<compile_context>
chip_gen: v5e
topology: v5e:2x2
jax: 0.10.0
libtpu: 0.0.40
codegen_flags: <defaults>
</compile_context>

<pallas_src>
import jax
import jax.numpy as jnp
from jax.experimental import pallas as pl
from jax.experimental.pallas import tpu as pltpu

# ---------------- small, module-consistent config ----------------
IMG_SIZE = 16
PATCH = 8
IN_CHANS = 3
EMBED_DIM = 32          # dim
DEPTH = 4               # num blocks
NUM_HEADS = 4
MLP_RATIO = 4
VOCAB = 100
MAX_TEXT_LEN = 8
FUSION_LAYER = 2
BATCH = 2

HEAD_DIM = EMBED_DIM // NUM_HEADS
NUM_PATCHES = (IMG_SIZE // PATCH) ** 2
IMG_SEQ = NUM_PATCHES + 1
IMG_PAD = ((IMG_SEQ + 7) // 8) * 8          # 5 -> 8 (sublane aligned)
PATCH_VEC = IN_CHANS * PATCH * PATCH        # 192
HIDDEN = EMBED_DIM * MLP_RATIO
LN_EPS = 1e-6                               # norm_layer = partial(nn.LayerNorm, eps=1e-6)
BERT_LN_EPS = 1e-12                         # BertEmbeddings LayerNorm eps
ATTN_SCALE = HEAD_DIM ** (-0.5)
NEG_INF = -1e30                             # finite "masked" bias (NaN-safe)

assert IMG_PAD == MAX_TEXT_LEN, "stream stacking assumes equal padded seq lengths"


# ---------------- in-kernel helpers (operate on values, not refs) ----------------
def _layer_norm(x, w, b, eps):
    x = x.astype(jnp.float32)
    mu = jnp.mean(x, axis=-1, keepdims=True)
    var = jnp.mean((x - mu) ** 2, axis=-1, keepdims=True)
    return (x - mu) * jax.lax.rsqrt(var + eps) * w + b


def _mlp(x2d, fc1w, fc1b, fc2w, fc2b):
    """fc1 -> exact GELU (erf) -> fc2 on flat [rows, C]."""
    h1 = jnp.dot(x2d, fc1w, preferred_element_type=jnp.float32) + fc1b
    h1 = 0.5 * h1 * (1.0 + jax.lax.erf(h1 * 0.7071067811865476))
    return jnp.dot(h1, fc2w, preferred_element_type=jnp.float32) + fc2b


def _attention(x, bias_full, aw):
    """Multi-head attention on a flat [rows, C] slab.

    `bias_full` is an additive [rows, rows] matrix: 0 inside a sequence for
    unmasked keys, NEG_INF for padded keys and for cross-sequence pairs, so a
    single 2D matmul per head is exactly equivalent to per-sequence attention.
    """
    ln1w, ln1b, qkvw, qkvb, projw, projb = aw[:6]
    R, C = x.shape
    Dh = C // NUM_HEADS

    xn = _layer_norm(x, ln1w, ln1b, LN_EPS)
    qkv = jnp.dot(xn, qkvw, preferred_element_type=jnp.float32) + qkvb   # [R, 3C]

    ctx_heads = []
    for h in range(NUM_HEADS):
        qh = qkv[:, h * Dh:(h + 1) * Dh]
        kh = qkv[:, C + h * Dh:C + (h + 1) * Dh]
        vh = qkv[:, 2 * C + h * Dh:2 * C + (h + 1) * Dh]
        # q @ k^T without an explicit transpose
        s = jax.lax.dot_general(qh, kh, (((1,), (1,)), ((), ())),
                                preferred_element_type=jnp.float32)
        s = s * ATTN_SCALE + bias_full                    # masked_fill via add
        s = s - jnp.max(s, axis=-1, keepdims=True)
        e = jnp.exp(s)
        p = e * pl.reciprocal(jnp.sum(e, axis=-1, keepdims=True), approx=True)
        ctx_heads.append(jnp.dot(p, vh, preferred_element_type=jnp.float32))
    ctx = jnp.concatenate(ctx_heads, axis=-1)             # [R, C] head-major (= torch)
    return jnp.dot(ctx, projw, preferred_element_type=jnp.float32) + projb


# ---------------- the single fused kernel ----------------
def vlmo_kernel(patches_ref, img_add_ref, txt_sum_ref,
                bert_lnw_ref, bert_lnb_ref,
                dual_mask_ref, co_mask_ref,
                patch_w_ref,
                ln1w_ref, ln1b_ref, qkvw_ref, qkvb_ref,
                projw_ref, projb_ref, ln2w_ref, ln2b_ref,
                v_fc1w_ref, v_fc1b_ref, v_fc2w_ref, v_fc2b_ref,
                l_fc1w_ref, l_fc1b_ref, l_fc2w_ref, l_fc2b_ref,
                vl_fc1w_ref, vl_fc1b_ref, vl_fc2w_ref, vl_fc2b_ref,
                normw_ref, normb_ref,
                o_ref):
    B = o_ref.shape[0]
    S = IMG_PAD                      # == MAX_TEXT_LEN
    half = B * S

    # ---- image embedding: patch conv == matmul; cls/pos/tte/bias folded into img_add ----
    img_x = jnp.dot(patches_ref[...], patch_w_ref[...],
                    preferred_element_type=jnp.float32) + img_add_ref[...]   # [B*S, C]

    # ---- text embedding: Bert LayerNorm (token-type idx 0 folded into its bias) ----
    txt_x = _layer_norm(txt_sum_ref[...], bert_lnw_ref[...], bert_lnb_ref[...],
                        BERT_LN_EPS)                                          # [B*S, C]

    # ---- pre-fusion: both streams stacked along rows, shared attention weights ----
    x = jnp.concatenate([img_x, txt_x], axis=0)            # [2B*S, C]  img rows first
    dual_mask = dual_mask_ref[...]
    for d in range(FUSION_LAYER):
        aw = (ln1w_ref[d], ln1b_ref[d], qkvw_ref[d], qkvb_ref[d],
              projw_ref[d], projb_ref[d])
        x = x + _attention(x, dual_mask, aw)               # residual 1 (drop_path=Id)
        xn2 = _layer_norm(x, ln2w_ref[d], ln2b_ref[d], LN_EPS)
        y_v = _mlp(xn2[:half], v_fc1w_ref[d], v_fc1b_ref[d],
                   v_fc2w_ref[d], v_fc2b_ref[d])           # route 'v' (img rows)
        y_l = _mlp(xn2[half:], l_fc1w_ref[d], l_fc1b_ref[d],
                   l_fc2w_ref[d], l_fc2b_ref[d])           # route 'l' (txt rows)
        x = x + jnp.concatenate([y_v, y_l], axis=0)        # residual 2

    # ---- reorder rows to the fused layout: per batch -> [txt tokens | img tokens] ----
    parts = []
    for b in range(B):
        parts.append(x[(B + b) * S:(B + b + 1) * S])       # txt rows of batch b
        parts.append(x[b * S:(b + 1) * S])                 # img rows of batch b
    co = jnp.concatenate(parts, axis=0)                    # [B*2S, C]

    # ---- fusion blocks (route 'vl') ----
    co_mask = co_mask_ref[...]
    for j in range(DEPTH - FUSION_LAYER):
        d = FUSION_LAYER + j
        aw = (ln1w_ref[d], ln1b_ref[d], qkvw_ref[d], qkvb_ref[d],
              projw_ref[d], projb_ref[d])
        co = co + _attention(co, co_mask, aw)
        xn2 = _layer_norm(co, ln2w_ref[d], ln2b_ref[d], LN_EPS)
        co = co + _mlp(xn2, vl_fc1w_ref[j], vl_fc1b_ref[j],
                       vl_fc2w_ref[j], vl_fc2b_ref[j])

    # ---- final LayerNorm on the CLS row only (LN is rowwise => equivalent) ----
    cls = jnp.concatenate([co[b * 2 * S: b * 2 * S + 1] for b in range(B)], axis=0)
    o_ref[...] = _layer_norm(cls, normw_ref[...], normb_ref[...],
                             LN_EPS).astype(o_ref.dtype)


# ---------------- deterministic parameters (kernel-ready layout) ----------------
def init_params(key):
    keys = jax.random.split(key, 64)
    it = iter(keys)

    def nrm(shape, std=0.02):
        return jax.random.normal(next(it), shape, jnp.float32) * std

    # raw (PyTorch-layout) parameters
    patch_w = nrm((EMBED_DIM, IN_CHANS, PATCH, PATCH))      # conv weight OIHW
    patch_b = jnp.zeros((EMBED_DIM,), jnp.float32)
    pos_embed = nrm((1, IMG_SEQ, EMBED_DIM))
    img_cls = nrm((1, 1, EMBED_DIM))
    tte = nrm((2, EMBED_DIM))                               # token_type_embeddings
    word_emb = nrm((VOCAB, EMBED_DIM))                      # BertEmbeddings
    bert_pos = nrm((MAX_TEXT_LEN, EMBED_DIM))
    bert_tok = nrm((2, EMBED_DIM))
    bert_ln_w = jnp.ones((EMBED_DIM,), jnp.float32)
    bert_ln_b = jnp.zeros((EMBED_DIM,), jnp.float32)
    norm_w = jnp.ones((EMBED_DIM,), jnp.float32)
    norm_b = jnp.zeros((EMBED_DIM,), jnp.float32)
    # TODO(synk): img_mask_token / bool_masked_pos branch not exercised (None in forward).

    qkv_w, proj_w = [], []
    mlp_raw = {'v': [], 'l': [], 'vl': []}
    for _ in range(DEPTH):
        qkv_w.append(nrm((3 * EMBED_DIM, EMBED_DIM)))
        proj_w.append(nrm((EMBED_DIM, EMBED_DIM)))
        for r in ('v', 'l', 'vl'):
            mlp_raw[r].append((nrm((HIDDEN, EMBED_DIM)), nrm((EMBED_DIM, HIDDEN))))

    # ---- fold cls / pos / token-type / conv-bias into a single additive tensor ----
    img_add = jnp.zeros((IMG_PAD, EMBED_DIM), jnp.float32)
    img_add = img_add.at[0].set(img_cls[0, 0] + pos_embed[0, 0] + tte[1])
    img_add = img_add.at[1:IMG_SEQ].set(pos_embed[0, 1:] + tte[1] + patch_b)

    def mlp_stack(route, lo, hi):
        fc1w = jnp.stack([mlp_raw[route][i][0].T for i in range(lo, hi)])   # [n, C, H]
        fc1b = jnp.zeros((hi - lo, 1, HIDDEN), jnp.float32)
        fc2w = jnp.stack([mlp_raw[route][i][1].T for i in range(lo, hi)])   # [n, H, C]
        fc2b = jnp.zeros((hi - lo, 1, EMBED_DIM), jnp.float32)
        return (fc1w, fc1b, fc2w, fc2b)

    p = {
        'patch_w_t': patch_w.reshape(EMBED_DIM, -1).T,       # [Cin*P*P, C], (c,kh,kw) order
        'img_add': img_add,                                  # [IMG_PAD, C]
        'word_emb': word_emb,
        'bert_pos_emb': bert_pos,
        'bert_tok0': bert_tok[0],
        'bert_ln_w': bert_ln_w.reshape(1, -1),
        'bert_ln_b_tte': (bert_ln_b + tte[0]).reshape(1, -1),  # fold token_type idx 0
        'norm_w': norm_w.reshape(1, -1),
        'norm_b': norm_b.reshape(1, -1),
        # stacked per-block attention params (pre-transposed for x @ W)
        'ln1_w': jnp.ones((DEPTH, 1, EMBED_DIM), jnp.float32),
        'ln1_b': jnp.zeros((DEPTH, 1, EMBED_DIM), jnp.float32),
        'qkv_w_t': jnp.stack([w.T for w in qkv_w]),          # [D, C, 3C]
        # qkv bias = cat(q_bias, zeros, v_bias); all zero-initialized here
        'qkv_b': jnp.zeros((DEPTH, 1, 3 * EMBED_DIM), jnp.float32),
        'proj_w_t': jnp.stack([w.T for w in proj_w]),        # [D, C, C]
        'proj_b': jnp.zeros((DEPTH, 1, EMBED_DIM), jnp.float32),
        'ln2_w': jnp.ones((DEPTH, 1, EMBED_DIM), jnp.float32),
        'ln2_b': jnp.zeros((DEPTH, 1, EMBED_DIM), jnp.float32),
        # route-specific MLP stacks (only the slices actually used)
        'mlp_v': mlp_stack('v', 0, FUSION_LAYER),
        'mlp_l': mlp_stack('l', 0, FUSION_LAYER),
        'mlp_vl': mlp_stack('vl', FUSION_LAYER, DEPTH),
    }
    return p


# ---------------- wrapper-side mask construction ----------------
def _block_diag_bias(seq_bias):
    """seq_bias: [num_seqs, S] additive per-key bias (0 or NEG_INF).

    Returns [num_seqs*S, num_seqs*S] additive score bias: per-key bias inside
    each sequence's diagonal block, NEG_INF everywhere off-block (so flat 2D
    attention over all rows is exactly per-sequence attention).
    """
    n, S = seq_bias.shape
    same = jnp.eye(n, dtype=bool)[:, None, :, None]                 # [n,1,n,1]
    full = jnp.where(same, seq_bias[None, None, :, :], NEG_INF)     # [n,1,n,S]
    full = jnp.broadcast_to(full, (n, S, n, S))
    return full.reshape(n * S, n * S)


# ---------------- forward (one pallas_call; only gathers/reshapes in XLA glue) ----------------
def vlmo_forward(params, img, txt, img_attn_masks, txt_attn_masks):
    B = img.shape[0]
    gh = gw = IMG_SIZE // PATCH
    S = IMG_PAD
    L = txt.shape[1]
    assert L == S

    # patch extraction (reshape/transpose only) + pad to [cls | patches | pad] rows
    patches = img.reshape(B, IN_CHANS, gh, PATCH, gw, PATCH)
    patches = patches.transpose(0, 2, 4, 1, 3, 5).reshape(B, NUM_PATCHES, PATCH_VEC)
    patches_pad = jnp.pad(patches, ((0, 0), (1, IMG_PAD - 1 - NUM_PATCHES), (0, 0)))
    patches_flat = patches_pad.reshape(B * S, PATCH_VEC)

    # img additive tensor tiled over batch (trace-time constant fold / fused by XLA)
    img_add_flat = jnp.tile(params['img_add'], (B, 1))               # [B*S, C]

    # text embedding gathers (word + position + token-type-0), LN happens in-kernel
    txt_sum = (params['word_emb'][txt]
               + params['bert_pos_emb'][:L][None]
               + params['bert_tok0'][None, None]).reshape(B * L, EMBED_DIM)

    # masks -> additive per-key biases (padded image positions masked out)
    img_mask = jnp.pad(img_attn_masks.astype(jnp.float32),
                       ((0, 0), (0, IMG_PAD - img_attn_masks.shape[1])))
    txt_mask = txt_attn_masks.astype(jnp.float32)
    img_bias = (1.0 - img_mask) * NEG_INF                    # [B, S]
    txt_bias = (1.0 - txt_mask) * NEG_INF                    # [B, L]

    # block-diagonal score-bias matrices for the flat 2D attention
    dual_mask = _block_diag_bias(jnp.concatenate([img_bias, txt_bias], axis=0))  # [2B*S, 2B*S]
    co_mask = _block_diag_bias(jnp.concatenate([txt_bias, img_bias], axis=1))    # [B*2S, B*2S]

    args = (patches_flat, img_add_flat, txt_sum,
            params['bert_ln_w'], params['bert_ln_b_tte'],
            dual_mask, co_mask,
            params['patch_w_t'],
            params['ln1_w'], params['ln1_b'], params['qkv_w_t'], params['qkv_b'],
            params['proj_w_t'], params['proj_b'], params['ln2_w'], params['ln2_b'],
            *params['mlp_v'], *params['mlp_l'], *params['mlp_vl'],
            params['norm_w'], params['norm_b'])

    vmem = pl.BlockSpec(memory_space=pltpu.MemorySpace.VMEM)
    return pl.pallas_call(
        vlmo_kernel,
        out_shape=jax.ShapeDtypeStruct((B, EMBED_DIM), jnp.float32),
        in_specs=[vmem] * len(args),
        out_specs=vmem,
    )(*args)


if __name__ == "__main__":
    key = jax.random.PRNGKey(0)
    kp, ki, kt = jax.random.split(key, 3)
    params = init_params(kp)

    img = jax.random.normal(ki, (BATCH, IN_CHANS, IMG_SIZE, IMG_SIZE), jnp.float32)
    txt = jax.random.randint(kt, (BATCH, MAX_TEXT_LEN), 0, VOCAB, jnp.int32)
    img_attn_masks = jnp.ones((BATCH, IMG_SEQ), jnp.int32)
    txt_attn_masks = jnp.array(
        [[1] * MAX_TEXT_LEN,
         [1] * (MAX_TEXT_LEN - 2) + [0, 0]], dtype=jnp.int32)

    out = jax.jit(vlmo_forward)(params, img, txt, img_attn_masks, txt_attn_masks)
    out = jax.block_until_ready(out)
    assert out.shape == (BATCH, EMBED_DIM) and bool(jnp.all(jnp.isfinite(out)))
    print("KERNEL_OK")
</pallas_src>

<mosaic_0001>
module attributes {stable_mosaic.version = 11 : i64} {
  func.func @vlmo_kernel(%arg0: memref<16x192xf32, #tpu.memory_space<vmem>>, %arg1: memref<16x32xf32, #tpu.memory_space<vmem>>, %arg2: memref<16x32xf32, #tpu.memory_space<vmem>>, %arg3: memref<1x32xf32, #tpu.memory_space<vmem>>, %arg4: memref<1x32xf32, #tpu.memory_space<vmem>>, %arg5: memref<32x32xf32, #tpu.memory_space<vmem>>, %arg6: memref<32x32xf32, #tpu.memory_space<vmem>>, %arg7: memref<192x32xf32, #tpu.memory_space<vmem>>, %arg8: memref<4x1x32xf32, #tpu.memory_space<vmem>>, %arg9: memref<4x1x32xf32, #tpu.memory_space<vmem>>, %arg10: memref<4x32x96xf32, #tpu.memory_space<vmem>>, %arg11: memref<4x1x96xf32, #tpu.memory_space<vmem>>, %arg12: memref<4x32x32xf32, #tpu.memory_space<vmem>>, %arg13: memref<4x1x32xf32, #tpu.memory_space<vmem>>, %arg14: memref<4x1x32xf32, #tpu.memory_space<vmem>>, %arg15: memref<4x1x32xf32, #tpu.memory_space<vmem>>, %arg16: memref<2x32x128xf32, #tpu.memory_space<vmem>>, %arg17: memref<2x1x128xf32, #tpu.memory_space<vmem>>, %arg18: memref<2x128x32xf32, #tpu.memory_space<vmem>>, %arg19: memref<2x1x32xf32, #tpu.memory_space<vmem>>, %arg20: memref<2x32x128xf32, #tpu.memory_space<vmem>>, %arg21: memref<2x1x128xf32, #tpu.memory_space<vmem>>, %arg22: memref<2x128x32xf32, #tpu.memory_space<vmem>>, %arg23: memref<2x1x32xf32, #tpu.memory_space<vmem>>, %arg24: memref<2x32x128xf32, #tpu.memory_space<vmem>>, %arg25: memref<2x1x128xf32, #tpu.memory_space<vmem>>, %arg26: memref<2x128x32xf32, #tpu.memory_space<vmem>>, %arg27: memref<2x1x32xf32, #tpu.memory_space<vmem>>, %arg28: memref<1x32xf32, #tpu.memory_space<vmem>>, %arg29: memref<1x32xf32, #tpu.memory_space<vmem>>, %arg30: memref<2x32xf32, #tpu.memory_space<vmem>>) attributes {dimension_semantics = [], scalar_prefetch = 0 : i64, scratch_operands = 0 : i64, tpu.core_type = #tpu.core_type<tc>} {
    %c0 = arith.constant 0 : index
    %c0_0 = arith.constant 0 : index
    %0 = vector.load %arg0[%c0, %c0_0] : memref<16x192xf32, #tpu.memory_space<vmem>>, vector<16x192xf32>
    %c0_1 = arith.constant 0 : index
    %c0_2 = arith.constant 0 : index
    %1 = vector.load %arg7[%c0_1, %c0_2] : memref<192x32xf32, #tpu.memory_space<vmem>>, vector<192x32xf32>
    %cst = arith.constant dense<0.000000e+00> : vector<16x32xf32>
    %2 = tpu.matmul %0, %1, %cst {dimension_numbers = #tpu.dot_dimension_numbers<[1], [0], [0], [1], [0, 0, 1, 1], [], []>} : vector<16x192xf32>, vector<192x32xf32>, vector<16x32xf32> -> vector<16x32xf32>
    %c0_3 = arith.constant 0 : index
    %c0_4 = arith.constant 0 : index
    %3 = vector.load %arg1[%c0_3, %c0_4] : memref<16x32xf32, #tpu.memory_space<vmem>>, vector<16x32xf32>
    %4 = arith.addf %2, %3 : vector<16x32xf32>
    %c0_5 = arith.constant 0 : index
    %c0_6 = arith.constant 0 : index
    %5 = vector.load %arg2[%c0_5, %c0_6] : memref<16x32xf32, #tpu.memory_space<vmem>>, vector<16x32xf32>
    %c0_7 = arith.constant 0 : index
    %c0_8 = arith.constant 0 : index
    %6 = vector.load %arg3[%c0_7, %c0_8] : memref<1x32xf32, #tpu.memory_space<vmem>>, vector<1x32xf32>
    %c0_9 = arith.constant 0 : index
    %c0_10 = arith.constant 0 : index
    %7 = vector.load %arg4[%c0_9, %c0_10] : memref<1x32xf32, #tpu.memory_space<vmem>>, vector<1x32xf32>
    %cst_11 = arith.constant dense<0.000000e+00> : vector<16xf32>
    %8 = vector.multi_reduction <add>, %5, %cst_11 [1] : vector<16x32xf32> to vector<16xf32>
    %9 = vector.shape_cast %8 : vector<16xf32> to vector<16x1xf32>
    %cst_12 = arith.constant 3.200000e+01 : f32
    %10 = vector.broadcast %cst_12 : f32 to vector<16x1xf32>
    %11 = arith.divf %9, %10 : vector<16x1xf32>
    %12 = vector.broadcast %11 : vector<16x1xf32> to vector<16x32xf32>
    %13 = arith.subf %5, %12 : vector<16x32xf32>
    %14 = arith.mulf %13, %13 : vector<16x32xf32>
    %cst_13 = arith.constant dense<0.000000e+00> : vector<16xf32>
    %15 = vector.multi_reduction <add>, %14, %cst_13 [1] : vector<16x32xf32> to vector<16xf32>
    %16 = vector.shape_cast %15 : vector<16xf32> to vector<16x1xf32>
    %cst_14 = arith.constant 3.200000e+01 : f32
    %17 = vector.broadcast %cst_14 : f32 to vector<16x1xf32>
    %18 = arith.divf %16, %17 : vector<16x1xf32>
    %19 = vector.broadcast %11 : vector<16x1xf32> to vector<16x32xf32>
    %20 = arith.subf %5, %19 : vector<16x32xf32>
    %cst_15 = arith.constant 9.99999996E-13 : f32
    %21 = vector.broadcast %cst_15 : f32 to vector<16x1xf32>
    %22 = arith.addf %18, %21 : vector<16x1xf32>
    %23 = math.rsqrt %22 : vector<16x1xf32>
    %24 = vector.broadcast %23 : vector<16x1xf32> to vector<16x32xf32>
    %25 = arith.mulf %20, %24 : vector<16x32xf32>
    %26 = vector.broadcast %6 : vector<1x32xf32> to vector<16x32xf32>
    %27 = arith.mulf %25, %26 : vector<16x32xf32>
    %28 = vector.broadcast %7 : vector<1x32xf32> to vector<16x32xf32>
    %29 = arith.addf %27, %28 : vector<16x32xf32>
    %30 = tpu.concatenate %4, %29 in 0 : vector<16x32xf32>, vector<16x32xf32> -> vector<32x32xf32>
    %c0_16 = arith.constant 0 : index
    %c0_17 = arith.constant 0 : index
    %31 = vector.load %arg5[%c0_16, %c0_17] : memref<32x32xf32, #tpu.memory_space<vmem>>, vector<32x32xf32>
    %c0_18 = arith.constant 0 : index
    %c0_19 = arith.constant 0 : index
    %c0_20 = arith.constant 0 : index
    %32 = vector.load %arg8[%c0_18, %c0_19, %c0_20] : memref<4x1x32xf32, #tpu.memory_space<vmem>>, vector<1x1x32xf32>
    %33 = vector.shape_cast %32 : vector<1x1x32xf32> to vector<1x32xf32>
    %c0_21 = arith.constant 0 : index
    %c0_22 = arith.constant 0 : index
    %c0_23 = arith.constant 0 : index
    %34 = vector.load %arg9[%c0_21, %c0_22, %c0_23] : memref<4x1x32xf32, #tpu.memory_space<vmem>>, vector<1x1x32xf32>
    %35 = vector.shape_cast %34 : vector<1x1x32xf32> to vector<1x32xf32>
    %c0_24 = arith.constant 0 : index
    %c0_25 = arith.constant 0 : index
    %c0_26 = arith.constant 0 : index
    %36 = vector.load %arg10[%c0_24, %c0_25, %c0_26] : memref<4x32x96xf32, #tpu.memory_space<vmem>>, vector<1x32x96xf32>
    %37 = vector.shape_cast %36 : vector<1x32x96xf32> to vector<32x96xf32>
    %c0_27 = arith.constant 0 : index
    %c0_28 = arith.constant 0 : index
    %c0_29 = arith.constant 0 : index
    %38 = vector.load %arg11[%c0_27, %c0_28, %c0_29] : memref<4x1x96xf32, #tpu.memory_space<vmem>>, vector<1x1x96xf32>
    %39 = vector.shape_cast %38 : vector<1x1x96xf32> to vector<1x96xf32>
    %c0_30 = arith.constant 0 : index
    %c0_31 = arith.constant 0 : index
    %c0_32 = arith.constant 0 : index
    %40 = vector.load %arg12[%c0_30, %c0_31, %c0_32] : memref<4x32x32xf32, #tpu.memory_space<vmem>>, vector<1x32x32xf32>
    %41 = vector.shape_cast %40 : vector<1x32x32xf32> to vector<32x32xf32>
    %c0_33 = arith.constant 0 : index
    %c0_34 = arith.constant 0 : index
    %c0_35 = arith.constant 0 : index
    %42 = vector.load %arg13[%c0_33, %c0_34, %c0_35] : memref<4x1x32xf32, #tpu.memory_space<vmem>>, vector<1x1x32xf32>
    %43 = vector.shape_cast %42 : vector<1x1x32xf32> to vector<1x32xf32>
    %cst_36 = arith.constant dense<0.000000e+00> : vector<32xf32>
    %44 = vector.multi_reduction <add>, %30, %cst_36 [1] : vector<32x32xf32> to vector<32xf32>
    %45 = vector.shape_cast %44 : vector<32xf32> to vector<32x1xf32>
    %cst_37 = arith.constant 3.200000e+01 : f32
    %46 = vector.broadcast %cst_37 : f32 to vector<32x1xf32>
    %47 = arith.divf %45, %46 : vector<32x1xf32>
    %48 = vector.broadcast %47 : vector<32x1xf32> to vector<32x32xf32>
    %49 = arith.subf %30, %48 : vector<32x32xf32>
    %50 = arith.mulf %49, %49 : vector<32x32xf32>
    %cst_38 = arith.constant dense<0.000000e+00> : vector<32xf32>
    %51 = vector.multi_reduction <add>, %50, %cst_38 [1] : vector<32x32xf32> to vector<32xf32>
    %52 = vector.shape_cast %51 : vector<32xf32> to vector<32x1xf32>
    %cst_39 = arith.constant 3.200000e+01 : f32
    %53 = vector.broadcast %cst_39 : f32 to vector<32x1xf32>
    %54 = arith.divf %52, %53 : vector<32x1xf32>
    %55 = vector.broadcast %47 : vector<32x1xf32> to vector<32x32xf32>
    %56 = arith.subf %30, %55 : vector<32x32xf32>
    %cst_40 = arith.constant 9.99999997E-7 : f32
    %57 = vector.broadcast %cst_40 : f32 to vector<32x1xf32>
    %58 = arith.addf %54, %57 : vector<32x1xf32>
    %59 = math.rsqrt %58 : vector<32x1xf32>
    %60 = vector.broadcast %59 : vector<32x1xf32> to vector<32x32xf32>
    %61 = arith.mulf %56, %60 : vector<32x32xf32>
    %62 = vector.broadcast %33 : vector<1x32xf32> to vector<32x32xf32>
    %63 = arith.mulf %61, %62 : vector<32x32xf32>
    %64 = vector.broadcast %35 : vector<1x32xf32> to vector<32x32xf32>
    %65 = arith.addf %63, %64 : vector<32x32xf32>
    %cst_41 = arith.constant dense<0.000000e+00> : vector<32x96xf32>
    %66 = tpu.matmul %65, %37, %cst_41 {dimension_numbers = #tpu.dot_dimension_numbers<[1], [0], [0], [1], [0, 0, 1, 1], [], []>} : vector<32x32xf32>, vector<32x96xf32>, vector<32x96xf32> -> vector<32x96xf32>
    %67 = vector.broadcast %39 : vector<1x96xf32> to vector<32x96xf32>
    %68 = arith.addf %66, %67 : vector<32x96xf32>
    %69 = vector.extract_strided_slice %68 {offsets = [0, 0], sizes = [32, 8], strides = [1, 1]} : vector<32x96xf32> to vector<32x8xf32>
    %70 = vector.extract_strided_slice %68 {offsets = [0, 32], sizes = [32, 8], strides = [1, 1]} : vector<32x96xf32> to vector<32x8xf32>
    %71 = vector.extract_strided_slice %68 {offsets = [0, 64], sizes = [32, 8], strides = [1, 1]} : vector<32x96xf32> to vector<32x8xf32>
    %cst_42 = arith.constant dense<0.000000e+00> : vector<32x32xf32>
    %72 = tpu.matmul %69, %70, %cst_42 {dimension_numbers = #tpu.dot_dimension_numbers<[1], [1], [0], [0], [0, 0, 1, 0], [], []>} : vector<32x8xf32>, vector<32x8xf32>, vector<32x32xf32> -> vector<32x32xf32>
    %cst_43 = arith.constant 0.353553385 : f32
    %73 = vector.broadcast %cst_43 : f32 to vector<32x32xf32>
    %74 = arith.mulf %72, %73 : vector<32x32xf32>
    %75 = arith.addf %74, %31 : vector<32x32xf32>
    %cst_44 = arith.constant dense<0xFF800000> : vector<32xf32>
    %76 = vector.multi_reduction <maximumf>, %75, %cst_44 [1] : vector<32x32xf32> to vector<32xf32>
    %77 = vector.shape_cast %76 : vector<32xf32> to vector<32x1xf32>
    %78 = vector.broadcast %77 : vector<32x1xf32> to vector<32x32xf32>
    %79 = arith.subf %75, %78 : vector<32x32xf32>
    %80 = math.exp %79 : vector<32x32xf32>
    %cst_45 = arith.constant dense<0.000000e+00> : vector<32xf32>
    %81 = vector.multi_reduction <add>, %80, %cst_45 [1] : vector<32x32xf32> to vector<32xf32>
    %82 = vector.shape_cast %81 : vector<32xf32> to vector<32x1xf32>
    %83 = tpu.reciprocal %82 {approx = true} : vector<32x1xf32> -> vector<32x1xf32>
    %84 = vector.broadcast %83 : vector<32x1xf32> to vector<32x32xf32>
    %85 = arith.mulf %80, %84 : vector<32x32xf32>
    %cst_46 = arith.constant dense<0.000000e+00> : vector<32x8xf32>
    %86 = tpu.matmul %85, %71, %cst_46 {dimension_numbers = #tpu.dot_dimension_numbers<[1], [0], [0], [1], [0, 0, 1, 1], [], []>} : vector<32x32xf32>, vector<32x8xf32>, vector<32x8xf32> -> vector<32x8xf32>
    %87 = vector.extract_strided_slice %68 {offsets = [0, 8], sizes = [32, 8], strides = [1, 1]} : vector<32x96xf32> to vector<32x8xf32>
    %88 = vector.extract_strided_slice %68 {offsets = [0, 40], sizes = [32, 8], strides = [1, 1]} : vector<32x96xf32> to vector<32x8xf32>
    %89 = vector.extract_strided_slice %68 {offsets = [0, 72], sizes = [32, 8], strides = [1, 1]} : vector<32x96xf32> to vector<32x8xf32>
    %cst_47 = arith.constant dense<0.000000e+00> : vector<32x32xf32>
    %90 = tpu.matmul %87, %88, %cst_47 {dimension_numbers = #tpu.dot_dimension_numbers<[1], [1], [0], [0], [0, 0, 1, 0], [], []>} : vector<32x8xf32>, vector<32x8xf32>, vector<32x32xf32> -> vector<32x32xf32>
    %cst_48 = arith.constant 0.353553385 : f32
    %91 = vector.broadcast %cst_48 : f32 to vector<32x32xf32>
    %92 = arith.mulf %90, %91 : vector<32x32xf32>
    %93 = arith.addf %92, %31 : vector<32x32xf32>
    %cst_49 = arith.constant dense<0xFF800000> : vector<32xf32>
    %94 = vector.multi_reduction <maximumf>, %93, %cst_49 [1] : vector<32x32xf32> to vector<32xf32>
    %95 = vector.shape_cast %94 : vector<32xf32> to vector<32x1xf32>
    %96 = vector.broadcast %95 : vector<32x1xf32> to vector<32x32xf32>
    %97 = arith.subf %93, %96 : vector<32x32xf32>
    %98 = math.exp %97 : vector<32x32xf32>
    %cst_50 = arith.constant dense<0.000000e+00> : vector<32xf32>
    %99 = vector.multi_reduction <add>, %98, %cst_50 [1] : vector<32x32xf32> to vector<32xf32>
    %100 = vector.shape_cast %99 : vector<32xf32> to vector<32x1xf32>
    %101 = tpu.reciprocal %100 {approx = true} : vector<32x1xf32> -> vector<32x1xf32>
    %102 = vector.broadcast %101 : vector<32x1xf32> to vector<32x32xf32>
    %103 = arith.mulf %98, %102 : vector<32x32xf32>
    %cst_51 = arith.constant dense<0.000000e+00> : vector<32x8xf32>
    %104 = tpu.matmul %103, %89, %cst_51 {dimension_numbers = #tpu.dot_dimension_numbers<[1], [0], [0], [1], [0, 0, 1, 1], [], []>} : vector<32x32xf32>, vector<32x8xf32>, vector<32x8xf32> -> vector<32x8xf32>
    %105 = vector.extract_strided_slice %68 {offsets = [0, 16], sizes = [32, 8], strides = [1, 1]} : vector<32x96xf32> to vector<32x8xf32>
    %106 = vector.extract_strided_slice %68 {offsets = [0, 48], sizes = [32, 8], strides = [1, 1]} : vector<32x96xf32> to vector<32x8xf32>
    %107 = vector.extract_strided_slice %68 {offsets = [0, 80], sizes = [32, 8], strides = [1, 1]} : vector<32x96xf32> to vector<32x8xf32>
    %cst_52 = arith.constant dense<0.000000e+00> : vector<32x32xf32>
    %108 = tpu.matmul %105, %106, %cst_52 {dimension_numbers = #tpu.dot_dimension_numbers<[1], [1], [0], [0], [0, 0, 1, 0], [], []>} : vector<32x8xf32>, vector<32x8xf32>, vector<32x32xf32> -> vector<32x32xf32>
    %cst_53 = arith.constant 0.353553385 : f32
    %109 = vector.broadcast %cst_53 : f32 to vector<32x32xf32>
    %110 = arith.mulf %108, %109 : vector<32x32xf32>
    %111 = arith.addf %110, %31 : vector<32x32xf32>
    %cst_54 = arith.constant dense<0xFF800000> : vector<32xf32>
    %112 = vector.multi_reduction <maximumf>, %111, %cst_54 [1] : vector<32x32xf32> to vector<32xf32>
    %113 = vector.shape_cast %112 : vector<32xf32> to vector<32x1xf32>
    %114 = vector.broadcast %113 : vector<32x1xf32> to vector<32x32xf32>
    %115 = arith.subf %111, %114 : vector<32x32xf32>
    %116 = math.exp %115 : vector<32x32xf32>
    %cst_55 = arith.constant dense<0.000000e+00> : vector<32xf32>
    %117 = vector.multi_reduction <add>, %116, %cst_55 [1] : vector<32x32xf32> to vector<32xf32>
    %118 = vector.shape_cast %117 : vector<32xf32> to vector<32x1xf32>
    %119 = tpu.reciprocal %118 {approx = true} : vector<32x1xf32> -> vector<32x1xf32>
    %120 = vector.broadcast %119 : vector<32x1xf32> to vector<32x32xf32>
    %121 = arith.mulf %116, %120 : vector<32x32xf32>
    %cst_56 = arith.constant dense<0.000000e+00> : vector<32x8xf32>
    %122 = tpu.matmul %121, %107, %cst_56 {dimension_numbers = #tpu.dot_dimension_numbers<[1], [0], [0], [1], [0, 0, 1, 1], [], []>} : vector<32x32xf32>, vector<32x8xf32>, vector<32x8xf32> -> vector<32x8xf32>
    %123 = vector.extract_strided_slice %68 {offsets = [0, 24], sizes = [32, 8], strides = [1, 1]} : vector<32x96xf32> to vector<32x8xf32>
    %124 = vector.extract_strided_slice %68 {offsets = [0, 56], sizes = [32, 8], strides = [1, 1]} : vector<32x96xf32> to vector<32x8xf32>
    %125 = vector.extract_strided_slice %68 {offsets = [0, 88], sizes = [32, 8], strides = [1, 1]} : vector<32x96xf32> to vector<32x8xf32>
    %cst_57 = arith.constant dense<0.000000e+00> : vector<32x32xf32>
    %126 = tpu.matmul %123, %124, %cst_57 {dimension_numbers = #tpu.dot_dimension_numbers<[1], [1], [0], [0], [0, 0, 1, 0], [], []>} : vector<32x8xf32>, vector<32x8xf32>, vector<32x32xf32> -> vector<32x32xf32>
    %cst_58 = arith.constant 0.353553385 : f32
    %127 = vector.broadcast %cst_58 : f32 to vector<32x32xf32>
    %128 = arith.mulf %126, %127 : vector<32x32xf32>
    %129 = arith.addf %128, %31 : vector<32x32xf32>
    %cst_59 = arith.constant dense<0xFF800000> : vector<32xf32>
    %130 = vector.multi_reduction <maximumf>, %129, %cst_59 [1] : vector<32x32xf32> to vector<32xf32>
    %131 = vector.shape_cast %130 : vector<32xf32> to vector<32x1xf32>
    %132 = vector.broadcast %131 : vector<32x1xf32> to vector<32x32xf32>
    %133 = arith.subf %129, %132 : vector<32x32xf32>
    %134 = math.exp %133 : vector<32x32xf32>
    %cst_60 = arith.constant dense<0.000000e+00> : vector<32xf32>
    %135 = vector.multi_reduction <add>, %134, %cst_60 [1] : vector<32x32xf32> to vector<32xf32>
    %136 = vector.shape_cast %135 : vector<32xf32> to vector<32x1xf32>
    %137 = tpu.reciprocal %136 {approx = true} : vector<32x1xf32> -> vector<32x1xf32>
    %138 = vector.broadcast %137 : vector<32x1xf32> to vector<32x32xf32>
    %139 = arith.mulf %134, %138 : vector<32x32xf32>
    %cst_61 = arith.constant dense<0.000000e+00> : vector<32x8xf32>
    %140 = tpu.matmul %139, %125, %cst_61 {dimension_numbers = #tpu.dot_dimension_numbers<[1], [0], [0], [1], [0, 0, 1, 1], [], []>} : vector<32x32xf32>, vector<32x8xf32>, vector<32x8xf32> -> vector<32x8xf32>
    %141 = tpu.concatenate %86, %104, %122, %140 in 1 : vector<32x8xf32>, vector<32x8xf32>, vector<32x8xf32>, vector<32x8xf32> -> vector<32x32xf32>
    %cst_62 = arith.constant dense<0.000000e+00> : vector<32x32xf32>
    %142 = tpu.matmul %141, %41, %cst_62 {dimension_numbers = #tpu.dot_dimension_numbers<[1], [0], [0], [1], [0, 0, 1, 1], [], []>} : vector<32x32xf32>, vector<32x32xf32>, vector<32x32xf32> -> vector<32x32xf32>
    %143 = vector.broadcast %43 : vector<1x32xf32> to vector<32x32xf32>
    %144 = arith.addf %142, %143 : vector<32x32xf32>
    %145 = arith.addf %30, %144 : vector<32x32xf32>
    %c0_63 = arith.constant 0 : index
    %c0_64 = arith.constant 0 : index
    %c0_65 = arith.constant 0 : index
    %146 = vector.load %arg14[%c0_63, %c0_64, %c0_65] : memref<4x1x32xf32, #tpu.memory_space<vmem>>, vector<1x1x32xf32>
    %147 = vector.shape_cast %146 : vector<1x1x32xf32> to vector<1x32xf32>
    %c0_66 = arith.constant 0 : index
    %c0_67 = arith.constant 0 : index
    %c0_68 = arith.constant 0 : index
    %148 = vector.load %arg15[%c0_66, %c0_67, %c0_68] : memref<4x1x32xf32, #tpu.memory_space<vmem>>, vector<1x1x32xf32>
    %149 = vector.shape_cast %148 : vector<1x1x32xf32> to vector<1x32xf32>
    %cst_69 = arith.constant dense<0.000000e+00> : vector<32xf32>
    %150 = vector.multi_reduction <add>, %145, %cst_69 [1] : vector<32x32xf32> to vector<32xf32>
    %151 = vector.shape_cast %150 : vector<32xf32> to vector<32x1xf32>
    %cst_70 = arith.constant 3.200000e+01 : f32
    %152 = vector.broadcast %cst_70 : f32 to vector<32x1xf32>
    %153 = arith.divf %151, %152 : vector<32x1xf32>
    %154 = vector.broadcast %153 : vector<32x1xf32> to vector<32x32xf32>
    %155 = arith.subf %145, %154 : vector<32x32xf32>
    %156 = arith.mulf %155, %155 : vector<32x32xf32>
    %cst_71 = arith.constant dense<0.000000e+00> : vector<32xf32>
    %157 = vector.multi_reduction <add>, %156, %cst_71 [1] : vector<32x32xf32> to vector<32xf32>
    %158 = vector.shape_cast %157 : vector<32xf32> to vector<32x1xf32>
    %cst_72 = arith.constant 3.200000e+01 : f32
    %159 = vector.broadcast %cst_72 : f32 to vector<32x1xf32>
    %160 = arith.divf %158, %159 : vector<32x1xf32>
    %161 = vector.broadcast %153 : vector<32x1xf32> to vector<32x32xf32>
    %162 = arith.subf %145, %161 : vector<32x32xf32>
    %cst_73 = arith.constant 9.99999997E-7 : f32
    %163 = vector.broadcast %cst_73 : f32 to vector<32x1xf32>
    %164 = arith.addf %160, %163 : vector<32x1xf32>
    %165 = math.rsqrt %164 : vector<32x1xf32>
    %166 = vector.broadcast %165 : vector<32x1xf32> to vector<32x32xf32>
    %167 = arith.mulf %162, %166 : vector<32x32xf32>
    %168 = vector.broadcast %147 : vector<1x32xf32> to vector<32x32xf32>
    %169 = arith.mulf %167, %168 : vector<32x32xf32>
    %170 = vector.broadcast %149 : vector<1x32xf32> to vector<32x32xf32>
    %171 = arith.addf %169, %170 : vector<32x32xf32>
    %172 = vector.extract_strided_slice %171 {offsets = [0, 0], sizes = [16, 32], strides = [1, 1]} : vector<32x32xf32> to vector<16x32xf32>
    %c0_74 = arith.constant 0 : index
    %c0_75 = arith.constant 0 : index
    %c0_76 = arith.constant 0 : index
    %173 = vector.load %arg16[%c0_74, %c0_75, %c0_76] : memref<2x32x128xf32, #tpu.memory_space<vmem>>, vector<1x32x128xf32>
    %174 = vector.shape_cast %173 : vector<1x32x128xf32> to vector<32x128xf32>
    %c0_77 = arith.constant 0 : index
    %c0_78 = arith.constant 0 : index
    %c0_79 = arith.constant 0 : index
    %175 = vector.load %arg17[%c0_77, %c0_78, %c0_79] : memref<2x1x128xf32, #tpu.memory_space<vmem>>, vector<1x1x128xf32>
    %176 = vector.shape_cast %175 : vector<1x1x128xf32> to vector<1x128xf32>
    %c0_80 = arith.constant 0 : index
    %c0_81 = arith.constant 0 : index
    %c0_82 = arith.constant 0 : index
    %177 = vector.load %arg18[%c0_80, %c0_81, %c0_82] : memref<2x128x32xf32, #tpu.memory_space<vmem>>, vector<1x128x32xf32>
    %178 = vector.shape_cast %177 : vector<1x128x32xf32> to vector<128x32xf32>
    %c0_83 = arith.constant 0 : index
    %c0_84 = arith.constant 0 : index
    %c0_85 = arith.constant 0 : index
    %179 = vector.load %arg19[%c0_83, %c0_84, %c0_85] : memref<2x1x32xf32, #tpu.memory_space<vmem>>, vector<1x1x32xf32>
    %180 = vector.shape_cast %179 : vector<1x1x32xf32> to vector<1x32xf32>
    %cst_86 = arith.constant dense<0.000000e+00> : vector<16x128xf32>
    %181 = tpu.matmul %172, %174, %cst_86 {dimension_numbers = #tpu.dot_dimension_numbers<[1], [0], [0], [1], [0, 0, 1, 1], [], []>} : vector<16x32xf32>, vector<32x128xf32>, vector<16x128xf32> -> vector<16x128xf32>
    %182 = vector.broadcast %176 : vector<1x128xf32> to vector<16x128xf32>
    %183 = arith.addf %181, %182 : vector<16x128xf32>
    %cst_87 = arith.constant 5.000000e-01 : f32
    %184 = vector.broadcast %cst_87 : f32 to vector<16x128xf32>
    %185 = arith.mulf %184, %183 : vector<16x128xf32>
    %cst_88 = arith.constant 0.707106769 : f32
    %186 = vector.broadcast %cst_88 : f32 to vector<16x128xf32>
    %187 = arith.mulf %183, %186 : vector<16x128xf32>
    %188 = math.erf %187 : vector<16x128xf32>
    %cst_89 = arith.constant 1.000000e+00 : f32
    %189 = vector.broadcast %cst_89 : f32 to vector<16x128xf32>
    %190 = arith.addf %189, %188 : vector<16x128xf32>
    %191 = arith.mulf %185, %190 : vector<16x128xf32>
    %cst_90 = arith.constant dense<0.000000e+00> : vector<16x32xf32>
    %192 = tpu.matmul %191, %178, %cst_90 {dimension_numbers = #tpu.dot_dimension_numbers<[1], [0], [0], [1], [0, 0, 1, 1], [], []>} : vector<16x128xf32>, vector<128x32xf32>, vector<16x32xf32> -> vector<16x32xf32>
    %193 = vector.broadcast %180 : vector<1x32xf32> to vector<16x32xf32>
    %194 = arith.addf %192, %193 : vector<16x32xf32>
    %195 = vector.extract_strided_slice %171 {offsets = [16, 0], sizes = [16, 32], strides = [1, 1]} : vector<32x32xf32> to vector<16x32xf32>
    %c0_91 = arith.constant 0 : index
    %c0_92 = arith.constant 0 : index
    %c0_93 = arith.constant 0 : index
    %196 = vector.load %arg20[%c0_91, %c0_92, %c0_93] : memref<2x32x128xf32, #tpu.memory_space<vmem>>, vector<1x32x128xf32>
    %197 = vector.shape_cast %196 : vector<1x32x128xf32> to vector<32x128xf32>
    %c0_94 = arith.constant 0 : index
    %c0_95 = arith.constant 0 : index
    %c0_96 = arith.constant 0 : index
    %198 = vector.load %arg21[%c0_94, %c0_95, %c0_96] : memref<2x1x128xf32, #tpu.memory_space<vmem>>, vector<1x1x128xf32>
    %199 = vector.shape_cast %198 : vector<1x1x128xf32> to vector<1x128xf32>
    %c0_97 = arith.constant 0 : index
    %c0_98 = arith.constant 0 : index
    %c0_99 = arith.constant 0 : index
    %200 = vector.load %arg22[%c0_97, %c0_98, %c0_99] : memref<2x128x32xf32, #tpu.memory_space<vmem>>, vector<1x128x32xf32>
    %201 = vector.shape_cast %200 : vector<1x128x32xf32> to vector<128x32xf32>
    %c0_100 = arith.constant 0 : index
    %c0_101 = arith.constant 0 : index
    %c0_102 = arith.constant 0 : index
    %202 = vector.load %arg23[%c0_100, %c0_101, %c0_102] : memref<2x1x32xf32, #tpu.memory_space<vmem>>, vector<1x1x32xf32>
    %203 = vector.shape_cast %202 : vector<1x1x32xf32> to vector<1x32xf32>
    %cst_103 = arith.constant dense<0.000000e+00> : vector<16x128xf32>
    %204 = tpu.matmul %195, %197, %cst_103 {dimension_numbers = #tpu.dot_dimension_numbers<[1], [0], [0], [1], [0, 0, 1, 1], [], []>} : vector<16x32xf32>, vector<32x128xf32>, vector<16x128xf32> -> vector<16x128xf32>
    %205 = vector.broadcast %199 : vector<1x128xf32> to vector<16x128xf32>
    %206 = arith.addf %204, %205 : vector<16x128xf32>
    %cst_104 = arith.constant 5.000000e-01 : f32
    %207 = vector.broadcast %cst_104 : f32 to vector<16x128xf32>
    %208 = arith.mulf %207, %206 : vector<16x128xf32>
    %cst_105 = arith.constant 0.707106769 : f32
    %209 = vector.broadcast %cst_105 : f32 to vector<16x128xf32>
    %210 = arith.mulf %206, %209 : vector<16x128xf32>
    %211 = math.erf %210 : vector<16x128xf32>
    %cst_106 = arith.constant 1.000000e+00 : f32
    %212 = vector.broadcast %cst_106 : f32 to vector<16x128xf32>
    %213 = arith.addf %212, %211 : vector<16x128xf32>
    %214 = arith.mulf %208, %213 : vector<16x128xf32>
    %cst_107 = arith.constant dense<0.000000e+00> : vector<16x32xf32>
    %215 = tpu.matmul %214, %201, %cst_107 {dimension_numbers = #tpu.dot_dimension_numbers<[1], [0], [0], [1], [0, 0, 1, 1], [], []>} : vector<16x128xf32>, vector<128x32xf32>, vector<16x32xf32> -> vector<16x32xf32>
    %216 = vector.broadcast %203 : vector<1x32xf32> to vector<16x32xf32>
    %217 = arith.addf %215, %216 : vector<16x32xf32>
    %218 = tpu.concatenate %194, %217 in 0 : vector<16x32xf32>, vector<16x32xf32> -> vector<32x32xf32>
    %219 = arith.addf %145, %218 : vector<32x32xf32>
    %c1 = arith.constant 1 : index
    %c0_108 = arith.constant 0 : index
    %c0_109 = arith.constant 0 : index
    %220 = vector.load %arg8[%c1, %c0_108, %c0_109] : memref<4x1x32xf32, #tpu.memory_space<vmem>>, vector<1x1x32xf32>
    %221 = vector.shape_cast %220 : vector<1x1x32xf32> to vector<1x32xf32>
    %c1_110 = arith.constant 1 : index
    %c0_111 = arith.constant 0 : index
    %c0_112 = arith.constant 0 : index
    %222 = vector.load %arg9[%c1_110, %c0_111, %c0_112] : memref<4x1x32xf32, #tpu.memory_space<vmem>>, vector<1x1x32xf32>
    %223 = vector.shape_cast %222 : vector<1x1x32xf32> to vector<1x32xf32>
    %c1_113 = arith.constant 1 : index
    %c0_114 = arith.constant 0 : index
    %c0_115 = arith.constant 0 : index
    %224 = vector.load %arg10[%c1_113, %c0_114, %c0_115] : memref<4x32x96xf32, #tpu.memory_space<vmem>>, vector<1x32x96xf32>
    %225 = vector.shape_cast %224 : vector<1x32x96xf32> to vector<32x96xf32>
    %c1_116 = arith.constant 1 : index
    %c0_117 = arith.constant 0 : index
    %c0_118 = arith.constant 0 : index
    %226 = vector.load %arg11[%c1_116, %c0_117, %c0_118] : memref<4x1x96xf32, #tpu.memory_space<vmem>>, vector<1x1x96xf32>
    %227 = vector.shape_cast %226 : vector<1x1x96xf32> to vector<1x96xf32>
    %c1_119 = arith.constant 1 : index
    %c0_120 = arith.constant 0 : index
    %c0_121 = arith.constant 0 : index
    %228 = vector.load %arg12[%c1_119, %c0_120, %c0_121] : memref<4x32x32xf32, #tpu.memory_space<vmem>>, vector<1x32x32xf32>
    %229 = vector.shape_cast %228 : vector<1x32x32xf32> to vector<32x32xf32>
    %c1_122 = arith.constant 1 : index
    %c0_123 = arith.constant 0 : index
    %c0_124 = arith.constant 0 : index
    %230 = vector.load %arg13[%c1_122, %c0_123, %c0_124] : memref<4x1x32xf32, #tpu.memory_space<vmem>>, vector<1x1x32xf32>
    %231 = vector.shape_cast %230 : vector<1x1x32xf32> to vector<1x32xf32>
    %cst_125 = arith.constant dense<0.000000e+00> : vector<32xf32>
    %232 = vector.multi_reduction <add>, %219, %cst_125 [1] : vector<32x32xf32> to vector<32xf32>
    %233 = vector.shape_cast %232 : vector<32xf32> to vector<32x1xf32>
    %cst_126 = arith.constant 3.200000e+01 : f32
    %234 = vector.broadcast %cst_126 : f32 to vector<32x1xf32>
    %235 = arith.divf %233, %234 : vector<32x1xf32>
    %236 = vector.broadcast %235 : vector<32x1xf32> to vector<32x32xf32>
    %237 = arith.subf %219, %236 : vector<32x32xf32>
    %238 = arith.mulf %237, %237 : vector<32x32xf32>
    %cst_127 = arith.constant dense<0.000000e+00> : vector<32xf32>
    %239 = vector.multi_reduction <add>, %238, %cst_127 [1] : vector<32x32xf32> to vector<32xf32>
    %240 = vector.shape_cast %239 : vector<32xf32> to vector<32x1xf32>
    %cst_128 = arith.constant 3.200000e+01 : f32
    %241 = vector.broadcast %cst_128 : f32 to vector<32x1xf32>
    %242 = arith.divf %240, %241 : vector<32x1xf32>
    %243 = vector.broadcast %235 : vector<32x1xf32> to vector<32x32xf32>
    %244 = arith.subf %219, %243 : vector<32x32xf32>
    %cst_129 = arith.constant 9.99999997E-7 : f32
    %245 = vector.broadcast %cst_129 : f32 to vector<32x1xf32>
    %246 = arith.addf %242, %245 : vector<32x1xf32>
    %247 = math.rsqrt %246 : vector<32x1xf32>
    %248 = vector.broadcast %247 : vector<32x1xf32> to vector<32x32xf32>
    %249 = arith.mulf %244, %248 : vector<32x32xf32>
    %250 = vector.broadcast %221 : vector<1x32xf32> to vector<32x32xf32>
    %251 = arith.mulf %249, %250 : vector<32x32xf32>
    %252 = vector.broadcast %223 : vector<1x32xf32> to vector<32x32xf32>
    %253 = arith.addf %251, %252 : vector<32x32xf32>
    %cst_130 = arith.constant dense<0.000000e+00> : vector<32x96xf32>
    %254 = tpu.matmul %253, %225, %cst_130 {dimension_numbers = #tpu.dot_dimension_numbers<[1], [0], [0], [1], [0, 0, 1, 1], [], []>} : vector<32x32xf32>, vector<32x96xf32>, vector<32x96xf32> -> vector<32x96xf32>
    %255 = vector.broadcast %227 : vector<1x96xf32> to vector<32x96xf32>
    %256 = arith.addf %254, %255 : vector<32x96xf32>
    %257 = vector.extract_strided_slice %256 {offsets = [0, 0], sizes = [32, 8], strides = [1, 1]} : vector<32x96xf32> to vector<32x8xf32>
    %258 = vector.extract_strided_slice %256 {offsets = [0, 32], sizes = [32, 8], strides = [1, 1]} : vector<32x96xf32> to vector<32x8xf32>
    %259 = vector.extract_strided_slice %256 {offsets = [0, 64], sizes = [32, 8], strides = [1, 1]} : vector<32x96xf32> to vector<32x8xf32>
    %cst_131 = arith.constant dense<0.000000e+00> : vector<32x32xf32>
    %260 = tpu.matmul %257, %258, %cst_131 {dimension_numbers = #tpu.dot_dimension_numbers<[1], [1], [0], [0], [0, 0, 1, 0], [], []>} : vector<32x8xf32>, vector<32x8xf32>, vector<32x32xf32> -> vector<32x32xf32>
    %cst_132 = arith.constant 0.353553385 : f32
    %261 = vector.broadcast %cst_132 : f32 to vector<32x32xf32>
    %262 = arith.mulf %260, %261 : vector<32x32xf32>
    %263 = arith.addf %262, %31 : vector<32x32xf32>
    %cst_133 = arith.constant dense<0xFF800000> : vector<32xf32>
    %264 = vector.multi_reduction <maximumf>, %263, %cst_133 [1] : vector<32x32xf32> to vector<32xf32>
    %265 = vector.shape_cast %264 : vector<32xf32> to vector<32x1xf32>
    %266 = vector.broadcast %265 : vector<32x1xf32> to vector<32x32xf32>
    %267 = arith.subf %263, %266 : vector<32x32xf32>
    %268 = math.exp %267 : vector<32x32xf32>
    %cst_134 = arith.constant dense<0.000000e+00> : vector<32xf32>
    %269 = vector.multi_reduction <add>, %268, %cst_134 [1] : vector<32x32xf32> to vector<32xf32>
    %270 = vector.shape_cast %269 : vector<32xf32> to vector<32x1xf32>
    %271 = tpu.reciprocal %270 {approx = true} : vector<32x1xf32> -> vector<32x1xf32>
    %272 = vector.broadcast %271 : vector<32x1xf32> to vector<32x32xf32>
    %273 = arith.mulf %268, %272 : vector<32x32xf32>
    %cst_135 = arith.constant dense<0.000000e+00> : vector<32x8xf32>
    %274 = tpu.matmul %273, %259, %cst_135 {dimension_numbers = #tpu.dot_dimension_numbers<[1], [0], [0], [1], [0, 0, 1, 1], [], []>} : vector<32x32xf32>, vector<32x8xf32>, vector<32x8xf32> -> vector<32x8xf32>
    %275 = vector.extract_strided_slice %256 {offsets = [0, 8], sizes = [32, 8], strides = [1, 1]} : vector<32x96xf32> to vector<32x8xf32>
    %276 = vector.extract_strided_slice %256 {offsets = [0, 40], sizes = [32, 8], strides = [1, 1]} : vector<32x96xf32> to vector<32x8xf32>
    %277 = vector.extract_strided_slice %256 {offsets = [0, 72], sizes = [32, 8], strides = [1, 1]} : vector<32x96xf32> to vector<32x8xf32>
    %cst_136 = arith.constant dense<0.000000e+00> : vector<32x32xf32>
    %278 = tpu.matmul %275, %276, %cst_136 {dimension_numbers = #tpu.dot_dimension_numbers<[1], [1], [0], [0], [0, 0, 1, 0], [], []>} : vector<32x8xf32>, vector<32x8xf32>, vector<32x32xf32> -> vector<32x32xf32>
    %cst_137 = arith.constant 0.353553385 : f32
    %279 = vector.broadcast %cst_137 : f32 to vector<32x32xf32>
    %280 = arith.mulf %278, %279 : vector<32x32xf32>
    %281 = arith.addf %280, %31 : vector<32x32xf32>
    %cst_138 = arith.constant dense<0xFF800000> : vector<32xf32>
    %282 = vector.multi_reduction <maximumf>, %281, %cst_138 [1] : vector<32x32xf32> to vector<32xf32>
    %283 = vector.shape_cast %282 : vector<32xf32> to vector<32x1xf32>
    %284 = vector.broadcast %283 : vector<32x1xf32> to vector<32x32xf32>
    %285 = arith.subf %281, %284 : vector<32x32xf32>
    %286 = math.exp %285 : vector<32x32xf32>
    %cst_139 = arith.constant dense<0.000000e+00> : vector<32xf32>
    %287 = vector.multi_reduction <add>, %286, %cst_139 [1] : vector<32x32xf32> to vector<32xf32>
    %288 = vector.shape_cast %287 : vector<32xf32> to vector<32x1xf32>
    %289 = tpu.reciprocal %288 {approx = true} : vector<32x1xf32> -> vector<32x1xf32>
    %290 = vector.broadcast %289 : vector<32x1xf32> to vector<32x32xf32>
    %291 = arith.mulf %286, %290 : vector<32x32xf32>
    %cst_140 = arith.constant dense<0.000000e+00> : vector<32x8xf32>
    %292 = tpu.matmul %291, %277, %cst_140 {dimension_numbers = #tpu.dot_dimension_numbers<[1], [0], [0], [1], [0, 0, 1, 1], [], []>} : vector<32x32xf32>, vector<32x8xf32>, vector<32x8xf32> -> vector<32x8xf32>
    %293 = vector.extract_strided_slice %256 {offsets = [0, 16], sizes = [32, 8], strides = [1, 1]} : vector<32x96xf32> to vector<32x8xf32>
    %294 = vector.extract_strided_slice %256 {offsets = [0, 48], sizes = [32, 8], strides = [1, 1]} : vector<32x96xf32> to vector<32x8xf32>
    %295 = vector.extract_strided_slice %256 {offsets = [0, 80], sizes = [32, 8], strides = [1, 1]} : vector<32x96xf32> to vector<32x8xf32>
    %cst_141 = arith.constant dense<0.000000e+00> : vector<32x32xf32>
    %296 = tpu.matmul %293, %294, %cst_141 {dimension_numbers = #tpu.dot_dimension_numbers<[1], [1], [0], [0], [0, 0, 1, 0], [], []>} : vector<32x8xf32>, vector<32x8xf32>, vector<32x32xf32> -> vector<32x32xf32>
    %cst_142 = arith.constant 0.353553385 : f32
    %297 = vector.broadcast %cst_142 : f32 to vector<32x32xf32>
    %298 = arith.mulf %296, %297 : vector<32x32xf32>
    %299 = arith.addf %298, %31 : vector<32x32xf32>
    %cst_143 = arith.constant dense<0xFF800000> : vector<32xf32>
    %300 = vector.multi_reduction <maximumf>, %299, %cst_143 [1] : vector<32x32xf32> to vector<32xf32>
    %301 = vector.shape_cast %300 : vector<32xf32> to vector<32x1xf32>
    %302 = vector.broadcast %301 : vector<32x1xf32> to vector<32x32xf32>
    %303 = arith.subf %299, %302 : vector<32x32xf32>
    %304 = math.exp %303 : vector<32x32xf32>
    %cst_144 = arith.constant dense<0.000000e+00> : vector<32xf32>
    %305 = vector.multi_reduction <add>, %304, %cst_144 [1] : vector<32x32xf32> to vector<32xf32>
    %306 = vector.shape_cast %305 : vector<32xf32> to vector<32x1xf32>
    %307 = tpu.reciprocal %306 {approx = true} : vector<32x1xf32> -> vector<32x1xf32>
    %308 = vector.broadcast %307 : vector<32x1xf32> to vector<32x32xf32>
    %309 = arith.mulf %304, %308 : vector<32x32xf32>
    %cst_145 = arith.constant dense<0.000000e+00> : vector<32x8xf32>
    %310 = tpu.matmul %309, %295, %cst_145 {dimension_numbers = #tpu.dot_dimension_numbers<[1], [0], [0], [1], [0, 0, 1, 1], [], []>} : vector<32x32xf32>, vector<32x8xf32>, vector<32x8xf32> -> vector<32x8xf32>
    %311 = vector.extract_strided_slice %256 {offsets = [0, 24], sizes = [32, 8], strides = [1, 1]} : vector<32x96xf32> to vector<32x8xf32>
    %312 = vector.extract_strided_slice %256 {offsets = [0, 56], sizes = [32, 8], strides = [1, 1]} : vector<32x96xf32> to vector<32x8xf32>
    %313 = vector.extract_strided_slice %256 {offsets = [0, 88], sizes = [32, 8], strides = [1, 1]} : vector<32x96xf32> to vector<32x8xf32>
    %cst_146 = arith.constant dense<0.000000e+00> : vector<32x32xf32>
    %314 = tpu.matmul %311, %312, %cst_146 {dimension_numbers = #tpu.dot_dimension_numbers<[1], [1], [0], [0], [0, 0, 1, 0], [], []>} : vector<32x8xf32>, vector<32x8xf32>, vector<32x32xf32> -> vector<32x32xf32>
    %cst_147 = arith.constant 0.353553385 : f32
    %315 = vector.broadcast %cst_147 : f32 to vector<32x32xf32>
    %316 = arith.mulf %314, %315 : vector<32x32xf32>
    %317 = arith.addf %316, %31 : vector<32x32xf32>
    %cst_148 = arith.constant dense<0xFF800000> : vector<32xf32>
    %318 = vector.multi_reduction <maximumf>, %317, %cst_148 [1] : vector<32x32xf32> to vector<32xf32>
    %319 = vector.shape_cast %318 : vector<32xf32> to vector<32x1xf32>
    %320 = vector.broadcast %319 : vector<32x1xf32> to vector<32x32xf32>
    %321 = arith.subf %317, %320 : vector<32x32xf32>
    %322 = math.exp %321 : vector<32x32xf32>
    %cst_149 = arith.constant dense<0.000000e+00> : vector<32xf32>
    %323 = vector.multi_reduction <add>, %322, %cst_149 [1] : vector<32x32xf32> to vector<32xf32>
    %324 = vector.shape_cast %323 : vector<32xf32> to vector<32x1xf32>
    %325 = tpu.reciprocal %324 {approx = true} : vector<32x1xf32> -> vector<32x1xf32>
    %326 = vector.broadcast %325 : vector<32x1xf32> to vector<32x32xf32>
    %327 = arith.mulf %322, %326 : vector<32x32xf32>
    %cst_150 = arith.constant dense<0.000000e+00> : vector<32x8xf32>
    %328 = tpu.matmul %327, %313, %cst_150 {dimension_numbers = #tpu.dot_dimension_numbers<[1], [0], [0], [1], [0, 0, 1, 1], [], []>} : vector<32x32xf32>, vector<32x8xf32>, vector<32x8xf32> -> vector<32x8xf32>
    %329 = tpu.concatenate %274, %292, %310, %328 in 1 : vector<32x8xf32>, vector<32x8xf32>, vector<32x8xf32>, vector<32x8xf32> -> vector<32x32xf32>
    %cst_151 = arith.constant dense<0.000000e+00> : vector<32x32xf32>
    %330 = tpu.matmul %329, %229, %cst_151 {dimension_numbers = #tpu.dot_dimension_numbers<[1], [0], [0], [1], [0, 0, 1, 1], [], []>} : vector<32x32xf32>, vector<32x32xf32>, vector<32x32xf32> -> vector<32x32xf32>
    %331 = vector.broadcast %231 : vector<1x32xf32> to vector<32x32xf32>
    %332 = arith.addf %330, %331 : vector<32x32xf32>
    %333 = arith.addf %219, %332 : vector<32x32xf32>
    %c1_152 = arith.constant 1 : index
    %c0_153 = arith.constant 0 : index
    %c0_154 = arith.constant 0 : index
    %334 = vector.load %arg14[%c1_152, %c0_153, %c0_154] : memref<4x1x32xf32, #tpu.memory_space<vmem>>, vector<1x1x32xf32>
    %335 = vector.shape_cast %334 : vector<1x1x32xf32> to vector<1x32xf32>
    %c1_155 = arith.constant 1 : index
    %c0_156 = arith.constant 0 : index
    %c0_157 = arith.constant 0 : index
    %336 = vector.load %arg15[%c1_155, %c0_156, %c0_157] : memref<4x1x32xf32, #tpu.memory_space<vmem>>, vector<1x1x32xf32>
    %337 = vector.shape_cast %336 : vector<1x1x32xf32> to vector<1x32xf32>
    %cst_158 = arith.constant dense<0.000000e+00> : vector<32xf32>
    %338 = vector.multi_reduction <add>, %333, %cst_158 [1] : vector<32x32xf32> to vector<32xf32>
    %339 = vector.shape_cast %338 : vector<32xf32> to vector<32x1xf32>
    %cst_159 = arith.constant 3.200000e+01 : f32
    %340 = vector.broadcast %cst_159 : f32 to vector<32x1xf32>
    %341 = arith.divf %339, %340 : vector<32x1xf32>
    %342 = vector.broadcast %341 : vector<32x1xf32> to vector<32x32xf32>
    %343 = arith.subf %333, %342 : vector<32x32xf32>
    %344 = arith.mulf %343, %343 : vector<32x32xf32>
    %cst_160 = arith.constant dense<0.000000e+00> : vector<32xf32>
    %345 = vector.multi_reduction <add>, %344, %cst_160 [1] : vector<32x32xf32> to vector<32xf32>
    %346 = vector.shape_cast %345 : vector<32xf32> to vector<32x1xf32>
    %cst_161 = arith.constant 3.200000e+01 : f32
    %347 = vector.broadcast %cst_161 : f32 to vector<32x1xf32>
    %348 = arith.divf %346, %347 : vector<32x1xf32>
    %349 = vector.broadcast %341 : vector<32x1xf32> to vector<32x32xf32>
    %350 = arith.subf %333, %349 : vector<32x32xf32>
    %cst_162 = arith.constant 9.99999997E-7 : f32
    %351 = vector.broadcast %cst_162 : f32 to vector<32x1xf32>
    %352 = arith.addf %348, %351 : vector<32x1xf32>
    %353 = math.rsqrt %352 : vector<32x1xf32>
    %354 = vector.broadcast %353 : vector<32x1xf32> to vector<32x32xf32>
    %355 = arith.mulf %350, %354 : vector<32x32xf32>
    %356 = vector.broadcast %335 : vector<1x32xf32> to vector<32x32xf32>
    %357 = arith.mulf %355, %356 : vector<32x32xf32>
    %358 = vector.broadcast %337 : vector<1x32xf32> to vector<32x32xf32>
    %359 = arith.addf %357, %358 : vector<32x32xf32>
    %360 = vector.extract_strided_slice %359 {offsets = [0, 0], sizes = [16, 32], strides = [1, 1]} : vector<32x32xf32> to vector<16x32xf32>
    %c1_163 = arith.constant 1 : index
    %c0_164 = arith.constant 0 : index
    %c0_165 = arith.constant 0 : index
    %361 = vector.load %arg16[%c1_163, %c0_164, %c0_165] : memref<2x32x128xf32, #tpu.memory_space<vmem>>, vector<1x32x128xf32>
    %362 = vector.shape_cast %361 : vector<1x32x128xf32> to vector<32x128xf32>
    %c1_166 = arith.constant 1 : index
    %c0_167 = arith.constant 0 : index
    %c0_168 = arith.constant 0 : index
    %363 = vector.load %arg17[%c1_166, %c0_167, %c0_168] : memref<2x1x128xf32, #tpu.memory_space<vmem>>, vector<1x1x128xf32>
    %364 = vector.shape_cast %363 : vector<1x1x128xf32> to vector<1x128xf32>
    %c1_169 = arith.constant 1 : index
    %c0_170 = arith.constant 0 : index
    %c0_171 = arith.constant 0 : index
    %365 = vector.load %arg18[%c1_169, %c0_170, %c0_171] : memref<2x128x32xf32, #tpu.memory_space<vmem>>, vector<1x128x32xf32>
    %366 = vector.shape_cast %365 : vector<1x128x32xf32> to vector<128x32xf32>
    %c1_172 = arith.constant 1 : index
    %c0_173 = arith.constant 0 : index
    %c0_174 = arith.constant 0 : index
    %367 = vector.load %arg19[%c1_172, %c0_173, %c0_174] : memref<2x1x32xf32, #tpu.memory_space<vmem>>, vector<1x1x32xf32>
    %368 = vector.shape_cast %367 : vector<1x1x32xf32> to vector<1x32xf32>
    %cst_175 = arith.constant dense<0.000000e+00> : vector<16x128xf32>
    %369 = tpu.matmul %360, %362, %cst_175 {dimension_numbers = #tpu.dot_dimension_numbers<[1], [0], [0], [1], [0, 0, 1, 1], [], []>} : vector<16x32xf32>, vector<32x128xf32>, vector<16x128xf32> -> vector<16x128xf32>
    %370 = vector.broadcast %364 : vector<1x128xf32> to vector<16x128xf32>
    %371 = arith.addf %369, %370 : vector<16x128xf32>
    %cst_176 = arith.constant 5.000000e-01 : f32
    %372 = vector.broadcast %cst_176 : f32 to vector<16x128xf32>
    %373 = arith.mulf %372, %371 : vector<16x128xf32>
    %cst_177 = arith.constant 0.707106769 : f32
    %374 = vector.broadcast %cst_177 : f32 to vector<16x128xf32>
    %375 = arith.mulf %371, %374 : vector<16x128xf32>
    %376 = math.erf %375 : vector<16x128xf32>
    %cst_178 = arith.constant 1.000000e+00 : f32
    %377 = vector.broadcast %cst_178 : f32 to vector<16x128xf32>
    %378 = arith.addf %377, %376 : vector<16x128xf32>
    %379 = arith.mulf %373, %378 : vector<16x128xf32>
    %cst_179 = arith.constant dense<0.000000e+00> : vector<16x32xf32>
    %380 = tpu.matmul %379, %366, %cst_179 {dimension_numbers = #tpu.dot_dimension_numbers<[1], [0], [0], [1], [0, 0, 1, 1], [], []>} : vector<16x128xf32>, vector<128x32xf32>, vector<16x32xf32> -> vector<16x32xf32>
    %381 = vector.broadcast %368 : vector<1x32xf32> to vector<16x32xf32>
    %382 = arith.addf %380, %381 : vector<16x32xf32>
    %383 = vector.extract_strided_slice %359 {offsets = [16, 0], sizes = [16, 32], strides = [1, 1]} : vector<32x32xf32> to vector<16x32xf32>
    %c1_180 = arith.constant 1 : index
    %c0_181 = arith.constant 0 : index
    %c0_182 = arith.constant 0 : index
    %384 = vector.load %arg20[%c1_180, %c0_181, %c0_182] : memref<2x32x128xf32, #tpu.memory_space<vmem>>, vector<1x32x128xf32>
    %385 = vector.shape_cast %384 : vector<1x32x128xf32> to vector<32x128xf32>
    %c1_183 = arith.constant 1 : index
    %c0_184 = arith.constant 0 : index
    %c0_185 = arith.constant 0 : index
    %386 = vector.load %arg21[%c1_183, %c0_184, %c0_185] : memref<2x1x128xf32, #tpu.memory_space<vmem>>, vector<1x1x128xf32>
    %387 = vector.shape_cast %386 : vector<1x1x128xf32> to vector<1x128xf32>
    %c1_186 = arith.constant 1 : index
    %c0_187 = arith.constant 0 : index
    %c0_188 = arith.constant 0 : index
    %388 = vector.load %arg22[%c1_186, %c0_187, %c0_188] : memref<2x128x32xf32, #tpu.memory_space<vmem>>, vector<1x128x32xf32>
    %389 = vector.shape_cast %388 : vector<1x128x32xf32> to vector<128x32xf32>
    %c1_189 = arith.constant 1 : index
    %c0_190 = arith.constant 0 : index
    %c0_191 = arith.constant 0 : index
    %390 = vector.load %arg23[%c1_189, %c0_190, %c0_191] : memref<2x1x32xf32, #tpu.memory_space<vmem>>, vector<1x1x32xf32>
    %391 = vector.shape_cast %390 : vector<1x1x32xf32> to vector<1x32xf32>
    %cst_192 = arith.constant dense<0.000000e+00> : vector<16x128xf32>
    %392 = tpu.matmul %383, %385, %cst_192 {dimension_numbers = #tpu.dot_dimension_numbers<[1], [0], [0], [1], [0, 0, 1, 1], [], []>} : vector<16x32xf32>, vector<32x128xf32>, vector<16x128xf32> -> vector<16x128xf32>
    %393 = vector.broadcast %387 : vector<1x128xf32> to vector<16x128xf32>
    %394 = arith.addf %392, %393 : vector<16x128xf32>
    %cst_193 = arith.constant 5.000000e-01 : f32
    %395 = vector.broadcast %cst_193 : f32 to vector<16x128xf32>
    %396 = arith.mulf %395, %394 : vector<16x128xf32>
    %cst_194 = arith.constant 0.707106769 : f32
    %397 = vector.broadcast %cst_194 : f32 to vector<16x128xf32>
    %398 = arith.mulf %394, %397 : vector<16x128xf32>
    %399 = math.erf %398 : vector<16x128xf32>
    %cst_195 = arith.constant 1.000000e+00 : f32
    %400 = vector.broadcast %cst_195 : f32 to vector<16x128xf32>
    %401 = arith.addf %400, %399 : vector<16x128xf32>
    %402 = arith.mulf %396, %401 : vector<16x128xf32>
    %cst_196 = arith.constant dense<0.000000e+00> : vector<16x32xf32>
    %403 = tpu.matmul %402, %389, %cst_196 {dimension_numbers = #tpu.dot_dimension_numbers<[1], [0], [0], [1], [0, 0, 1, 1], [], []>} : vector<16x128xf32>, vector<128x32xf32>, vector<16x32xf32> -> vector<16x32xf32>
    %404 = vector.broadcast %391 : vector<1x32xf32> to vector<16x32xf32>
    %405 = arith.addf %403, %404 : vector<16x32xf32>
    %406 = tpu.concatenate %382, %405 in 0 : vector<16x32xf32>, vector<16x32xf32> -> vector<32x32xf32>
    %407 = arith.addf %333, %406 : vector<32x32xf32>
    %408 = vector.extract_strided_slice %407 {offsets = [16, 0], sizes = [8, 32], strides = [1, 1]} : vector<32x32xf32> to vector<8x32xf32>
    %409 = vector.extract_strided_slice %407 {offsets = [0, 0], sizes = [8, 32], strides = [1, 1]} : vector<32x32xf32> to vector<8x32xf32>
    %410 = vector.extract_strided_slice %407 {offsets = [24, 0], sizes = [8, 32], strides = [1, 1]} : vector<32x32xf32> to vector<8x32xf32>
    %411 = vector.extract_strided_slice %407 {offsets = [8, 0], sizes = [8, 32], strides = [1, 1]} : vector<32x32xf32> to vector<8x32xf32>
    %412 = tpu.concatenate %408, %409, %410, %411 in 0 : vector<8x32xf32>, vector<8x32xf32>, vector<8x32xf32>, vector<8x32xf32> -> vector<32x32xf32>
    %c0_197 = arith.constant 0 : index
    %c0_198 = arith.constant 0 : index
    %413 = vector.load %arg6[%c0_197, %c0_198] : memref<32x32xf32, #tpu.memory_space<vmem>>, vector<32x32xf32>
    %c2 = arith.constant 2 : index
    %c0_199 = arith.constant 0 : index
    %c0_200 = arith.constant 0 : index
    %414 = vector.load %arg8[%c2, %c0_199, %c0_200] : memref<4x1x32xf32, #tpu.memory_space<vmem>>, vector<1x1x32xf32>
    %415 = vector.shape_cast %414 : vector<1x1x32xf32> to vector<1x32xf32>
    %c2_201 = arith.constant 2 : index
    %c0_202 = arith.constant 0 : index
    %c0_203 = arith.constant 0 : index
    %416 = vector.load %arg9[%c2_201, %c0_202, %c0_203] : memref<4x1x32xf32, #tpu.memory_space<vmem>>, vector<1x1x32xf32>
    %417 = vector.shape_cast %416 : vector<1x1x32xf32> to vector<1x32xf32>
    %c2_204 = arith.constant 2 : index
    %c0_205 = arith.constant 0 : index
    %c0_206 = arith.constant 0 : index
    %418 = vector.load %arg10[%c2_204, %c0_205, %c0_206] : memref<4x32x96xf32, #tpu.memory_space<vmem>>, vector<1x32x96xf32>
    %419 = vector.shape_cast %418 : vector<1x32x96xf32> to vector<32x96xf32>
    %c2_207 = arith.constant 2 : index
    %c0_208 = arith.constant 0 : index
    %c0_209 = arith.constant 0 : index
    %420 = vector.load %arg11[%c2_207, %c0_208, %c0_209] : memref<4x1x96xf32, #tpu.memory_space<vmem>>, vector<1x1x96xf32>
    %421 = vector.shape_cast %420 : vector<1x1x96xf32> to vector<1x96xf32>
    %c2_210 = arith.constant 2 : index
    %c0_211 = arith.constant 0 : index
    %c0_212 = arith.constant 0 : index
    %422 = vector.load %arg12[%c2_210, %c0_211, %c0_212] : memref<4x32x32xf32, #tpu.memory_space<vmem>>, vector<1x32x32xf32>
    %423 = vector.shape_cast %422 : vector<1x32x32xf32> to vector<32x32xf32>
    %c2_213 = arith.constant 2 : index
    %c0_214 = arith.constant 0 : index
    %c0_215 = arith.constant 0 : index
    %424 = vector.load %arg13[%c2_213, %c0_214, %c0_215] : memref<4x1x32xf32, #tpu.memory_space<vmem>>, vector<1x1x32xf32>
    %425 = vector.shape_cast %424 : vector<1x1x32xf32> to vector<1x32xf32>
    %cst_216 = arith.constant dense<0.000000e+00> : vector<32xf32>
    %426 = vector.multi_reduction <add>, %412, %cst_216 [1] : vector<32x32xf32> to vector<32xf32>
    %427 = vector.shape_cast %426 : vector<32xf32> to vector<32x1xf32>
    %cst_217 = arith.constant 3.200000e+01 : f32
    %428 = vector.broadcast %cst_217 : f32 to vector<32x1xf32>
    %429 = arith.divf %427, %428 : vector<32x1xf32>
    %430 = vector.broadcast %429 : vector<32x1xf32> to vector<32x32xf32>
    %431 = arith.subf %412, %430 : vector<32x32xf32>
    %432 = arith.mulf %431, %431 : vector<32x32xf32>
    %cst_218 = arith.constant dense<0.000000e+00> : vector<32xf32>
    %433 = vector.multi_reduction <add>, %432, %cst_218 [1] : vector<32x32xf32> to vector<32xf32>
    %434 = vector.shape_cast %433 : vector<32xf32> to vector<32x1xf32>
    %cst_219 = arith.constant 3.200000e+01 : f32
    %435 = vector.broadcast %cst_219 : f32 to vector<32x1xf32>
    %436 = arith.divf %434, %435 : vector<32x1xf32>
    %437 = vector.broadcast %429 : vector<32x1xf32> to vector<32x32xf32>
    %438 = arith.subf %412, %437 : vector<32x32xf32>
    %cst_220 = arith.constant 9.99999997E-7 : f32
    %439 = vector.broadcast %cst_220 : f32 to vector<32x1xf32>
    %440 = arith.addf %436, %439 : vector<32x1xf32>
    %441 = math.rsqrt %440 : vector<32x1xf32>
    %442 = vector.broadcast %441 : vector<32x1xf32> to vector<32x32xf32>
    %443 = arith.mulf %438, %442 : vector<32x32xf32>
    %444 = vector.broadcast %415 : vector<1x32xf32> to vector<32x32xf32>
    %445 = arith.mulf %443, %444 : vector<32x32xf32>
    %446 = vector.broadcast %417 : vector<1x32xf32> to vector<32x32xf32>
    %447 = arith.addf %445, %446 : vector<32x32xf32>
    %cst_221 = arith.constant dense<0.000000e+00> : vector<32x96xf32>
    %448 = tpu.matmul %447, %419, %cst_221 {dimension_numbers = #tpu.dot_dimension_numbers<[1], [0], [0], [1], [0, 0, 1, 1], [], []>} : vector<32x32xf32>, vector<32x96xf32>, vector<32x96xf32> -> vector<32x96xf32>
    %449 = vector.broadcast %421 : vector<1x96xf32> to vector<32x96xf32>
    %450 = arith.addf %448, %449 : vector<32x96xf32>
    %451 = vector.extract_strided_slice %450 {offsets = [0, 0], sizes = [32, 8], strides = [1, 1]} : vector<32x96xf32> to vector<32x8xf32>
    %452 = vector.extract_strided_slice %450 {offsets = [0, 32], sizes = [32, 8], strides = [1, 1]} : vector<32x96xf32> to vector<32x8xf32>
    %453 = vector.extract_strided_slice %450 {offsets = [0, 64], sizes = [32, 8], strides = [1, 1]} : vector<32x96xf32> to vector<32x8xf32>
    %cst_222 = arith.constant dense<0.000000e+00> : vector<32x32xf32>
    %454 = tpu.matmul %451, %452, %cst_222 {dimension_numbers = #tpu.dot_dimension_numbers<[1], [1], [0], [0], [0, 0, 1, 0], [], []>} : vector<32x8xf32>, vector<32x8xf32>, vector<32x32xf32> -> vector<32x32xf32>
    %cst_223 = arith.constant 0.353553385 : f32
    %455 = vector.broadcast %cst_223 : f32 to vector<32x32xf32>
    %456 = arith.mulf %454, %455 : vector<32x32xf32>
    %457 = arith.addf %456, %413 : vector<32x32xf32>
    %cst_224 = arith.constant dense<0xFF800000> : vector<32xf32>
    %458 = vector.multi_reduction <maximumf>, %457, %cst_224 [1] : vector<32x32xf32> to vector<32xf32>
    %459 = vector.shape_cast %458 : vector<32xf32> to vector<32x1xf32>
    %460 = vector.broadcast %459 : vector<32x1xf32> to vector<32x32xf32>
    %461 = arith.subf %457, %460 : vector<32x32xf32>
    %462 = math.exp %461 : vector<32x32xf32>
    %cst_225 = arith.constant dense<0.000000e+00> : vector<32xf32>
    %463 = vector.multi_reduction <add>, %462, %cst_225 [1] : vector<32x32xf32> to vector<32xf32>
    %464 = vector.shape_cast %463 : vector<32xf32> to vector<32x1xf32>
    %465 = tpu.reciprocal %464 {approx = true} : vector<32x1xf32> -> vector<32x1xf32>
    %466 = vector.broadcast %465 : vector<32x1xf32> to vector<32x32xf32>
    %467 = arith.mulf %462, %466 : vector<32x32xf32>
    %cst_226 = arith.constant dense<0.000000e+00> : vector<32x8xf32>
    %468 = tpu.matmul %467, %453, %cst_226 {dimension_numbers = #tpu.dot_dimension_numbers<[1], [0], [0], [1], [0, 0, 1, 1], [], []>} : vector<32x32xf32>, vector<32x8xf32>, vector<32x8xf32> -> vector<32x8xf32>
    %469 = vector.extract_strided_slice %450 {offsets = [0, 8], sizes = [32, 8], strides = [1, 1]} : vector<32x96xf32> to vector<32x8xf32>
    %470 = vector.extract_strided_slice %450 {offsets = [0, 40], sizes = [32, 8], strides = [1, 1]} : vector<32x96xf32> to vector<32x8xf32>
    %471 = vector.extract_strided_slice %450 {offsets = [0, 72], sizes = [32, 8], strides = [1, 1]} : vector<32x96xf32> to vector<32x8xf32>
    %cst_227 = arith.constant dense<0.000000e+00> : vector<32x32xf32>
    %472 = tpu.matmul %469, %470, %cst_227 {dimension_numbers = #tpu.dot_dimension_numbers<[1], [1], [0], [0], [0, 0, 1, 0], [], []>} : vector<32x8xf32>, vector<32x8xf32>, vector<32x32xf32> -> vector<32x32xf32>
    %cst_228 = arith.constant 0.353553385 : f32
    %473 = vector.broadcast %cst_228 : f32 to vector<32x32xf32>
    %474 = arith.mulf %472, %473 : vector<32x32xf32>
    %475 = arith.addf %474, %413 : vector<32x32xf32>
    %cst_229 = arith.constant dense<0xFF800000> : vector<32xf32>
    %476 = vector.multi_reduction <maximumf>, %475, %cst_229 [1] : vector<32x32xf32> to vector<32xf32>
    %477 = vector.shape_cast %476 : vector<32xf32> to vector<32x1xf32>
    %478 = vector.broadcast %477 : vector<32x1xf32> to vector<32x32xf32>
    %479 = arith.subf %475, %478 : vector<32x32xf32>
    %480 = math.exp %479 : vector<32x32xf32>
    %cst_230 = arith.constant dense<0.000000e+00> : vector<32xf32>
    %481 = vector.multi_reduction <add>, %480, %cst_230 [1] : vector<32x32xf32> to vector<32xf32>
    %482 = vector.shape_cast %481 : vector<32xf32> to vector<32x1xf32>
    %483 = tpu.reciprocal %482 {approx = true} : vector<32x1xf32> -> vector<32x1xf32>
    %484 = vector.broadcast %483 : vector<32x1xf32> to vector<32x32xf32>
    %485 = arith.mulf %480, %484 : vector<32x32xf32>
    %cst_231 = arith.constant dense<0.000000e+00> : vector<32x8xf32>
    %486 = tpu.matmul %485, %471, %cst_231 {dimension_numbers = #tpu.dot_dimension_numbers<[1], [0], [0], [1], [0, 0, 1, 1], [], []>} : vector<32x32xf32>, vector<32x8xf32>, vector<32x8xf32> -> vector<32x8xf32>
    %487 = vector.extract_strided_slice %450 {offsets = [0, 16], sizes = [32, 8], strides = [1, 1]} : vector<32x96xf32> to vector<32x8xf32>
    %488 = vector.extract_strided_slice %450 {offsets = [0, 48], sizes = [32, 8], strides = [1, 1]} : vector<32x96xf32> to vector<32x8xf32>
    %489 = vector.extract_strided_slice %450 {offsets = [0, 80], sizes = [32, 8], strides = [1, 1]} : vector<32x96xf32> to vector<32x8xf32>
    %cst_232 = arith.constant dense<0.000000e+00> : vector<32x32xf32>
    %490 = tpu.matmul %487, %488, %cst_232 {dimension_numbers = #tpu.dot_dimension_numbers<[1], [1], [0], [0], [0, 0, 1, 0], [], []>} : vector<32x8xf32>, vector<32x8xf32>, vector<32x32xf32> -> vector<32x32xf32>
    %cst_233 = arith.constant 0.353553385 : f32
    %491 = vector.broadcast %cst_233 : f32 to vector<32x32xf32>
    %492 = arith.mulf %490, %491 : vector<32x32xf32>
    %493 = arith.addf %492, %413 : vector<32x32xf32>
    %cst_234 = arith.constant dense<0xFF800000> : vector<32xf32>
    %494 = vector.multi_reduction <maximumf>, %493, %cst_234 [1] : vector<32x32xf32> to vector<32xf32>
    %495 = vector.shape_cast %494 : vector<32xf32> to vector<32x1xf32>
    %496 = vector.broadcast %495 : vector<32x1xf32> to vector<32x32xf32>
    %497 = arith.subf %493, %496 : vector<32x32xf32>
    %498 = math.exp %497 : vector<32x32xf32>
    %cst_235 = arith.constant dense<0.000000e+00> : vector<32xf32>
    %499 = vector.multi_reduction <add>, %498, %cst_235 [1] : vector<32x32xf32> to vector<32xf32>
    %500 = vector.shape_cast %499 : vector<32xf32> to vector<32x1xf32>
    %501 = tpu.reciprocal %500 {approx = true} : vector<32x1xf32> -> vector<32x1xf32>
    %502 = vector.broadcast %501 : vector<32x1xf32> to vector<32x32xf32>
    %503 = arith.mulf %498, %502 : vector<32x32xf32>
    %cst_236 = arith.constant dense<0.000000e+00> : vector<32x8xf32>
    %504 = tpu.matmul %503, %489, %cst_236 {dimension_numbers = #tpu.dot_dimension_numbers<[1], [0], [0], [1], [0, 0, 1, 1], [], []>} : vector<32x32xf32>, vector<32x8xf32>, vector<32x8xf32> -> vector<32x8xf32>
    %505 = vector.extract_strided_slice %450 {offsets = [0, 24], sizes = [32, 8], strides = [1, 1]} : vector<32x96xf32> to vector<32x8xf32>
    %506 = vector.extract_strided_slice %450 {offsets = [0, 56], sizes = [32, 8], strides = [1, 1]} : vector<32x96xf32> to vector<32x8xf32>
    %507 = vector.extract_strided_slice %450 {offsets = [0, 88], sizes = [32, 8], strides = [1, 1]} : vector<32x96xf32> to vector<32x8xf32>
    %cst_237 = arith.constant dense<0.000000e+00> : vector<32x32xf32>
    %508 = tpu.matmul %505, %506, %cst_237 {dimension_numbers = #tpu.dot_dimension_numbers<[1], [1], [0], [0], [0, 0, 1, 0], [], []>} : vector<32x8xf32>, vector<32x8xf32>, vector<32x32xf32> -> vector<32x32xf32>
    %cst_238 = arith.constant 0.353553385 : f32
    %509 = vector.broadcast %cst_238 : f32 to vector<32x32xf32>
    %510 = arith.mulf %508, %509 : vector<32x32xf32>
    %511 = arith.addf %510, %413 : vector<32x32xf32>
    %cst_239 = arith.constant dense<0xFF800000> : vector<32xf32>
    %512 = vector.multi_reduction <maximumf>, %511, %cst_239 [1] : vector<32x32xf32> to vector<32xf32>
    %513 = vector.shape_cast %512 : vector<32xf32> to vector<32x1xf32>
    %514 = vector.broadcast %513 : vector<32x1xf32> to vector<32x32xf32>
    %515 = arith.subf %511, %514 : vector<32x32xf32>
    %516 = math.exp %515 : vector<32x32xf32>
    %cst_240 = arith.constant dense<0.000000e+00> : vector<32xf32>
    %517 = vector.multi_reduction <add>, %516, %cst_240 [1] : vector<32x32xf32> to vector<32xf32>
    %518 = vector.shape_cast %517 : vector<32xf32> to vector<32x1xf32>
    %519 = tpu.reciprocal %518 {approx = true} : vector<32x1xf32> -> vector<32x1xf32>
    %520 = vector.broadcast %519 : vector<32x1xf32> to vector<32x32xf32>
    %521 = arith.mulf %516, %520 : vector<32x32xf32>
    %cst_241 = arith.constant dense<0.000000e+00> : vector<32x8xf32>
    %522 = tpu.matmul %521, %507, %cst_241 {dimension_numbers = #tpu.dot_dimension_numbers<[1], [0], [0], [1], [0, 0, 1, 1], [], []>} : vector<32x32xf32>, vector<32x8xf32>, vector<32x8xf32> -> vector<32x8xf32>
    %523 = tpu.concatenate %468, %486, %504, %522 in 1 : vector<32x8xf32>, vector<32x8xf32>, vector<32x8xf32>, vector<32x8xf32> -> vector<32x32xf32>
    %cst_242 = arith.constant dense<0.000000e+00> : vector<32x32xf32>
    %524 = tpu.matmul %523, %423, %cst_242 {dimension_numbers = #tpu.dot_dimension_numbers<[1], [0], [0], [1], [0, 0, 1, 1], [], []>} : vector<32x32xf32>, vector<32x32xf32>, vector<32x32xf32> -> vector<32x32xf32>
    %525 = vector.broadcast %425 : vector<1x32xf32> to vector<32x32xf32>
    %526 = arith.addf %524, %525 : vector<32x32xf32>
    %527 = arith.addf %412, %526 : vector<32x32xf32>
    %c2_243 = arith.constant 2 : index
    %c0_244 = arith.constant 0 : index
    %c0_245 = arith.constant 0 : index
    %528 = vector.load %arg14[%c2_243, %c0_244, %c0_245] : memref<4x1x32xf32, #tpu.memory_space<vmem>>, vector<1x1x32xf32>
    %529 = vector.shape_cast %528 : vector<1x1x32xf32> to vector<1x32xf32>
    %c2_246 = arith.constant 2 : index
    %c0_247 = arith.constant 0 : index
    %c0_248 = arith.constant 0 : index
    %530 = vector.load %arg15[%c2_246, %c0_247, %c0_248] : memref<4x1x32xf32, #tpu.memory_space<vmem>>, vector<1x1x32xf32>
    %531 = vector.shape_cast %530 : vector<1x1x32xf32> to vector<1x32xf32>
    %cst_249 = arith.constant dense<0.000000e+00> : vector<32xf32>
    %532 = vector.multi_reduction <add>, %527, %cst_249 [1] : vector<32x32xf32> to vector<32xf32>
    %533 = vector.shape_cast %532 : vector<32xf32> to vector<32x1xf32>
    %cst_250 = arith.constant 3.200000e+01 : f32
    %534 = vector.broadcast %cst_250 : f32 to vector<32x1xf32>
    %535 = arith.divf %533, %534 : vector<32x1xf32>
    %536 = vector.broadcast %535 : vector<32x1xf32> to vector<32x32xf32>
    %537 = arith.subf %527, %536 : vector<32x32xf32>
    %538 = arith.mulf %537, %537 : vector<32x32xf32>
    %cst_251 = arith.constant dense<0.000000e+00> : vector<32xf32>
    %539 = vector.multi_reduction <add>, %538, %cst_251 [1] : vector<32x32xf32> to vector<32xf32>
    %540 = vector.shape_cast %539 : vector<32xf32> to vector<32x1xf32>
    %cst_252 = arith.constant 3.200000e+01 : f32
    %541 = vector.broadcast %cst_252 : f32 to vector<32x1xf32>
    %542 = arith.divf %540, %541 : vector<32x1xf32>
    %543 = vector.broadcast %535 : vector<32x1xf32> to vector<32x32xf32>
    %544 = arith.subf %527, %543 : vector<32x32xf32>
    %cst_253 = arith.constant 9.99999997E-7 : f32
    %545 = vector.broadcast %cst_253 : f32 to vector<32x1xf32>
    %546 = arith.addf %542, %545 : vector<32x1xf32>
    %547 = math.rsqrt %546 : vector<32x1xf32>
    %548 = vector.broadcast %547 : vector<32x1xf32> to vector<32x32xf32>
    %549 = arith.mulf %544, %548 : vector<32x32xf32>
    %550 = vector.broadcast %529 : vector<1x32xf32> to vector<32x32xf32>
    %551 = arith.mulf %549, %550 : vector<32x32xf32>
    %552 = vector.broadcast %531 : vector<1x32xf32> to vector<32x32xf32>
    %553 = arith.addf %551, %552 : vector<32x32xf32>
    %c0_254 = arith.constant 0 : index
    %c0_255 = arith.constant 0 : index
    %c0_256 = arith.constant 0 : index
    %554 = vector.load %arg24[%c0_254, %c0_255, %c0_256] : memref<2x32x128xf32, #tpu.memory_space<vmem>>, vector<1x32x128xf32>
    %555 = vector.shape_cast %554 : vector<1x32x128xf32> to vector<32x128xf32>
    %c0_257 = arith.constant 0 : index
    %c0_258 = arith.constant 0 : index
    %c0_259 = arith.constant 0 : index
    %556 = vector.load %arg25[%c0_257, %c0_258, %c0_259] : memref<2x1x128xf32, #tpu.memory_space<vmem>>, vector<1x1x128xf32>
    %557 = vector.shape_cast %556 : vector<1x1x128xf32> to vector<1x128xf32>
    %c0_260 = arith.constant 0 : index
    %c0_261 = arith.constant 0 : index
    %c0_262 = arith.constant 0 : index
    %558 = vector.load %arg26[%c0_260, %c0_261, %c0_262] : memref<2x128x32xf32, #tpu.memory_space<vmem>>, vector<1x128x32xf32>
    %559 = vector.shape_cast %558 : vector<1x128x32xf32> to vector<128x32xf32>
    %c0_263 = arith.constant 0 : index
    %c0_264 = arith.constant 0 : index
    %c0_265 = arith.constant 0 : index
    %560 = vector.load %arg27[%c0_263, %c0_264, %c0_265] : memref<2x1x32xf32, #tpu.memory_space<vmem>>, vector<1x1x32xf32>
    %561 = vector.shape_cast %560 : vector<1x1x32xf32> to vector<1x32xf32>
    %cst_266 = arith.constant dense<0.000000e+00> : vector<32x128xf32>
    %562 = tpu.matmul %553, %555, %cst_266 {dimension_numbers = #tpu.dot_dimension_numbers<[1], [0], [0], [1], [0, 0, 1, 1], [], []>} : vector<32x32xf32>, vector<32x128xf32>, vector<32x128xf32> -> vector<32x128xf32>
    %563 = vector.broadcast %557 : vector<1x128xf32> to vector<32x128xf32>
    %564 = arith.addf %562, %563 : vector<32x128xf32>
    %cst_267 = arith.constant 5.000000e-01 : f32
    %565 = vector.broadcast %cst_267 : f32 to vector<32x128xf32>
    %566 = arith.mulf %565, %564 : vector<32x128xf32>
    %cst_268 = arith.constant 0.707106769 : f32
    %567 = vector.broadcast %cst_268 : f32 to vector<32x128xf32>
    %568 = arith.mulf %564, %567 : vector<32x128xf32>
    %569 = math.erf %568 : vector<32x128xf32>
    %cst_269 = arith.constant 1.000000e+00 : f32
    %570 = vector.broadcast %cst_269 : f32 to vector<32x128xf32>
    %571 = arith.addf %570, %569 : vector<32x128xf32>
    %572 = arith.mulf %566, %571 : vector<32x128xf32>
    %cst_270 = arith.constant dense<0.000000e+00> : vector<32x32xf32>
    %573 = tpu.matmul %572, %559, %cst_270 {dimension_numbers = #tpu.dot_dimension_numbers<[1], [0], [0], [1], [0, 0, 1, 1], [], []>} : vector<32x128xf32>, vector<128x32xf32>, vector<32x32xf32> -> vector<32x32xf32>
    %574 = vector.broadcast %561 : vector<1x32xf32> to vector<32x32xf32>
    %575 = arith.addf %573, %574 : vector<32x32xf32>
    %576 = arith.addf %527, %575 : vector<32x32xf32>
    %c3 = arith.constant 3 : index
    %c0_271 = arith.constant 0 : index
    %c0_272 = arith.constant 0 : index
    %577 = vector.load %arg8[%c3, %c0_271, %c0_272] : memref<4x1x32xf32, #tpu.memory_space<vmem>>, vector<1x1x32xf32>
    %578 = vector.shape_cast %577 : vector<1x1x32xf32> to vector<1x32xf32>
    %c3_273 = arith.constant 3 : index
    %c0_274 = arith.constant 0 : index
    %c0_275 = arith.constant 0 : index
    %579 = vector.load %arg9[%c3_273, %c0_274, %c0_275] : memref<4x1x32xf32, #tpu.memory_space<vmem>>, vector<1x1x32xf32>
    %580 = vector.shape_cast %579 : vector<1x1x32xf32> to vector<1x32xf32>
    %c3_276 = arith.constant 3 : index
    %c0_277 = arith.constant 0 : index
    %c0_278 = arith.constant 0 : index
    %581 = vector.load %arg10[%c3_276, %c0_277, %c0_278] : memref<4x32x96xf32, #tpu.memory_space<vmem>>, vector<1x32x96xf32>
    %582 = vector.shape_cast %581 : vector<1x32x96xf32> to vector<32x96xf32>
    %c3_279 = arith.constant 3 : index
    %c0_280 = arith.constant 0 : index
    %c0_281 = arith.constant 0 : index
    %583 = vector.load %arg11[%c3_279, %c0_280, %c0_281] : memref<4x1x96xf32, #tpu.memory_space<vmem>>, vector<1x1x96xf32>
    %584 = vector.shape_cast %583 : vector<1x1x96xf32> to vector<1x96xf32>
    %c3_282 = arith.constant 3 : index
    %c0_283 = arith.constant 0 : index
    %c0_284 = arith.constant 0 : index
    %585 = vector.load %arg12[%c3_282, %c0_283, %c0_284] : memref<4x32x32xf32, #tpu.memory_space<vmem>>, vector<1x32x32xf32>
    %586 = vector.shape_cast %585 : vector<1x32x32xf32> to vector<32x32xf32>
    %c3_285 = arith.constant 3 : index
    %c0_286 = arith.constant 0 : index
    %c0_287 = arith.constant 0 : index
    %587 = vector.load %arg13[%c3_285, %c0_286, %c0_287] : memref<4x1x32xf32, #tpu.memory_space<vmem>>, vector<1x1x32xf32>
    %588 = vector.shape_cast %587 : vector<1x1x32xf32> to vector<1x32xf32>
    %cst_288 = arith.constant dense<0.000000e+00> : vector<32xf32>
    %589 = vector.multi_reduction <add>, %576, %cst_288 [1] : vector<32x32xf32> to vector<32xf32>
    %590 = vector.shape_cast %589 : vector<32xf32> to vector<32x1xf32>
    %cst_289 = arith.constant 3.200000e+01 : f32
    %591 = vector.broadcast %cst_289 : f32 to vector<32x1xf32>
    %592 = arith.divf %590, %591 : vector<32x1xf32>
    %593 = vector.broadcast %592 : vector<32x1xf32> to vector<32x32xf32>
    %594 = arith.subf %576, %593 : vector<32x32xf32>
    %595 = arith.mulf %594, %594 : vector<32x32xf32>
    %cst_290 = arith.constant dense<0.000000e+00> : vector<32xf32>
    %596 = vector.multi_reduction <add>, %595, %cst_290 [1] : vector<32x32xf32> to vector<32xf32>
    %597 = vector.shape_cast %596 : vector<32xf32> to vector<32x1xf32>
    %cst_291 = arith.constant 3.200000e+01 : f32
    %598 = vector.broadcast %cst_291 : f32 to vector<32x1xf32>
    %599 = arith.divf %597, %598 : vector<32x1xf32>
    %600 = vector.broadcast %592 : vector<32x1xf32> to vector<32x32xf32>
    %601 = arith.subf %576, %600 : vector<32x32xf32>
    %cst_292 = arith.constant 9.99999997E-7 : f32
    %602 = vector.broadcast %cst_292 : f32 to vector<32x1xf32>
    %603 = arith.addf %599, %602 : vector<32x1xf32>
    %604 = math.rsqrt %603 : vector<32x1xf32>
    %605 = vector.broadcast %604 : vector<32x1xf32> to vector<32x32xf32>
    %606 = arith.mulf %601, %605 : vector<32x32xf32>
    %607 = vector.broadcast %578 : vector<1x32xf32> to vector<32x32xf32>
    %608 = arith.mulf %606, %607 : vector<32x32xf32>
    %609 = vector.broadcast %580 : vector<1x32xf32> to vector<32x32xf32>
    %610 = arith.addf %608, %609 : vector<32x32xf32>
    %cst_293 = arith.constant dense<0.000000e+00> : vector<32x96xf32>
    %611 = tpu.matmul %610, %582, %cst_293 {dimension_numbers = #tpu.dot_dimension_numbers<[1], [0], [0], [1], [0, 0, 1, 1], [], []>} : vector<32x32xf32>, vector<32x96xf32>, vector<32x96xf32> -> vector<32x96xf32>
    %612 = vector.broadcast %584 : vector<1x96xf32> to vector<32x96xf32>
    %613 = arith.addf %611, %612 : vector<32x96xf32>
    %614 = vector.extract_strided_slice %613 {offsets = [0, 0], sizes = [32, 8], strides = [1, 1]} : vector<32x96xf32> to vector<32x8xf32>
    %615 = vector.extract_strided_slice %613 {offsets = [0, 32], sizes = [32, 8], strides = [1, 1]} : vector<32x96xf32> to vector<32x8xf32>
    %616 = vector.extract_strided_slice %613 {offsets = [0, 64], sizes = [32, 8], strides = [1, 1]} : vector<32x96xf32> to vector<32x8xf32>
    %cst_294 = arith.constant dense<0.000000e+00> : vector<32x32xf32>
    %617 = tpu.matmul %614, %615, %cst_294 {dimension_numbers = #tpu.dot_dimension_numbers<[1], [1], [0], [0], [0, 0, 1, 0], [], []>} : vector<32x8xf32>, vector<32x8xf32>, vector<32x32xf32> -> vector<32x32xf32>
    %cst_295 = arith.constant 0.353553385 : f32
    %618 = vector.broadcast %cst_295 : f32 to vector<32x32xf32>
    %619 = arith.mulf %617, %618 : vector<32x32xf32>
    %620 = arith.addf %619, %413 : vector<32x32xf32>
    %cst_296 = arith.constant dense<0xFF800000> : vector<32xf32>
    %621 = vector.multi_reduction <maximumf>, %620, %cst_296 [1] : vector<32x32xf32> to vector<32xf32>
    %622 = vector.shape_cast %621 : vector<32xf32> to vector<32x1xf32>
    %623 = vector.broadcast %622 : vector<32x1xf32> to vector<32x32xf32>
    %624 = arith.subf %620, %623 : vector<32x32xf32>
    %625 = math.exp %624 : vector<32x32xf32>
    %cst_297 = arith.constant dense<0.000000e+00> : vector<32xf32>
    %626 = vector.multi_reduction <add>, %625, %cst_297 [1] : vector<32x32xf32> to vector<32xf32>
    %627 = vector.shape_cast %626 : vector<32xf32> to vector<32x1xf32>
    %628 = tpu.reciprocal %627 {approx = true} : vector<32x1xf32> -> vector<32x1xf32>
    %629 = vector.broadcast %628 : vector<32x1xf32> to vector<32x32xf32>
    %630 = arith.mulf %625, %629 : vector<32x32xf32>
    %cst_298 = arith.constant dense<0.000000e+00> : vector<32x8xf32>
    %631 = tpu.matmul %630, %616, %cst_298 {dimension_numbers = #tpu.dot_dimension_numbers<[1], [0], [0], [1], [0, 0, 1, 1], [], []>} : vector<32x32xf32>, vector<32x8xf32>, vector<32x8xf32> -> vector<32x8xf32>
    %632 = vector.extract_strided_slice %613 {offsets = [0, 8], sizes = [32, 8], strides = [1, 1]} : vector<32x96xf32> to vector<32x8xf32>
    %633 = vector.extract_strided_slice %613 {offsets = [0, 40], sizes = [32, 8], strides = [1, 1]} : vector<32x96xf32> to vector<32x8xf32>
    %634 = vector.extract_strided_slice %613 {offsets = [0, 72], sizes = [32, 8], strides = [1, 1]} : vector<32x96xf32> to vector<32x8xf32>
    %cst_299 = arith.constant dense<0.000000e+00> : vector<32x32xf32>
    %635 = tpu.matmul %632, %633, %cst_299 {dimension_numbers = #tpu.dot_dimension_numbers<[1], [1], [0], [0], [0, 0, 1, 0], [], []>} : vector<32x8xf32>, vector<32x8xf32>, vector<32x32xf32> -> vector<32x32xf32>
    %cst_300 = arith.constant 0.353553385 : f32
    %636 = vector.broadcast %cst_300 : f32 to vector<32x32xf32>
    %637 = arith.mulf %635, %636 : vector<32x32xf32>
    %638 = arith.addf %637, %413 : vector<32x32xf32>
    %cst_301 = arith.constant dense<0xFF800000> : vector<32xf32>
    %639 = vector.multi_reduction <maximumf>, %638, %cst_301 [1] : vector<32x32xf32> to vector<32xf32>
    %640 = vector.shape_cast %639 : vector<32xf32> to vector<32x1xf32>
    %641 = vector.broadcast %640 : vector<32x1xf32> to vector<32x32xf32>
    %642 = arith.subf %638, %641 : vector<32x32xf32>
    %643 = math.exp %642 : vector<32x32xf32>
    %cst_302 = arith.constant dense<0.000000e+00> : vector<32xf32>
    %644 = vector.multi_reduction <add>, %643, %cst_302 [1] : vector<32x32xf32> to vector<32xf32>
    %645 = vector.shape_cast %644 : vector<32xf32> to vector<32x1xf32>
    %646 = tpu.reciprocal %645 {approx = true} : vector<32x1xf32> -> vector<32x1xf32>
    %647 = vector.broadcast %646 : vector<32x1xf32> to vector<32x32xf32>
    %648 = arith.mulf %643, %647 : vector<32x32xf32>
    %cst_303 = arith.constant dense<0.000000e+00> : vector<32x8xf32>
    %649 = tpu.matmul %648, %634, %cst_303 {dimension_numbers = #tpu.dot_dimension_numbers<[1], [0], [0], [1], [0, 0, 1, 1], [], []>} : vector<32x32xf32>, vector<32x8xf32>, vector<32x8xf32> -> vector<32x8xf32>
    %650 = vector.extract_strided_slice %613 {offsets = [0, 16], sizes = [32, 8], strides = [1, 1]} : vector<32x96xf32> to vector<32x8xf32>
    %651 = vector.extract_strided_slice %613 {offsets = [0, 48], sizes = [32, 8], strides = [1, 1]} : vector<32x96xf32> to vector<32x8xf32>
    %652 = vector.extract_strided_slice %613 {offsets = [0, 80], sizes = [32, 8], strides = [1, 1]} : vector<32x96xf32> to vector<32x8xf32>
    %cst_304 = arith.constant dense<0.000000e+00> : vector<32x32xf32>
    %653 = tpu.matmul %650, %651, %cst_304 {dimension_numbers = #tpu.dot_dimension_numbers<[1], [1], [0], [0], [0, 0, 1, 0], [], []>} : vector<32x8xf32>, vector<32x8xf32>, vector<32x32xf32> -> vector<32x32xf32>
    %cst_305 = arith.constant 0.353553385 : f32
    %654 = vector.broadcast %cst_305 : f32 to vector<32x32xf32>
    %655 = arith.mulf %653, %654 : vector<32x32xf32>
    %656 = arith.addf %655, %413 : vector<32x32xf32>
    %cst_306 = arith.constant dense<0xFF800000> : vector<32xf32>
    %657 = vector.multi_reduction <maximumf>, %656, %cst_306 [1] : vector<32x32xf32> to vector<32xf32>
    %658 = vector.shape_cast %657 : vector<32xf32> to vector<32x1xf32>
    %659 = vector.broadcast %658 : vector<32x1xf32> to vector<32x32xf32>
    %660 = arith.subf %656, %659 : vector<32x32xf32>
    %661 = math.exp %660 : vector<32x32xf32>
    %cst_307 = arith.constant dense<0.000000e+00> : vector<32xf32>
    %662 = vector.multi_reduction <add>, %661, %cst_307 [1] : vector<32x32xf32> to vector<32xf32>
    %663 = vector.shape_cast %662 : vector<32xf32> to vector<32x1xf32>
    %664 = tpu.reciprocal %663 {approx = true} : vector<32x1xf32> -> vector<32x1xf32>
    %665 = vector.broadcast %664 : vector<32x1xf32> to vector<32x32xf32>
    %666 = arith.mulf %661, %665 : vector<32x32xf32>
    %cst_308 = arith.constant dense<0.000000e+00> : vector<32x8xf32>
    %667 = tpu.matmul %666, %652, %cst_308 {dimension_numbers = #tpu.dot_dimension_numbers<[1], [0], [0], [1], [0, 0, 1, 1], [], []>} : vector<32x32xf32>, vector<32x8xf32>, vector<32x8xf32> -> vector<32x8xf32>
    %668 = vector.extract_strided_slice %613 {offsets = [0, 24], sizes = [32, 8], strides = [1, 1]} : vector<32x96xf32> to vector<32x8xf32>
    %669 = vector.extract_strided_slice %613 {offsets = [0, 56], sizes = [32, 8], strides = [1, 1]} : vector<32x96xf32> to vector<32x8xf32>
    %670 = vector.extract_strided_slice %613 {offsets = [0, 88], sizes = [32, 8], strides = [1, 1]} : vector<32x96xf32> to vector<32x8xf32>
    %cst_309 = arith.constant dense<0.000000e+00> : vector<32x32xf32>
    %671 = tpu.matmul %668, %669, %cst_309 {dimension_numbers = #tpu.dot_dimension_numbers<[1], [1], [0], [0], [0, 0, 1, 0], [], []>} : vector<32x8xf32>, vector<32x8xf32>, vector<32x32xf32> -> vector<32x32xf32>
    %cst_310 = arith.constant 0.353553385 : f32
    %672 = vector.broadcast %cst_310 : f32 to vector<32x32xf32>
    %673 = arith.mulf %671, %672 : vector<32x32xf32>
    %674 = arith.addf %673, %413 : vector<32x32xf32>
    %cst_311 = arith.constant dense<0xFF800000> : vector<32xf32>
    %675 = vector.multi_reduction <maximumf>, %674, %cst_311 [1] : vector<32x32xf32> to vector<32xf32>
    %676 = vector.shape_cast %675 : vector<32xf32> to vector<32x1xf32>
    %677 = vector.broadcast %676 : vector<32x1xf32> to vector<32x32xf32>
    %678 = arith.subf %674, %677 : vector<32x32xf32>
    %679 = math.exp %678 : vector<32x32xf32>
    %cst_312 = arith.constant dense<0.000000e+00> : vector<32xf32>
    %680 = vector.multi_reduction <add>, %679, %cst_312 [1] : vector<32x32xf32> to vector<32xf32>
    %681 = vector.shape_cast %680 : vector<32xf32> to vector<32x1xf32>
    %682 = tpu.reciprocal %681 {approx = true} : vector<32x1xf32> -> vector<32x1xf32>
    %683 = vector.broadcast %682 : vector<32x1xf32> to vector<32x32xf32>
    %684 = arith.mulf %679, %683 : vector<32x32xf32>
    %cst_313 = arith.constant dense<0.000000e+00> : vector<32x8xf32>
    %685 = tpu.matmul %684, %670, %cst_313 {dimension_numbers = #tpu.dot_dimension_numbers<[1], [0], [0], [1], [0, 0, 1, 1], [], []>} : vector<32x32xf32>, vector<32x8xf32>, vector<32x8xf32> -> vector<32x8xf32>
    %686 = tpu.concatenate %631, %649, %667, %685 in 1 : vector<32x8xf32>, vector<32x8xf32>, vector<32x8xf32>, vector<32x8xf32> -> vector<32x32xf32>
    %cst_314 = arith.constant dense<0.000000e+00> : vector<32x32xf32>
    %687 = tpu.matmul %686, %586, %cst_314 {dimension_numbers = #tpu.dot_dimension_numbers<[1], [0], [0], [1], [0, 0, 1, 1], [], []>} : vector<32x32xf32>, vector<32x32xf32>, vector<32x32xf32> -> vector<32x32xf32>
    %688 = vector.broadcast %588 : vector<1x32xf32> to vector<32x32xf32>
    %689 = arith.addf %687, %688 : vector<32x32xf32>
    %690 = arith.addf %576, %689 : vector<32x32xf32>
    %c3_315 = arith.constant 3 : index
    %c0_316 = arith.constant 0 : index
    %c0_317 = arith.constant 0 : index
    %691 = vector.load %arg14[%c3_315, %c0_316, %c0_317] : memref<4x1x32xf32, #tpu.memory_space<vmem>>, vector<1x1x32xf32>
    %692 = vector.shape_cast %691 : vector<1x1x32xf32> to vector<1x32xf32>
    %c3_318 = arith.constant 3 : index
    %c0_319 = arith.constant 0 : index
    %c0_320 = arith.constant 0 : index
    %693 = vector.load %arg15[%c3_318, %c0_319, %c0_320] : memref<4x1x32xf32, #tpu.memory_space<vmem>>, vector<1x1x32xf32>
    %694 = vector.shape_cast %693 : vector<1x1x32xf32> to vector<1x32xf32>
    %cst_321 = arith.constant dense<0.000000e+00> : vector<32xf32>
    %695 = vector.multi_reduction <add>, %690, %cst_321 [1] : vector<32x32xf32> to vector<32xf32>
    %696 = vector.shape_cast %695 : vector<32xf32> to vector<32x1xf32>
    %cst_322 = arith.constant 3.200000e+01 : f32
    %697 = vector.broadcast %cst_322 : f32 to vector<32x1xf32>
    %698 = arith.divf %696, %697 : vector<32x1xf32>
    %699 = vector.broadcast %698 : vector<32x1xf32> to vector<32x32xf32>
    %700 = arith.subf %690, %699 : vector<32x32xf32>
    %701 = arith.mulf %700, %700 : vector<32x32xf32>
    %cst_323 = arith.constant dense<0.000000e+00> : vector<32xf32>
    %702 = vector.multi_reduction <add>, %701, %cst_323 [1] : vector<32x32xf32> to vector<32xf32>
    %703 = vector.shape_cast %702 : vector<32xf32> to vector<32x1xf32>
    %cst_324 = arith.constant 3.200000e+01 : f32
    %704 = vector.broadcast %cst_324 : f32 to vector<32x1xf32>
    %705 = arith.divf %703, %704 : vector<32x1xf32>
    %706 = vector.broadcast %698 : vector<32x1xf32> to vector<32x32xf32>
    %707 = arith.subf %690, %706 : vector<32x32xf32>
    %cst_325 = arith.constant 9.99999997E-7 : f32
    %708 = vector.broadcast %cst_325 : f32 to vector<32x1xf32>
    %709 = arith.addf %705, %708 : vector<32x1xf32>
    %710 = math.rsqrt %709 : vector<32x1xf32>
    %711 = vector.broadcast %710 : vector<32x1xf32> to vector<32x32xf32>
    %712 = arith.mulf %707, %711 : vector<32x32xf32>
    %713 = vector.broadcast %692 : vector<1x32xf32> to vector<32x32xf32>
    %714 = arith.mulf %712, %713 : vector<32x32xf32>
    %715 = vector.broadcast %694 : vector<1x32xf32> to vector<32x32xf32>
    %716 = arith.addf %714, %715 : vector<32x32xf32>
    %c1_326 = arith.constant 1 : index
    %c0_327 = arith.constant 0 : index
    %c0_328 = arith.constant 0 : index
    %717 = vector.load %arg24[%c1_326, %c0_327, %c0_328] : memref<2x32x128xf32, #tpu.memory_space<vmem>>, vector<1x32x128xf32>
    %718 = vector.shape_cast %717 : vector<1x32x128xf32> to vector<32x128xf32>
    %c1_329 = arith.constant 1 : index
    %c0_330 = arith.constant 0 : index
    %c0_331 = arith.constant 0 : index
    %719 = vector.load %arg25[%c1_329, %c0_330, %c0_331] : memref<2x1x128xf32, #tpu.memory_space<vmem>>, vector<1x1x128xf32>
    %720 = vector.shape_cast %719 : vector<1x1x128xf32> to vector<1x128xf32>
    %c1_332 = arith.constant 1 : index
    %c0_333 = arith.constant 0 : index
    %c0_334 = arith.constant 0 : index
    %721 = vector.load %arg26[%c1_332, %c0_333, %c0_334] : memref<2x128x32xf32, #tpu.memory_space<vmem>>, vector<1x128x32xf32>
    %722 = vector.shape_cast %721 : vector<1x128x32xf32> to vector<128x32xf32>
    %c1_335 = arith.constant 1 : index
    %c0_336 = arith.constant 0 : index
    %c0_337 = arith.constant 0 : index
    %723 = vector.load %arg27[%c1_335, %c0_336, %c0_337] : memref<2x1x32xf32, #tpu.memory_space<vmem>>, vector<1x1x32xf32>
    %724 = vector.shape_cast %723 : vector<1x1x32xf32> to vector<1x32xf32>
    %cst_338 = arith.constant dense<0.000000e+00> : vector<32x128xf32>
    %725 = tpu.matmul %716, %718, %cst_338 {dimension_numbers = #tpu.dot_dimension_numbers<[1], [0], [0], [1], [0, 0, 1, 1], [], []>} : vector<32x32xf32>, vector<32x128xf32>, vector<32x128xf32> -> vector<32x128xf32>
    %726 = vector.broadcast %720 : vector<1x128xf32> to vector<32x128xf32>
    %727 = arith.addf %725, %726 : vector<32x128xf32>
    %cst_339 = arith.constant 5.000000e-01 : f32
    %728 = vector.broadcast %cst_339 : f32 to vector<32x128xf32>
    %729 = arith.mulf %728, %727 : vector<32x128xf32>
    %cst_340 = arith.constant 0.707106769 : f32
    %730 = vector.broadcast %cst_340 : f32 to vector<32x128xf32>
    %731 = arith.mulf %727, %730 : vector<32x128xf32>
    %732 = math.erf %731 : vector<32x128xf32>
    %cst_341 = arith.constant 1.000000e+00 : f32
    %733 = vector.broadcast %cst_341 : f32 to vector<32x128xf32>
    %734 = arith.addf %733, %732 : vector<32x128xf32>
    %735 = arith.mulf %729, %734 : vector<32x128xf32>
    %cst_342 = arith.constant dense<0.000000e+00> : vector<32x32xf32>
    %736 = tpu.matmul %735, %722, %cst_342 {dimension_numbers = #tpu.dot_dimension_numbers<[1], [0], [0], [1], [0, 0, 1, 1], [], []>} : vector<32x128xf32>, vector<128x32xf32>, vector<32x32xf32> -> vector<32x32xf32>
    %737 = vector.broadcast %724 : vector<1x32xf32> to vector<32x32xf32>
    %738 = arith.addf %736, %737 : vector<32x32xf32>
    %739 = arith.addf %690, %738 : vector<32x32xf32>
    %740 = vector.extract_strided_slice %739 {offsets = [0, 0], sizes = [1, 32], strides = [1, 1]} : vector<32x32xf32> to vector<1x32xf32>
    %741 = vector.extract_strided_slice %739 {offsets = [16, 0], sizes = [1, 32], strides = [1, 1]} : vector<32x32xf32> to vector<1x32xf32>
    %742 = tpu.concatenate %740, %741 in 0 : vector<1x32xf32>, vector<1x32xf32> -> vector<2x32xf32>
    %c0_343 = arith.constant 0 : index
    %c0_344 = arith.constant 0 : index
    %743 = vector.load %arg28[%c0_343, %c0_344] : memref<1x32xf32, #tpu.memory_space<vmem>>, vector<1x32xf32>
    %c0_345 = arith.constant 0 : index
    %c0_346 = arith.constant 0 : index
    %744 = vector.load %arg29[%c0_345, %c0_346] : memref<1x32xf32, #tpu.memory_space<vmem>>, vector<1x32xf32>
    %cst_347 = arith.constant dense<0.000000e+00> : vector<2xf32>
    %745 = vector.multi_reduction <add>, %742, %cst_347 [1] : vector<2x32xf32> to vector<2xf32>
    %746 = vector.shape_cast %745 : vector<2xf32> to vector<2x1xf32>
    %cst_348 = arith.constant 3.200000e+01 : f32
    %747 = vector.broadcast %cst_348 : f32 to vector<2x1xf32>
    %748 = arith.divf %746, %747 : vector<2x1xf32>
    %749 = vector.broadcast %748 : vector<2x1xf32> to vector<2x32xf32>
    %750 = arith.subf %742, %749 : vector<2x32xf32>
    %751 = arith.mulf %750, %750 : vector<2x32xf32>
    %cst_349 = arith.constant dense<0.000000e+00> : vector<2xf32>
    %752 = vector.multi_reduction <add>, %751, %cst_349 [1] : vector<2x32xf32> to vector<2xf32>
    %753 = vector.shape_cast %752 : vector<2xf32> to vector<2x1xf32>
    %cst_350 = arith.constant 3.200000e+01 : f32
    %754 = vector.broadcast %cst_350 : f32 to vector<2x1xf32>
    %755 = arith.divf %753, %754 : vector<2x1xf32>
    %756 = vector.broadcast %748 : vector<2x1xf32> to vector<2x32xf32>
    %757 = arith.subf %742, %756 : vector<2x32xf32>
    %cst_351 = arith.constant 9.99999997E-7 : f32
    %758 = vector.broadcast %cst_351 : f32 to vector<2x1xf32>
    %759 = arith.addf %755, %758 : vector<2x1xf32>
    %760 = math.rsqrt %759 : vector<2x1xf32>
    %761 = vector.broadcast %760 : vector<2x1xf32> to vector<2x32xf32>
    %762 = arith.mulf %757, %761 : vector<2x32xf32>
    %763 = vector.broadcast %743 : vector<1x32xf32> to vector<2x32xf32>
    %764 = arith.mulf %762, %763 : vector<2x32xf32>
    %765 = vector.broadcast %744 : vector<1x32xf32> to vector<2x32xf32>
    %766 = arith.addf %764, %765 : vector<2x32xf32>
    %c0_352 = arith.constant 0 : index
    %c0_353 = arith.constant 0 : index
    %767 = vector.load %arg30[%c0_352, %c0_353] : memref<2x32xf32, #tpu.memory_space<vmem>>, vector<2x32xf32>
    tpu.vector_store %arg30[%c0_352, %c0_353], %766 {strides = array<i32>} : memref<2x32xf32, #tpu.memory_space<vmem>>, vector<2x32xf32>,
    return
  }
}

</mosaic_0001>

<bundles_post_ra>
// kernel: vlmo_forward.1
= control target key start
LH: loop header
LB: loop body
LE: loop exit
PB: predicated region body
PF: predicated region fallthrough
CT: control target
= control target key end

     0   :  { %s6770_s6 = smov 1   ;;  %s6771_s10 = smov 2   ;;  %s9169_s0 = inlined_call_operand.smem [shape: u32[31], index: -1, kind: input, shape index: {}] }
   0x1   :  { %s6824_s5 = sld [smem:[%s9169_s0]]   ;;  %s6772_s14 = smov 3  }
   0x2   :  { %s6829_s9 = sld [smem:[%s9169_s0 + %s6770_s6]]   ;;  %s6773_s18 = smov 4  }
   0x3   :  { %s6834_s13 = sld [smem:[%s9169_s0 + %s6771_s10]]   ;;  %s6774_s22 = smov 5  }
   0x4   :  { %s6839_s17 = sld [smem:[%s9169_s0 + %s6772_s14]]   ;;  %s6775_s26 = smov 6  }
   0x5   :  { %s6844_s21 = sld [smem:[%s9169_s0 + %s6773_s18]]   ;;  %s6776_s30 = smov 7  }
   0x6   :  { %s6849_s25 = sld [smem:[%s9169_s0 + %s6774_s22]]   ;;  %s6777_s4 = smov 8  }
   0x7   :  { %s6854_s29 = sld [smem:[%s9169_s0 + %s6775_s26]]   ;;  %s6778_s10 = smov 9  }
   0x8   :  { %s6859_s3 = sld [smem:[%s9169_s0 + %s6776_s30]]   ;;  %s6779_s15 = smov 10  }
   0x9   :  { %s6864_s8 = sld [smem:[%s9169_s0 + %s6777_s4]]   ;;  %s6780_s20 = smov 11  }
   0xa   :  { %s6869_s14 = sld [smem:[%s9169_s0 + %s6778_s10]]   ;;  %s6781_s26 = smov 12  }
   0xb   :  { %s6874_s19 = sld [smem:[%s9169_s0 + %s6779_s15]]   ;;  %s6782_s1 = smov 13  }
   0xc   :  { %s6879_s24 = sld [smem:[%s9169_s0 + %s6780_s20]]   ;;  %s6783_s7 = smov 14  }
   0xd   :  { %9197 = sst [smem:[#allocation5_spill]] %s6854_s29  ;;  %s6784_s15 = smov 15  }
   0xe   :  { %s6884_s30 = sld [smem:[%s9169_s0 + %s6781_s26]]   ;;  %s6785_s22 = smov 16  }
   0xf   :  { %s6889_s6 = sld [smem:[%s9169_s0 + %s6782_s1]]   ;;  %s6786_s28 = smov 17  }
  0x10   :  { %s6894_s12 = sld [smem:[%s9169_s0 + %s6783_s7]]   ;;  %s6787_s7 = smov 18  }
  0x11   :  { %s6899_s20 = sld [smem:[%s9169_s0 + %s6784_s15]]   ;;  %s6788_s15 = smov 19  }
  0x12   :  { %s6904_s27 = sld [smem:[%s9169_s0 + %s6785_s22]]   ;;  %s6789_s22 = smov 20  }
  0x13   :  { %s6909_s4 = sld [smem:[%s9169_s0 + %s6786_s28]]   ;;  %s6790_s28 = smov 21  }
  0x14   :  { %s6914_s29 = sld [smem:[%s9169_s0 + %s6787_s7]]   ;;  %s6791_s7 = smov 22  }
  0x16   :  { %9198 = sst [smem:[#allocation6_spill]] %s6894_s12 }
  0x17   :  { %9199 = sst [smem:[#allocation7_spill]] %s6899_s20 }
  0x18   :  { %s6919_s20 = sld [smem:[%s9169_s0 + %s6788_s15]]   ;;  %s6792_s15 = smov 23  }
  0x19   :  { %9200 = sst [smem:[#allocation8_spill]] %s6909_s4 }
  0x1a   :  { %9201 = sst [smem:[#allocation9_spill]] %s6914_s29 }
  0x1b   :  { %s6924_s12 = sld [smem:[%s9169_s0 + %s6789_s22]]   ;;  %s6793_s22 = smov 24  }
  0x1c   :  { %s6929_s4 = sld [smem:[%s9169_s0 + %s6790_s28]]   ;;  %s6794_s28 = smov 25  }
  0x1d   :  { %s6934_s29 = sld [smem:[%s9169_s0 + %s6791_s7]]   ;;  %s6795_s7 = smov 26  }
  0x1e   :  { %9202 = sst [smem:[#allocation10_spill]] %s6919_s20 }
  0x1f   :  { %s6939_s20 = sld [smem:[%s9169_s0 + %s6792_s15]]   ;;  %s6796_s15 = smov 27  }
  0x21   :  { %9203 = sst [smem:[#allocation11_spill]] %s6924_s12 }
  0x22   :  { %9204 = sst [smem:[#allocation12_spill]] %s6929_s4 }
  0x23   :  { %9205 = sst [smem:[#allocation13_spill]] %s6934_s29 }
  0x24   :  { %s6944_s12 = sld [smem:[%s9169_s0 + %s6793_s22]]   ;;  %s6797_s22 = smov 28  }
  0x25   :  { %9206 = sst [smem:[#allocation14_spill]] %s6939_s20 }
  0x26   :  { %s6949_s4 = sld [smem:[%s9169_s0 + %s6794_s28]]   ;;  %s6798_s28 = smov 29  }
  0x27   :  { %s6954_s29 = sld [smem:[%s9169_s0 + %s6795_s7]]   ;;  %s6799_s7 = smov 30  }
  0x28   :  { %s6959_s20 = sld [smem:[%s9169_s0 + %s6796_s15]]  }
  0x2a   :  { %9207 = sst [smem:[#allocation15_spill]] %s6944_s12 }
  0x2b   :  { %s6964_s12 = sld [smem:[%s9169_s0 + %s6797_s22]]  }
  0x2c   :  { %9208 = sst [smem:[#allocation16_spill]] %s6949_s4 }
  0x2d   :  { %9209 = sst [smem:[#allocation17_spill]] %s6954_s29 }
  0x2e   :  { %s6969_s4 = sld [smem:[%s9169_s0 + %s6798_s28]]  }
  0x2f   :  { %s6974_s29 = sld [smem:[%s9169_s0 + %s6799_s7]]  }
  0x30   :  { %v146_v0 = vld [vmem:[%s6859_s3 + $0x78] sm:$0xff]  ;;  %v6978_v1 = vld [vmem:[%s6834_s13] sm:$0xff]  ;;  %vm214_vm0 = vcmask 261120   ;;  %v145_v2 = vld [vmem:[%s6859_s3 + $0x70] sm:$0xff]  ;;  %vm157_vm1 = vcmask 523264  }
  0x31   :  { %164 = vmatpush.msra.mxu0 %v146_v0  ;;  %v215_v3 = vsel %vm214_vm0, %v6978_v1, 0.0  ;;  %v144_v4 = vld [vmem:[%s6859_s3 + $0x68] sm:$0xff]  ;;  %v143_v5 = vld [vmem:[%s6859_s3 + $0x60] sm:$0xff]  ;;  %v154_v7 = vld [vmem:[%s6859_s3 + $0xb8] sm:$0xff] }
  0x32   :  { %216 = vadd.xlane.f32.xlu0 %v215_v3  ;;  %v6986_v6 = vld [vmem:[%s6834_s13 + $0x8] sm:$0xff]  ;;  %v153_v8 = vld [vmem:[%s6859_s3 + $0xb0] sm:$0xff]  ;;  %195 = vmatpush.msra.mxu1 %v154_v7  ;;  %v142_v9 = vld [vmem:[%s6859_s3 + $0x58] sm:$0xff] }
  0x33   :  { %165 = vmatpush.msra.mxu0 %v145_v2  ;;  %v152_v10 = vld [vmem:[%s6859_s3 + $0xa8] sm:$0xff]  ;;  %v218_v11 = vsel %vm214_vm0, %v6986_v6, 0.0  ;;  %v141_v12 = vld [vmem:[%s6859_s3 + $0x50] sm:$0xff]  ;;  %v151_v13 = vld [vmem:[%s6859_s3 + $0xa0] sm:$0xff] }
  0x34   :  { %196 = vmatpush.msra.mxu1 %v153_v8  ;;  %v140_v14 = vld [vmem:[%s6859_s3 + $0x48] sm:$0xff]  ;;  %v150_v15 = vld [vmem:[%s6859_s3 + $0x98] sm:$0xff]  ;;  %v139_v16 = vld [vmem:[%s6859_s3 + $0x40] sm:$0xff] }
  0x35   :  { %166 = vmatpush.msra.mxu0 %v144_v4  ;;  %v149_v17 = vld [vmem:[%s6859_s3 + $0x90] sm:$0xff]  ;;  %v138_v18 = vld [vmem:[%s6859_s3 + $0x38] sm:$0xff]  ;;  %v148_v19 = vld [vmem:[%s6859_s3 + $0x88] sm:$0xff] }
  0x36   :  { %197 = vmatpush.msra.mxu1 %v152_v10  ;;  %v137_v20 = vld [vmem:[%s6859_s3 + $0x30] sm:$0xff]  ;;  %v147_v21 = vld [vmem:[%s6859_s3 + $0x80] sm:$0xff]  ;;  %v136_v22 = vld [vmem:[%s6859_s3 + $0x28] sm:$0xff] }
  0x37   :  { %167 = vmatpush.msra.mxu0 %v143_v5  ;;  %v128_v23 = vld [vmem:[%s6824_s5 + $0x8] sm:$0xff]  ;;  %v135_v24 = vld [vmem:[%s6859_s3 + $0x20] sm:$0xff]  ;;  %v134_v25 = vld [vmem:[%s6859_s3 + $0x18] sm:$0xff] }
  0x38   :  { %198 = vmatpush.msra.mxu1 %v151_v13 }
  0x39   :  { %168 = vmatpush.msra.mxu0 %v142_v9 }
  0x3a   :  { %219 = vadd.xlane.f32.xlu0 %v218_v11  ;;  %199 = vmatpush.msra.mxu1 %v150_v15 }
  0x3b   :  { %169 = vmatpush.msra.mxu0 %v141_v12 }
  0x3c   :  { %200 = vmatpush.msra.mxu1 %v149_v17 }
  0x3d   :  { %170 = vmatpush.msra.mxu0 %v140_v14 }
  0x3e   :  { %201 = vmatpush.msra.mxu1 %v148_v19 }
  0x3f   :  { %171 = vmatpush.msra.mxu0 %v139_v16 }
  0x40   :  { %202 = vmatpush.msra.mxu1 %v147_v21 }
  0x41   :  { %172 = vmatpush.msra.mxu0 %v138_v18  ;;  %5760 = vmatmul.msk.f32.vlgmr.msra.gmra.mxu1 %vm157_vm1, %v128_v23 }
  0x43   :  { %173 = vmatpush.msra.mxu0 %v137_v20 }
  0x45   :  { %174 = vmatpush.msra.mxu0 %v136_v22 }
  0x47   :  { %175 = vmatpush.msra.mxu0 %v135_v24 }
  0x48   :  { %66 = vsyncpa [#allocation3], 0  ;;  %v133_v26 = vld [vmem:[%s6859_s3 + $0x10] sm:$0xff]  ;;  %v130_v27 = vld [vmem:[%s6824_s5 + $0x18] sm:$0xff]  ;;  %v6800_v32 = vmov 32.0   ;;  %s6801_s0 = smov 88  }
  0x49   :  { %176 = vmatpush.msra.mxu0 %v134_v25  ;;  %v132_v28 = vld [vmem:[%s6859_s3 + $0x8] sm:$0xff]  ;;  %v131_v29 = vld [vmem:[%s6859_s3] sm:$0xff]  ;;  %5761 = vmatmul.msk.f32.gmra.mxu1 %vm157_vm1, %v130_v27  ;;  %v129_v31 = vld [vmem:[%s6824_s5 + $0x10] sm:$0xff]  ;;  %6376 = vrcp.f32 %v6800_v32  ;;  %s6804_s13 = smov 80   ;;  %s6807_s3 = smov 104  }
  0x4a   :  { %v127_v30 = vld [vmem:[%s6824_s5] sm:$0xff]  ;;  %v156_v55 = vld [vmem:[%s6829_s9 + $0x8] sm:$0xff]  ;;  %s6802_s5 = smov 96   ;;  %s9193_s15 = smov 64  }
  0x4b   :  { %177 = vmatpush.msra.mxu0 %v133_v26  ;;  %v155_v49 = vld [vmem:[%s6829_s9] sm:$0xff]  ;;  %s6803_s9 = smov 120   ;;  %s9189_s16 = smov 48  }
  0x4c   :  { %v6336_v11 = vld [vmem:[%s6839_s17] ss:$0 sm:$0xff]  ;;  %s6805_s17 = smov 72   ;;  %s9195_s18 = smov 56  }
  0x4d   :  { %178 = vmatpush.msra.mxu0 %v132_v28  ;;  %v6337_v15 = vld [vmem:[%s6844_s21] ss:$0 sm:$0xff]  ;;  %s6806_s21 = smov 112   ;;  %s9191_s22 = smov 40  }
  0x4e   :  { %s9187_s23 = smov 8   ;;  %s9185_s26 = smov 16  }
  0x4f   :  { %179 = vmatpush.msra.mxu0 %v131_v29  ;;  %v6377_v33 = vpop.eup %6376  ;;  %s9183_s28 = smov 24   ;;  %s9210_s1 = sld [smem:[#allocation11_spill]] }
  0x50   :  { %180 = vmatmul.f32.vlgmr.msra.gmra.mxu0 %v127_v30  ;;  %v222_v34 = vmul.f32 32.0, %v6377_v33  ;;  %vm226_vm2 = vweird.f32 %v6377_v33  ;;  %s9211_s2 = sld [smem:[#allocation6_spill]] }
  0x51   :  { %s9212_s7 = sld [smem:[#allocation7_spill]] }
  0x52   :  { %v223_v35 = vsub.f32 1.0, %v222_v34  ;;  %s9213_s10 = sld [smem:[#allocation9_spill]] }
  0x53   :  { %s9214_s11 = sld [smem:[#allocation8_spill]] }
  0x54   :  { %v224_v36 = vmul.f32 %v6377_v33, %v223_v35 }
  0x56   :  { %v225_v37 = vadd.f32 %v6377_v33, %v224_v36 }
  0x58   :  { %183 = vmatmul.f32.gmra.mxu0 %v129_v31  ;;  %v7016_v38 = vsel %vm226_vm2, %v6377_v33, %v225_v37 }
  0xa5   :  { %v217_v39 = vpop.xlane.xlu0 %216 }
  0xa6   :  { %v228_v40 = vmul.f32 %v7016_v38, %v217_v39 }
  0xa8   :  { %v230_v41 = vsub.f32 %v6978_v1, %v228_v40 }
  0xaa   :  { %v232_v42 = vmul.f32 %v230_v41, %v230_v41 }
  0xac   :  { %v234_v43 = vsel %vm214_vm0, %v232_v42, 0.0  ;;  %v285_v42 = vld [vmem:[%s6874_s19 + $0x18] sm:$0xff] }
  0xad   :  { %235 = vadd.xlane.f32.xlu1 %v234_v43  ;;  %v220_v44 = vpop.xlane.xlu0 %219  ;;  %421 = vmatpush.msra.mxu2 %v285_v42 }
  0xae   :  { %v229_v45 = vmul.f32 %v7016_v38, %v220_v44  ;;  %v284_v44 = vld [vmem:[%s6874_s19 + $0x10] sm:$0xff] }
  0xaf   :  { %422 = vmatpush.msra.mxu2 %v284_v44 }
  0xb0   :  { %v231_v46 = vsub.f32 %v6986_v6, %v229_v45 }
  0xb2   :  { %v233_v47 = vmul.f32 %v231_v46, %v231_v46 }
  0xb4   :  { %v237_v48 = vsel %vm214_vm0, %v233_v47, 0.0  ;;  %v283_v47 = vld [vmem:[%s6874_s19 + $0x8] sm:$0xff] }
  0xb5   :  { %238 = vadd.xlane.f32.xlu1 %v237_v48  ;;  %423 = vmatpush.msra.mxu2 %v283_v47 }
  0xbe   :  { %v204_v50 = vpop.f32.mrf.mxu1 }
  0xc6   :  { %v207_v57 = vpop.f32.mrf.mxu1 }
  0xcd   :  { %v181_v51 = vpop.f32.mrf.mxu0 }
  0xce   :  { %v182_v52 = vadd.f32 %v181_v51, %v155_v49  ;;  %v282_v49 = vld [vmem:[%s6874_s19] sm:$0xff] }
  0xcf   :  { %424 = vmatpush.msra.mxu2 %v282_v49 }
  0xd0   :  { %v7025_v53 = vadd.f32 %v204_v50, %v182_v52 }
  0xd2   :  { %v292_v54 = vsel %vm214_vm0, %v7025_v53, 0.0 }
  0xd3   :  { %293 = vadd.xlane.f32.xlu2 %v292_v54 }
  0xd5   :  { %v184_v56 = vpop.f32.mrf.mxu0 }
  0xd6   :  { %v185_v58 = vadd.f32 %v184_v56, %v156_v55 }
  0xd8   :  { %v7030_v59 = vadd.f32 %v207_v57, %v185_v58 }
  0xda   :  { %v295_v60 = vsel %vm214_vm0, %v7030_v59, 0.0 }
  0xdb   :  { %296 = vadd.xlane.f32.xlu2 %v295_v60 }
 0x120   :  { %v236_v61 = vpop.xlane.xlu1 %235 }
 0x121   :  { %v240_v62 = vmul.f32 %v236_v61, %v7016_v38 }
 0x123   :  { %v242_v63 = vadd.f32 1e-12, %v240_v62 }
 0x125   :  { %6378 = vrsqrt.f32 %v242_v63  ;;  %vm250_vm4 = vweird.f32 %v242_v63 }
 0x128   :  { %v239_v0 = vpop.xlane.xlu1 %238 }
 0x129   :  { %v241_v1 = vmul.f32 %v239_v0, %v7016_v38 }
 0x12b   :  { %v6379_v2 = vpop.eup %6378  ;;  %v243_v3 = vadd.f32 1e-12, %v241_v1 }
 0x12c   :  { %v245_v4 = vmul.f32 %v6379_v2, %v242_v63  ;;  %vm251_vm3 = vweird.f32 %v6379_v2 }
 0x12d   :  { %6380 = vrsqrt.f32 %v243_v3  ;;  %vm252_vm5 = vmor %vm250_vm4, %vm251_vm3  ;;  %vm260_vm7 = vweird.f32 %v243_v3 }
 0x12e   :  { %v246_v5 = vmul.f32 %v6379_v2, %v245_v4  ;;  %v6338_v4 = vld [vmem:[%s6864_s8] ss:$0 sm:$0xff] }
 0x130   :  { %v247_v6 = vmul.f32 0.5, %v246_v5 }
 0x132   :  { %v248_v7 = vsub.f32 1.5, %v247_v6 }
 0x133   :  { %v6381_v8 = vpop.eup %6380 }
 0x134   :  { %v249_v9 = vmul.f32 %v6379_v2, %v248_v7  ;;  %v255_v10 = vmul.f32 %v6381_v8, %v243_v3  ;;  %vm261_vm6 = vweird.f32 %v6381_v8 }
 0x135   :  { %vm262_vm8 = vmor %vm260_vm7, %vm261_vm6  ;;  %vm450_vm6 = vcmask 64512   ;;  %vm1151_vm7 = vcmask 130048  }
 0x136   :  { %v256_v12 = vmul.f32 %v6381_v8, %v255_v10  ;;  %v253_v13 = vsel %vm252_vm5, %v6379_v2, %v249_v9 }
 0x137   :  { %v264_v14 = vmul.f32 %v253_v13, %v230_v41 }
 0x138   :  { %v257_v16 = vmul.f32 0.5, %v256_v12 }
 0x139   :  { %v269_v17 = vmul.f32 %v6336_v11, %v264_v14 }
 0x13a   :  { %v258_v18 = vsub.f32 1.5, %v257_v16 }
 0x13b   :  { %v7038_v19 = vadd.f32 %v6337_v15, %v269_v17 }
 0x13c   :  { %v259_v20 = vmul.f32 %v6381_v8, %v258_v18 }
 0x13d   :  { %v298_v21 = vsel %vm214_vm0, %v7038_v19, 0.0 }
 0x13e   :  { %299 = vadd.xlane.f32.xlu0 %v298_v21  ;;  %v263_v22 = vsel %vm262_vm8, %v6381_v8, %v259_v20  ;;  %v6339_v8 = vld [vmem:[%s6869_s14] ss:$0 sm:$0xff]  ;;  %vm1156_vm8 = vcmask 195584  }
 0x13f   :  { %v265_v23 = vmul.f32 %v263_v22, %v231_v46 }
 0x141   :  { %v270_v24 = vmul.f32 %v6336_v11, %v265_v23 }
 0x143   :  { %v7042_v25 = vadd.f32 %v6337_v15, %v270_v24 }
 0x145   :  { %v301_v26 = vsel %vm214_vm0, %v7042_v25, 0.0 }
 0x146   :  { %302 = vadd.xlane.f32.xlu1 %v301_v26  ;;  %v294_v27 = vpop.xlane.xlu2 %293 }
 0x147   :  { %v304_v28 = vmul.f32 %v294_v27, %v7016_v38 }
 0x149   :  { %v308_v29 = vsub.f32 %v7025_v53, %v304_v28 }
 0x14b   :  { %v312_v30 = vmul.f32 %v308_v29, %v308_v29 }
 0x14d   :  { %v316_v31 = vsel %vm214_vm0, %v312_v30, 0.0 }
 0x14e   :  { %317 = vadd.xlane.f32.xlu2 %v316_v31  ;;  %v297_v32 = vpop.xlane.xlu2 %296 }
 0x14f   :  { %v305_v33 = vmul.f32 %v297_v32, %v7016_v38 }
 0x151   :  { %v309_v34 = vsub.f32 %v7030_v59, %v305_v33 }
 0x153   :  { %v313_v35 = vmul.f32 %v309_v34, %v309_v34 }
 0x155   :  { %v319_v36 = vsel %vm214_vm0, %v313_v35, 0.0 }
 0x156   :  { %320 = vadd.xlane.f32.xlu0 %v319_v36 }
 0x1b1   :  { %v300_v37 = vpop.xlane.xlu0 %299 }
 0x1b2   :  { %v306_v39 = vmul.f32 %v300_v37, %v7016_v38 }
 0x1b4   :  { %v7054_v40 = vsub.f32 %v7038_v19, %v306_v39 }
 0x1b6   :  { %v314_v41 = vmul.f32 %v7054_v40, %v7054_v40 }
 0x1b8   :  { %v322_v43 = vsel %vm214_vm0, %v314_v41, 0.0 }
 0x1b9   :  { %v303_v45 = vpop.xlane.xlu1 %302  ;;  %323 = vadd.xlane.f32.xlu1 %v322_v43 }
 0x1ba   :  { %v307_v46 = vmul.f32 %v303_v45, %v7016_v38 }
 0x1bc   :  { %v7064_v48 = vsub.f32 %v7042_v25, %v307_v46 }
 0x1be   :  { %v315_v50 = vmul.f32 %v7064_v48, %v7064_v48 }
 0x1c0   :  { %v325_v51 = vsel %vm214_vm0, %v315_v50, 0.0  ;;  %v6340_v50 = vld [vmem:[%s6879_s24] ss:$0 sm:$0xff] }
 0x1c1   :  { %326 = vadd.xlane.f32.xlu2 %v325_v51  ;;  %v318_v52 = vpop.xlane.xlu2 %317 }
 0x1c2   :  { %v328_v54 = vmul.f32 %v318_v52, %v7016_v38 }
 0x1c4   :  { %v332_v55 = vadd.f32 1e-06, %v328_v54 }
 0x1c6   :  { %6382 = vrsqrt.f32 %v332_v55  ;;  %vm342_vm10 = vweird.f32 %v332_v55 }
 0x1c9   :  { %v321_v56 = vpop.xlane.xlu0 %320 }
 0x1ca   :  { %v329_v57 = vmul.f32 %v321_v56, %v7016_v38 }
 0x1cc   :  { %v6383_v58 = vpop.eup %6382  ;;  %v333_v60 = vadd.f32 1e-06, %v329_v57 }
 0x1cd   :  { %v337_v61 = vmul.f32 %v6383_v58, %v332_v55  ;;  %vm343_vm9 = vweird.f32 %v6383_v58 }
 0x1ce   :  { %6384 = vrsqrt.f32 %v333_v60  ;;  %vm344_vm11 = vmor %vm342_vm10, %vm343_vm9  ;;  %vm352_vm13 = vweird.f32 %v333_v60 }
 0x1cf   :  { %v338_v62 = vmul.f32 %v6383_v58, %v337_v61 }
 0x1d1   :  { %v339_v63 = vmul.f32 0.5, %v338_v62 }
 0x1d3   :  { %v340_v0 = vsub.f32 1.5, %v339_v63 }
 0x1d4   :  { %v6385_v1 = vpop.eup %6384 }
 0x1d5   :  { %v341_v2 = vmul.f32 %v6383_v58, %v340_v0  ;;  %v347_v3 = vmul.f32 %v6385_v1, %v333_v60  ;;  %vm353_vm12 = vweird.f32 %v6385_v1 }
 0x1d6   :  { %vm354_vm14 = vmor %vm352_vm13, %vm353_vm12 }
 0x1d7   :  { %v348_v5 = vmul.f32 %v6385_v1, %v347_v3  ;;  %v345_v6 = vsel %vm344_vm11, %v6383_v58, %v341_v2 }
 0x1d8   :  { %v376_v7 = vmul.f32 %v345_v6, %v308_v29 }
 0x1d9   :  { %v349_v9 = vmul.f32 0.5, %v348_v5 }
 0x1da   :  { %v383_v10 = vmul.f32 %v6338_v4, %v376_v7 }
 0x1db   :  { %v350_v11 = vsub.f32 1.5, %v349_v9 }
 0x1dc   :  { %v390_v12 = vadd.f32 %v6339_v8, %v383_v10 }
 0x1dd   :  { %v351_v13 = vmul.f32 %v6385_v1, %v350_v11 }
 0x1de   :  { %5762 = vmatmul.msk.f32.vlgmr.msra.gmra.mxu2 %vm214_vm0, %v390_v12 }
 0x1df   :  { %v355_v14 = vsel %vm354_vm14, %v6385_v1, %v351_v13 }
 0x1e0   :  { %v377_v15 = vmul.f32 %v355_v14, %v309_v34 }
 0x1e2   :  { %v384_v16 = vmul.f32 %v6338_v4, %v377_v15 }
 0x1e4   :  { %v391_v17 = vadd.f32 %v6339_v8, %v384_v16 }
 0x1e6   :  { %5763 = vmatmul.msk.f32.gmra.mxu2 %vm214_vm0, %v391_v17 }
 0x22c   :  { %v324_v18 = vpop.xlane.xlu1 %323 }
 0x22d   :  { %v330_v20 = vmul.f32 %v324_v18, %v7016_v38 }
 0x22f   :  { %v334_v21 = vadd.f32 1e-06, %v330_v20 }
 0x231   :  { %6386 = vrsqrt.f32 %v334_v21  ;;  %vm362_vm1 = vweird.f32 %v334_v21 }
 0x234   :  { %v327_v22 = vpop.xlane.xlu2 %326 }
 0x235   :  { %v331_v23 = vmul.f32 %v327_v22, %v7016_v38 }
 0x237   :  { %v6387_v24 = vpop.eup %6386  ;;  %v335_v26 = vadd.f32 1e-06, %v331_v23 }
 0x238   :  { %v357_v27 = vmul.f32 %v6387_v24, %v334_v21  ;;  %vm363_vm15 = vweird.f32 %v6387_v24 }
 0x239   :  { %6388 = vrsqrt.f32 %v335_v26  ;;  %vm364_vm2 = vmor %vm362_vm1, %vm363_vm15  ;;  %vm372_vm4 = vweird.f32 %v335_v26 }
 0x23a   :  { %v358_v28 = vmul.f32 %v6387_v24, %v357_v27 }
 0x23c   :  { %v359_v29 = vmul.f32 0.5, %v358_v28 }
 0x23e   :  { %v360_v30 = vsub.f32 1.5, %v359_v29 }
 0x23f   :  { %v6389_v31 = vpop.eup %6388 }
 0x240   :  { %v361_v32 = vmul.f32 %v6387_v24, %v360_v30  ;;  %v367_v33 = vmul.f32 %v6389_v31, %v335_v26  ;;  %vm373_vm3 = vweird.f32 %v6389_v31 }
 0x241   :  { %vm374_vm5 = vmor %vm372_vm4, %vm373_vm3 }
 0x242   :  { %v368_v34 = vmul.f32 %v6389_v31, %v367_v33  ;;  %v365_v35 = vsel %vm364_vm2, %v6387_v24, %v361_v32 }
 0x243   :  { %v378_v36 = vmul.f32 %v365_v35, %v7054_v40 }
 0x244   :  { %v369_v37 = vmul.f32 0.5, %v368_v34 }
 0x245   :  { %v385_v39 = vmul.f32 %v6338_v4, %v378_v36 }
 0x246   :  { %v370_v41 = vsub.f32 1.5, %v369_v37 }
 0x247   :  { %v392_v42 = vadd.f32 %v6339_v8, %v385_v39 }
 0x248   :  { %v371_v43 = vmul.f32 %v6389_v31, %v370_v41 }
 0x249   :  { %5764 = vmatmul.msk.f32.gmra.mxu2 %vm214_vm0, %v392_v42 }
 0x24a   :  { %v375_v44 = vsel %vm374_vm5, %v6389_v31, %v371_v43 }
 0x24b   :  { %v379_v45 = vmul.f32 %v375_v44, %v7064_v48 }
 0x24d   :  { %v386_v46 = vmul.f32 %v6338_v4, %v379_v45  ;;  %v276_v45 = vld [vmem:[%s6849_s25] sm:$0xff] }
 0x24f   :  { %v393_v47 = vadd.f32 %v6339_v8, %v386_v46 }
 0x251   :  { %5765 = vmatmul.msk.f32.gmra.mxu2 %vm214_vm0, %v393_v47 }
 0x261   :  { %v426_v49 = vpop.f32.mrf.mxu2 }
 0x262   :  { %v427_v56 = vadd.f32 %v6340_v50, %v426_v49 }
 0x269   :  { %v429_v40 = vpop.f32.mrf.mxu2 }
 0x26a   :  { %v7089_v48 = vadd.f32 %v6340_v50, %v429_v40 }
 0x26c   :  { %v7135_v57 = vpack.i.bf16 %v427_v56, %v7089_v48 }
 0x2cc   :  { %v432_v51 = vpop.f32.mrf.mxu2 }
 0x2cd   :  { %v7083_v52 = vadd.f32 %v6340_v50, %v432_v51 }
 0x2cf   :  { %613 = vrot.lane.b32.xlu0 %v7083_v52, %s6801_s0  ;;  %446 = vrot.lane.b32.xlu2 %v7083_v52, %s6802_s5 }
 0x2d4   :  { %v435_v54 = vpop.f32.mrf.mxu2 }
 0x2d5   :  { %v7091_v55 = vadd.f32 %v6340_v50, %v435_v54 }
 0x2d7   :  { %444 = vrot.lane.b32.xlu2 %v7089_v48, %s6802_s5  ;;  %615 = vrot.lane.b32.xlu1 %v7091_v55, %s6801_s0  ;;  %v7145_v58 = vpack.i.bf16 %v7083_v52, %v7091_v55 }
 0x2d8   :  { %448 = vrot.lane.b32.xlu0 %v7091_v55, %s6802_s5 }
 0x2df   :  { %609 = vrot.lane.b32.xlu2 %v427_v56, %s6801_s0  ;;  %611 = vrot.lane.b32.xlu1 %v7089_v48, %s6801_s0 }
 0x2e0   :  { %442 = vrot.lane.b32.xlu0 %v427_v56, %s6802_s5 }
 0x2e7   :  { %605 = vrot.lane.b32.xlu2 %v7083_v52, %s6803_s9  ;;  %601 = vrot.lane.b32.xlu1 %v427_v56, %s6803_s9 }
 0x2e8   :  { %603 = vrot.lane.b32.xlu0 %v7089_v48, %s6803_s9 }
 0x2ef   :  { %779 = vrot.lane.b32.xlu2 %v7083_v52, %s6804_s13  ;;  %945 = vrot.lane.b32.xlu1 %v7083_v52, %s6805_s17 }
 0x2f0   :  { %775 = vrot.lane.b32.xlu0 %v427_v56, %s6804_s13 }
 0x2f7   :  { %777 = vrot.lane.b32.xlu2 %v7089_v48, %s6804_s13  ;;  %781 = vrot.lane.b32.xlu1 %v7091_v55, %s6804_s13 }
 0x2f8   :  { %947 = vrot.lane.b32.xlu0 %v7091_v55, %s6805_s17 }
 0x2ff   :  { %941 = vrot.lane.b32.xlu2 %v427_v56, %s6805_s17  ;;  %943 = vrot.lane.b32.xlu1 %v7089_v48, %s6805_s17 }
 0x300   :  { %607 = vrot.lane.b32.xlu0 %v7091_v55, %s6803_s9 }
 0x307   :  { %769 = vrot.lane.b32.xlu2 %v7089_v48, %s6806_s21  ;;  %767 = vrot.lane.b32.xlu1 %v427_v56, %s6806_s21 }
 0x308   :  { %933 = vrot.lane.b32.xlu0 %v427_v56, %s6807_s3 }
 0x30f   :  { %937 = vrot.lane.b32.xlu2 %v7083_v52, %s6807_s3  ;;  %935 = vrot.lane.b32.xlu1 %v7089_v48, %s6807_s3 }
 0x310   :  { %771 = vrot.lane.b32.xlu0 %v7083_v52, %s6806_s21 }
 0x317   :  { %6177 = vrot.lane.b32.xlu2 %v7135_v57, %s9193_s15  ;;  %773 = vrot.lane.b32.xlu1 %v7091_v55, %s6806_s21 }
 0x318   :  { %939 = vrot.lane.b32.xlu0 %v7091_v55, %s6807_s3 }
 0x31f   :  { %6197 = vrot.lane.b32.xlu2 %v7145_v58, %s9189_s16  ;;  %6182 = vrot.lane.b32.xlu1 %v7135_v57, %s9195_s18 }
 0x320   :  { %6192 = vrot.lane.b32.xlu0 %v7145_v58, %s9195_s18 }
 0x327   :  { %6187 = vrot.lane.b32.xlu1 %v7145_v58, %s9193_s15 }
 0x329   :  { %v447_v60 = vpop.permute.xlu2 %446 }
 0x331   :  { %v445_v62 = vpop.permute.xlu2 %444 }
 0x339   :  { %v610_v1 = vpop.permute.xlu2 %609 }
 0x341   :  { %v614_v61 = vpop.permute.xlu0 %613  ;;  %v606_v4 = vpop.permute.xlu2 %605 }
 0x349   :  { %v616_v63 = vpop.permute.xlu1 %615  ;;  %v780_v8 = vpop.permute.xlu2 %779 }
 0x34a   :  { %v449_v0 = vpop.permute.xlu0 %448  ;;  %5778 = vmatpush.xpose.msk.msrb.mxu2 %vm450_vm6, %v616_v63 }
 0x34b   :  { %5766 = vmatpush.xpose.msk.msra.mxu3 %vm450_vm6, %v449_v0 }
 0x34e   :  { %5779 = vmatpush.xpose.msk.msrb.mxu2 %vm450_vm6, %v614_v61 }
 0x34f   :  { %5767 = vmatpush.xpose.msk.msra.mxu3 %vm450_vm6, %v447_v60 }
 0x351   :  { %v612_v2 = vpop.permute.xlu1 %611  ;;  %v778_v12 = vpop.permute.xlu2 %777 }
 0x352   :  { %v443_v3 = vpop.permute.xlu0 %442  ;;  %5780 = vmatpush.xpose.msk.msrb.mxu2 %vm450_vm6, %v612_v2  ;;  %v278_v2 = vld [vmem:[%s6849_s25 + $0x10] sm:$0xff] }
 0x353   :  { %5768 = vmatpush.xpose.msk.msra.mxu3 %vm450_vm6, %v445_v62 }
 0x356   :  { %5781 = vmatpush.xpose.msk.msrb.mxu2 %vm450_vm6, %v610_v1 }
 0x357   :  { %5769 = vmatpush.xpose.msk.msra.mxu3 %vm450_vm6, %v443_v3 }
 0x359   :  { %v602_v5 = vpop.permute.xlu1 %601  ;;  %v942_v15 = vpop.permute.xlu2 %941 }
 0x35a   :  { %v604_v6 = vpop.permute.xlu0 %603  ;;  %5770 = vmatmul.msk.f32.vlgmr.msra.gmra.mxu3 %vm450_vm6, %v427_v56  ;;  %5782 = vmatmul.msk.f32.vlgmr.msrb.gmra.mxu2 %vm450_vm6, %v602_v5 }
 0x361   :  { %v946_v7 = vpop.permute.xlu1 %945  ;;  %v770_v18 = vpop.permute.xlu2 %769 }
 0x362   :  { %v776_v9 = vpop.permute.xlu0 %775  ;;  %5771 = vmatmul.msk.f32.gmra.mxu3 %vm450_vm6, %v7089_v48  ;;  %5783 = vmatmul.msk.f32.gmra.mxu2 %vm450_vm6, %v604_v6  ;;  %v277_v48 = vld [vmem:[%s6849_s25 + $0x8] sm:$0xff] }
 0x369   :  { %v782_v10 = vpop.permute.xlu1 %781  ;;  %v938_v23 = vpop.permute.xlu2 %937 }
 0x36a   :  { %v948_v11 = vpop.permute.xlu0 %947  ;;  %5772 = vmatmul.msk.f32.gmra.mxu3 %vm450_vm6, %v7083_v52  ;;  %5784 = vmatmul.msk.f32.gmra.mxu2 %vm450_vm6, %v606_v4 }
 0x36b   :  { %5790 = vmatpush.xpose.msk.msrb.mxu3 %vm450_vm6, %v782_v10  ;;  %5802 = vmatpush.xpose.msk.msra.mxu2 %vm450_vm6, %v948_v11  ;;  %v279_v10 = vld [vmem:[%s6849_s25 + $0x18] sm:$0xff] }
 0x36f   :  { %5791 = vmatpush.xpose.msk.msrb.mxu3 %vm450_vm6, %v780_v8  ;;  %5803 = vmatpush.xpose.msk.msra.mxu2 %vm450_vm6, %v946_v7 }
 0x371   :  { %v944_v13 = vpop.permute.xlu1 %943  ;;  %v6178_v29 = vpop.permute.xlu2 %6177 }
 0x372   :  { %v608_v14 = vpop.permute.xlu0 %607  ;;  %5773 = vmatmul.msk.f32.gmra.mxu3 %vm450_vm6, %v7091_v55  ;;  %v6179_v37 = vunpack.i.l.bf16 %v6178_v29  ;;  %v6180_v39 = vunpack.i.h.bf16 %v6178_v29 }
 0x373   :  { %5785 = vmatmul.msk.f32.gmra.mxu2 %vm450_vm6, %v608_v14  ;;  %5792 = vmatpush.xpose.msk.msrb.mxu3 %vm450_vm6, %v778_v12 }
 0x374   :  { %5804 = vmatpush.xpose.msk.msra.mxu2 %vm450_vm6, %v944_v13 }
 0x377   :  { %5793 = vmatpush.xpose.msk.msrb.mxu3 %vm450_vm6, %v776_v9 }
 0x378   :  { %5805 = vmatpush.xpose.msk.msra.mxu2 %vm450_vm6, %v942_v15 }
 0x379   :  { %v768_v16 = vpop.permute.xlu1 %767  ;;  %v6198_v36 = vpop.permute.xlu2 %6197 }
 0x37a   :  { %v934_v17 = vpop.permute.xlu0 %933  ;;  %5794 = vmatmul.msk.f32.vlgmr.msrb.gmra.mxu3 %vm450_vm6, %v768_v16  ;;  %v6199_v41 = vunpack.i.l.bf16 %v6198_v36  ;;  %v6200_v42 = vunpack.i.h.bf16 %v6198_v36 }
 0x37b   :  { %5806 = vmatmul.msk.f32.vlgmr.msra.gmra.mxu2 %vm450_vm6, %v934_v17 }
 0x381   :  { %v936_v20 = vpop.permute.xlu1 %935 }
 0x382   :  { %v772_v21 = vpop.permute.xlu0 %771  ;;  %5795 = vmatmul.msk.f32.gmra.mxu3 %vm450_vm6, %v770_v18 }
 0x383   :  { %5807 = vmatmul.msk.f32.gmra.mxu2 %vm450_vm6, %v936_v20 }
 0x389   :  { %v774_v22 = vpop.permute.xlu1 %773 }
 0x38a   :  { %v940_v24 = vpop.permute.xlu0 %939  ;;  %5796 = vmatmul.msk.f32.gmra.mxu3 %vm450_vm6, %v772_v21 }
 0x38b   :  { %5808 = vmatmul.msk.f32.gmra.mxu2 %vm450_vm6, %v938_v23 }
 0x391   :  { %v6183_v26 = vpop.permute.xlu1 %6182 }
 0x392   :  { %v6193_v27 = vpop.permute.xlu0 %6192  ;;  %5797 = vmatmul.msk.f32.gmra.mxu3 %vm450_vm6, %v774_v22  ;;  %v6184_v31 = vunpack.i.l.bf16 %v6183_v26  ;;  %v6185_v33 = vunpack.i.h.bf16 %v6183_v26 }
 0x393   :  { %5809 = vmatmul.msk.f32.gmra.mxu2 %vm450_vm6, %v940_v24  ;;  %v6194_v28 = vunpack.i.l.bf16 %v6193_v27  ;;  %v6195_v30 = vunpack.i.h.bf16 %v6193_v27 }
 0x395   :  { %750 = vmatpush.msrb.mxu0 %v6194_v28 }
 0x397   :  { %751 = vmatpush.msrb.mxu0 %v6195_v30 }
 0x399   :  { %752 = vmatpush.msrb.mxu0 %v6184_v31  ;;  %v6188_v32 = vpop.permute.xlu1 %6187 }
 0x39a   :  { %v6189_v34 = vunpack.i.l.bf16 %v6188_v32  ;;  %v6190_v35 = vunpack.i.h.bf16 %v6188_v32 }
 0x39b   :  { %753 = vmatpush.msrb.mxu0 %v6185_v33 }
 0x39c   :  { %584 = vmatpush.msrb.mxu1 %v6189_v34 }
 0x39e   :  { %585 = vmatpush.msrb.mxu1 %v6190_v35 }
 0x3a0   :  { %586 = vmatpush.msrb.mxu1 %v6179_v37 }
 0x3a2   :  { %587 = vmatpush.msrb.mxu1 %v6180_v39 }
 0x3a4   :  { %916 = vmatpush.msra.mxu1 %v6199_v41 }
 0x3a6   :  { %917 = vmatpush.msra.mxu1 %v6200_v42 }
 0x3dd   :  { %v484_v43 = vpop.f32.mrf.mxu3  ;;  %v650_v44 = vpop.f32.mrf.mxu2 }
 0x3de   :  { %v496_v46 = vmul.f32 0.35355338, %v484_v43  ;;  %v662_v47 = vmul.f32 0.35355338, %v650_v44 }
 0x3e0   :  { %v7191_v49 = vadd.f32 %v496_v46, %v276_v45  ;;  %v7193_v40 = vadd.f32 %v662_v47, %v276_v45 }
 0x3e2   :  { %v504_v50 = vsel %vm214_vm0, %v7191_v49, -inf  ;;  %v670_v51 = vsel %vm214_vm0, %v7193_v40, -inf }
 0x3e3   :  { %505 = vmax.xlane.f32.xlu2 %v504_v50  ;;  %671 = vmax.xlane.f32.xlu1 %v670_v51 }
 0x3e5   :  { %v487_v52 = vpop.f32.mrf.mxu3  ;;  %v653_v54 = vpop.f32.mrf.mxu2 }
 0x3e6   :  { %v497_v55 = vmul.f32 0.35355338, %v487_v52  ;;  %v663_v56 = vmul.f32 0.35355338, %v653_v54 }
 0x3e8   :  { %v7200_v60 = vadd.f32 %v497_v55, %v277_v48  ;;  %v7202_v61 = vadd.f32 %v663_v56, %v277_v48 }
 0x3ea   :  { %v507_v62 = vsel %vm214_vm0, %v7200_v60, -inf  ;;  %v673_v63 = vsel %vm214_vm0, %v7202_v61, -inf }
 0x3eb   :  { %508 = vmax.xlane.f32.xlu0 %v507_v62  ;;  %674 = vmax.xlane.f32.xlu2 %v673_v63 }
 0x3ed   :  { %v490_v0 = vpop.f32.mrf.mxu3  ;;  %v656_v1 = vpop.f32.mrf.mxu2 }
 0x3ee   :  { %v498_v3 = vmul.f32 0.35355338, %v490_v0  ;;  %v664_v4 = vmul.f32 0.35355338, %v656_v1 }
 0x3f0   :  { %v7209_v5 = vadd.f32 %v498_v3, %v278_v2  ;;  %v7211_v6 = vadd.f32 %v664_v4, %v278_v2 }
 0x3f2   :  { %v510_v7 = vsel %vm214_vm0, %v7209_v5, -inf  ;;  %v676_v8 = vsel %vm214_vm0, %v7211_v6, -inf }
 0x3f3   :  { %511 = vmax.xlane.f32.xlu1 %v510_v7  ;;  %677 = vmax.xlane.f32.xlu0 %v676_v8 }
 0x3f5   :  { %v493_v9 = vpop.f32.mrf.mxu3 }
 0x3f6   :  { %v499_v11 = vmul.f32 0.35355338, %v493_v9  ;;  %v659_v12 = vpop.f32.mrf.mxu2 }
 0x3f7   :  { %v665_v13 = vmul.f32 0.35355338, %v659_v12 }
 0x3f8   :  { %v7218_v14 = vadd.f32 %v499_v11, %v279_v10 }
 0x3f9   :  { %v7220_v15 = vadd.f32 %v665_v13, %v279_v10 }
 0x3fa   :  { %v513_v16 = vsel %vm214_vm0, %v7218_v14, -inf }
 0x3fb   :  { %514 = vmax.xlane.f32.xlu2 %v513_v16  ;;  %v679_v17 = vsel %vm214_vm0, %v7220_v15, -inf }
 0x3fc   :  { %680 = vmax.xlane.f32.xlu1 %v679_v17 }
 0x3fd   :  { %v816_v18 = vpop.f32.mrf.mxu3 }
 0x3fe   :  { %v828_v20 = vmul.f32 0.35355338, %v816_v18  ;;  %v982_v21 = vpop.f32.mrf.mxu2 }
 0x3ff   :  { %v994_v22 = vmul.f32 0.35355338, %v982_v21 }
 0x400   :  { %v7226_v23 = vadd.f32 %v828_v20, %v276_v45 }
 0x401   :  { %v7228_v24 = vadd.f32 %v994_v22, %v276_v45 }
 0x402   :  { %v836_v26 = vsel %vm214_vm0, %v7226_v23, -inf }
 0x403   :  { %837 = vmax.xlane.f32.xlu0 %v836_v26  ;;  %v1002_v27 = vsel %vm214_vm0, %v7228_v24, -inf }
 0x404   :  { %1003 = vmax.xlane.f32.xlu2 %v1002_v27 }
 0x405   :  { %v819_v28 = vpop.f32.mrf.mxu3 }
 0x406   :  { %v829_v29 = vmul.f32 0.35355338, %v819_v28  ;;  %v985_v30 = vpop.f32.mrf.mxu2 }
 0x407   :  { %v995_v31 = vmul.f32 0.35355338, %v985_v30 }
 0x408   :  { %v7234_v32 = vadd.f32 %v829_v29, %v277_v48 }
 0x409   :  { %v7236_v33 = vadd.f32 %v995_v31, %v277_v48 }
 0x40a   :  { %v839_v34 = vsel %vm214_vm0, %v7234_v32, -inf }
 0x40b   :  { %v1005_v35 = vsel %vm214_vm0, %v7236_v33, -inf  ;;  %840 = vmax.xlane.f32.xlu1 %v839_v34 }
 0x40c   :  { %1006 = vmax.xlane.f32.xlu0 %v1005_v35 }
 0x40d   :  { %v822_v36 = vpop.f32.mrf.mxu3 }
 0x40e   :  { %v830_v37 = vmul.f32 0.35355338, %v822_v36  ;;  %v988_v39 = vpop.f32.mrf.mxu2 }
 0x40f   :  { %v996_v41 = vmul.f32 0.35355338, %v988_v39 }
 0x410   :  { %v7242_v42 = vadd.f32 %v830_v37, %v278_v2 }
 0x411   :  { %v7244_v43 = vadd.f32 %v996_v41, %v278_v2 }
 0x412   :  { %v842_v44 = vsel %vm214_vm0, %v7242_v42, -inf }
 0x413   :  { %843 = vmax.xlane.f32.xlu2 %v842_v44  ;;  %v1008_v45 = vsel %vm214_vm0, %v7244_v43, -inf }
 0x414   :  { %1009 = vmax.xlane.f32.xlu1 %v1008_v45 }
 0x415   :  { %v825_v46 = vpop.f32.mrf.mxu3 }
 0x416   :  { %v831_v47 = vmul.f32 0.35355338, %v825_v46  ;;  %v991_v50 = vpop.f32.mrf.mxu2 }
 0x417   :  { %v997_v52 = vmul.f32 0.35355338, %v991_v50 }
 0x418   :  { %v7250_v51 = vadd.f32 %v831_v47, %v279_v10 }
 0x419   :  { %v7254_v48 = vadd.f32 %v997_v52, %v279_v10 }
 0x41a   :  { %v845_v54 = vsel %vm214_vm0, %v7250_v51, -inf }
 0x41b   :  { %846 = vmax.xlane.f32.xlu2 %v845_v54  ;;  %v1011_v55 = vsel %vm214_vm0, %v7254_v48, -inf }
 0x420   :  { %6202 = vrot.lane.b32.xlu0 %v7145_v58, %s9191_s22 }
 0x423   :  { %1012 = vmax.xlane.f32.xlu2 %v1011_v55 }
 0x456   :  { %v506_v56 = vpop.xlane.xlu2 %505  ;;  %v672_v62 = vpop.xlane.xlu1 %671 }
 0x457   :  { %v516_v63 = vsub.f32 %v7191_v49, %v506_v56  ;;  %v682_v0 = vsub.f32 %v7193_v40, %v672_v62 }
 0x459   :  { %v520_v1 = vmul.f32 1.442695, %v516_v63  ;;  %v686_v2 = vmul.f32 1.442695, %v682_v0 }
 0x45b   :  { %6390 = vpow2.f32 %v520_v1 }
 0x45c   :  { %6392 = vpow2.f32 %v686_v2 }
 0x45e   :  { %v509_v3 = vpop.xlane.xlu0 %508  ;;  %v675_v4 = vpop.xlane.xlu2 %674 }
 0x45f   :  { %v517_v7 = vsub.f32 %v7200_v60, %v509_v3  ;;  %v683_v58 = vsub.f32 %v7202_v61, %v675_v4 }
 0x461   :  { %v7264_v8 = vpop.eup %6390  ;;  %v522_v9 = vmul.f32 1.442695, %v517_v7  ;;  %v688_v10 = vmul.f32 1.442695, %v683_v58 }
 0x462   :  { %v7266_v11 = vpop.eup %6392  ;;  %v528_v49 = vsel %vm214_vm0, %v7264_v8, 0.0 }
 0x463   :  { %6394 = vpow2.f32 %v522_v9  ;;  %529 = vadd.xlane.f32.xlu0 %v528_v49  ;;  %v694_v40 = vsel %vm214_vm0, %v7266_v11, 0.0 }
 0x464   :  { %6396 = vpow2.f32 %v688_v10  ;;  %695 = vadd.xlane.f32.xlu2 %v694_v40 }
 0x466   :  { %v512_v12 = vpop.xlane.xlu1 %511  ;;  %v678_v60 = vpop.xlane.xlu0 %677 }
 0x467   :  { %v518_v61 = vsub.f32 %v7209_v5, %v512_v12  ;;  %v684_v13 = vsub.f32 %v7211_v6, %v678_v60 }
 0x469   :  { %v7274_v16 = vpop.eup %6394  ;;  %v524_v17 = vmul.f32 1.442695, %v518_v61  ;;  %v690_v18 = vmul.f32 1.442695, %v684_v13 }
 0x46a   :  { %v7276_v20 = vpop.eup %6396  ;;  %v531_v21 = vsel %vm214_vm0, %v7274_v16, 0.0 }
 0x46b   :  { %6398 = vpow2.f32 %v524_v17  ;;  %532 = vadd.xlane.f32.xlu0 %v531_v21  ;;  %v697_v22 = vsel %vm214_vm0, %v7276_v20, 0.0 }
 0x46c   :  { %6400 = vpow2.f32 %v690_v18  ;;  %698 = vadd.xlane.f32.xlu1 %v697_v22 }
 0x46e   :  { %v515_v26 = vpop.xlane.xlu2 %514 }
 0x46f   :  { %v519_v5 = vsub.f32 %v7218_v14, %v515_v26  ;;  %v681_v31 = vpop.xlane.xlu1 %680 }
 0x471   :  { %v7283_v6 = vpop.eup %6398  ;;  %v526_v27 = vmul.f32 1.442695, %v519_v5 }
 0x472   :  { %v7285_v28 = vpop.eup %6400  ;;  %v534_v29 = vsel %vm214_vm0, %v7283_v6, 0.0 }
 0x473   :  { %6402 = vpow2.f32 %v526_v27  ;;  %535 = vadd.xlane.f32.xlu2 %v534_v29  ;;  %v700_v30 = vsel %vm214_vm0, %v7285_v28, 0.0 }
 0x474   :  { %701 = vadd.xlane.f32.xlu0 %v700_v30 }
 0x476   :  { %v838_v34 = vpop.xlane.xlu0 %837 }
 0x477   :  { %v848_v35 = vsub.f32 %v7226_v23, %v838_v34  ;;  %v1004_v39 = vpop.xlane.xlu2 %1003 }
 0x478   :  { %v1014_v40 = vsub.f32 %v7228_v24, %v1004_v39 }
 0x479   :  { %v7292_v36 = vpop.eup %6402  ;;  %v852_v14 = vmul.f32 1.442695, %v848_v35 }
 0x47a   :  { %v537_v37 = vsel %vm214_vm0, %v7292_v36, 0.0  ;;  %v1018_v60 = vmul.f32 1.442695, %v1014_v40 }
 0x47b   :  { %6404 = vpow2.f32 %v852_v14 }
 0x47c   :  { %538 = vadd.xlane.f32.xlu0 %v537_v37 }
 0x47e   :  { %v841_v41 = vpop.xlane.xlu1 %840 }
 0x47f   :  { %v849_v44 = vsub.f32 %v7234_v32, %v841_v41  ;;  %v1007_v55 = vpop.xlane.xlu0 %1006 }
 0x481   :  { %v7297_v45 = vpop.eup %6404  ;;  %v854_v46 = vmul.f32 1.442695, %v849_v44 }
 0x482   :  { %v860_v47 = vsel %vm214_vm0, %v7297_v45, 0.0 }
 0x483   :  { %6406 = vpow2.f32 %v854_v46 }
 0x484   :  { %861 = vadd.xlane.f32.xlu0 %v860_v47 }
 0x485   :  { %6207 = vrot.lane.b32.xlu1 %v7135_v57, %s9189_s16  ;;  %s9218_s16 = sld [smem:[#allocation14_spill]] }
 0x486   :  { %v844_v23 = vpop.xlane.xlu2 %843 }
 0x487   :  { %v1010_v50 = vpop.xlane.xlu1 %1009  ;;  %v850_v10 = vsub.f32 %v7242_v42, %v844_v23 }
 0x488   :  { %v1016_v52 = vsub.f32 %v7244_v43, %v1010_v50 }
 0x489   :  { %v7304_v54 = vpop.eup %6406  ;;  %v856_v12 = vmul.f32 1.442695, %v850_v10 }
 0x48a   :  { %v1022_v56 = vmul.f32 1.442695, %v1016_v52  ;;  %v863_v32 = vsel %vm214_vm0, %v7304_v54, 0.0 }
 0x48b   :  { %6212 = vrot.lane.b32.xlu2 %v7135_v57, %s9191_s22  ;;  %v685_v57 = vsub.f32 %v7220_v15, %v681_v31  ;;  %v1015_v15 = vsub.f32 %v7236_v33, %v1007_v55 }
 0x48c   :  { %6408 = vpow2.f32 %v1022_v56  ;;  %864 = vadd.xlane.f32.xlu0 %v863_v32 }
 0x48d   :  { %v692_v9 = vmul.f32 1.442695, %v685_v57  ;;  %v1020_v13 = vmul.f32 1.442695, %v1015_v15 }
 0x48e   :  { %v847_v62 = vpop.xlane.xlu2 %846 }
 0x48f   :  { %v851_v18 = vsub.f32 %v7250_v51, %v847_v62 }
 0x491   :  { %v858_v33 = vmul.f32 1.442695, %v851_v18 }
 0x492   :  { %v7310_v63 = vpop.eup %6408  ;;  %v6203_v0 = vpop.permute.xlu0 %6202 }
 0x493   :  { %v6204_v1 = vunpack.i.l.bf16 %v6203_v0  ;;  %v1032_v43 = vsel %vm214_vm0, %v7310_v63, 0.0  ;;  %v6205_v2 = vunpack.i.h.bf16 %v6203_v0 }
 0x494   :  { %1033 = vadd.xlane.f32.xlu0 %v1032_v43 }
 0x495   :  { %1082 = vmatpush.msra.mxu0 %v6204_v1 }
 0x496   :  { %v1013_v3 = vpop.xlane.xlu2 %1012 }
 0x497   :  { %1083 = vmatpush.msra.mxu0 %v6205_v2  ;;  %v1017_v4 = vsub.f32 %v7254_v48, %v1013_v3 }
 0x499   :  { %v1024_v7 = vmul.f32 1.442695, %v1017_v4 }
 0x49b   :  { %6410 = vpow2.f32 %v1024_v7 }
 0x49c   :  { %6412 = vpow2.f32 %v692_v9 }
 0x49d   :  { %6414 = vpow2.f32 %v856_v12 }
 0x49e   :  { %6416 = vpow2.f32 %v1018_v60 }
 0x49f   :  { %6418 = vpow2.f32 %v1020_v13 }
 0x4a0   :  { %6420 = vpow2.f32 %v858_v33 }
 0x4a1   :  { %v7316_v58 = vpop.eup %6410 }
 0x4a2   :  { %v1035_v49 = vsel %vm214_vm0, %v7316_v58, 0.0  ;;  %v7322_v48 = vpop.eup %6412 }
 0x4a3   :  { %1036 = vadd.xlane.f32.xlu0 %v1035_v49  ;;  %v703_v61 = vsel %vm214_vm0, %v7322_v48, 0.0  ;;  %v7327_v42 = vpop.eup %6414 }
 0x4a4   :  { %v7329_v17 = vpop.eup %6416  ;;  %v866_v24 = vsel %vm214_vm0, %v7327_v42, 0.0 }
 0x4a5   :  { %v1026_v21 = vsel %vm214_vm0, %v7329_v17, 0.0  ;;  %v7336_v22 = vpop.eup %6418 }
 0x4a6   :  { %v1029_v26 = vsel %vm214_vm0, %v7336_v22, 0.0  ;;  %v7340_v5 = vpop.eup %6420 }
 0x4a7   :  { %v869_v27 = vsel %vm214_vm0, %v7340_v5, 0.0 }
 0x4af   :  { %704 = vadd.xlane.f32.xlu1 %v703_v61 }
 0x4b4   :  { %867 = vadd.xlane.f32.xlu2 %v866_v24 }
 0x4b7   :  { %1027 = vadd.xlane.f32.xlu1 %v1026_v21 }
 0x4bf   :  { %1030 = vadd.xlane.f32.xlu1 %v1029_v26 }
 0x4c7   :  { %870 = vadd.xlane.f32.xlu1 %v869_v27 }
 0x4d6   :  { %v530_v29 = vpop.xlane.xlu0 %529 }
 0x4d7   :  { %6422 = vrcp.f32 %v530_v29  ;;  %v696_v51 = vpop.xlane.xlu2 %695 }
 0x4d8   :  { %6424 = vrcp.f32 %v696_v51 }
 0x4dd   :  { %v6423_v30 = vpop.eup %6422 }
 0x4de   :  { %v6425_v31 = vpop.eup %6424  ;;  %v533_v34 = vpop.xlane.xlu0 %532  ;;  %v544_v35 = vmul.f32 %v6423_v30, %v7264_v8 }
 0x4df   :  { %6426 = vrcp.f32 %v533_v34  ;;  %v699_v14 = vpop.xlane.xlu1 %698  ;;  %v710_v37 = vmul.f32 %v6425_v31, %v7266_v11 }
 0x4e0   :  { %6428 = vrcp.f32 %v699_v14  ;;  %5774 = vmatmul.msk.f32.vlgmr.msrb.gmra.mxu1 %vm214_vm0, %v544_v35 }
 0x4e1   :  { %5786 = vmatmul.msk.f32.vlgmr.msrb.gmra.mxu0 %vm214_vm0, %v710_v37 }
 0x4e5   :  { %v6427_v39 = vpop.eup %6426 }
 0x4e6   :  { %v6429_v41 = vpop.eup %6428  ;;  %v536_v44 = vpop.xlane.xlu2 %535  ;;  %v545_v46 = vmul.f32 %v6427_v39, %v7274_v16 }
 0x4e7   :  { %6430 = vrcp.f32 %v536_v44  ;;  %v702_v47 = vpop.xlane.xlu0 %701  ;;  %v711_v23 = vmul.f32 %v6429_v41, %v7276_v20 }
 0x4e8   :  { %6432 = vrcp.f32 %v702_v47  ;;  %5775 = vmatmul.msk.f32.gmra.mxu1 %vm214_vm0, %v545_v46  ;;  %v290_v46 = vld [vmem:[%s6884_s30 + $0x18] sm:$0xff]  ;;  %v289_v47 = vld [vmem:[%s6884_s30 + $0x10] sm:$0xff] }
 0x4e9   :  { %5787 = vmatmul.msk.f32.gmra.mxu0 %vm214_vm0, %v711_v23  ;;  %1188 = vmatpush.msra.mxu3 %v290_v46  ;;  %v288_v23 = vld [vmem:[%s6884_s30 + $0x8] sm:$0xff] }
 0x4eb   :  { %1189 = vmatpush.msra.mxu3 %v289_v47 }
 0x4ed   :  { %v6431_v8 = vpop.eup %6430  ;;  %1190 = vmatpush.msra.mxu3 %v288_v23  ;;  %v1316_v23 = vld [vmem:[%s6904_s27 + $0x18] sm:$0xff] }
 0x4ee   :  { %v6433_v11 = vpop.eup %6432  ;;  %v6213_v50 = vpop.permute.xlu2 %6212  ;;  %v546_v52 = vmul.f32 %v6431_v8, %v7283_v6  ;;  %v287_v8 = vld [vmem:[%s6884_s30] sm:$0xff] }
 0x4ef   :  { %v6214_v55 = vunpack.i.l.bf16 %v6213_v50  ;;  %v539_v56 = vpop.xlane.xlu0 %538  ;;  %v712_v32 = vmul.f32 %v6433_v11, %v7285_v28  ;;  %v6215_v16 = vunpack.i.h.bf16 %v6213_v50  ;;  %1191 = vmatpush.msra.mxu3 %v287_v8  ;;  %v1315_v8 = vld [vmem:[%s6904_s27 + $0x10] sm:$0xff] }
 0x4f0   :  { %6434 = vrcp.f32 %v539_v56  ;;  %5776 = vmatmul.msk.f32.gmra.mxu1 %vm214_vm0, %v546_v52 }
 0x4f1   :  { %5788 = vmatmul.msk.f32.gmra.mxu0 %vm214_vm0, %v712_v32 }
 0x4f2   :  { %1084 = vmatpush.msra.mxu0 %v6214_v55 }
 0x4f4   :  { %1085 = vmatpush.msra.mxu0 %v6215_v16 }
 0x4f6   :  { %v6435_v20 = vpop.eup %6434 }
 0x4f7   :  { %v6208_v62 = vpop.permute.xlu1 %6207  ;;  %v862_v0 = vpop.xlane.xlu0 %861  ;;  %v547_v1 = vmul.f32 %v6435_v20, %v7292_v36 }
 0x4f8   :  { %v6209_v43 = vunpack.i.l.bf16 %v6208_v62  ;;  %6436 = vrcp.f32 %v862_v0  ;;  %v6210_v6 = vunpack.i.h.bf16 %v6208_v62 }
 0x4f9   :  { %5777 = vmatmul.msk.f32.gmra.mxu1 %vm214_vm0, %v547_v1 }
 0x4fa   :  { %918 = vmatpush.msra.mxu1 %v6209_v43 }
 0x4fc   :  { %919 = vmatpush.msra.mxu1 %v6210_v6 }
 0x4fe   :  { %v6437_v28 = vpop.eup %6436  ;;  %1356 = vmatpush.msrb.mxu1 %v1316_v23 }
 0x4ff   :  { %v876_v2 = vmul.f32 %v6437_v28, %v7297_v45  ;;  %v865_v3 = vpop.xlane.xlu0 %864 }
 0x500   :  { %6438 = vrcp.f32 %v865_v3  ;;  %1357 = vmatpush.msrb.mxu1 %v1315_v8 }
 0x501   :  { %5798 = vmatmul.msk.f32.vlgmr.msra.gmra.mxu1 %vm214_vm0, %v876_v2 }
 0x506   :  { %v6439_v4 = vpop.eup %6438 }
 0x507   :  { %v877_v7 = vmul.f32 %v6439_v4, %v7304_v54  ;;  %v1034_v15 = vpop.xlane.xlu0 %1033 }
 0x509   :  { %5799 = vmatmul.msk.f32.gmra.mxu1 %vm214_vm0, %v877_v7 }
 0x516   :  { %v1037_v24 = vpop.xlane.xlu0 %1036 }
 0x522   :  { %v705_v36 = vpop.xlane.xlu1 %704 }
 0x523   :  { %6440 = vrcp.f32 %v705_v36 }
 0x527   :  { %v868_v57 = vpop.xlane.xlu2 %867 }
 0x528   :  { %6442 = vrcp.f32 %v868_v57 }
 0x529   :  { %v6441_v9 = vpop.eup %6440 }
 0x52a   :  { %v1028_v10 = vpop.xlane.xlu1 %1027  ;;  %v713_v49 = vmul.f32 %v6441_v9, %v7322_v48 }
 0x52b   :  { %6444 = vrcp.f32 %v1028_v10 }
 0x52c   :  { %5789 = vmatmul.msk.f32.gmra.mxu0 %vm214_vm0, %v713_v49 }
 0x52e   :  { %v6443_v45 = vpop.eup %6442 }
 0x52f   :  { %v878_v40 = vmul.f32 %v6443_v45, %v7327_v42 }
 0x531   :  { %v6445_v12 = vpop.eup %6444  ;;  %5800 = vmatmul.msk.f32.gmra.mxu1 %vm214_vm0, %v878_v40  ;;  %v6341_v40 = vld [vmem:[%s6889_s6] ss:$0 sm:$0xff] }
 0x532   :  { %v1042_v54 = vmul.f32 %v6445_v12, %v7329_v17  ;;  %v1031_v60 = vpop.xlane.xlu1 %1030 }
 0x533   :  { %6446 = vrcp.f32 %v1031_v60 }
 0x534   :  { %5810 = vmatmul.msk.f32.vlgmr.msra.gmra.mxu0 %vm214_vm0, %v1042_v54  ;;  %6448 = vrcp.f32 %v1034_v15 }
 0x539   :  { %v6447_v61 = vpop.eup %6446 }
 0x53a   :  { %v871_v13 = vpop.xlane.xlu1 %870  ;;  %v1043_v48 = vmul.f32 %v6447_v61, %v7336_v22  ;;  %v6449_v42 = vpop.eup %6448 }
 0x53b   :  { %6450 = vrcp.f32 %v871_v13  ;;  %v1044_v17 = vmul.f32 %v6449_v42, %v7310_v63 }
 0x53c   :  { %5811 = vmatmul.msk.f32.gmra.mxu0 %vm214_vm0, %v1043_v48  ;;  %6452 = vrcp.f32 %v1037_v24 }
 0x541   :  { %v6451_v18 = vpop.eup %6450 }
 0x542   :  { %v879_v21 = vmul.f32 %v6451_v18, %v7340_v5  ;;  %v6453_v33 = vpop.eup %6452 }
 0x543   :  { %v1045_v26 = vmul.f32 %v6453_v33, %v7316_v58 }
 0x544   :  { %5801 = vmatmul.msk.f32.gmra.mxu1 %vm214_vm0, %v879_v21  ;;  %5812 = vmatmul.msk.f32.gmra.mxu0 %vm214_vm0, %v1044_v17 }
 0x54c   :  { %5813 = vmatmul.msk.f32.gmra.mxu0 %vm214_vm0, %v1045_v26 }
 0x55d   :  { %v589_v22 = vpop.f32.mrf.mxu1 }
 0x55e   :  { %v755_v27 = vpop.f32.mrf.mxu0 }
 0x55f   :  { %1103 = vrot.lane.b32.xlu2 %v755_v27, %s9187_s23 }
 0x565   :  { %v592_v29 = vpop.f32.mrf.mxu1 }
 0x566   :  { %v758_v51 = vpop.f32.mrf.mxu0 }
 0x567   :  { %1105 = vrot.lane.b32.xlu2 %v758_v51, %s9187_s23 }
 0x56d   :  { %v595_v5 = vpop.f32.mrf.mxu1 }
 0x56e   :  { %v761_v63 = vpop.f32.mrf.mxu0 }
 0x56f   :  { %1107 = vrot.lane.b32.xlu2 %v761_v63, %s9187_s23 }
 0x576   :  { %v598_v30 = vpop.f32.mrf.mxu1 }
 0x57e   :  { %v921_v31 = vpop.f32.mrf.mxu1 }
 0x57f   :  { %1119 = vrot.lane.b32.xlu1 %v921_v31, %s9185_s26 }
 0x586   :  { %v924_v35 = vpop.f32.mrf.mxu1 }
 0x5a9   :  { %v764_v58 = vpop.f32.mrf.mxu0 }
 0x5aa   :  { %1109 = vrot.lane.b32.xlu2 %v764_v58, %s9187_s23  ;;  %s9217_s23 = sld [smem:[#allocation10_spill]] }
 0x5ae   :  { %v927_v37 = vpop.f32.mrf.mxu1 }
 0x5b1   :  { %v1087_v34 = vpop.f32.mrf.mxu0 }
 0x5b2   :  { %1135 = vrot.lane.b32.xlu0 %v1087_v34, %s9183_s28 }
 0x5b9   :  { %v1090_v14 = vpop.f32.mrf.mxu0  ;;  %v1104_v11 = vpop.permute.xlu2 %1103 }
 0x5ba   :  { %1137 = vrot.lane.b32.xlu1 %v1090_v14, %s9183_s28  ;;  %1121 = vrot.lane.b32.xlu0 %v924_v35, %s9185_s26  ;;  %v1147_v52 = vsel %vm450_vm6, %v589_v22, %v1104_v11  ;;  %v1314_v11 = vld [vmem:[%s6904_s27 + $0x8] sm:$0xff] }
 0x5bb   :  { %1358 = vmatpush.msrb.mxu1 %v1314_v11 }
 0x5c1   :  { %v1093_v39 = vpop.f32.mrf.mxu0  ;;  %v930_v41 = vpop.f32.mrf.mxu1 }
 0x5c2   :  { %1123 = vrot.lane.b32.xlu0 %v927_v37, %s9185_s26  ;;  %1139 = vrot.lane.b32.xlu1 %v1093_v39, %s9183_s28  ;;  %v1106_v16 = vpop.permute.xlu2 %1105 }
 0x5c3   :  { %v1148_v20 = vsel %vm450_vm6, %v592_v29, %v1106_v16 }
 0x5c9   :  { %v1096_v44 = vpop.f32.mrf.mxu0 }
 0x5ca   :  { %1125 = vrot.lane.b32.xlu0 %v930_v41, %s9185_s26  ;;  %1141 = vrot.lane.b32.xlu1 %v1096_v44, %s9183_s28  ;;  %v1108_v6 = vpop.permute.xlu2 %1107  ;;  %s9215_s28 = sld [smem:[#allocation13_spill]] }
 0x5cb   :  { %v1149_v28 = vsel %vm450_vm6, %v595_v5, %v1108_v6  ;;  %s9216_s26 = sld [smem:[#allocation12_spill]] }
 0x5f1   :  { %v1120_v50 = vpop.permute.xlu1 %1119 }
 0x5f2   :  { %v1152_v55 = vsel %vm1151_vm7, %v1147_v52, %v1120_v50  ;;  %v1313_v50 = vld [vmem:[%s6904_s27] sm:$0xff] }
 0x5f3   :  { %1359 = vmatpush.msrb.mxu1 %v1313_v50 }
 0x604   :  { %v1110_v36 = vpop.permute.xlu2 %1109 }
 0x605   :  { %v1150_v57 = vsel %vm450_vm6, %v598_v30, %v1110_v36 }
 0x624   :  { %v1136_v56 = vpop.permute.xlu0 %1135 }
 0x625   :  { %v1157_v32 = vsel %vm1156_vm8, %v1152_v55, %v1136_v56 }
 0x626   :  { %5814 = vmatmul.msk.f32.vlgmr.msra.gmra.mxu3 %vm214_vm0, %v1157_v32  ;;  %v1484_v32 = vld [vmem:[%s9210_s1 + $0x18] sm:$0xff] }
 0x627   :  { %1524 = vmatpush.msrb.mxu0 %v1484_v32  ;;  %v1331_v32 = vld [vmem:[%s9213_s10 + $0x68] sm:$0xff] }
 0x62c   :  { %v1138_v62 = vpop.permute.xlu1 %1137  ;;  %v1122_v0 = vpop.permute.xlu0 %1121 }
 0x62d   :  { %v1153_v1 = vsel %vm1151_vm7, %v1148_v20, %v1122_v0  ;;  %v1483_v20 = vld [vmem:[%s9210_s1 + $0x10] sm:$0xff] }
 0x62e   :  { %v1158_v43 = vsel %vm1156_vm8, %v1153_v1, %v1138_v62  ;;  %1525 = vmatpush.msrb.mxu0 %v1483_v20  ;;  %v1482_v1 = vld [vmem:[%s9210_s1 + $0x8] sm:$0xff]  ;;  %v1330_v20 = vld [vmem:[%s9213_s10 + $0x60] sm:$0xff] }
 0x62f   :  { %5815 = vmatmul.msk.f32.gmra.mxu3 %vm214_vm0, %v1158_v43 }
 0x630   :  { %1526 = vmatpush.msrb.mxu0 %v1482_v1  ;;  %v1328_v1 = vld [vmem:[%s9213_s10 + $0x50] sm:$0xff] }
 0x634   :  { %v1124_v2 = vpop.permute.xlu0 %1123  ;;  %v1140_v3 = vpop.permute.xlu1 %1139 }
 0x635   :  { %v1154_v4 = vsel %vm1151_vm7, %v1149_v28, %v1124_v2  ;;  %v1481_v28 = vld [vmem:[%s9210_s1] sm:$0xff] }
 0x636   :  { %v1159_v7 = vsel %vm1156_vm8, %v1154_v4, %v1140_v3  ;;  %1527 = vmatpush.msrb.mxu0 %v1481_v28 }
 0x637   :  { %5816 = vmatmul.msk.f32.gmra.mxu3 %vm214_vm0, %v1159_v7 }
 0x63c   :  { %v1126_v9 = vpop.permute.xlu0 %1125  ;;  %v1142_v10 = vpop.permute.xlu1 %1141 }
 0x63d   :  { %v1155_v49 = vsel %vm1151_vm7, %v1150_v57, %v1126_v9 }
 0x63e   :  { %v1160_v45 = vsel %vm1156_vm8, %v1155_v49, %v1142_v10  ;;  %v6342_v49 = vld [vmem:[%s9211_s2] ss:$0 sm:$0xff] }
 0x63f   :  { %5817 = vmatmul.msk.f32.gmra.mxu3 %vm214_vm0, %v1160_v45 }
 0x6a9   :  { %v1193_v12 = vpop.f32.mrf.mxu3 }
 0x6aa   :  { %v1194_v54 = vadd.f32 %v6341_v40, %v1193_v12 }
 0x6ac   :  { %v7410_v60 = vadd.f32 %v1194_v54, %v7025_v53 }
 0x6ae   :  { %v1211_v15 = vsel %vm214_vm0, %v7410_v60, 0.0 }
 0x6af   :  { %1212 = vadd.xlane.f32.xlu2 %v1211_v15  ;;  %v6343_v15 = vld [vmem:[%s9212_s7] ss:$0 sm:$0xff] }
 0x6b2   :  { %v1196_v61 = vpop.f32.mrf.mxu3 }
 0x6b3   :  { %v1197_v13 = vadd.f32 %v6341_v40, %v1196_v61 }
 0x6b5   :  { %v7415_v48 = vadd.f32 %v1197_v13, %v7030_v59 }
 0x6b7   :  { %v1214_v24 = vsel %vm214_vm0, %v7415_v48, 0.0 }
 0x6b8   :  { %1215 = vadd.xlane.f32.xlu0 %v1214_v24 }
 0x6ba   :  { %v1199_v42 = vpop.f32.mrf.mxu3 }
 0x6bb   :  { %v1200_v18 = vadd.f32 %v6341_v40, %v1199_v42 }
 0x6bd   :  { %v7420_v21 = vadd.f32 %v1200_v18, %v7038_v19 }
 0x6bf   :  { %v1217_v53 = vsel %vm214_vm0, %v7420_v21, 0.0 }
 0x6c0   :  { %1218 = vadd.xlane.f32.xlu1 %v1217_v53 }
 0x6c2   :  { %v1202_v17 = vpop.f32.mrf.mxu3 }
 0x6c3   :  { %v1203_v33 = vadd.f32 %v6341_v40, %v1202_v17 }
 0x6c5   :  { %v7425_v26 = vadd.f32 %v1203_v33, %v7042_v25 }
 0x6c7   :  { %v1220_v59 = vsel %vm214_vm0, %v7425_v26, 0.0 }
 0x6c8   :  { %1221 = vadd.xlane.f32.xlu2 %v1220_v59 }
 0x722   :  { %v1213_v22 = vpop.xlane.xlu2 %1212 }
 0x723   :  { %v1223_v27 = vmul.f32 %v1213_v22, %v7016_v38 }
 0x725   :  { %v7431_v29 = vsub.f32 %v7410_v60, %v1223_v27 }
 0x727   :  { %v1231_v19 = vmul.f32 %v7431_v29, %v7431_v29 }
 0x729   :  { %v1235_v51 = vsel %vm214_vm0, %v1231_v19, 0.0 }
 0x72a   :  { %1236 = vadd.xlane.f32.xlu0 %v1235_v51 }
 0x72b   :  { %v1216_v5 = vpop.xlane.xlu0 %1215 }
 0x72c   :  { %v1224_v25 = vmul.f32 %v1216_v5, %v7016_v38 }
 0x72e   :  { %v7438_v63 = vsub.f32 %v7415_v48, %v1224_v25 }
 0x730   :  { %v1232_v30 = vmul.f32 %v7438_v63, %v7438_v63 }
 0x732   :  { %v1238_v31 = vsel %vm214_vm0, %v1232_v30, 0.0 }
 0x733   :  { %v1219_v58 = vpop.xlane.xlu1 %1218  ;;  %1239 = vadd.xlane.f32.xlu1 %v1238_v31 }
 0x734   :  { %v1225_v34 = vmul.f32 %v1219_v58, %v7016_v38 }
 0x736   :  { %v7445_v35 = vsub.f32 %v7420_v21, %v1225_v34 }
 0x738   :  { %v1233_v14 = vmul.f32 %v7445_v35, %v7445_v35 }
 0x73a   :  { %v1241_v37 = vsel %vm214_vm0, %v1233_v14, 0.0 }
 0x73b   :  { %1242 = vadd.xlane.f32.xlu2 %v1241_v37  ;;  %v1222_v39 = vpop.xlane.xlu2 %1221 }
 0x73c   :  { %v1226_v41 = vmul.f32 %v1222_v39, %v7016_v38 }
 0x73e   :  { %v7452_v44 = vsub.f32 %v7425_v26, %v1226_v41 }
 0x740   :  { %v1234_v46 = vmul.f32 %v7452_v44, %v7452_v44 }
 0x742   :  { %v1244_v47 = vsel %vm214_vm0, %v1234_v46, 0.0 }
 0x743   :  { %1245 = vadd.xlane.f32.xlu0 %v1244_v47 }
 0x79d   :  { %v1237_v52 = vpop.xlane.xlu0 %1236 }
 0x79e   :  { %v1247_v55 = vmul.f32 %v1237_v52, %v7016_v38  ;;  %v1333_v52 = vld [vmem:[%s9213_s10 + $0x78] sm:$0xff] }
 0x79f   :  { %1458 = vmatpush.msrb.mxu2 %v1333_v52  ;;  %v1318_v52 = vld [vmem:[%s9213_s10] sm:$0xff] }
 0x7a0   :  { %v1251_v56 = vadd.f32 1e-06, %v1247_v55  ;;  %v1332_v55 = vld [vmem:[%s9213_s10 + $0x70] sm:$0xff] }
 0x7a1   :  { %1459 = vmatpush.msrb.mxu2 %v1332_v55 }
 0x7a2   :  { %6454 = vrsqrt.f32 %v1251_v56  ;;  %vm1261_vm10 = vweird.f32 %v1251_v56 }
 0x7a3   :  { %1460 = vmatpush.msrb.mxu2 %v1331_v32  ;;  %v1494_v32 = vld [vmem:[%s9215_s28 + $0x40] sm:$0xff] }
 0x7a5   :  { %1461 = vmatpush.msrb.mxu2 %v1330_v20 }
 0x7a6   :  { %v1240_v16 = vpop.xlane.xlu1 %1239 }
 0x7a7   :  { %v1248_v62 = vmul.f32 %v1240_v16, %v7016_v38 }
 0x7a8   :  { %v6455_v0 = vpop.eup %6454 }
 0x7a9   :  { %v1256_v43 = vmul.f32 %v6455_v0, %v1251_v56  ;;  %v1252_v6 = vadd.f32 1e-06, %v1248_v62  ;;  %vm1262_vm9 = vweird.f32 %v6455_v0  ;;  %v6344_v56 = vld [vmem:[%s9214_s11] ss:$0 sm:$0xff] }
 0x7aa   :  { %vm1263_vm11 = vmor %vm1261_vm10, %vm1262_vm9 }
 0x7ab   :  { %v1257_v2 = vmul.f32 %v6455_v0, %v1256_v43  ;;  %6456 = vrsqrt.f32 %v1252_v6  ;;  %vm1271_vm13 = vweird.f32 %v1252_v6 }
 0x7ad   :  { %v1258_v3 = vmul.f32 0.5, %v1257_v2  ;;  %v1326_v2 = vld [vmem:[%s9213_s10 + $0x40] sm:$0xff] }
 0x7ae   :  { %v1243_v4 = vpop.xlane.xlu2 %1242 }
 0x7af   :  { %v1259_v7 = vsub.f32 1.5, %v1258_v3  ;;  %v1249_v36 = vmul.f32 %v1243_v4, %v7016_v38 }
 0x7b1   :  { %v6457_v57 = vpop.eup %6456  ;;  %v1260_v9 = vmul.f32 %v6455_v0, %v1259_v7  ;;  %v1253_v10 = vadd.f32 1e-06, %v1249_v36 }
 0x7b2   :  { %v1266_v45 = vmul.f32 %v6457_v57, %v1252_v6  ;;  %vm1272_vm12 = vweird.f32 %v6457_v57  ;;  %v1327_v6 = vld [vmem:[%s9213_s10 + $0x48] sm:$0xff] }
 0x7b3   :  { %v1264_v40 = vsel %vm1263_vm11, %v6455_v0, %v1260_v9  ;;  %6458 = vrsqrt.f32 %v1253_v10  ;;  %vm1273_vm14 = vmor %vm1271_vm13, %vm1272_vm12  ;;  %vm1281_vm1 = vweird.f32 %v1253_v10 }
 0x7b4   :  { %v1295_v12 = vmul.f32 %v1264_v40, %v7431_v29  ;;  %v1267_v54 = vmul.f32 %v6457_v57, %v1266_v45  ;;  %v1324_v40 = vld [vmem:[%s9213_s10 + $0x30] sm:$0xff] }
 0x7b6   :  { %v1302_v61 = vmul.f32 %v6342_v49, %v1295_v12  ;;  %v1268_v13 = vmul.f32 0.5, %v1267_v54  ;;  %v1246_v24 = vpop.xlane.xlu0 %1245 }
 0x7b7   :  { %v1250_v42 = vmul.f32 %v1246_v24, %v7016_v38  ;;  %v1323_v24 = vld [vmem:[%s9213_s10 + $0x28] sm:$0xff] }
 0x7b8   :  { %v1269_v18 = vsub.f32 1.5, %v1268_v13  ;;  %v1309_v53 = vadd.f32 %v6343_v15, %v1302_v61  ;;  %v6345_v13 = vld [vmem:[%s9216_s26] ss:$0 sm:$0xff] }
 0x7b9   :  { %v6459_v17 = vpop.eup %6458  ;;  %v1254_v33 = vadd.f32 1e-06, %v1250_v42 }
 0x7ba   :  { %v1270_v59 = vmul.f32 %v6457_v57, %v1269_v18  ;;  %v1276_v22 = vmul.f32 %v6459_v17, %v1253_v10  ;;  %5818 = vmatmul.msk.f32.vlgmr.msrb.gmra.mxu1 %vm214_vm0, %v1309_v53  ;;  %vm1282_vm15 = vweird.f32 %v6459_v17  ;;  %v1499_v53 = vld [vmem:[%s9215_s28 + $0x68] sm:$0xff] }
 0x7bb   :  { %6460 = vrsqrt.f32 %v1254_v33  ;;  %vm1283_vm2 = vmor %vm1281_vm1, %vm1282_vm15  ;;  %vm1291_vm4 = vweird.f32 %v1254_v33 }
 0x7bc   :  { %v1277_v27 = vmul.f32 %v6459_v17, %v1276_v22  ;;  %v1274_v29 = vsel %vm1273_vm14, %v6457_v57, %v1270_v59  ;;  %v1325_v57 = vld [vmem:[%s9213_s10 + $0x38] sm:$0xff] }
 0x7bd   :  { %v1296_v19 = vmul.f32 %v1274_v29, %v7438_v63 }
 0x7be   :  { %v1278_v51 = vmul.f32 0.5, %v1277_v27  ;;  %v1498_v27 = vld [vmem:[%s9215_s28 + $0x60] sm:$0xff] }
 0x7bf   :  { %v1303_v5 = vmul.f32 %v6342_v49, %v1296_v19 }
 0x7c0   :  { %v1279_v25 = vsub.f32 1.5, %v1278_v51 }
 0x7c1   :  { %v6461_v30 = vpop.eup %6460  ;;  %v1310_v31 = vadd.f32 %v6343_v15, %v1303_v5  ;;  %v1321_v5 = vld [vmem:[%s9213_s10 + $0x18] sm:$0xff] }
 0x7c2   :  { %v1280_v58 = vmul.f32 %v6459_v17, %v1279_v25  ;;  %v1286_v34 = vmul.f32 %v6461_v30, %v1254_v33  ;;  %vm1292_vm3 = vweird.f32 %v6461_v30  ;;  %v1322_v33 = vld [vmem:[%s9213_s10 + $0x20] sm:$0xff] }
 0x7c3   :  { %5819 = vmatmul.msk.f32.gmra.mxu1 %vm214_vm0, %v1310_v31  ;;  %vm1293_vm5 = vmor %vm1291_vm4, %vm1292_vm3  ;;  %v1497_v31 = vld [vmem:[%s9215_s28 + $0x58] sm:$0xff] }
 0x7c4   :  { %v1284_v14 = vsel %vm1283_vm2, %v6459_v17, %v1280_v58  ;;  %v1287_v37 = vmul.f32 %v6461_v30, %v1286_v34 }
 0x7c5   :  { %v1297_v39 = vmul.f32 %v1284_v14, %v7445_v35  ;;  %v1320_v14 = vld [vmem:[%s9213_s10 + $0x10] sm:$0xff] }
 0x7c6   :  { %v1288_v41 = vmul.f32 0.5, %v1287_v37 }
 0x7c7   :  { %v1304_v63 = vmul.f32 %v6342_v49, %v1297_v39  ;;  %v1496_v39 = vld [vmem:[%s9215_s28 + $0x50] sm:$0xff] }
 0x7c8   :  { %v1289_v46 = vsub.f32 1.5, %v1288_v41 }
 0x7c9   :  { %v1311_v47 = vadd.f32 %v6343_v15, %v1304_v63 }
 0x7ca   :  { %v1290_v23 = vmul.f32 %v6461_v30, %v1289_v46 }
 0x7cb   :  { %5822 = vmatmul.msk.f32.vlgmr.msrb.gmra.mxu0 %vm214_vm0, %v1311_v47 }
 0x7cc   :  { %v1294_v8 = vsel %vm1293_vm5, %v6461_v30, %v1290_v23  ;;  %v1319_v23 = vld [vmem:[%s9213_s10 + $0x8] sm:$0xff] }
 0x7cd   :  { %v1298_v11 = vmul.f32 %v1294_v8, %v7452_v44  ;;  %v1329_v44 = vld [vmem:[%s9213_s10 + $0x58] sm:$0xff] }
 0x7ce   :  { %1462 = vmatpush.msrb.mxu2 %v1329_v44 }
 0x7cf   :  { %v1305_v50 = vmul.f32 %v6342_v49, %v1298_v11  ;;  %v1501_v49 = vld [vmem:[%s9215_s28 + $0x78] sm:$0xff]  ;;  %v1495_v11 = vld [vmem:[%s9215_s28 + $0x48] sm:$0xff] }
 0x7d0   :  { %1463 = vmatpush.msrb.mxu2 %v1328_v1  ;;  %1626 = vmatpush.msrb.mxu3 %v1501_v49 }
 0x7d1   :  { %v1312_v35 = vadd.f32 %v6343_v15, %v1305_v50  ;;  %v1500_v15 = vld [vmem:[%s9215_s28 + $0x70] sm:$0xff] }
 0x7d2   :  { %1464 = vmatpush.msrb.mxu2 %v1327_v6  ;;  %1627 = vmatpush.msrb.mxu3 %v1500_v15  ;;  %v1491_v15 = vld [vmem:[%s9215_s28 + $0x28] sm:$0xff] }
 0x7d3   :  { %5823 = vmatmul.msk.f32.gmra.mxu0 %vm214_vm0, %v1312_v35 }
 0x7d4   :  { %1465 = vmatpush.msrb.mxu2 %v1326_v2  ;;  %1628 = vmatpush.msrb.mxu3 %v1499_v53 }
 0x7d6   :  { %1466 = vmatpush.msrb.mxu2 %v1325_v57  ;;  %1629 = vmatpush.msrb.mxu3 %v1498_v27 }
 0x7d8   :  { %1467 = vmatpush.msrb.mxu2 %v1324_v40  ;;  %1630 = vmatpush.msrb.mxu3 %v1497_v31 }
 0x7da   :  { %1468 = vmatpush.msrb.mxu2 %v1323_v24  ;;  %1631 = vmatpush.msrb.mxu3 %v1496_v39 }
 0x7dc   :  { %1469 = vmatpush.msrb.mxu2 %v1322_v33  ;;  %1632 = vmatpush.msrb.mxu3 %v1495_v11 }
 0x7de   :  { %1470 = vmatpush.msrb.mxu2 %v1321_v5  ;;  %1633 = vmatpush.msrb.mxu3 %v1494_v32  ;;  %v1489_v5 = vld [vmem:[%s9215_s28 + $0x18] sm:$0xff] }
 0x7e0   :  { %1471 = vmatpush.msrb.mxu2 %v1320_v14  ;;  %v1488_v14 = vld [vmem:[%s9215_s28 + $0x10] sm:$0xff] }
 0x7e2   :  { %1472 = vmatpush.msrb.mxu2 %v1319_v23 }
 0x7e4   :  { %1473 = vmatpush.msrb.mxu2 %v1318_v52 }
 0x837   :  { %v1361_v16 = vpop.f32.mrf.mxu1 }
 0x838   :  { %v7484_v62 = vadd.f32 %v6344_v56, %v1361_v16 }
 0x83a   :  { %v7488_v0 = vmul.f32 0.70710677, %v7484_v62 }
 0x83c   :  { %v1371_v43 = vmul.f32 %v7488_v0, %v7488_v0 }
 0x83e   :  { %v7494_v28 = vmin.f32 %v1371_v43, 16.0 }
 0x840   :  { %v1373_v3 = vmul.f32 2.1237322e-06, %v7494_v28  ;;  %v1384_v4 = vmul.f32 3.8918573e-05, %v7494_v28  ;;  %v1364_v7 = vpop.f32.mrf.mxu1 }
 0x841   :  { %v7499_v36 = vadd.f32 %v6344_v56, %v1364_v7 }
 0x842   :  { %v1374_v9 = vadd.f32 0.00028619796, %v1373_v3  ;;  %v1385_v10 = vadd.f32 0.001143296, %v1384_v4  ;;  %v1493_v3 = vld [vmem:[%s9215_s28 + $0x38] sm:$0xff] }
 0x843   :  { %v7504_v45 = vmul.f32 0.70710677, %v7499_v36  ;;  %1634 = vmatpush.msrb.mxu3 %v1493_v3 }
 0x844   :  { %v1375_v12 = vmul.f32 %v1374_v9, %v7494_v28  ;;  %v1386_v54 = vmul.f32 %v1385_v10, %v7494_v28  ;;  %v1492_v9 = vld [vmem:[%s9215_s28 + $0x30] sm:$0xff] }
 0x845   :  { %v1411_v61 = vmul.f32 %v7504_v45, %v7504_v45  ;;  %1635 = vmatpush.msrb.mxu3 %v1492_v9 }
 0x846   :  { %v1376_v42 = vadd.f32 0.0036580483, %v1375_v12  ;;  %v1387_v18 = vadd.f32 0.014752088, %v1386_v54 }
 0x847   :  { %v7515_v17 = vmin.f32 %v1411_v61, 16.0  ;;  %1636 = vmatpush.msrb.mxu3 %v1491_v15 }
 0x848   :  { %v1388_v59 = vmul.f32 %v1387_v18, %v7494_v28  ;;  %v1529_v22 = vpop.f32.mrf.mxu0  ;;  %v1377_v29 = vmul.f32 %v1376_v42, %v7494_v28  ;;  %v1490_v18 = vld [vmem:[%s9215_s28 + $0x20] sm:$0xff] }
 0x849   :  { %v1413_v19 = vmul.f32 2.1237322e-06, %v7515_v17  ;;  %v7522_v51 = vadd.f32 %v6345_v13, %v1529_v22  ;;  %v1424_v25 = vmul.f32 3.8918573e-05, %v7515_v17  ;;  %1637 = vmatpush.msrb.mxu3 %v1490_v18  ;;  %v1367_v18 = vmul.f32 0.5, %v7484_v62 }
 0x84a   :  { %v1389_v30 = vadd.f32 0.112945676, %v1388_v59  ;;  %v1378_v63 = vadd.f32 0.05243302, %v1377_v29 }
 0x84b   :  { %v1414_v58 = vadd.f32 0.00028619796, %v1413_v19  ;;  %v7528_v34 = vmul.f32 0.70710677, %v7522_v51  ;;  %v1425_v41 = vadd.f32 0.001143296, %v1424_v25  ;;  %1638 = vmatpush.msrb.mxu3 %v1489_v5 }
 0x84c   :  { %v1390_v37 = vmul.f32 %v1389_v30, %v7494_v28  ;;  %v1379_v20 = vmul.f32 %v1378_v63, %v7494_v28  ;;  %v1487_v63 = vld [vmem:[%s9215_s28 + $0x8] sm:$0xff] }
 0x84d   :  { %v1415_v46 = vmul.f32 %v1414_v58, %v7515_v17  ;;  %v1539_v47 = vmul.f32 %v7528_v34, %v7528_v34  ;;  %v1426_v50 = vmul.f32 %v1425_v41, %v7515_v17  ;;  %1639 = vmatpush.msrb.mxu3 %v1488_v14 }
 0x84e   :  { %v1391_v8 = vadd.f32 0.4994258, %v1390_v37  ;;  %v1380_v10 = vadd.f32 0.18741608, %v1379_v20 }
 0x84f   :  { %v7539_v35 = vmin.f32 %v1539_v47, 16.0  ;;  %v1427_v16 = vadd.f32 0.014752088, %v1426_v50  ;;  %v1416_v44 = vadd.f32 0.0036580483, %v1415_v46  ;;  %v1486_v50 = vld [vmem:[%s9215_s28] sm:$0xff]  ;;  %1640 = vmatpush.msrb.mxu3 %v1487_v63 }
 0x850   :  { %v1392_v55 = vmul.f32 %v1391_v8, %v7494_v28  ;;  %v1532_v56 = vpop.f32.mrf.mxu0  ;;  %v1381_v33 = vmul.f32 %v1380_v10, %v7494_v28 }
 0x851   :  { %v1541_v1 = vmul.f32 2.1237322e-06, %v7539_v35  ;;  %v1552_v43 = vmul.f32 3.8918573e-05, %v7539_v35  ;;  %v7549_v2 = vadd.f32 %v6345_v13, %v1532_v56  ;;  %v1428_v4 = vmul.f32 %v1427_v16, %v7515_v17  ;;  %1641 = vmatpush.msrb.mxu3 %v1486_v50 }
 0x852   :  { %v7547_v6 = vadd.f32 1.0, %v1392_v55  ;;  %v1417_v49 = vmul.f32 %v1416_v44, %v7515_v17  ;;  %v1382_v37 = vadd.f32 1.1283791, %v1381_v33 }
 0x853   :  { %v1542_v7 = vadd.f32 0.00028619796, %v1541_v1  ;;  %v1553_v57 = vadd.f32 0.001143296, %v1552_v43  ;;  %v7559_v54 = vmul.f32 0.70710677, %v7549_v2 }
 0x854   :  { %6462 = vrcp.f32 %v7547_v6  ;;  %v1429_v61 = vadd.f32 0.112945676, %v1428_v4  ;;  %v1418_v59 = vadd.f32 0.05243302, %v1417_v49  ;;  %v1403_v47 = vand.u32 2147483647, %v7547_v6 }
 0x855   :  { %v1543_v40 = vmul.f32 %v1542_v7, %v7539_v35  ;;  %v1554_v12 = vmul.f32 %v1553_v57, %v7539_v35  ;;  %v1579_v42 = vmul.f32 %v7559_v54, %v7559_v54  ;;  %v1405_v23 = vand.u32 2147483648, %v7547_v6 }
 0x856   :  { %v1430_v53 = vmul.f32 %v1429_v61, %v7515_v17  ;;  %v1419_v41 = vmul.f32 %v1418_v59, %v7515_v17  ;;  %vm1399_vm10 = vweird.f32 %v7547_v6  ;;  %v1383_v4 = vmul.f32 %v1382_v37, %v7488_v0 }
 0x857   :  { %v1544_v13 = vadd.f32 0.0036580483, %v1543_v40  ;;  %v1555_v24 = vadd.f32 0.014752088, %v1554_v12  ;;  %v7568_v29 = vmin.f32 %v1579_v42, 16.0  ;;  %v1406_v1 = vor.u32 1.1754944e-38, %v1405_v23 }
 0x858   :  { %v1431_v19 = vadd.f32 0.4994258, %v1430_v53  ;;  %v1420_v44 = vadd.f32 0.18741608, %v1419_v41  ;;  %vm1404_vm12 = vcmp.eq.f32.partialorder %v1403_v47, 8.507059e+37 }
 0x859   :  { %v1556_v27 = vmul.f32 %v1555_v24, %v7539_v35  ;;  %v1545_v30 = vmul.f32 %v1544_v13, %v7539_v35  ;;  %v1581_v58 = vmul.f32 2.1237322e-06, %v7568_v29  ;;  %v1592_v46 = vmul.f32 3.8918573e-05, %v7568_v29 }
 0x85a   :  { %v6463_v22 = vpop.eup %6462  ;;  %v1432_v28 = vmul.f32 %v1431_v19, %v7515_v17  ;;  %v1421_v12 = vmul.f32 %v1420_v44, %v7515_v17 }
 0x85b   :  { %v1395_v25 = vmul.f32 %v6463_v22, %v7547_v6  ;;  %v1557_v31 = vadd.f32 0.112945676, %v1556_v27  ;;  %vm1400_vm9 = vweird.f32 %v6463_v22  ;;  %v1582_v55 = vadd.f32 0.00028619796, %v1581_v58 }
 0x85c   :  { %v1433_v11 = vadd.f32 1.0, %v1432_v28  ;;  %v1593_v56 = vadd.f32 0.001143296, %v1592_v46  ;;  %v1546_v32 = vadd.f32 0.05243302, %v1545_v30  ;;  %vm1401_vm11 = vmor %vm1399_vm10, %vm1400_vm9 }
 0x85d   :  { %v1396_v39 = vsub.f32 1.0, %v1395_v25  ;;  %v1558_v8 = vmul.f32 %v1557_v31, %v7539_v35  ;;  %v1583_v57 = vmul.f32 %v1582_v55, %v7568_v29  ;;  %v1422_v33 = vadd.f32 1.1283791, %v1421_v12 }
 0x85e   :  { %6464 = vrcp.f32 %v1433_v11  ;;  %v1594_v3 = vmul.f32 %v1593_v56, %v7568_v29  ;;  %v1547_v10 = vmul.f32 %v1546_v32, %v7539_v35  ;;  %v1445_v27 = vand.u32 2147483648, %v1433_v11 }
 0x85f   :  { %v1397_v52 = vmul.f32 %v6463_v22, %v1396_v39  ;;  %v1559_v16 = vadd.f32 0.4994258, %v1558_v8  ;;  %v1584_v13 = vadd.f32 0.0036580483, %v1583_v57  ;;  %vm1439_vm14 = vweird.f32 %v1433_v11 }
 0x860   :  { %v1595_v40 = vadd.f32 0.014752088, %v1594_v3  ;;  %v1548_v42 = vadd.f32 0.18741608, %v1547_v10  ;;  %v1423_v62 = vmul.f32 %v1422_v33, %v7504_v45  ;;  %v1446_v37 = vor.u32 1.1754944e-38, %v1445_v27 }
 0x861   :  { %v1398_v20 = vadd.f32 %v6463_v22, %v1397_v52  ;;  %v1560_v43 = vmul.f32 %v1559_v16, %v7539_v35  ;;  %v1585_v25 = vmul.f32 %v1584_v13, %v7568_v29 }
 0x862   :  { %v1596_v0 = vmul.f32 %v1595_v40, %v7568_v29  ;;  %v1549_v31 = vmul.f32 %v1548_v42, %v7539_v35 }
 0x863   :  { %v1402_v7 = vsel %vm1401_vm11, %v6463_v22, %v1398_v20  ;;  %v1561_v49 = vadd.f32 1.0, %v1560_v43  ;;  %v1443_v22 = vand.u32 2147483647, %v1433_v11  ;;  %v1586_v63 = vadd.f32 0.05243302, %v1585_v25 }
 0x864   :  { %v1407_v9 = vsel %vm1404_vm12, %v1406_v1, %v1402_v7  ;;  %v6465_v15 = vpop.eup %6464  ;;  %v1597_v19 = vadd.f32 0.112945676, %v1596_v0  ;;  %v1550_v47 = vadd.f32 1.1283791, %v1549_v31  ;;  %v1368_v20 = vmul.f32 0.5, %v7499_v36 }
 0x865   :  { %v1408_v6 = vmul.f32 %v1407_v9, %v1383_v4  ;;  %6466 = vrcp.f32 %v1561_v49  ;;  %v1435_v24 = vmul.f32 %v6465_v15, %v1433_v11  ;;  %vm1440_vm13 = vweird.f32 %v6465_v15 }
 0x866   :  { %v1598_v58 = vmul.f32 %v1597_v19, %v7568_v29  ;;  %vm1441_vm15 = vmor %vm1439_vm14, %vm1440_vm13  ;;  %vm1444_vm1 = vcmp.eq.f32.partialorder %v1443_v22, 8.507059e+37  ;;  %v1573_v23 = vand.u32 2147483648, %v1561_v49  ;;  %v1571_v52 = vand.u32 2147483647, %v1561_v49  ;;  %v6346_v19 = vld [vmem:[%s9217_s23] ss:$0 sm:$0xff] }
 0x867   :  { %v5820_v61 = vclamps-f32 %v1408_v6, 1.0  ;;  %v1436_v59 = vsub.f32 1.0, %v1435_v24  ;;  %vm1567_vm3 = vweird.f32 %v1561_v49  ;;  %v1587_v45 = vmul.f32 %v1586_v63, %v7568_v29 }
 0x868   :  { %v1599_v39 = vadd.f32 0.4994258, %v1598_v58  ;;  %v1574_v16 = vor.u32 1.1754944e-38, %v1573_v23  ;;  %v1551_v44 = vmul.f32 %v1550_v47, %v7528_v34  ;;  %vm1572_vm5 = vcmp.eq.f32.partialorder %v1571_v52, 8.507059e+37 }
 0x869   :  { %v1451_v53 = vadd.f32 1.0, %v5820_v61  ;;  %v1437_v17 = vmul.f32 %v6465_v15, %v1436_v59  ;;  %v1588_v7 = vadd.f32 0.18741608, %v1587_v45  ;;  %v1536_v59 = vmul.f32 0.5, %v7549_v2 }
 0x86a   :  { %v1600_v35 = vmul.f32 %v1599_v39, %v7568_v29 }
 0x86b   :  { %v1453_v5 = vmul.f32 %v1451_v53, %v1367_v18  ;;  %v6467_v30 = vpop.eup %6466  ;;  %v1438_v14 = vadd.f32 %v6465_v15, %v1437_v17  ;;  %v1589_v6 = vmul.f32 %v1588_v7, %v7568_v29  ;;  %v5830_v7 = vld [vmem:[%s6874_s19 + $0x30] sm:$0xff] }
 0x86c   :  { %v1563_v28 = vmul.f32 %v6467_v30, %v1561_v49  ;;  %vm1568_vm2 = vweird.f32 %v6467_v30  ;;  %v1601_v56 = vadd.f32 1.0, %v1600_v35  ;;  %v1535_v49 = vmul.f32 0.5, %v7522_v51 }
 0x86d   :  { %1474 = vmatmul.f32.vlgmr.msrb.gmra.mxu2 %v1453_v5  ;;  %v1442_v46 = vsel %vm1441_vm15, %v6465_v15, %v1438_v14  ;;  %vm1569_vm4 = vmor %vm1567_vm3, %vm1568_vm2  ;;  %v1590_v34 = vadd.f32 1.1283791, %v1589_v6 }
 0x86e   :  { %v1564_v41 = vsub.f32 1.0, %v1563_v28  ;;  %v1447_v8 = vsel %vm1444_vm1, %v1446_v37, %v1442_v46  ;;  %6468 = vrcp.f32 %v1601_v56  ;;  %v1613_v61 = vand.u32 2147483648, %v1601_v56  ;;  %v6347_v28 = vld [vmem:[%s9218_s16] ss:$0 sm:$0xff] }
 0x86f   :  { %v1448_v55 = vmul.f32 %v1447_v8, %v1423_v62  ;;  %v1611_v24 = vand.u32 2147483647, %v1601_v56  ;;  %vm1607_vm10 = vweird.f32 %v1601_v56  ;;  %v1591_v18 = vmul.f32 %v1590_v34, %v7559_v54 }
 0x870   :  { %v1565_v50 = vmul.f32 %v6467_v30, %v1564_v41  ;;  %v1614_v0 = vor.u32 1.1754944e-38, %v1613_v61 }
 0x871   :  { %v5821_v32 = vclamps-f32 %v1448_v55, 1.0  ;;  %vm1612_vm12 = vcmp.eq.f32.partialorder %v1611_v24, 8.507059e+37 }
 0x872   :  { %v1566_v11 = vadd.f32 %v6467_v30, %v1565_v50 }
 0x873   :  { %v1452_v43 = vadd.f32 1.0, %v5821_v32 }
 0x874   :  { %v1570_v1 = vsel %vm1569_vm4, %v6467_v30, %v1566_v11  ;;  %v6469_v10 = vpop.eup %6468 }
 0x875   :  { %v1575_v3 = vsel %vm1572_vm5, %v1574_v16, %v1570_v1  ;;  %v1454_v57 = vmul.f32 %v1452_v43, %v1368_v20  ;;  %v1603_v12 = vmul.f32 %v6469_v10, %v1601_v56  ;;  %vm1608_vm9 = vweird.f32 %v6469_v10 }
 0x876   :  { %v1576_v4 = vmul.f32 %v1575_v3, %v1551_v44  ;;  %vm1609_vm11 = vmor %vm1607_vm10, %vm1608_vm9 }
 0x877   :  { %1477 = vmatmul.f32.gmra.mxu2 %v1454_v57  ;;  %v1604_v15 = vsub.f32 1.0, %v1603_v12 }
 0x878   :  { %v5824_v9 = vclamps-f32 %v1576_v4, 1.0  ;;  %v5831_v4 = vld [vmem:[%s6874_s19 + $0x38] sm:$0xff] }
 0x879   :  { %v1605_v13 = vmul.f32 %v6469_v10, %v1604_v15  ;;  %1800 = vmatpush.msra.mxu1 %v5831_v4 }
 0x87a   :  { %v1619_v40 = vadd.f32 1.0, %v5824_v9  ;;  %v5829_v9 = vld [vmem:[%s6874_s19 + $0x28] sm:$0xff] }
 0x87b   :  { %v1606_v42 = vadd.f32 %v6469_v10, %v1605_v13  ;;  %1801 = vmatpush.msra.mxu1 %v5830_v7 }
 0x87c   :  { %v1621_v36 = vmul.f32 %v1619_v40, %v1535_v49  ;;  %v5828_v49 = vld [vmem:[%s6874_s19 + $0x20] sm:$0xff] }
 0x87d   :  { %v1610_v51 = vsel %vm1609_vm11, %v6469_v10, %v1606_v42  ;;  %1802 = vmatpush.msra.mxu1 %v5829_v9 }
 0x87e   :  { %1642 = vmatmul.f32.vlgmr.msrb.gmra.mxu3 %v1621_v36  ;;  %v1615_v53 = vsel %vm1612_vm12, %v1614_v0, %v1610_v51  ;;  %v6348_v51 = vld [vmem:[%s6864_s8 + $0x1] ss:$0 sm:$0xff] }
 0x87f   :  { %v1616_v29 = vmul.f32 %v1615_v53, %v1591_v18  ;;  %1803 = vmatpush.msra.mxu1 %v5828_v49 }
 0x881   :  { %v5825_v33 = vclamps-f32 %v1616_v29, 1.0 }
 0x883   :  { %v1620_v22 = vadd.f32 1.0, %v5825_v33 }
 0x885   :  { %v1622_v27 = vmul.f32 %v1620_v22, %v1536_v59  ;;  %v6349_v22 = vld [vmem:[%s6869_s14 + $0x1] ss:$0 sm:$0xff] }
 0x887   :  { %1645 = vmatmul.f32.gmra.mxu3 %v1622_v27 }
 0x8f0   :  { %v1475_v5 = vpop.f32.mrf.mxu2 }
 0x8f1   :  { %v1476_v25 = vadd.f32 %v6346_v19, %v1475_v5 }
 0x8f3   :  { %v7606_v17 = vadd.f32 %v1476_v25, %v7410_v60 }
 0x8f5   :  { %v1671_v54 = vsel %vm214_vm0, %v7606_v17, 0.0 }
 0x8f6   :  { %1672 = vadd.xlane.f32.xlu1 %v1671_v54 }
 0x8fa   :  { %v1478_v30 = vpop.f32.mrf.mxu2 }
 0x8fb   :  { %v1479_v31 = vadd.f32 %v6346_v19, %v1478_v30 }
 0x8fd   :  { %v7611_v58 = vadd.f32 %v1479_v31, %v7415_v48 }
 0x8ff   :  { %v1674_v2 = vsel %vm214_vm0, %v7611_v58, 0.0 }
 0x900   :  { %1675 = vadd.xlane.f32.xlu2 %v1674_v2 }
 0x901   :  { %v1643_v14 = vpop.f32.mrf.mxu3 }
 0x902   :  { %v1644_v62 = vadd.f32 %v6347_v28, %v1643_v14 }
 0x904   :  { %v7617_v37 = vadd.f32 %v1644_v62, %v7420_v21 }
 0x906   :  { %v1677_v60 = vsel %vm214_vm0, %v7617_v37, 0.0 }
 0x907   :  { %1678 = vadd.xlane.f32.xlu0 %v1677_v60 }
 0x90a   :  { %v1646_v39 = vpop.f32.mrf.mxu3 }
 0x90b   :  { %v1647_v41 = vadd.f32 %v6347_v28, %v1646_v39 }
 0x90d   :  { %v7622_v63 = vadd.f32 %v1647_v41, %v7425_v26 }
 0x90f   :  { %v1680_v48 = vsel %vm214_vm0, %v7622_v63, 0.0 }
 0x910   :  { %1681 = vadd.xlane.f32.xlu1 %v1680_v48 }
 0x969   :  { %v1673_v46 = vpop.xlane.xlu1 %1672 }
 0x96a   :  { %v1683_v47 = vmul.f32 %v1673_v46, %v7016_v38 }
 0x96c   :  { %v1687_v23 = vsub.f32 %v7606_v17, %v1683_v47 }
 0x96e   :  { %v1691_v21 = vmul.f32 %v1687_v23, %v1687_v23 }
 0x970   :  { %v1695_v8 = vsel %vm214_vm0, %v1691_v21, 0.0 }
 0x971   :  { %1696 = vadd.xlane.f32.xlu2 %v1695_v8 }
 0x973   :  { %v1676_v35 = vpop.xlane.xlu2 %1675 }
 0x974   :  { %v1684_v50 = vmul.f32 %v1676_v35, %v7016_v38 }
 0x976   :  { %v7631_v52 = vsub.f32 %v7611_v58, %v1684_v50 }
 0x978   :  { %v1692_v26 = vmul.f32 %v7631_v52, %v7631_v52 }
 0x97a   :  { %v1679_v55 = vpop.xlane.xlu0 %1678  ;;  %v1698_v56 = vsel %vm214_vm0, %v1692_v26, 0.0 }
 0x97b   :  { %v1685_v11 = vmul.f32 %v1679_v55, %v7016_v38  ;;  %1699 = vadd.xlane.f32.xlu0 %v1698_v56 }
 0x97d   :  { %v7638_v45 = vsub.f32 %v7617_v37, %v1685_v11 }
 0x97f   :  { %v1693_v32 = vmul.f32 %v7638_v45, %v7638_v45 }
 0x981   :  { %v1701_v16 = vsel %vm214_vm0, %v1693_v32, 0.0 }
 0x982   :  { %1702 = vadd.xlane.f32.xlu1 %v1701_v16 }
 0x983   :  { %v1682_v20 = vpop.xlane.xlu1 %1681 }
 0x984   :  { %v1686_v44 = vmul.f32 %v1682_v20, %v7016_v38 }
 0x986   :  { %v7645_v1 = vsub.f32 %v7622_v63, %v1686_v44 }
 0x988   :  { %v1694_v43 = vmul.f32 %v7645_v1, %v7645_v1 }
 0x98a   :  { %v1704_v3 = vsel %vm214_vm0, %v1694_v43, 0.0 }
 0x98b   :  { %1705 = vadd.xlane.f32.xlu2 %v1704_v3 }
 0x9e4   :  { %v1697_v57 = vpop.xlane.xlu2 %1696 }
 0x9e5   :  { %v1707_v10 = vmul.f32 %v1697_v57, %v7016_v38  ;;  %v6350_v57 = vld [vmem:[%s6879_s24 + $0x1] ss:$0 sm:$0xff] }
 0x9e7   :  { %v1711_v40 = vadd.f32 1e-06, %v1707_v10 }
 0x9e9   :  { %6470 = vrsqrt.f32 %v1711_v40  ;;  %vm1721_vm14 = vweird.f32 %v1711_v40 }
 0x9ee   :  { %v1700_v36 = vpop.xlane.xlu0 %1699 }
 0x9ef   :  { %v6471_v6 = vpop.eup %6470  ;;  %v1708_v15 = vmul.f32 %v1700_v36, %v7016_v38 }
 0x9f0   :  { %v1716_v12 = vmul.f32 %v6471_v6, %v1711_v40  ;;  %vm1722_vm13 = vweird.f32 %v6471_v6 }
 0x9f1   :  { %v1712_v34 = vadd.f32 1e-06, %v1708_v15  ;;  %vm1723_vm15 = vmor %vm1721_vm14, %vm1722_vm13 }
 0x9f2   :  { %v1717_v61 = vmul.f32 %v6471_v6, %v1716_v12 }
 0x9f3   :  { %6472 = vrsqrt.f32 %v1712_v34  ;;  %vm1731_vm2 = vweird.f32 %v1712_v34 }
 0x9f4   :  { %v1718_v13 = vmul.f32 0.5, %v1717_v61 }
 0x9f5   :  { %v1703_v42 = vpop.xlane.xlu1 %1702 }
 0x9f6   :  { %v1719_v24 = vsub.f32 1.5, %v1718_v13  ;;  %v1709_v0 = vmul.f32 %v1703_v42, %v7016_v38 }
 0x9f8   :  { %v1720_v18 = vmul.f32 %v6471_v6, %v1719_v24  ;;  %v1713_v53 = vadd.f32 1e-06, %v1709_v0 }
 0x9f9   :  { %v6473_v33 = vpop.eup %6472 }
 0x9fa   :  { %v1724_v29 = vsel %vm1723_vm15, %v6471_v6, %v1720_v18  ;;  %6474 = vrsqrt.f32 %v1713_v53  ;;  %v1726_v27 = vmul.f32 %v6473_v33, %v1712_v34  ;;  %vm1732_vm1 = vweird.f32 %v6473_v33 }
 0x9fb   :  { %v1755_v59 = vmul.f32 %v1724_v29, %v1687_v23  ;;  %vm1733_vm3 = vmor %vm1731_vm2, %vm1732_vm1  ;;  %vm1741_vm5 = vweird.f32 %v1713_v53 }
 0x9fc   :  { %v1727_v5 = vmul.f32 %v6473_v33, %v1726_v27 }
 0x9fd   :  { %v1762_v19 = vmul.f32 %v6348_v51, %v1755_v59 }
 0x9fe   :  { %v1728_v54 = vmul.f32 0.5, %v1727_v5  ;;  %v1706_v62 = vpop.xlane.xlu2 %1705 }
 0x9ff   :  { %v1769_v25 = vadd.f32 %v6349_v22, %v1762_v19  ;;  %v1710_v60 = vmul.f32 %v1706_v62, %v7016_v38 }
 0xa00   :  { %v6475_v30 = vpop.eup %6474  ;;  %v1729_v31 = vsub.f32 1.5, %v1728_v54 }
 0xa01   :  { %5838 = vmatmul.msk.f32.vlgmr.msra.gmra.mxu1 %vm214_vm0, %v1769_v25  ;;  %v1736_v28 = vmul.f32 %v6475_v30, %v1713_v53  ;;  %v1714_v48 = vadd.f32 1e-06, %v1710_v60  ;;  %vm1742_vm4 = vweird.f32 %v6475_v30 }
 0xa02   :  { %v1730_v2 = vmul.f32 %v6473_v33, %v1729_v31  ;;  %vm1743_vm9 = vmor %vm1741_vm5, %vm1742_vm4 }
 0xa03   :  { %v1737_v14 = vmul.f32 %v6475_v30, %v1736_v28  ;;  %6476 = vrsqrt.f32 %v1714_v48  ;;  %vm1751_vm11 = vweird.f32 %v1714_v48 }
 0xa04   :  { %v1734_v41 = vsel %vm1733_vm3, %v6473_v33, %v1730_v2 }
 0xa05   :  { %v1738_v39 = vmul.f32 0.5, %v1737_v14  ;;  %v1756_v46 = vmul.f32 %v1734_v41, %v7631_v52 }
 0xa07   :  { %v1739_v47 = vsub.f32 1.5, %v1738_v39  ;;  %v1763_v23 = vmul.f32 %v6348_v51, %v1756_v46 }
 0xa09   :  { %v1740_v21 = vmul.f32 %v6475_v30, %v1739_v47  ;;  %v1770_v8 = vadd.f32 %v6349_v22, %v1763_v23  ;;  %v6477_v26 = vpop.eup %6476 }
 0xa0a   :  { %v1746_v56 = vmul.f32 %v6477_v26, %v1714_v48  ;;  %vm1752_vm10 = vweird.f32 %v6477_v26 }
 0xa0b   :  { %v1744_v35 = vsel %vm1743_vm9, %v6475_v30, %v1740_v21  ;;  %5839 = vmatmul.msk.f32.gmra.mxu1 %vm214_vm0, %v1770_v8  ;;  %vm1753_vm12 = vmor %vm1751_vm11, %vm1752_vm10 }
 0xa0c   :  { %v1757_v50 = vmul.f32 %v1744_v35, %v7638_v45  ;;  %v1747_v32 = vmul.f32 %v6477_v26, %v1746_v56 }
 0xa0e   :  { %v1764_v55 = vmul.f32 %v6348_v51, %v1757_v50  ;;  %v1748_v52 = vmul.f32 0.5, %v1747_v32 }
 0xa10   :  { %v1771_v11 = vadd.f32 %v6349_v22, %v1764_v55  ;;  %v1749_v16 = vsub.f32 1.5, %v1748_v52 }
 0xa12   :  { %v1750_v20 = vmul.f32 %v6477_v26, %v1749_v16 }
 0xa13   :  { %5840 = vmatmul.msk.f32.gmra.mxu1 %vm214_vm0, %v1771_v11  ;;  %v6736_v11 = vld [vmem:[%s6849_s25] sm:$0xff] }
 0xa14   :  { %v1754_v44 = vsel %vm1753_vm12, %v6477_v26, %v1750_v20 }
 0xa15   :  { %v1758_v43 = vmul.f32 %v1754_v44, %v7645_v1 }
 0xa17   :  { %v1765_v3 = vmul.f32 %v6348_v51, %v1758_v43 }
 0xa19   :  { %v1772_v4 = vadd.f32 %v6349_v22, %v1765_v3 }
 0xa1b   :  { %5841 = vmatmul.msk.f32.gmra.mxu1 %vm214_vm0, %v1772_v4 }
 0xa7e   :  { %v1805_v45 = vpop.f32.mrf.mxu1 }
 0xa7f   :  { %v1806_v6 = vadd.f32 %v6350_v57, %v1805_v45  ;;  %v6737_v45 = vld [vmem:[%s6849_s25 + $0x8] sm:$0xff] }
 0xa88   :  { %v1808_v7 = vpop.f32.mrf.mxu1 }
 0xa89   :  { %v1809_v49 = vadd.f32 %v6350_v57, %v1808_v7 }
 0xa8b   :  { %v7710_v12 = vpack.i.bf16 %v1806_v6, %v1809_v49 }
 0xa90   :  { %v1811_v9 = vpop.f32.mrf.mxu1 }
 0xa91   :  { %v7668_v10 = vadd.f32 %v6350_v57, %v1811_v9 }
 0xa93   :  { %1991 = vrot.lane.b32.xlu0 %v7668_v10, %s6801_s0  ;;  %1825 = vrot.lane.b32.xlu2 %v7668_v10, %s6802_s5 }
 0xa98   :  { %v1814_v1 = vpop.f32.mrf.mxu1 }
 0xa99   :  { %v7675_v40 = vadd.f32 %v6350_v57, %v1814_v1 }
 0xa9b   :  { %1989 = vrot.lane.b32.xlu2 %v1809_v49, %s6801_s0  ;;  %1993 = vrot.lane.b32.xlu1 %v7675_v40, %s6801_s0  ;;  %v7720_v36 = vpack.i.bf16 %v7668_v10, %v7675_v40 }
 0xa9c   :  { %1827 = vrot.lane.b32.xlu0 %v7675_v40, %s6802_s5 }
 0xaa3   :  { %1979 = vrot.lane.b32.xlu2 %v1806_v6, %s6803_s9  ;;  %1821 = vrot.lane.b32.xlu1 %v1806_v6, %s6802_s5 }
 0xaa4   :  { %1823 = vrot.lane.b32.xlu0 %v1809_v49, %s6802_s5 }
 0xaab   :  { %2323 = vrot.lane.b32.xlu2 %v7668_v10, %s6805_s17  ;;  %1981 = vrot.lane.b32.xlu1 %v1809_v49, %s6803_s9 }
 0xaac   :  { %1987 = vrot.lane.b32.xlu0 %v1806_v6, %s6801_s0 }
 0xab3   :  { %2159 = vrot.lane.b32.xlu2 %v7675_v40, %s6804_s13  ;;  %2153 = vrot.lane.b32.xlu1 %v1806_v6, %s6804_s13 }
 0xab4   :  { %1983 = vrot.lane.b32.xlu0 %v7668_v10, %s6803_s9 }
 0xabb   :  { %2321 = vrot.lane.b32.xlu2 %v1809_v49, %s6805_s17  ;;  %2325 = vrot.lane.b32.xlu1 %v7675_v40, %s6805_s17 }
 0xabc   :  { %2157 = vrot.lane.b32.xlu0 %v7668_v10, %s6804_s13 }
 0xac3   :  { %2145 = vrot.lane.b32.xlu2 %v1806_v6, %s6806_s21  ;;  %1985 = vrot.lane.b32.xlu1 %v7675_v40, %s6803_s9 }
 0xac4   :  { %2155 = vrot.lane.b32.xlu0 %v1809_v49, %s6804_s13 }
 0xacb   :  { %2313 = vrot.lane.b32.xlu2 %v1809_v49, %s6807_s3  ;;  %2311 = vrot.lane.b32.xlu1 %v1806_v6, %s6807_s3 }
 0xacc   :  { %2319 = vrot.lane.b32.xlu0 %v1806_v6, %s6805_s17 }
 0xad3   :  { %2315 = vrot.lane.b32.xlu2 %v7668_v10, %s6807_s3  ;;  %2151 = vrot.lane.b32.xlu1 %v7675_v40, %s6806_s21 }
 0xad4   :  { %2147 = vrot.lane.b32.xlu0 %v1809_v49, %s6806_s21 }
 0xadb   :  { %6217 = vrot.lane.b32.xlu2 %v7710_v12, %s9193_s15 }
 0xadc   :  { %2149 = vrot.lane.b32.xlu0 %v7668_v10, %s6806_s21 }
 0xae3   :  { %2317 = vrot.lane.b32.xlu2 %v7675_v40, %s6807_s3 }
 0xaeb   :  { %6222 = vrot.lane.b32.xlu2 %v7720_v36, %s9193_s15  ;;  %s9221_s15 = smov 16  }
 0xaed   :  { %v1826_v15 = vpop.permute.xlu2 %1825 }
 0xaf3   :  { %6227 = vrot.lane.b32.xlu2 %v7720_v36, %s9195_s18 }
 0xaf5   :  { %v1990_v61 = vpop.permute.xlu2 %1989 }
 0xafd   :  { %v1980_v34 = vpop.permute.xlu2 %1979 }
 0xb05   :  { %v2324_v13 = vpop.permute.xlu2 %2323  ;;  %v1992_v24 = vpop.permute.xlu0 %1991 }
 0xb0d   :  { %v2160_v42 = vpop.permute.xlu2 %2159  ;;  %v1994_v0 = vpop.permute.xlu1 %1993 }
 0xb0e   :  { %v1828_v18 = vpop.permute.xlu0 %1827  ;;  %5854 = vmatpush.xpose.msk.msra.mxu3 %vm450_vm6, %v1994_v0 }
 0xb0f   :  { %5842 = vmatpush.xpose.msk.msra.mxu2 %vm450_vm6, %v1828_v18 }
 0xb12   :  { %5855 = vmatpush.xpose.msk.msra.mxu3 %vm450_vm6, %v1992_v24 }
 0xb13   :  { %5843 = vmatpush.xpose.msk.msra.mxu2 %vm450_vm6, %v1826_v15  ;;  %v7776_v15 = vld [vmem:[%s6849_s25 + $0x10] sm:$0xff] }
 0xb15   :  { %v2322_v51 = vpop.permute.xlu2 %2321  ;;  %v1822_v53 = vpop.permute.xlu1 %1821 }
 0xb16   :  { %v1824_v29 = vpop.permute.xlu0 %1823  ;;  %5856 = vmatpush.xpose.msk.msra.mxu3 %vm450_vm6, %v1990_v61 }
 0xb17   :  { %5844 = vmatpush.xpose.msk.msra.mxu2 %vm450_vm6, %v1824_v29 }
 0xb1b   :  { %5845 = vmatpush.xpose.msk.msra.mxu2 %vm450_vm6, %v1822_v53  ;;  %v7789_v53 = vld [vmem:[%s6849_s25 + $0x18] sm:$0xff]  ;;  %s9219_s25 = smov 48  }
 0xb1d   :  { %v2146_v33 = vpop.permute.xlu2 %2145  ;;  %v1982_v59 = vpop.permute.xlu1 %1981 }
 0xb1e   :  { %5846 = vmatmul.msk.f32.vlgmr.msra.gmra.mxu2 %vm450_vm6, %v1806_v6  ;;  %v1988_v22 = vpop.permute.xlu0 %1987 }
 0xb1f   :  { %5866 = vmatpush.xpose.msk.msrb.mxu2 %vm450_vm6, %v2160_v42  ;;  %5857 = vmatpush.xpose.msk.msra.mxu3 %vm450_vm6, %v1988_v22 }
 0xb22   :  { %5858 = vmatmul.msk.f32.vlgmr.msra.gmra.mxu3 %vm450_vm6, %v1980_v34 }
 0xb25   :  { %v2314_v27 = vpop.permute.xlu2 %2313  ;;  %v2154_v19 = vpop.permute.xlu1 %2153 }
 0xb26   :  { %5847 = vmatmul.msk.f32.gmra.mxu2 %vm450_vm6, %v1809_v49  ;;  %v1984_v5 = vpop.permute.xlu0 %1983 }
 0xb2a   :  { %5859 = vmatmul.msk.f32.gmra.mxu3 %vm450_vm6, %v1982_v59 }
 0xb2d   :  { %v2316_v25 = vpop.permute.xlu2 %2315  ;;  %v2326_v54 = vpop.permute.xlu1 %2325 }
 0xb2e   :  { %5848 = vmatmul.msk.f32.gmra.mxu2 %vm450_vm6, %v7668_v10  ;;  %v2158_v30 = vpop.permute.xlu0 %2157  ;;  %5878 = vmatpush.xpose.msk.msrb.mxu3 %vm450_vm6, %v2326_v54 }
 0xb2f   :  { %5867 = vmatpush.xpose.msk.msrb.mxu2 %vm450_vm6, %v2158_v30 }
 0xb32   :  { %5860 = vmatmul.msk.f32.gmra.mxu3 %vm450_vm6, %v1984_v5 }
 0xb33   :  { %5879 = vmatpush.xpose.msk.msrb.mxu3 %vm450_vm6, %v2324_v13 }
 0xb35   :  { %v6218_v31 = vpop.permute.xlu2 %6217  ;;  %v1986_v2 = vpop.permute.xlu1 %1985 }
 0xb36   :  { %5849 = vmatmul.msk.f32.gmra.mxu2 %vm450_vm6, %v7675_v40  ;;  %v2156_v28 = vpop.permute.xlu0 %2155  ;;  %v6219_v47 = vunpack.i.l.bf16 %v6218_v31  ;;  %v6220_v23 = vunpack.i.h.bf16 %v6218_v31 }
 0xb37   :  { %5868 = vmatpush.xpose.msk.msrb.mxu2 %vm450_vm6, %v2156_v28  ;;  %5880 = vmatpush.xpose.msk.msrb.mxu3 %vm450_vm6, %v2322_v51 }
 0xb3a   :  { %5861 = vmatmul.msk.f32.gmra.mxu3 %vm450_vm6, %v1986_v2 }
 0xb3b   :  { %5869 = vmatpush.xpose.msk.msrb.mxu2 %vm450_vm6, %v2154_v19 }
 0xb3d   :  { %v2318_v14 = vpop.permute.xlu2 %2317  ;;  %v2312_v60 = vpop.permute.xlu1 %2311 }
 0xb3e   :  { %5870 = vmatmul.msk.f32.vlgmr.msrb.gmra.mxu2 %vm450_vm6, %v2146_v33  ;;  %v2320_v62 = vpop.permute.xlu0 %2319 }
 0xb3f   :  { %5881 = vmatpush.xpose.msk.msrb.mxu3 %vm450_vm6, %v2320_v62 }
 0xb42   :  { %5882 = vmatmul.msk.f32.vlgmr.msrb.gmra.mxu3 %vm450_vm6, %v2312_v60 }
 0xb45   :  { %v6223_v39 = vpop.permute.xlu2 %6222  ;;  %v2152_v26 = vpop.permute.xlu1 %2151 }
 0xb46   :  { %v6224_v41 = vunpack.i.l.bf16 %v6223_v39  ;;  %v6225_v48 = vunpack.i.h.bf16 %v6223_v39  ;;  %v2148_v46 = vpop.permute.xlu0 %2147 }
 0xb47   :  { %5871 = vmatmul.msk.f32.gmra.mxu2 %vm450_vm6, %v2148_v46 }
 0xb48   :  { %1962 = vmatpush.msra.mxu0 %v6224_v41 }
 0xb4a   :  { %1963 = vmatpush.msra.mxu0 %v6225_v48  ;;  %5883 = vmatmul.msk.f32.gmra.mxu3 %vm450_vm6, %v2314_v27 }
 0xb4c   :  { %1964 = vmatpush.msra.mxu0 %v6219_v47 }
 0xb4d   :  { %v6228_v21 = vpop.permute.xlu2 %6227 }
 0xb4e   :  { %v6229_v8 = vunpack.i.l.bf16 %v6228_v21  ;;  %1965 = vmatpush.msra.mxu0 %v6220_v23  ;;  %v6230_v35 = vunpack.i.h.bf16 %v6228_v21  ;;  %v2150_v50 = vpop.permute.xlu0 %2149 }
 0xb4f   :  { %5872 = vmatmul.msk.f32.gmra.mxu2 %vm450_vm6, %v2150_v50 }
 0xb50   :  { %2128 = vmatpush.msrb.mxu1 %v6229_v8 }
 0xb52   :  { %2129 = vmatpush.msrb.mxu1 %v6230_v35  ;;  %5884 = vmatmul.msk.f32.gmra.mxu3 %vm450_vm6, %v2316_v25 }
 0xb57   :  { %5873 = vmatmul.msk.f32.gmra.mxu2 %vm450_vm6, %v2152_v26 }
 0xb5a   :  { %5885 = vmatmul.msk.f32.gmra.mxu3 %vm450_vm6, %v2318_v14 }
 0xba1   :  { %v1862_v55 = vpop.f32.mrf.mxu2 }
 0xba2   :  { %v1874_v56 = vmul.f32 0.35355338, %v1862_v55 }
 0xba4   :  { %v7761_v32 = vadd.f32 %v6736_v11, %v1874_v56 }
 0xba5   :  { %v2028_v52 = vpop.f32.mrf.mxu3 }
 0xba6   :  { %v2040_v16 = vmul.f32 0.35355338, %v2028_v52  ;;  %v1882_v20 = vsel %vm214_vm0, %v7761_v32, -inf }
 0xba7   :  { %1883 = vmax.xlane.f32.xlu1 %v1882_v20 }
 0xba8   :  { %v7765_v44 = vadd.f32 %v6736_v11, %v2040_v16 }
 0xba9   :  { %v1865_v43 = vpop.f32.mrf.mxu2 }
 0xbaa   :  { %v1875_v3 = vmul.f32 0.35355338, %v1865_v43  ;;  %v2048_v4 = vsel %vm214_vm0, %v7765_v44, -inf }
 0xbab   :  { %2049 = vmax.xlane.f32.xlu0 %v2048_v4 }
 0xbac   :  { %v1879_v7 = vadd.f32 %v6737_v45, %v1875_v3 }
 0xbad   :  { %v2031_v57 = vpop.f32.mrf.mxu3 }
 0xbae   :  { %v2041_v9 = vmul.f32 0.35355338, %v2031_v57  ;;  %v1885_v10 = vsel %vm214_vm0, %v1879_v7, -inf }
 0xbaf   :  { %1886 = vmax.xlane.f32.xlu2 %v1885_v10 }
 0xbb0   :  { %v7771_v49 = vadd.f32 %v6737_v45, %v2041_v9 }
 0xbb1   :  { %v1868_v1 = vpop.f32.mrf.mxu2 }
 0xbb2   :  { %v1876_v40 = vmul.f32 0.35355338, %v1868_v1  ;;  %v2051_v6 = vsel %vm214_vm0, %v7771_v49, -inf }
 0xbb3   :  { %2052 = vmax.xlane.f32.xlu1 %v2051_v6 }
 0xbb4   :  { %v7779_v61 = vadd.f32 %v7776_v15, %v1876_v40 }
 0xbb5   :  { %v2034_v34 = vpop.f32.mrf.mxu3 }
 0xbb6   :  { %v2042_v13 = vmul.f32 0.35355338, %v2034_v34  ;;  %v1888_v24 = vsel %vm214_vm0, %v7779_v61, -inf }
 0xbb7   :  { %1889 = vmax.xlane.f32.xlu2 %v1888_v24 }
 0xbb8   :  { %v7784_v42 = vadd.f32 %v7776_v15, %v2042_v13 }
 0xbb9   :  { %v1871_v0 = vpop.f32.mrf.mxu2 }
 0xbba   :  { %v1877_v18 = vmul.f32 0.35355338, %v1871_v0  ;;  %v2054_v51 = vsel %vm214_vm0, %v7784_v42, -inf }
 0xbbb   :  { %2055 = vmax.xlane.f32.xlu0 %v2054_v51 }
 0xbbc   :  { %v7792_v29 = vadd.f32 %v7789_v53, %v1877_v18 }
 0xbbd   :  { %v2037_v33 = vpop.f32.mrf.mxu3 }
 0xbbe   :  { %v2043_v59 = vmul.f32 0.35355338, %v2037_v33  ;;  %v1891_v22 = vsel %vm214_vm0, %v7792_v29, -inf }
 0xbbf   :  { %1892 = vmax.xlane.f32.xlu1 %v1891_v22 }
 0xbc0   :  { %v7797_v27 = vadd.f32 %v7789_v53, %v2043_v59 }
 0xbc1   :  { %v2194_v19 = vpop.f32.mrf.mxu2 }
 0xbc2   :  { %v2206_v5 = vmul.f32 0.35355338, %v2194_v19  ;;  %v2057_v25 = vsel %vm214_vm0, %v7797_v27, -inf }
 0xbc3   :  { %2058 = vmax.xlane.f32.xlu2 %v2057_v25 }
 0xbc4   :  { %v7801_v54 = vadd.f32 %v6736_v11, %v2206_v5 }
 0xbc5   :  { %v2360_v30 = vpop.f32.mrf.mxu3 }
 0xbc6   :  { %v2372_v31 = vmul.f32 0.35355338, %v2360_v30  ;;  %v2214_v28 = vsel %vm214_vm0, %v7801_v54, -inf }
 0xbc7   :  { %2215 = vmax.xlane.f32.xlu0 %v2214_v28 }
 0xbc8   :  { %v7805_v2 = vadd.f32 %v6736_v11, %v2372_v31 }
 0xbca   :  { %v2197_v14 = vpop.f32.mrf.mxu2  ;;  %v2380_v62 = vsel %vm214_vm0, %v7805_v2, -inf }
 0xbcb   :  { %v2207_v60 = vmul.f32 0.35355338, %v2197_v14  ;;  %2381 = vmax.xlane.f32.xlu1 %v2380_v62 }
 0xbcd   :  { %v2363_v39 = vpop.f32.mrf.mxu3  ;;  %v7809_v41 = vadd.f32 %v6737_v45, %v2207_v60 }
 0xbce   :  { %v2373_v48 = vmul.f32 0.35355338, %v2363_v39 }
 0xbcf   :  { %v2217_v46 = vsel %vm214_vm0, %v7809_v41, -inf }
 0xbd0   :  { %2218 = vmax.xlane.f32.xlu2 %v2217_v46  ;;  %v7813_v47 = vadd.f32 %v6737_v45, %v2373_v48 }
 0xbd2   :  { %v2383_v23 = vsel %vm214_vm0, %v7813_v47, -inf  ;;  %v2200_v14 = vpop.f32.mrf.mxu2 }
 0xbd3   :  { %2384 = vmax.xlane.f32.xlu1 %v2383_v23 }
 0xbe8   :  { %6232 = vrot.lane.b32.xlu2 %v7710_v12, %s9195_s18  ;;  %s9222_s18 = smov 24  }
 0xc1a   :  { %v1884_v21 = vpop.xlane.xlu1 %1883 }
 0xc1b   :  { %v1894_v8 = vsub.f32 %v7761_v32, %v1884_v21 }
 0xc1d   :  { %v1898_v35 = vmul.f32 1.442695, %v1894_v8 }
 0xc1e   :  { %v2050_v50 = vpop.xlane.xlu0 %2049 }
 0xc1f   :  { %6478 = vpow2.f32 %v1898_v35  ;;  %v2060_v26 = vsub.f32 %v7765_v44, %v2050_v50 }
 0xc21   :  { %v2064_v55 = vmul.f32 1.442695, %v2060_v26 }
 0xc22   :  { %v1887_v56 = vpop.xlane.xlu2 %1886 }
 0xc23   :  { %6480 = vpow2.f32 %v2064_v55  ;;  %v1895_v11 = vsub.f32 %v1879_v7, %v1887_v56  ;;  %v2366_v56 = vpop.f32.mrf.mxu3 }
 0xc25   :  { %v7821_v52 = vpop.eup %6478  ;;  %v1900_v16 = vmul.f32 1.442695, %v1895_v11  ;;  %v2374_v11 = vmul.f32 0.35355338, %v2366_v56 }
 0xc26   :  { %v2053_v20 = vpop.xlane.xlu1 %2052  ;;  %v1906_v43 = vsel %vm214_vm0, %v7821_v52, 0.0 }
 0xc27   :  { %6482 = vpow2.f32 %v1900_v16  ;;  %v2061_v3 = vsub.f32 %v7771_v49, %v2053_v20  ;;  %1907 = vadd.xlane.f32.xlu0 %v1906_v43  ;;  %v7885_v20 = vadd.f32 %v7776_v15, %v2374_v11  ;;  %v2203_v43 = vpop.f32.mrf.mxu2 }
 0xc29   :  { %v7826_v32 = vpop.eup %6480  ;;  %v2066_v4 = vmul.f32 1.442695, %v2061_v3  ;;  %v2209_v3 = vmul.f32 0.35355338, %v2203_v43 }
 0xc2a   :  { %v1890_v45 = vpop.xlane.xlu2 %1889  ;;  %v2072_v44 = vsel %vm214_vm0, %v7826_v32, 0.0 }
 0xc2b   :  { %v1896_v7 = vsub.f32 %v7779_v61, %v1890_v45  ;;  %2073 = vadd.xlane.f32.xlu1 %v2072_v44  ;;  %6484 = vpow2.f32 %v2066_v4  ;;  %v2386_v4 = vsel %vm214_vm0, %v7885_v20, -inf  ;;  %v7890_v45 = vadd.f32 %v7789_v53, %v2209_v3  ;;  %v2369_v44 = vpop.f32.mrf.mxu3 }
 0xc2d   :  { %v7831_v57 = vpop.eup %6482  ;;  %v1902_v9 = vmul.f32 1.442695, %v1896_v7  ;;  %v2375_v7 = vmul.f32 0.35355338, %v2369_v44 }
 0xc2e   :  { %v1909_v10 = vsel %vm214_vm0, %v7831_v57, 0.0  ;;  %v2056_v18 = vpop.xlane.xlu0 %2055 }
 0xc2f   :  { %6486 = vpow2.f32 %v1902_v9  ;;  %1910 = vadd.xlane.f32.xlu0 %v1909_v10  ;;  %v2062_v51 = vsub.f32 %v7784_v42, %v2056_v18  ;;  %v2223_v9 = vsel %vm214_vm0, %v7890_v45, -inf }
 0xc31   :  { %v7835_v49 = vpop.eup %6484  ;;  %v2068_v33 = vmul.f32 1.442695, %v2062_v51 }
 0xc32   :  { %v2075_v40 = vsel %vm214_vm0, %v7835_v49, 0.0  ;;  %v1893_v59 = vpop.xlane.xlu1 %1892 }
 0xc33   :  { %v1897_v22 = vsub.f32 %v7792_v29, %v1893_v59  ;;  %6488 = vpow2.f32 %v2068_v33  ;;  %v2208_v29 = vmul.f32 0.35355338, %v2200_v14 }
 0xc35   :  { %v7837_v1 = vpop.eup %6486  ;;  %v1904_v5 = vmul.f32 1.442695, %v1897_v22 }
 0xc36   :  { %v1912_v6 = vsel %vm214_vm0, %v7837_v1, 0.0  ;;  %v2059_v61 = vpop.xlane.xlu2 %2058 }
 0xc37   :  { %2076 = vadd.xlane.f32.xlu0 %v2075_v40  ;;  %1913 = vadd.xlane.f32.xlu2 %v1912_v6  ;;  %v2063_v19 = vsub.f32 %v7797_v27, %v2059_v61  ;;  %6490 = vpow2.f32 %v1904_v5 }
 0xc39   :  { %v7852_v31 = vpop.eup %6488 }
 0xc3a   :  { %v2216_v25 = vpop.xlane.xlu0 %2215  ;;  %v2078_v62 = vsel %vm214_vm0, %v7852_v31, 0.0 }
 0xc3b   :  { %v2226_v28 = vsub.f32 %v7801_v54, %v2216_v25  ;;  %v7864_v54 = vadd.f32 %v7776_v15, %v2208_v29  ;;  %v7897_v15 = vadd.f32 %v7789_v53, %v2375_v7 }
 0xc3d   :  { %v2230_v60 = vmul.f32 1.442695, %v2226_v28  ;;  %v7858_v39 = vpop.eup %6490  ;;  %v2220_v8 = vsel %vm214_vm0, %v7864_v54, -inf  ;;  %v2389_v6 = vsel %vm214_vm0, %v7897_v15, -inf }
 0xc3e   :  { %v2382_v30 = vpop.xlane.xlu1 %2381 }
 0xc3f   :  { %v2392_v42 = vsub.f32 %v7805_v2, %v2382_v30  ;;  %v1915_v2 = vsel %vm214_vm0, %v7858_v39, 0.0 }
 0xc41   :  { %v2396_v27 = vmul.f32 1.442695, %v2392_v42 }
 0xc43   :  { %v2219_v34 = vpop.xlane.xlu2 %2218 }
 0xc44   :  { %6242 = vrot.lane.b32.xlu1 %v7720_v36, %s9191_s22  ;;  %v2227_v46 = vsub.f32 %v7809_v41, %v2219_v34 }
 0xc46   :  { %v2232_v21 = vmul.f32 1.442695, %v2227_v46  ;;  %v2385_v10 = vpop.xlane.xlu1 %2384 }
 0xc4b   :  { %6237 = vrot.lane.b32.xlu0 %v7720_v36, %s9219_s25  ;;  %v6233_v13 = vpop.permute.xlu2 %6232  ;;  %v2070_v36 = vmul.f32 1.442695, %v2063_v19 }
 0xc4c   :  { %v6234_v24 = vunpack.i.l.bf16 %v6233_v13  ;;  %v6235_v0 = vunpack.i.h.bf16 %v6233_v13 }
 0xc4d   :  { %6492 = vpow2.f32 %v2070_v36 }
 0xc4e   :  { %2130 = vmatpush.msrb.mxu1 %v6234_v24  ;;  %6494 = vpow2.f32 %v2230_v60 }
 0xc4f   :  { %6247 = vrot.lane.b32.xlu2 %v7710_v12, %s9219_s25  ;;  %6496 = vpow2.f32 %v2396_v27 }
 0xc50   :  { %2131 = vmatpush.msrb.mxu1 %v6235_v0  ;;  %6498 = vpow2.f32 %v2232_v21 }
 0xc53   :  { %v7860_v48 = vpop.eup %6492 }
 0xc54   :  { %v2081_v23 = vsel %vm214_vm0, %v7860_v48, 0.0  ;;  %v7872_v35 = vpop.eup %6494 }
 0xc55   :  { %v7874_v41 = vpop.eup %6496  ;;  %v2238_v50 = vsel %vm214_vm0, %v7872_v35, 0.0 }
 0xc56   :  { %v2404_v26 = vsel %vm214_vm0, %v7874_v41, 0.0  ;;  %v7880_v55 = vpop.eup %6498 }
 0xc57   :  { %v2241_v16 = vsel %vm214_vm0, %v7880_v55, 0.0 }
 0xc6e   :  { %2079 = vadd.xlane.f32.xlu1 %v2078_v62 }
 0xc75   :  { %1916 = vadd.xlane.f32.xlu0 %v1915_v2 }
 0xc76   :  { %2082 = vadd.xlane.f32.xlu1 %v2081_v23 }
 0xc78   :  { %2221 = vmax.xlane.f32.xlu2 %v2220_v8 }
 0xc7d   :  { %2239 = vadd.xlane.f32.xlu0 %v2238_v50 }
 0xc7e   :  { %2405 = vadd.xlane.f32.xlu1 %v2404_v26 }
 0xc85   :  { %2242 = vadd.xlane.f32.xlu0 %v2241_v16 }
 0xc8d   :  { %2387 = vmax.xlane.f32.xlu0 %v2386_v4 }
 0xc95   :  { %2224 = vmax.xlane.f32.xlu0 %v2223_v9 }
 0xc97   :  { %6252 = vrot.lane.b32.xlu1 %v7710_v12, %s9191_s22  ;;  %s9220_s22 = smov 8  }
 0xc9a   :  { %v1908_v40 = vpop.xlane.xlu0 %1907 }
 0xc9b   :  { %6500 = vrcp.f32 %v1908_v40 }
 0xc9d   :  { %2390 = vmax.xlane.f32.xlu0 %v2389_v6 }
 0xc9e   :  { %v2074_v61 = vpop.xlane.xlu1 %2073 }
 0xc9f   :  { %6502 = vrcp.f32 %v2074_v61 }
 0xca1   :  { %v6501_v34 = vpop.eup %6500 }
 0xca2   :  { %v1922_v13 = vmul.f32 %v6501_v34, %v7821_v52  ;;  %v1911_v24 = vpop.xlane.xlu0 %1910  ;;  %v2393_v52 = vsub.f32 %v7813_v47, %v2385_v10 }
 0xca3   :  { %6504 = vrcp.f32 %v1911_v24 }
 0xca4   :  { %5850 = vmatmul.msk.f32.vlgmr.msra.gmra.mxu0 %vm214_vm0, %v1922_v13  ;;  %v2398_v5 = vmul.f32 1.442695, %v2393_v52 }
 0xca5   :  { %v6503_v0 = vpop.eup %6502 }
 0xca6   :  { %v2088_v12 = vmul.f32 %v6503_v0, %v7826_v32 }
 0xca8   :  { %5862 = vmatmul.msk.f32.vlgmr.msrb.gmra.mxu1 %vm214_vm0, %v2088_v12 }
 0xca9   :  { %v6505_v53 = vpop.eup %6504 }
 0xcaa   :  { %v1914_v18 = vpop.xlane.xlu2 %1913  ;;  %v2077_v51 = vpop.xlane.xlu0 %2076  ;;  %v1923_v33 = vmul.f32 %v6505_v53, %v7831_v57 }
 0xcab   :  { %6506 = vrcp.f32 %v1914_v18 }
 0xcac   :  { %6508 = vrcp.f32 %v2077_v51  ;;  %5851 = vmatmul.msk.f32.gmra.mxu0 %vm214_vm0, %v1923_v33 }
 0xcad   :  { %6510 = vpow2.f32 %v2398_v5 }
 0xcb1   :  { %v6507_v59 = vpop.eup %6506 }
 0xcb2   :  { %v6509_v22 = vpop.eup %6508  ;;  %v1924_v19 = vmul.f32 %v6507_v59, %v7837_v1  ;;  %v6248_v14 = vpop.permute.xlu2 %6247 }
 0xcb3   :  { %v2089_v32 = vmul.f32 %v6509_v22, %v7835_v49  ;;  %v6511_v30 = vpop.eup %6510  ;;  %v6249_v49 = vunpack.i.l.bf16 %v6248_v14  ;;  %v6250_v62 = vunpack.i.h.bf16 %v6248_v14 }
 0xcb4   :  { %5852 = vmatmul.msk.f32.gmra.mxu0 %vm214_vm0, %v1924_v19  ;;  %v2407_v1 = vsel %vm214_vm0, %v6511_v30, 0.0 }
 0xcb5   :  { %5863 = vmatmul.msk.f32.gmra.mxu1 %vm214_vm0, %v2089_v32 }
 0xcb6   :  { %v6243_v36 = vpop.permute.xlu1 %6242 }
 0xcb7   :  { %v6244_v57 = vunpack.i.l.bf16 %v6243_v36  ;;  %v6245_v25 = vunpack.i.h.bf16 %v6243_v36 }
 0xcb9   :  { %2460 = vmatpush.msra.mxu1 %v6244_v57 }
 0xcbb   :  { %2461 = vmatpush.msra.mxu1 %v6245_v25 }
 0xcbd   :  { %v6238_v28 = vpop.permute.xlu0 %6237 }
 0xcbe   :  { %v6239_v47 = vunpack.i.l.bf16 %v6238_v28  ;;  %v6240_v42 = vunpack.i.h.bf16 %v6238_v28 }
 0xcc0   :  { %2294 = vmatpush.msrb.mxu0 %v6239_v47 }
 0xcc1   :  { %2408 = vadd.xlane.f32.xlu1 %v2407_v1 }
 0xcc2   :  { %2295 = vmatpush.msrb.mxu0 %v6240_v42 }
 0xcc4   :  { %2296 = vmatpush.msrb.mxu0 %v6249_v49 }
 0xcc6   :  { %2297 = vmatpush.msrb.mxu0 %v6250_v62  ;;  %v5836_v62 = vld [vmem:[%s6884_s30 + $0x38] sm:$0xff] }
 0xcc7   :  { %2564 = vmatpush.msra.mxu2 %v5836_v62 }
 0xce1   :  { %v2080_v29 = vpop.xlane.xlu1 %2079 }
 0xce2   :  { %6512 = vrcp.f32 %v2080_v29  ;;  %v5835_v29 = vld [vmem:[%s6884_s30 + $0x30] sm:$0xff] }
 0xce3   :  { %2565 = vmatpush.msra.mxu2 %v5835_v29 }
 0xce8   :  { %v6513_v60 = vpop.eup %6512  ;;  %v1917_v27 = vpop.xlane.xlu0 %1916 }
 0xce9   :  { %6514 = vrcp.f32 %v1917_v27  ;;  %v2083_v46 = vpop.xlane.xlu1 %2082  ;;  %v2090_v2 = vmul.f32 %v6513_v60, %v7852_v31  ;;  %v5834_v60 = vld [vmem:[%s6884_s30 + $0x28] sm:$0xff]  ;;  %v5833_v27 = vld [vmem:[%s6884_s30 + $0x20] sm:$0xff] }
 0xcea   :  { %6516 = vrcp.f32 %v2083_v46  ;;  %2566 = vmatpush.msra.mxu2 %v5834_v60 }
 0xceb   :  { %v2222_v23 = vpop.xlane.xlu2 %2221  ;;  %5864 = vmatmul.msk.f32.gmra.mxu1 %vm214_vm0, %v2090_v2 }
 0xcec   :  { %v2228_v21 = vsub.f32 %v7864_v54, %v2222_v23  ;;  %2567 = vmatpush.msra.mxu2 %v5833_v27 }
 0xcee   :  { %v2234_v8 = vmul.f32 1.442695, %v2228_v21 }
 0xcef   :  { %v6515_v50 = vpop.eup %6514 }
 0xcf0   :  { %v6517_v26 = vpop.eup %6516  ;;  %6518 = vpow2.f32 %v2234_v8  ;;  %v2240_v56 = vpop.xlane.xlu0 %2239  ;;  %v1925_v11 = vmul.f32 %v6515_v50, %v7858_v39 }
 0xcf1   :  { %6520 = vrcp.f32 %v2240_v56  ;;  %v2091_v16 = vmul.f32 %v6517_v26, %v7860_v48  ;;  %v2406_v7 = vpop.xlane.xlu1 %2405 }
 0xcf2   :  { %5853 = vmatmul.msk.f32.gmra.mxu0 %vm214_vm0, %v1925_v11 }
 0xcf3   :  { %5865 = vmatmul.msk.f32.gmra.mxu1 %vm214_vm0, %v2091_v16 }
 0xcf6   :  { %v6519_v31 = vpop.eup %6518 }
 0xcf7   :  { %v6521_v43 = vpop.eup %6520  ;;  %v2244_v3 = vsel %vm214_vm0, %v6519_v31, 0.0 }
 0xcf8   :  { %v2254_v54 = vmul.f32 %v6521_v43, %v7872_v35  ;;  %2245 = vadd.xlane.f32.xlu0 %v2244_v3  ;;  %v2243_v4 = vpop.xlane.xlu0 %2242 }
 0xcf9   :  { %6522 = vrcp.f32 %v2243_v4 }
 0xcfa   :  { %5874 = vmatmul.msk.f32.vlgmr.msrb.gmra.mxu0 %vm214_vm0, %v2254_v54  ;;  %6524 = vrcp.f32 %v2406_v7 }
 0xcff   :  { %v6523_v44 = vpop.eup %6522 }
 0xd00   :  { %v2255_v39 = vmul.f32 %v6523_v44, %v7880_v55  ;;  %v6525_v9 = vpop.eup %6524  ;;  %v2388_v24 = vpop.xlane.xlu0 %2387 }
 0xd01   :  { %v2420_v6 = vmul.f32 %v6525_v9, %v7874_v41  ;;  %v2394_v57 = vsub.f32 %v7885_v20, %v2388_v24 }
 0xd02   :  { %5875 = vmatmul.msk.f32.gmra.mxu0 %vm214_vm0, %v2255_v39 }
 0xd03   :  { %v2400_v25 = vmul.f32 1.442695, %v2394_v57 }
 0xd08   :  { %v2225_v12 = vpop.xlane.xlu0 %2224 }
 0xd09   :  { %v6253_v48 = vpop.permute.xlu1 %6252  ;;  %v2229_v20 = vsub.f32 %v7890_v45, %v2225_v12 }
 0xd0a   :  { %v6254_v10 = vunpack.i.l.bf16 %v6253_v48  ;;  %v6255_v40 = vunpack.i.h.bf16 %v6253_v48 }
 0xd0c   :  { %2462 = vmatpush.msra.mxu1 %v6254_v10 }
 0xd0e   :  { %2463 = vmatpush.msra.mxu1 %v6255_v40 }
 0xd0f   :  { %5886 = vmatmul.msk.f32.vlgmr.msra.gmra.mxu1 %vm214_vm0, %v2420_v6 }
 0xd10   :  { %v2391_v41 = vpop.xlane.xlu0 %2390 }
 0xd21   :  { %v1967_v0 = vpop.f32.mrf.mxu0 }
 0xd25   :  { %v2133_v35 = vpop.f32.mrf.mxu1 }
 0xd26   :  { %2481 = vrot.lane.b32.xlu1 %v2133_v35, %s9220_s22 }
 0xd29   :  { %v1970_v53 = vpop.f32.mrf.mxu0 }
 0xd31   :  { %v7930_v18 = vpop.f32.mrf.mxu0 }
 0xd32   :  { %v2136_v61 = vpop.f32.mrf.mxu1 }
 0xd33   :  { %2483 = vrot.lane.b32.xlu0 %v2136_v61, %s9220_s22  ;;  %v7964_v61 = vld [vmem:[%s6889_s6 + $0x1] ss:$0 sm:$0xff] }
 0xd34   :  { %v2409_v55 = vpop.xlane.xlu1 %2408 }
 0xd35   :  { %6526 = vrcp.f32 %v2409_v55 }
 0xd3b   :  { %v6527_v34 = vpop.eup %6526 }
 0xd3c   :  { %v2421_v13 = vmul.f32 %v6527_v34, %v6511_v30  ;;  %v2395_v30 = vsub.f32 %v7897_v15, %v2391_v41  ;;  %v2236_v15 = vmul.f32 1.442695, %v2229_v20 }
 0xd3e   :  { %5887 = vmatmul.msk.f32.gmra.mxu1 %vm214_vm0, %v2421_v13  ;;  %v2402_v47 = vmul.f32 1.442695, %v2395_v30 }
 0xd68   :  { %v2139_v19 = vpop.f32.mrf.mxu1 }
 0xd6b   :  { %v2246_v51 = vpop.xlane.xlu0 %2245 }
 0xd6c   :  { %6528 = vrcp.f32 %v2246_v51 }
 0xd6d   :  { %6530 = vpow2.f32 %v2400_v25 }
 0xd6e   :  { %6532 = vpow2.f32 %v2402_v47 }
 0xd6f   :  { %v7932_v33 = vpop.f32.mrf.mxu0  ;;  %6534 = vpow2.f32 %v2236_v15 }
 0xd70   :  { %v2142_v32 = vpop.f32.mrf.mxu1 }
 0xd72   :  { %v6529_v52 = vpop.eup %6528 }
 0xd73   :  { %v2256_v59 = vmul.f32 %v6529_v52, %v6519_v31  ;;  %v6531_v28 = vpop.eup %6530 }
 0xd74   :  { %v2410_v14 = vsel %vm214_vm0, %v6531_v28, 0.0  ;;  %v6533_v42 = vpop.eup %6532 }
 0xd75   :  { %5876 = vmatmul.msk.f32.gmra.mxu0 %vm214_vm0, %v2256_v59  ;;  %v2413_v1 = vsel %vm214_vm0, %v6533_v42, 0.0  ;;  %v6535_v46 = vpop.eup %6534 }
 0xd76   :  { %v2247_v2 = vsel %vm214_vm0, %v6535_v46, 0.0 }
 0xd77   :  { %v2299_v22 = vpop.f32.mrf.mxu0 }
 0xd78   :  { %2497 = vrot.lane.b32.xlu2 %v2299_v22, %s9221_s15 }
 0xd7f   :  { %v2302_v5 = vpop.f32.mrf.mxu0 }
 0xd80   :  { %2499 = vrot.lane.b32.xlu1 %v2302_v5, %s9221_s15 }
 0xd8c   :  { %v2465_v36 = vpop.f32.mrf.mxu1 }
 0xd8d   :  { %2513 = vrot.lane.b32.xlu0 %v2465_v36, %s9222_s18 }
 0xd98   :  { %v2482_v8 = vpop.permute.xlu1 %2481 }
 0xd99   :  { %v2525_v50 = vsel %vm450_vm6, %v1967_v0, %v2482_v8 }
 0xda5   :  { %v2484_v21 = vpop.permute.xlu0 %2483 }
 0xda6   :  { %v2526_v31 = vsel %vm450_vm6, %v1970_v53, %v2484_v21  ;;  %v5899_v21 = vld [vmem:[%s6904_s27 + $0x38] sm:$0xff] }
 0xda7   :  { %2738 = vmatpush.msra.mxu0 %v5899_v21 }
 0xdaa   :  { %2411 = vadd.xlane.f32.xlu1 %v2410_v14 }
 0xdb7   :  { %2414 = vadd.xlane.f32.xlu0 %v2413_v1 }
 0xdbb   :  { %v2468_v49 = vpop.f32.mrf.mxu1 }
 0xdbc   :  { %2515 = vrot.lane.b32.xlu2 %v2468_v49, %s9222_s18 }
 0xdd2   :  { %v2498_v45 = vpop.permute.xlu2 %2497 }
 0xdd3   :  { %v2529_v26 = vsel %vm1151_vm7, %v2525_v50, %v2498_v45  ;;  %v5898_v45 = vld [vmem:[%s6904_s27 + $0x30] sm:$0xff]  ;;  %v5897_v50 = vld [vmem:[%s6904_s27 + $0x28] sm:$0xff] }
 0xdd4   :  { %2739 = vmatpush.msra.mxu0 %v5898_v45 }
 0xdd6   :  { %2740 = vmatpush.msra.mxu0 %v5897_v50  ;;  %v5907_v50 = vld [vmem:[%s9213_s10 + $0xb0] sm:$0xff] }
 0xde5   :  { %2248 = vadd.xlane.f32.xlu2 %v2247_v2 }
 0xdf2   :  { %v2305_v23 = vpop.f32.mrf.mxu0  ;;  %v2500_v16 = vpop.permute.xlu1 %2499 }
 0xdf3   :  { %2501 = vrot.lane.b32.xlu0 %v2305_v23, %s9221_s15  ;;  %v2530_v43 = vsel %vm1151_vm7, %v2526_v31, %v2500_v16 }
 0xdfb   :  { %2487 = vrot.lane.b32.xlu0 %v2142_v32, %s9220_s22 }
 0xdfd   :  { %2485 = vrot.lane.b32.xlu2 %v2139_v19, %s9220_s22 }
 0xdff   :  { %v2514_v56 = vpop.permute.xlu0 %2513 }
 0xe00   :  { %v2533_v11 = vsel %vm1156_vm8, %v2529_v26, %v2514_v56  ;;  %v5896_v26 = vld [vmem:[%s6904_s27 + $0x20] sm:$0xff]  ;;  %s9223_s27 = smov 56  }
 0xe01   :  { %5890 = vmatmul.msk.f32.vlgmr.msra.gmra.mxu2 %vm214_vm0, %v2533_v11  ;;  %2741 = vmatpush.msra.mxu0 %v5896_v26 }
 0xe16   :  { %v2516_v3 = vpop.permute.xlu2 %2515 }
 0xe17   :  { %v2534_v54 = vsel %vm1156_vm8, %v2530_v43, %v2516_v3 }
 0xe18   :  { %5891 = vmatmul.msk.f32.gmra.mxu2 %vm214_vm0, %v2534_v54 }
 0xe1d   :  { %v2412_v4 = vpop.xlane.xlu1 %2411 }
 0xe1e   :  { %6536 = vrcp.f32 %v2412_v4 }
 0xe24   :  { %v6537_v44 = vpop.eup %6536 }
 0xe25   :  { %v2422_v39 = vmul.f32 %v6537_v44, %v6531_v28 }
 0xe27   :  { %5888 = vmatmul.msk.f32.gmra.mxu1 %vm214_vm0, %v2422_v39 }
 0xe2a   :  { %v2415_v7 = vpop.xlane.xlu0 %2414 }
 0xe2b   :  { %6538 = vrcp.f32 %v2415_v7 }
 0xe31   :  { %v6539_v48 = vpop.eup %6538 }
 0xe32   :  { %v2423_v9 = vmul.f32 %v6539_v48, %v6533_v42 }
 0xe34   :  { %5889 = vmatmul.msk.f32.gmra.mxu1 %vm214_vm0, %v2423_v9 }
 0xe58   :  { %v2249_v10 = vpop.xlane.xlu2 %2248 }
 0xe59   :  { %6540 = vrcp.f32 %v2249_v10 }
 0xe5f   :  { %v6541_v40 = vpop.eup %6540 }
 0xe60   :  { %v2257_v6 = vmul.f32 %v6541_v40, %v6535_v46  ;;  %v2486_v52 = vpop.permute.xlu2 %2485 }
 0xe61   :  { %v2527_v5 = vsel %vm450_vm6, %v7930_v18, %v2486_v52 }
 0xe62   :  { %5877 = vmatmul.msk.f32.gmra.mxu0 %vm214_vm0, %v2257_v6  ;;  %v8014_v6 = vld [vmem:[%s9211_s2 + $0x1] ss:$0 sm:$0xff] }
 0xe65   :  { %v2502_v59 = vpop.permute.xlu0 %2501 }
 0xe66   :  { %v2531_v32 = vsel %vm1151_vm7, %v2527_v5, %v2502_v59 }
 0xe6d   :  { %v2488_v1 = vpop.permute.xlu0 %2487 }
 0xe6e   :  { %v2528_v49 = vsel %vm450_vm6, %v7932_v33, %v2488_v1 }
 0xe84   :  { %v2569_v35 = vpop.f32.mrf.mxu2 }
 0xe85   :  { %v2570_v53 = vadd.f32 %v7964_v61, %v2569_v35 }
 0xe87   :  { %v7976_v41 = vadd.f32 %v2570_v53, %v7606_v17 }
 0xe89   :  { %v2589_v51 = vsel %vm214_vm0, %v7976_v41, 0.0 }
 0xe9b   :  { %v2572_v55 = vpop.f32.mrf.mxu2 }
 0xe9c   :  { %v2573_v34 = vadd.f32 %v7964_v61, %v2572_v55 }
 0xe9e   :  { %v7968_v13 = vadd.f32 %v2573_v34, %v7611_v58 }
 0xea0   :  { %v2592_v24 = vsel %vm214_vm0, %v7968_v13, 0.0 }
 0xea1   :  { %2593 = vadd.xlane.f32.xlu2 %v2592_v24  ;;  %v8018_v24 = vld [vmem:[%s9212_s7 + $0x1] ss:$0 sm:$0xff] }
 0xea4   :  { %v2471_v0 = vpop.f32.mrf.mxu1 }
 0xea5   :  { %2517 = vrot.lane.b32.xlu1 %v2471_v0, %s9222_s18 }
 0xeb1   :  { %v2474_v12 = vpop.f32.mrf.mxu1 }
 0xeb2   :  { %2519 = vrot.lane.b32.xlu0 %v2474_v12, %s9222_s18 }
 0xecf   :  { %2590 = vadd.xlane.f32.xlu1 %v2589_v51 }
 0xedf   :  { %v2308_v58 = vpop.f32.mrf.mxu0 }
 0xee8   :  { %2503 = vrot.lane.b32.xlu1 %v2308_v58, %s9221_s15 }
 0xf14   :  { %v2594_v22 = vpop.xlane.xlu2 %2593 }
 0xf15   :  { %v2602_v19 = vmul.f32 %v2594_v22, %v7016_v38 }
 0xf17   :  { %v7986_v17 = vsub.f32 %v7968_v13, %v2602_v19  ;;  %v2518_v36 = vpop.permute.xlu1 %2517 }
 0xf18   :  { %v2535_v57 = vsel %vm1156_vm8, %v2531_v32, %v2518_v36  ;;  %v5915_v36 = vld [vmem:[%s9213_s10 + $0xf0] sm:$0xff] }
 0xf19   :  { %5892 = vmatmul.msk.f32.gmra.mxu2 %vm214_vm0, %v2535_v57  ;;  %v2610_v25 = vmul.f32 %v7986_v17, %v7986_v17  ;;  %v5914_v57 = vld [vmem:[%s9213_s10 + $0xe8] sm:$0xff] }
 0xf1b   :  { %v2616_v30 = vsel %vm214_vm0, %v2610_v25, 0.0  ;;  %v6354_v25 = vld [vmem:[%s9214_s11 + $0x1] ss:$0 sm:$0xff] }
 0xf1c   :  { %2617 = vadd.xlane.f32.xlu0 %v2616_v30  ;;  %v5913_v30 = vld [vmem:[%s9213_s10 + $0xe0] sm:$0xff] }
 0xf24   :  { %v2520_v62 = vpop.permute.xlu0 %2519 }
 0xf42   :  { %v2591_v28 = vpop.xlane.xlu1 %2590 }
 0xf43   :  { %v2601_v47 = vmul.f32 %v2591_v28, %v7016_v38  ;;  %v5912_v28 = vld [vmem:[%s9213_s10 + $0xd8] sm:$0xff] }
 0xf45   :  { %v2605_v18 = vsub.f32 %v7976_v41, %v2601_v47 }
 0xf47   :  { %v2609_v14 = vmul.f32 %v2605_v18, %v2605_v18 }
 0xf49   :  { %v2613_v42 = vsel %vm214_vm0, %v2609_v14, 0.0  ;;  %v5911_v14 = vld [vmem:[%s9213_s10 + $0xd0] sm:$0xff] }
 0xf4a   :  { %2614 = vadd.xlane.f32.xlu1 %v2613_v42 }
 0xf5a   :  { %v2504_v20 = vpop.permute.xlu1 %2503 }
 0xf5b   :  { %v2532_v15 = vsel %vm1151_vm7, %v2528_v49, %v2504_v20  ;;  %v5910_v20 = vld [vmem:[%s9213_s10 + $0xc8] sm:$0xff] }
 0xf5c   :  { %v2536_v29 = vsel %vm1156_vm8, %v2532_v15, %v2520_v62 }
 0xf5d   :  { %5893 = vmatmul.msk.f32.gmra.mxu2 %vm214_vm0, %v2536_v29  ;;  %v5909_v29 = vld [vmem:[%s9213_s10 + $0xc0] sm:$0xff] }
 0xf8f   :  { %v2618_v2 = vpop.xlane.xlu0 %2617 }
 0xf90   :  { %v2626_v23 = vmul.f32 %v2618_v2, %v7016_v38 }
 0xf92   :  { %v2630_v8 = vadd.f32 1e-06, %v2626_v23 }
 0xf94   :  { %6542 = vrsqrt.f32 %v2630_v8  ;;  %vm2649_vm2 = vweird.f32 %v2630_v8 }
 0xf9c   :  { %v2575_v60 = vpop.f32.mrf.mxu2 }
 0xf9d   :  { %v2576_v27 = vadd.f32 %v7964_v61, %v2575_v60 }
 0xf9f   :  { %v8003_v46 = vadd.f32 %v2576_v27, %v7617_v37  ;;  %v6543_v37 = vpop.eup %6542 }
 0xfa0   :  { %v2644_v31 = vmul.f32 %v6543_v37, %v2630_v8  ;;  %vm2650_vm14 = vweird.f32 %v6543_v37 }
 0xfa1   :  { %v2595_v33 = vsel %vm214_vm0, %v8003_v46, 0.0  ;;  %vm2651_vm3 = vmor %vm2649_vm2, %vm2650_vm14 }
 0xfa2   :  { %2596 = vadd.xlane.f32.xlu2 %v2595_v33  ;;  %v2645_v43 = vmul.f32 %v6543_v37, %v2644_v31  ;;  %v5908_v33 = vld [vmem:[%s9213_s10 + $0xb8] sm:$0xff] }
 0xfa4   :  { %v2646_v54 = vmul.f32 0.5, %v2645_v43 }
 0xfa6   :  { %v2647_v39 = vsub.f32 1.5, %v2646_v54 }
 0xfa8   :  { %v2648_v9 = vmul.f32 %v6543_v37, %v2647_v39 }
 0xfaa   :  { %v2652_v55 = vsel %vm2651_vm3, %v6543_v37, %v2648_v9  ;;  %v5903_v9 = vld [vmem:[%s9213_s10 + $0x90] sm:$0xff] }
 0xfab   :  { %v2674_v12 = vmul.f32 %v2652_v55, %v7986_v17 }
 0xfad   :  { %v2681_v53 = vmul.f32 %v8014_v6, %v2674_v12 }
 0xfaf   :  { %v2688_v58 = vadd.f32 %v8018_v24, %v2681_v53 }
 0xfbd   :  { %v2615_v56 = vpop.xlane.xlu1 %2614 }
 0xfbe   :  { %v2625_v11 = vmul.f32 %v2615_v56, %v7016_v38 }
 0xfc0   :  { %v2629_v16 = vadd.f32 1e-06, %v2625_v11  ;;  %v5906_v11 = vld [vmem:[%s9213_s10 + $0xa8] sm:$0xff] }
 0xfc2   :  { %6544 = vrsqrt.f32 %v2629_v16  ;;  %vm2639_vm15 = vweird.f32 %v2629_v16 }
 0xfc8   :  { %v6545_v3 = vpop.eup %6544 }
 0xfc9   :  { %v2634_v4 = vmul.f32 %v6545_v3, %v2629_v16  ;;  %vm2640_vm13 = vweird.f32 %v6545_v3 }
 0xfca   :  { %vm2641_vm1 = vmor %vm2639_vm15, %vm2640_vm13 }
 0xfcb   :  { %v2635_v44 = vmul.f32 %v6545_v3, %v2634_v4 }
 0xfcd   :  { %v2636_v7 = vmul.f32 0.5, %v2635_v44  ;;  %v5904_v44 = vld [vmem:[%s9213_s10 + $0x98] sm:$0xff] }
 0xfcf   :  { %v2637_v48 = vsub.f32 1.5, %v2636_v7 }
 0xfd1   :  { %v2638_v10 = vmul.f32 %v6545_v3, %v2637_v48 }
 0xfd3   :  { %v2642_v40 = vsel %vm2641_vm1, %v6545_v3, %v2638_v10  ;;  %v5905_v3 = vld [vmem:[%s9213_s10 + $0xa0] sm:$0xff] }
 0xfd4   :  { %v2673_v35 = vmul.f32 %v2642_v40, %v2605_v18 }
 0xfd6   :  { %v2680_v34 = vmul.f32 %v8014_v6, %v2673_v35 }
 0xfd8   :  { %v2687_v0 = vadd.f32 %v8018_v24, %v2680_v34  ;;  %v5902_v34 = vld [vmem:[%s9213_s10 + $0x88] sm:$0xff] }
 0xfda   :  { %5918 = vmatmul.msk.f32.vlgmr.msra.gmra.mxu0 %vm214_vm0, %v2687_v0  ;;  %v5901_v0 = vld [vmem:[%s9213_s10 + $0x80] sm:$0xff] }
 0xfe0   :  { %v2578_v51 = vpop.f32.mrf.mxu2 }
 0xfe1   :  { %v2579_v52 = vadd.f32 %v7964_v61, %v2578_v51 }
 0xfe2   :  { %5919 = vmatmul.msk.f32.gmra.mxu0 %vm214_vm0, %v2688_v58 }
 0xfe3   :  { %v8028_v59 = vadd.f32 %v2579_v52, %v7622_v63  ;;  %v5916_v63 = vld [vmem:[%s9213_s10 + $0xf8] sm:$0xff]  ;;  %s9229_s10 = sld [smem:[#allocation16_spill]] }
 0xfe4   :  { %2840 = vmatpush.msra.mxu3 %v5916_v63 }
 0xfe5   :  { %v2598_v22 = vsel %vm214_vm0, %v8028_v59, 0.0 }
 0xfe6   :  { %2599 = vadd.xlane.f32.xlu2 %v2598_v22  ;;  %2841 = vmatpush.msra.mxu3 %v5915_v36 }
 0xfe8   :  { %2842 = vmatpush.msra.mxu3 %v5914_v57 }
 0xfea   :  { %2843 = vmatpush.msra.mxu3 %v5913_v30 }
 0xfec   :  { %2844 = vmatpush.msra.mxu3 %v5912_v28 }
 0xfee   :  { %2845 = vmatpush.msra.mxu3 %v5911_v14 }
 0xff0   :  { %2846 = vmatpush.msra.mxu3 %v5910_v20 }
 0xff2   :  { %2847 = vmatpush.msra.mxu3 %v5909_v29 }
 0xff4   :  { %2848 = vmatpush.msra.mxu3 %v5908_v33 }
 0xff6   :  { %2849 = vmatpush.msra.mxu3 %v5907_v50 }
 0xff8   :  { %2850 = vmatpush.msra.mxu3 %v5906_v11 }
 0xffa   :  { %2851 = vmatpush.msra.mxu3 %v5905_v3 }
 0xffc   :  { %2852 = vmatpush.msra.mxu3 %v5904_v44 }
 0xffe   :  { %2853 = vmatpush.msra.mxu3 %v5903_v9 }
0x1000   :  { %2854 = vmatpush.msra.mxu3 %v5902_v34  ;;  %v5923_v34 = vld [vmem:[%s9210_s1 + $0x28] sm:$0xff] }
0x1002   :  { %2855 = vmatpush.msra.mxu3 %v5901_v0 }
0x1015   :  { %v2597_v19 = vpop.xlane.xlu2 %2596 }
0x1016   :  { %v2603_v5 = vmul.f32 %v2597_v19, %v7016_v38 }
0x1018   :  { %v8034_v32 = vsub.f32 %v8003_v46, %v2603_v5 }
0x101a   :  { %v2611_v61 = vmul.f32 %v8034_v32, %v8034_v32 }
0x101c   :  { %v2619_v17 = vsel %vm214_vm0, %v2611_v61, 0.0 }
0x101d   :  { %2620 = vadd.xlane.f32.xlu2 %v2619_v17 }
0x1057   :  { %v2743_v47 = vpop.f32.mrf.mxu0 }
0x1058   :  { %v8045_v18 = vadd.f32 %v6354_v25, %v2743_v47 }
0x1059   :  { %v2600_v42 = vpop.xlane.xlu2 %2599 }
0x105a   :  { %v8049_v1 = vmul.f32 0.70710677, %v8045_v18  ;;  %v2604_v49 = vmul.f32 %v2600_v42, %v7016_v38 }
0x105c   :  { %v2753_v62 = vmul.f32 %v8049_v1, %v8049_v1  ;;  %v8056_v15 = vsub.f32 %v8028_v59, %v2604_v49 }
0x105e   :  { %v2754_v60 = vmin.f32 %v2753_v62, 16.0  ;;  %v2612_v27 = vmul.f32 %v8056_v15, %v8056_v15 }
0x105f   :  { %v2746_v2 = vpop.f32.mrf.mxu0 }
0x1060   :  { %v2755_v23 = vmul.f32 2.1237322e-06, %v2754_v60  ;;  %v2766_v21 = vmul.f32 3.8918573e-05, %v2754_v60  ;;  %v8062_v8 = vadd.f32 %v6354_v25, %v2746_v2  ;;  %v2622_v45 = vsel %vm214_vm0, %v2612_v27, 0.0 }
0x1061   :  { %2623 = vadd.xlane.f32.xlu1 %v2622_v45 }
0x1062   :  { %v2756_v26 = vadd.f32 0.00028619796, %v2755_v23  ;;  %v2767_v56 = vadd.f32 0.001143296, %v2766_v21  ;;  %v8067_v37 = vmul.f32 0.70710677, %v8062_v8 }
0x1064   :  { %v2757_v16 = vmul.f32 %v2756_v26, %v2754_v60  ;;  %v2768_v31 = vmul.f32 %v2767_v56, %v2754_v60  ;;  %v2793_v43 = vmul.f32 %v8067_v37, %v8067_v37 }
0x1066   :  { %v2769_v54 = vadd.f32 0.014752088, %v2768_v31  ;;  %v2794_v4 = vmin.f32 %v2793_v43, 16.0  ;;  %v2758_v39 = vadd.f32 0.0036580483, %v2757_v16 }
0x1068   :  { %v2770_v7 = vmul.f32 %v2769_v54, %v2754_v60  ;;  %v2795_v48 = vmul.f32 2.1237322e-06, %v2794_v4  ;;  %v2806_v10 = vmul.f32 3.8918573e-05, %v2794_v4  ;;  %v2759_v55 = vmul.f32 %v2758_v39, %v2754_v60 }
0x106a   :  { %v2771_v40 = vadd.f32 0.112945676, %v2770_v7  ;;  %v2796_v35 = vadd.f32 0.00028619796, %v2795_v48  ;;  %v2807_v12 = vadd.f32 0.001143296, %v2806_v10 }
0x106b   :  { %v2760_v22 = vadd.f32 0.05243302, %v2759_v55  ;;  %v5925_v48 = vld [vmem:[%s9210_s1 + $0x38] sm:$0xff]  ;;  %v5924_v55 = vld [vmem:[%s9210_s1 + $0x30] sm:$0xff] }
0x106c   :  { %v2772_v53 = vmul.f32 %v2771_v40, %v2754_v60  ;;  %v2797_v51 = vmul.f32 %v2796_v35, %v2794_v4  ;;  %v2808_v58 = vmul.f32 %v2807_v12, %v2794_v4  ;;  %2910 = vmatpush.msrb.mxu0 %v5925_v48  ;;  %6126 = vmatpush.msrb.mxu3 %v5925_v48 }
0x106d   :  { %v2761_v36 = vmul.f32 %v2760_v22, %v2754_v60 }
0x106e   :  { %v2773_v52 = vadd.f32 0.4994258, %v2772_v53  ;;  %v2809_v19 = vadd.f32 0.014752088, %v2808_v58  ;;  %v2798_v61 = vadd.f32 0.0036580483, %v2797_v51  ;;  %2911 = vmatpush.msrb.mxu0 %v5924_v55  ;;  %6127 = vmatpush.msrb.mxu3 %v5924_v55 }
0x106f   :  { %v2762_v28 = vadd.f32 0.18741608, %v2761_v36  ;;  %v5922_v53 = vld [vmem:[%s9210_s1 + $0x20] sm:$0xff]  ;;  %s9228_s1 = sld [smem:[#allocation17_spill]] }
0x1070   :  { %v2774_v5 = vmul.f32 %v2773_v52, %v2754_v60  ;;  %v2810_v17 = vmul.f32 %v2809_v19, %v2794_v4  ;;  %v2799_v25 = vmul.f32 %v2798_v61, %v2794_v4  ;;  %2912 = vmatpush.msrb.mxu0 %v5923_v34  ;;  %6128 = vmatpush.msrb.mxu3 %v5923_v34  ;;  %v2750_v61 = vmul.f32 0.5, %v8062_v8 }
0x1071   :  { %v2763_v20 = vmul.f32 %v2762_v28, %v2754_v60 }
0x1072   :  { %v2775_v63 = vadd.f32 1.0, %v2774_v5  ;;  %v2811_v57 = vadd.f32 0.112945676, %v2810_v17  ;;  %v2800_v14 = vadd.f32 0.05243302, %v2799_v25  ;;  %2913 = vmatpush.msrb.mxu0 %v5922_v53  ;;  %6129 = vmatpush.msrb.mxu3 %v5922_v53  ;;  %v5932_v53 = vld [vmem:[%s9215_s28 + $0xa8] sm:$0xff] }
0x1073   :  { %v2764_v23 = vadd.f32 1.1283791, %v2763_v20 }
0x1074   :  { %6546 = vrcp.f32 %v2775_v63  ;;  %v2812_v30 = vmul.f32 %v2811_v57, %v2794_v4  ;;  %v2801_v27 = vmul.f32 %v2800_v14, %v2794_v4  ;;  %v2787_v2 = vand.u32 2147483648, %v2775_v63 }
0x1075   :  { %v2785_v45 = vand.u32 2147483647, %v2775_v63  ;;  %vm2781_vm5 = vweird.f32 %v2775_v63  ;;  %v2765_v16 = vmul.f32 %v2764_v23, %v8049_v1  ;;  %v2749_v1 = vmul.f32 0.5, %v8045_v18 }
0x1076   :  { %v2813_v47 = vadd.f32 0.4994258, %v2812_v30  ;;  %v2802_v50 = vadd.f32 0.18741608, %v2801_v27  ;;  %v2788_v56 = vor.u32 1.1754944e-38, %v2787_v2 }
0x1077   :  { %vm2786_vm10 = vcmp.eq.f32.partialorder %v2785_v45, 8.507059e+37 }
0x1078   :  { %v2814_v42 = vmul.f32 %v2813_v47, %v2794_v4  ;;  %v2803_v43 = vmul.f32 %v2802_v50, %v2794_v4 }
0x107a   :  { %v6547_v49 = vpop.eup %6546  ;;  %v2815_v29 = vadd.f32 1.0, %v2814_v42  ;;  %v2804_v9 = vadd.f32 1.1283791, %v2803_v43  ;;  %v5940_v43 = vld [vmem:[%s9215_s28 + $0xe8] sm:$0xff] }
0x107b   :  { %v2777_v62 = vmul.f32 %v6547_v49, %v2775_v63  ;;  %vm2782_vm4 = vweird.f32 %v6547_v49 }
0x107c   :  { %6548 = vrcp.f32 %v2815_v29  ;;  %vm2783_vm9 = vmor %vm2781_vm5, %vm2782_vm4  ;;  %v2827_v7 = vand.u32 2147483648, %v2815_v29  ;;  %v2825_v40 = vand.u32 2147483647, %v2815_v29  ;;  %vm2821_vm12 = vweird.f32 %v2815_v29 }
0x107d   :  { %v2778_v33 = vsub.f32 1.0, %v2777_v62  ;;  %v2805_v51 = vmul.f32 %v2804_v9, %v8067_v37  ;;  %v5936_v9 = vld [vmem:[%s9215_s28 + $0xc8] sm:$0xff] }
0x107e   :  { %v2828_v12 = vor.u32 1.1754944e-38, %v2827_v7  ;;  %vm2826_vm14 = vcmp.eq.f32.partialorder %v2825_v40, 8.507059e+37  ;;  %v5937_v7 = vld [vmem:[%s9215_s28 + $0xd0] sm:$0xff]  ;;  %v5935_v40 = vld [vmem:[%s9215_s28 + $0xc0] sm:$0xff] }
0x107f   :  { %v2779_v21 = vmul.f32 %v6547_v49, %v2778_v33 }
0x1081   :  { %v2780_v26 = vadd.f32 %v6547_v49, %v2779_v21 }
0x1082   :  { %v6549_v11 = vpop.eup %6548 }
0x1083   :  { %v2784_v60 = vsel %vm2783_vm9, %v6547_v49, %v2780_v26  ;;  %v2817_v3 = vmul.f32 %v6549_v11, %v2815_v29  ;;  %vm2822_vm11 = vweird.f32 %v6549_v11 }
0x1084   :  { %v2789_v31 = vsel %vm2786_vm10, %v2788_v56, %v2784_v60  ;;  %vm2823_vm13 = vmor %vm2821_vm12, %vm2822_vm11 }
0x1085   :  { %v2790_v54 = vmul.f32 %v2789_v31, %v2765_v16  ;;  %v2818_v44 = vsub.f32 1.0, %v2817_v3  ;;  %v8108_v3 = vld [vmem:[%s9216_s26 + $0x1] ss:$0 sm:$0xff]  ;;  %s9226_s26 = smov 40  }
0x1087   :  { %v5920_v39 = vclamps-f32 %v2790_v54, 1.0  ;;  %v2819_v10 = vmul.f32 %v6549_v11, %v2818_v44  ;;  %v5939_v54 = vld [vmem:[%s9215_s28 + $0xe0] sm:$0xff]  ;;  %v5938_v44 = vld [vmem:[%s9215_s28 + $0xd8] sm:$0xff] }
0x1089   :  { %v2833_v35 = vadd.f32 1.0, %v5920_v39  ;;  %v2820_v4 = vadd.f32 %v6549_v11, %v2819_v10 }
0x108b   :  { %v2835_v0 = vmul.f32 %v2833_v35, %v2749_v1  ;;  %v2824_v58 = vsel %vm2823_vm13, %v6549_v11, %v2820_v4  ;;  %v8096_v11 = vld [vmem:[%s9217_s23 + $0x1] ss:$0 sm:$0xff]  ;;  %v5934_v35 = vld [vmem:[%s9215_s28 + $0xb8] sm:$0xff]  ;;  %v5933_v4 = vld [vmem:[%s9215_s28 + $0xb0] sm:$0xff]  ;;  %s9225_s23 = sld [smem:[#allocation5_spill]] }
0x108c   :  { %v2829_v52 = vsel %vm2826_vm14, %v2828_v12, %v2824_v58 }
0x108d   :  { %2856 = vmatmul.f32.vlgmr.msra.gmra.mxu3 %v2835_v0  ;;  %v2830_v18 = vmul.f32 %v2829_v52, %v2805_v51  ;;  %v5931_v52 = vld [vmem:[%s9215_s28 + $0xa0] sm:$0xff] }
0x108f   :  { %v5921_v19 = vclamps-f32 %v2830_v18, 1.0 }
0x1090   :  { %v2621_v22 = vpop.xlane.xlu2 %2620 }
0x1091   :  { %v2627_v5 = vmul.f32 %v2621_v22, %v7016_v38  ;;  %v2834_v17 = vadd.f32 1.0, %v5921_v19  ;;  %v5930_v19 = vld [vmem:[%s9215_s28 + $0x98] sm:$0xff] }
0x1093   :  { %v2631_v63 = vadd.f32 1e-06, %v2627_v5  ;;  %v2836_v36 = vmul.f32 %v2834_v17, %v2750_v61  ;;  %v5929_v61 = vld [vmem:[%s9215_s28 + $0x90] sm:$0xff] }
0x1095   :  { %6550 = vrsqrt.f32 %v2631_v63  ;;  %2859 = vmatmul.f32.gmra.mxu3 %v2836_v36  ;;  %vm2659_vm1 = vweird.f32 %v2631_v63  ;;  %v5928_v36 = vld [vmem:[%s9215_s28 + $0x88] sm:$0xff] }
0x109b   :  { %v6551_v37 = vpop.eup %6550 }
0x109c   :  { %v2654_v57 = vmul.f32 %v6551_v37, %v2631_v63  ;;  %vm2660_vm15 = vweird.f32 %v6551_v37 }
0x109d   :  { %vm2661_vm2 = vmor %vm2659_vm1, %vm2660_vm15 }
0x109e   :  { %v2655_v25 = vmul.f32 %v6551_v37, %v2654_v57 }
0x10a0   :  { %v2656_v30 = vmul.f32 0.5, %v2655_v25 }
0x10a2   :  { %v2657_v28 = vsub.f32 1.5, %v2656_v30 }
0x10a4   :  { %v2658_v47 = vmul.f32 %v6551_v37, %v2657_v28 }
0x10a6   :  { %v2662_v14 = vsel %vm2661_vm2, %v6551_v37, %v2658_v47  ;;  %v5927_v37 = vld [vmem:[%s9215_s28 + $0x80] sm:$0xff] }
0x10a7   :  { %v2675_v42 = vmul.f32 %v2662_v14, %v8034_v32 }
0x10a9   :  { %v2682_v49 = vmul.f32 %v8014_v6, %v2675_v42 }
0x10ab   :  { %v2689_v8 = vadd.f32 %v8018_v24, %v2682_v49 }
0x10ad   :  { %5944 = vmatmul.msk.f32.vlgmr.msrb.gmra.mxu0 %vm214_vm0, %v2689_v8 }
0x10d4   :  { %v2624_v20 = vpop.xlane.xlu1 %2623 }
0x10d5   :  { %v2628_v62 = vmul.f32 %v2624_v20, %v7016_v38 }
0x10d7   :  { %v2632_v29 = vadd.f32 1e-06, %v2628_v62 }
0x10d9   :  { %6552 = vrsqrt.f32 %v2632_v29  ;;  %vm2669_vm4 = vweird.f32 %v2632_v29 }
0x10df   :  { %v6553_v27 = vpop.eup %6552 }
0x10e0   :  { %v2664_v33 = vmul.f32 %v6553_v27, %v2632_v29  ;;  %vm2670_vm3 = vweird.f32 %v6553_v27 }
0x10e1   :  { %vm2671_vm5 = vmor %vm2669_vm4, %vm2670_vm3 }
0x10e2   :  { %v2665_v2 = vmul.f32 %v6553_v27, %v2664_v33 }
0x10e4   :  { %v2666_v23 = vmul.f32 0.5, %v2665_v2 }
0x10e6   :  { %v2667_v21 = vsub.f32 1.5, %v2666_v23 }
0x10e8   :  { %v2668_v32 = vmul.f32 %v6553_v27, %v2667_v21 }
0x10ea   :  { %v2672_v45 = vsel %vm2671_vm5, %v6553_v27, %v2668_v32 }
0x10eb   :  { %v2676_v50 = vmul.f32 %v2672_v45, %v8056_v15 }
0x10ed   :  { %v2683_v26 = vmul.f32 %v8014_v6, %v2676_v50  ;;  %v5942_v6 = vld [vmem:[%s9215_s28 + $0xf8] sm:$0xff] }
0x10ee   :  { %3012 = vmatpush.msrb.mxu1 %v5942_v6 }
0x10ef   :  { %v2690_v56 = vadd.f32 %v8018_v24, %v2683_v26  ;;  %v5941_v24 = vld [vmem:[%s9215_s28 + $0xf0] sm:$0xff]  ;;  %s9227_s28 = sld [smem:[#allocation15_spill]] }
0x10f0   :  { %3013 = vmatpush.msrb.mxu1 %v5941_v24 }
0x10f1   :  { %5945 = vmatmul.msk.f32.vlgmr.msrb.gmra.mxu3 %vm214_vm0, %v2690_v56 }
0x10f2   :  { %3014 = vmatpush.msrb.mxu1 %v5940_v43 }
0x10f4   :  { %3015 = vmatpush.msrb.mxu1 %v5939_v54 }
0x10f6   :  { %3016 = vmatpush.msrb.mxu1 %v5938_v44 }
0x10f8   :  { %3017 = vmatpush.msrb.mxu1 %v5937_v7 }
0x10fa   :  { %3018 = vmatpush.msrb.mxu1 %v5936_v9 }
0x10fc   :  { %3019 = vmatpush.msrb.mxu1 %v5935_v40 }
0x10fe   :  { %3020 = vmatpush.msrb.mxu1 %v5934_v35 }
0x1100   :  { %3021 = vmatpush.msrb.mxu1 %v5933_v4 }
0x1102   :  { %3022 = vmatpush.msrb.mxu1 %v5932_v53 }
0x1104   :  { %3023 = vmatpush.msrb.mxu1 %v5931_v52 }
0x1106   :  { %3024 = vmatpush.msrb.mxu1 %v5930_v19 }
0x1108   :  { %3025 = vmatpush.msrb.mxu1 %v5929_v61 }
0x110a   :  { %3026 = vmatpush.msrb.mxu1 %v5928_v36 }
0x110c   :  { %3027 = vmatpush.msrb.mxu1 %v5927_v37 }
0x1110   :  { %v2857_v16 = vpop.f32.mrf.mxu3 }
0x1111   :  { %v2858_v60 = vadd.f32 %v8096_v11, %v2857_v16 }
0x1113   :  { %v8100_v31 = vadd.f32 %v2858_v60, %v7976_v41 }
0x1115   :  { %v3064_v15 = vsel %vm214_vm0, %v8100_v31, 0.0 }
0x1116   :  { %3065 = vadd.xlane.f32.xlu2 %v3064_v15 }
0x1118   :  { %v2860_v6 = vpop.f32.mrf.mxu3 }
0x112a   :  { %v2915_v41 = vpop.f32.mrf.mxu0 }
0x112b   :  { %v8113_v39 = vadd.f32 %v8108_v3, %v2915_v41 }
0x112d   :  { %v2923_v48 = vmul.f32 0.70710677, %v8113_v39  ;;  %v2921_v16 = vmul.f32 0.5, %v8113_v39 }
0x112f   :  { %v2925_v10 = vmul.f32 %v2923_v48, %v2923_v48 }
0x1131   :  { %v2926_v1 = vmin.f32 %v2925_v10, 16.0 }
0x1133   :  { %v2927_v55 = vmul.f32 2.1237322e-06, %v2926_v1  ;;  %v2938_v34 = vmul.f32 3.8918573e-05, %v2926_v1 }
0x1135   :  { %v2928_v0 = vadd.f32 0.00028619796, %v2927_v55  ;;  %v2939_v12 = vadd.f32 0.001143296, %v2938_v34 }
0x1137   :  { %v2929_v51 = vmul.f32 %v2928_v0, %v2926_v1  ;;  %v2940_v58 = vmul.f32 %v2939_v12, %v2926_v1 }
0x1139   :  { %v2941_v18 = vadd.f32 0.014752088, %v2940_v58  ;;  %v2930_v22 = vadd.f32 0.0036580483, %v2929_v51 }
0x113b   :  { %v2942_v5 = vmul.f32 %v2941_v18, %v2926_v1  ;;  %v2931_v63 = vmul.f32 %v2930_v22, %v2926_v1 }
0x113d   :  { %v2943_v17 = vadd.f32 0.112945676, %v2942_v5  ;;  %v2932_v30 = vadd.f32 0.05243302, %v2931_v63 }
0x113f   :  { %v2944_v57 = vmul.f32 %v2943_v17, %v2926_v1  ;;  %v2933_v14 = vmul.f32 %v2932_v30, %v2926_v1 }
0x1141   :  { %v2945_v25 = vadd.f32 0.4994258, %v2944_v57  ;;  %v2934_v42 = vadd.f32 0.18741608, %v2933_v14 }
0x1143   :  { %v2946_v28 = vmul.f32 %v2945_v25, %v2926_v1  ;;  %v2935_v8 = vmul.f32 %v2934_v42, %v2926_v1 }
0x1145   :  { %v2947_v47 = vadd.f32 1.0, %v2946_v28  ;;  %v2936_v27 = vadd.f32 1.1283791, %v2935_v8 }
0x1147   :  { %6554 = vrcp.f32 %v2947_v47  ;;  %v2959_v29 = vand.u32 2147483648, %v2947_v47  ;;  %v2957_v2 = vand.u32 2147483647, %v2947_v47  ;;  %vm2953_vm10 = vweird.f32 %v2947_v47 }
0x1148   :  { %v2937_v32 = vmul.f32 %v2936_v27, %v2923_v48 }
0x1149   :  { %v2960_v21 = vor.u32 1.1754944e-38, %v2959_v29  ;;  %vm2958_vm12 = vcmp.eq.f32.partialorder %v2957_v2, 8.507059e+37 }
0x114d   :  { %v6555_v49 = vpop.eup %6554 }
0x114e   :  { %v2949_v20 = vmul.f32 %v6555_v49, %v2947_v47  ;;  %vm2954_vm9 = vweird.f32 %v6555_v49 }
0x114f   :  { %vm2955_vm11 = vmor %vm2953_vm10, %vm2954_vm9 }
0x1150   :  { %v2950_v62 = vsub.f32 1.0, %v2949_v20  ;;  %v6357_v20 = vld [vmem:[%s9218_s16 + $0x1] ss:$0 sm:$0xff]  ;;  %s9224_s16 = smov 64  }
0x1152   :  { %v2951_v33 = vmul.f32 %v6555_v49, %v2950_v62 }
0x1154   :  { %v2952_v23 = vadd.f32 %v6555_v49, %v2951_v33  ;;  %v2861_v33 = vadd.f32 %v8096_v11, %v2860_v6 }
0x1156   :  { %v2956_v45 = vsel %vm2955_vm11, %v6555_v49, %v2952_v23  ;;  %v8137_v23 = vadd.f32 %v2861_v33, %v7968_v13 }
0x1157   :  { %v2961_v50 = vsel %vm2958_vm12, %v2960_v21, %v2956_v45 }
0x1158   :  { %v2962_v26 = vmul.f32 %v2961_v50, %v2937_v32  ;;  %v3070_v21 = vsel %vm214_vm0, %v8137_v23, 0.0 }
0x115a   :  { %v5946_v56 = vclamps-f32 %v2962_v26, 1.0 }
0x115c   :  { %v3005_v60 = vadd.f32 1.0, %v5946_v56 }
0x115e   :  { %v3007_v15 = vmul.f32 %v3005_v60, %v2921_v16 }
0x1160   :  { %3028 = vmatmul.f32.vlgmr.msrb.gmra.mxu1 %v3007_v15 }
0x1174   :  { %v2918_v24 = vpop.f32.mrf.mxu3 }
0x1175   :  { %v2919_v43 = vadd.f32 %v8108_v3, %v2918_v24 }
0x1177   :  { %v2924_v54 = vmul.f32 0.70710677, %v2919_v43  ;;  %v2922_v42 = vmul.f32 0.5, %v2919_v43 }
0x1179   :  { %v2965_v41 = vmul.f32 %v2924_v54, %v2924_v54 }
0x117b   :  { %v2966_v44 = vmin.f32 %v2965_v41, 16.0 }
0x117d   :  { %v2967_v7 = vmul.f32 2.1237322e-06, %v2966_v44  ;;  %v2978_v9 = vmul.f32 3.8918573e-05, %v2966_v44 }
0x117f   :  { %v2968_v48 = vadd.f32 0.00028619796, %v2967_v7  ;;  %v2979_v10 = vadd.f32 0.001143296, %v2978_v9 }
0x1181   :  { %v2969_v40 = vmul.f32 %v2968_v48, %v2966_v44  ;;  %v2980_v1 = vmul.f32 %v2979_v10, %v2966_v44 }
0x1183   :  { %v2981_v35 = vadd.f32 0.014752088, %v2980_v1  ;;  %v2970_v55 = vadd.f32 0.0036580483, %v2969_v40 }
0x1185   :  { %v2982_v34 = vmul.f32 %v2981_v35, %v2966_v44  ;;  %v2971_v4 = vmul.f32 %v2970_v55, %v2966_v44 }
0x1187   :  { %v2983_v39 = vadd.f32 0.112945676, %v2982_v34  ;;  %v2972_v53 = vadd.f32 0.05243302, %v2971_v4  ;;  %v5952_v4 = vld [vmem:[%s6874_s19 + $0x50] sm:$0xff] }
0x1189   :  { %v2984_v0 = vmul.f32 %v2983_v39, %v2966_v44  ;;  %v2973_v3 = vmul.f32 %v2972_v53, %v2966_v44  ;;  %v3066_v32 = vpop.xlane.xlu2 %3065  ;;  %v5953_v39 = vld [vmem:[%s6874_s19 + $0x58] sm:$0xff] }
0x118a   :  { %v3074_v50 = vmul.f32 %v3066_v32, %v7016_v38  ;;  %3190 = vmatpush.msra.mxu3 %v5953_v39  ;;  %v6360_v39 = vld [vmem:[%s6879_s24 + $0x2] ss:$0 sm:$0xff] }
0x118b   :  { %v2985_v12 = vadd.f32 0.4994258, %v2984_v0  ;;  %v2974_v52 = vadd.f32 0.18741608, %v2973_v3  ;;  %v5951_v0 = vld [vmem:[%s6874_s19 + $0x48] sm:$0xff] }
0x118c   :  { %v8146_v11 = vsub.f32 %v8100_v31, %v3074_v50  ;;  %3191 = vmatpush.msra.mxu3 %v5952_v4 }
0x118d   :  { %v2986_v51 = vmul.f32 %v2985_v12, %v2966_v44  ;;  %v2975_v22 = vmul.f32 %v2974_v52, %v2966_v44  ;;  %v5950_v12 = vld [vmem:[%s6874_s19 + $0x40] sm:$0xff] }
0x118e   :  { %v3082_v13 = vmul.f32 %v8146_v11, %v8146_v11  ;;  %3192 = vmatpush.msra.mxu3 %v5951_v0 }
0x118f   :  { %v2987_v58 = vadd.f32 1.0, %v2986_v51  ;;  %v2976_v17 = vadd.f32 1.1283791, %v2975_v22 }
0x1190   :  { %v3088_v16 = vsel %vm214_vm0, %v3082_v13, 0.0  ;;  %3193 = vmatpush.msra.mxu3 %v5950_v12 }
0x1191   :  { %6556 = vrcp.f32 %v2987_v58  ;;  %v2999_v61 = vand.u32 2147483648, %v2987_v58  ;;  %v2997_v36 = vand.u32 2147483647, %v2987_v58  ;;  %vm2993_vm14 = vweird.f32 %v2987_v58 }
0x1192   :  { %v2977_v25 = vmul.f32 %v2976_v17, %v2924_v54 }
0x1193   :  { %v3000_v57 = vor.u32 1.1754944e-38, %v2999_v61  ;;  %vm2998_vm1 = vcmp.eq.f32.partialorder %v2997_v36, 8.507059e+37 }
0x1197   :  { %v6557_v18 = vpop.eup %6556 }
0x1198   :  { %v2989_v19 = vmul.f32 %v6557_v18, %v2987_v58  ;;  %vm2994_vm13 = vweird.f32 %v6557_v18 }
0x1199   :  { %vm2995_vm15 = vmor %vm2993_vm14, %vm2994_vm13 }
0x119a   :  { %v2990_v5 = vsub.f32 1.0, %v2989_v19 }
0x119c   :  { %v2991_v63 = vmul.f32 %v6557_v18, %v2990_v5 }
0x119e   :  { %v2992_v37 = vadd.f32 %v6557_v18, %v2991_v63 }
0x11a0   :  { %v2996_v30 = vsel %vm2995_vm15, %v6557_v18, %v2992_v37 }
0x11a1   :  { %v3001_v28 = vsel %vm2998_vm1, %v3000_v57, %v2996_v30  ;;  %v6358_v30 = vld [vmem:[%s6864_s8 + $0x2] ss:$0 sm:$0xff] }
0x11a2   :  { %v3002_v47 = vmul.f32 %v3001_v28, %v2977_v25 }
0x11a4   :  { %v5947_v14 = vclamps-f32 %v3002_v47, 1.0 }
0x11a6   :  { %v3006_v49 = vadd.f32 1.0, %v5947_v14  ;;  %v6359_v14 = vld [vmem:[%s6869_s14 + $0x2] ss:$0 sm:$0xff] }
0x11a8   :  { %v3008_v8 = vmul.f32 %v3006_v49, %v2922_v42 }
0x11aa   :  { %3031 = vmatmul.f32.gmra.mxu1 %v3008_v8 }
0x11dd   :  { %v3029_v62 = vpop.f32.mrf.mxu1 }
0x11de   :  { %v3030_v29 = vadd.f32 %v6357_v20, %v3029_v62 }
0x11e0   :  { %v8131_v27 = vadd.f32 %v3030_v29, %v8003_v46 }
0x11e2   :  { %v3061_v2 = vsel %vm214_vm0, %v8131_v27, 0.0 }
0x11e3   :  { %3062 = vadd.xlane.f32.xlu0 %v3061_v2 }
0x11eb   :  { %3071 = vadd.xlane.f32.xlu0 %v3070_v21 }
0x1227   :  { %v3032_v45 = vpop.f32.mrf.mxu1 }
0x1228   :  { %v3033_v26 = vadd.f32 %v6357_v20, %v3032_v45 }
0x122a   :  { %v8143_v46 = vadd.f32 %v3033_v26, %v8028_v59 }
0x122c   :  { %v3067_v56 = vsel %vm214_vm0, %v8143_v46, 0.0 }
0x122d   :  { %3068 = vadd.xlane.f32.xlu1 %v3067_v56 }
0x1235   :  { %3089 = vadd.xlane.f32.xlu1 %v3088_v16 }
0x1256   :  { %v3063_v60 = vpop.xlane.xlu0 %3062 }
0x1257   :  { %v3073_v15 = vmul.f32 %v3063_v60, %v7016_v38 }
0x1259   :  { %v3077_v6 = vsub.f32 %v8131_v27, %v3073_v15 }
0x125b   :  { %v3081_v59 = vmul.f32 %v3077_v6, %v3077_v6 }
0x125d   :  { %v3085_v24 = vsel %vm214_vm0, %v3081_v59, 0.0 }
0x125e   :  { %v3072_v43 = vpop.xlane.xlu0 %3071  ;;  %3086 = vadd.xlane.f32.xlu2 %v3085_v24 }
0x125f   :  { %v3076_v54 = vmul.f32 %v3072_v43, %v7016_v38 }
0x1261   :  { %v8158_v41 = vsub.f32 %v8137_v23, %v3076_v54 }
0x1263   :  { %v3084_v44 = vmul.f32 %v8158_v41, %v8158_v41 }
0x1265   :  { %v3094_v7 = vsel %vm214_vm0, %v3084_v44, 0.0 }
0x1266   :  { %3095 = vadd.xlane.f32.xlu2 %v3094_v7 }
0x12a0   :  { %v3069_v9 = vpop.xlane.xlu1 %3068 }
0x12a1   :  { %v3075_v48 = vmul.f32 %v3069_v9, %v7016_v38 }
0x12a3   :  { %v8165_v10 = vsub.f32 %v8143_v46, %v3075_v48 }
0x12a5   :  { %v3083_v40 = vmul.f32 %v8165_v10, %v8165_v10 }
0x12a7   :  { %v3091_v1 = vsel %vm214_vm0, %v3083_v40, 0.0 }
0x12a8   :  { %3092 = vadd.xlane.f32.xlu0 %v3091_v1  ;;  %v3090_v35 = vpop.xlane.xlu1 %3089 }
0x12a9   :  { %v3098_v55 = vmul.f32 %v3090_v35, %v7016_v38 }
0x12ab   :  { %v3102_v34 = vadd.f32 1e-06, %v3098_v55 }
0x12ad   :  { %6558 = vrsqrt.f32 %v3102_v34  ;;  %vm3121_vm9 = vweird.f32 %v3102_v34 }
0x12b3   :  { %v6559_v51 = vpop.eup %6558 }
0x12b4   :  { %v3116_v52 = vmul.f32 %v6559_v51, %v3102_v34  ;;  %vm3122_vm3 = vweird.f32 %v6559_v51 }
0x12b5   :  { %vm3123_vm10 = vmor %vm3121_vm9, %vm3122_vm3 }
0x12b6   :  { %v3117_v18 = vmul.f32 %v6559_v51, %v3116_v52 }
0x12b8   :  { %v3118_v19 = vmul.f32 0.5, %v3117_v18 }
0x12ba   :  { %v3119_v17 = vsub.f32 1.5, %v3118_v19 }
0x12bc   :  { %v3120_v37 = vmul.f32 %v6559_v51, %v3119_v17 }
0x12be   :  { %v3124_v47 = vsel %vm3123_vm10, %v6559_v51, %v3120_v37 }
0x12bf   :  { %v3146_v49 = vmul.f32 %v3124_v47, %v8146_v11 }
0x12c1   :  { %v3153_v20 = vmul.f32 %v6358_v30, %v3146_v49 }
0x12c3   :  { %v3160_v62 = vadd.f32 %v6359_v14, %v3153_v20 }
0x12d1   :  { %v3087_v53 = vpop.xlane.xlu2 %3086 }
0x12d2   :  { %v3097_v58 = vmul.f32 %v3087_v53, %v7016_v38 }
0x12d4   :  { %v3101_v3 = vadd.f32 1e-06, %v3097_v58 }
0x12d6   :  { %6560 = vrsqrt.f32 %v3101_v3  ;;  %vm3111_vm4 = vweird.f32 %v3101_v3 }
0x12d9   :  { %v3096_v29 = vpop.xlane.xlu2 %3095 }
0x12da   :  { %v3100_v33 = vmul.f32 %v3096_v29, %v7016_v38 }
0x12dc   :  { %v6561_v22 = vpop.eup %6560  ;;  %v3104_v2 = vadd.f32 1e-06, %v3100_v33 }
0x12dd   :  { %v3106_v5 = vmul.f32 %v6561_v22, %v3101_v3  ;;  %vm3112_vm2 = vweird.f32 %v6561_v22 }
0x12de   :  { %vm3113_vm5 = vmor %vm3111_vm4, %vm3112_vm2  ;;  %6562 = vrsqrt.f32 %v3104_v2  ;;  %vm3141_vm15 = vweird.f32 %v3104_v2 }
0x12df   :  { %v3107_v61 = vmul.f32 %v6561_v22, %v3106_v5 }
0x12e1   :  { %v3108_v63 = vmul.f32 0.5, %v3107_v61 }
0x12e3   :  { %v3109_v36 = vsub.f32 1.5, %v3108_v63 }
0x12e4   :  { %v6563_v32 = vpop.eup %6562 }
0x12e5   :  { %v3110_v57 = vmul.f32 %v6561_v22, %v3109_v36  ;;  %v3136_v26 = vmul.f32 %v6563_v32, %v3104_v2  ;;  %vm3142_vm12 = vweird.f32 %v6563_v32 }
0x12e6   :  { %vm3143_vm1 = vmor %vm3141_vm15, %vm3142_vm12 }
0x12e7   :  { %v3114_v25 = vsel %vm3113_vm5, %v6561_v22, %v3110_v57  ;;  %v3137_v11 = vmul.f32 %v6563_v32, %v3136_v26 }
0x12e8   :  { %v3145_v28 = vmul.f32 %v3114_v25, %v3077_v6 }
0x12e9   :  { %v3138_v13 = vmul.f32 0.5, %v3137_v11 }
0x12ea   :  { %v3152_v42 = vmul.f32 %v6358_v30, %v3145_v28 }
0x12eb   :  { %v3139_v15 = vsub.f32 1.5, %v3138_v13 }
0x12ec   :  { %v3159_v8 = vadd.f32 %v6359_v14, %v3152_v42 }
0x12ed   :  { %v3140_v24 = vmul.f32 %v6563_v32, %v3139_v15 }
0x12ee   :  { %5960 = vmatmul.msk.f32.vlgmr.msra.gmra.mxu3 %vm214_vm0, %v3159_v8 }
0x12ef   :  { %v3144_v7 = vsel %vm3143_vm1, %v6563_v32, %v3140_v24 }
0x12f0   :  { %v3148_v48 = vmul.f32 %v3144_v7, %v8158_v41 }
0x12f2   :  { %v3155_v1 = vmul.f32 %v6358_v30, %v3148_v48 }
0x12f4   :  { %v3162_v35 = vadd.f32 %v6359_v14, %v3155_v1 }
0x12f6   :  { %5961 = vmatmul.msk.f32.gmra.mxu3 %vm214_vm0, %v3160_v62 }
0x131b   :  { %v3093_v21 = vpop.xlane.xlu0 %3092 }
0x131c   :  { %v3099_v45 = vmul.f32 %v3093_v21, %v7016_v38 }
0x131e   :  { %v3103_v50 = vadd.f32 1e-06, %v3099_v45 }
0x1320   :  { %6564 = vrsqrt.f32 %v3103_v50  ;;  %vm3131_vm13 = vweird.f32 %v3103_v50 }
0x1326   :  { %v6565_v56 = vpop.eup %6564 }
0x1327   :  { %v3126_v16 = vmul.f32 %v6565_v56, %v3103_v50  ;;  %vm3132_vm11 = vweird.f32 %v6565_v56 }
0x1328   :  { %vm3133_vm14 = vmor %vm3131_vm13, %vm3132_vm11 }
0x1329   :  { %v3127_v60 = vmul.f32 %v6565_v56, %v3126_v16 }
0x132b   :  { %v3128_v6 = vmul.f32 0.5, %v3127_v60 }
0x132d   :  { %v3129_v59 = vsub.f32 1.5, %v3128_v6 }
0x132f   :  { %v3130_v43 = vmul.f32 %v6565_v56, %v3129_v59 }
0x1331   :  { %v3134_v54 = vsel %vm3133_vm14, %v6565_v56, %v3130_v43 }
0x1332   :  { %v3147_v44 = vmul.f32 %v3134_v54, %v8165_v10  ;;  %v3039_v54 = vld [vmem:[%s9225_s23] sm:$0xff] }
0x1334   :  { %v3154_v9 = vmul.f32 %v6358_v30, %v3147_v44 }
0x1336   :  { %v3161_v40 = vadd.f32 %v6359_v14, %v3154_v9 }
0x1338   :  { %5962 = vmatmul.msk.f32.gmra.mxu3 %vm214_vm0, %v3161_v40 }
0x1340   :  { %5963 = vmatmul.msk.f32.gmra.mxu3 %vm214_vm0, %v3162_v35 }
0x1371   :  { %v3195_v55 = vpop.f32.mrf.mxu3 }
0x1372   :  { %v3196_v53 = vadd.f32 %v6360_v39, %v3195_v55 }
0x1379   :  { %v3198_v34 = vpop.f32.mrf.mxu3 }
0x137a   :  { %v3199_v12 = vadd.f32 %v6360_v39, %v3198_v34  ;;  %v3040_v34 = vld [vmem:[%s9225_s23 + $0x8] sm:$0xff] }
0x137c   :  { %v8230_v51 = vpack.i.bf16 %v3196_v53, %v3199_v12 }
0x13bb   :  { %v3201_v4 = vpop.f32.mrf.mxu3 }
0x13bc   :  { %v8188_v0 = vadd.f32 %v6360_v39, %v3201_v4 }
0x13be   :  { %3381 = vrot.lane.b32.xlu0 %v8188_v0, %s6801_s0  ;;  %3215 = vrot.lane.b32.xlu2 %v8188_v0, %s6802_s5 }
0x13c3   :  { %v3204_v41 = vpop.f32.mrf.mxu3 }
0x13c4   :  { %v8194_v10 = vadd.f32 %v6360_v39, %v3204_v41 }
0x13c6   :  { %3217 = vrot.lane.b32.xlu1 %v8194_v10, %s6802_s5  ;;  %3383 = vrot.lane.b32.xlu0 %v8194_v10, %s6801_s0  ;;  %v8240_v58 = vpack.i.bf16 %v8188_v0, %v8194_v10 }
0x13c7   :  { %3379 = vrot.lane.b32.xlu2 %v3199_v12, %s6801_s0 }
0x13ce   :  { %3211 = vrot.lane.b32.xlu0 %v3196_v53, %s6802_s5  ;;  %3213 = vrot.lane.b32.xlu1 %v3199_v12, %s6802_s5 }
0x13cf   :  { %3369 = vrot.lane.b32.xlu2 %v3196_v53, %s6803_s9 }
0x13d6   :  { %3371 = vrot.lane.b32.xlu0 %v3199_v12, %s6803_s9  ;;  %3377 = vrot.lane.b32.xlu1 %v3196_v53, %s6801_s0 }
0x13d7   :  { %3713 = vrot.lane.b32.xlu2 %v8188_v0, %s6805_s17 }
0x13de   :  { %3543 = vrot.lane.b32.xlu0 %v3196_v53, %s6804_s13  ;;  %3373 = vrot.lane.b32.xlu1 %v8188_v0, %s6803_s9 }
0x13df   :  { %3549 = vrot.lane.b32.xlu2 %v8194_v10, %s6804_s13 }
0x13e6   :  { %3715 = vrot.lane.b32.xlu0 %v8194_v10, %s6805_s17  ;;  %3547 = vrot.lane.b32.xlu1 %v8188_v0, %s6804_s13 }
0x13e7   :  { %3711 = vrot.lane.b32.xlu2 %v3199_v12, %s6805_s17 }
0x13ee   :  { %3375 = vrot.lane.b32.xlu0 %v8194_v10, %s6803_s9  ;;  %3545 = vrot.lane.b32.xlu1 %v3199_v12, %s6804_s13 }
0x13ef   :  { %3535 = vrot.lane.b32.xlu2 %v3196_v53, %s6806_s21 }
0x13f6   :  { %3701 = vrot.lane.b32.xlu0 %v3196_v53, %s6807_s3  ;;  %3709 = vrot.lane.b32.xlu1 %v3196_v53, %s6805_s17 }
0x13f7   :  { %3703 = vrot.lane.b32.xlu2 %v3199_v12, %s6807_s3 }
0x13fe   :  { %3539 = vrot.lane.b32.xlu0 %v8188_v0, %s6806_s21  ;;  %3537 = vrot.lane.b32.xlu1 %v3199_v12, %s6806_s21 }
0x13ff   :  { %3541 = vrot.lane.b32.xlu2 %v8194_v10, %s6806_s21 }
0x1406   :  { %3707 = vrot.lane.b32.xlu0 %v8194_v10, %s6807_s3  ;;  %3705 = vrot.lane.b32.xlu1 %v8188_v0, %s6807_s3 }
0x1407   :  { %6257 = vrot.lane.b32.xlu2 %v8230_v51, %s9223_s27 }
0x140e   :  { %6272 = vrot.lane.b32.xlu0 %v8240_v58, %s9224_s16  ;;  %6267 = vrot.lane.b32.xlu1 %v8240_v58, %s9223_s27 }
0x140f   :  { %6262 = vrot.lane.b32.xlu2 %v8230_v51, %s9224_s16 }
0x1418   :  { %v3216_v3 = vpop.permute.xlu2 %3215 }
0x1421   :  { %v3380_v52 = vpop.permute.xlu2 %3379 }
0x1429   :  { %v3370_v22 = vpop.permute.xlu2 %3369 }
0x1430   :  { %v3382_v18 = vpop.permute.xlu0 %3381 }
0x1431   :  { %v3714_v61 = vpop.permute.xlu2 %3713 }
0x1438   :  { %v3218_v19 = vpop.permute.xlu1 %3217  ;;  %v3384_v5 = vpop.permute.xlu0 %3383 }
0x1439   :  { %5964 = vmatpush.xpose.msk.msrb.mxu2 %vm450_vm6, %v3218_v19  ;;  %5976 = vmatpush.xpose.msk.msra.mxu1 %vm450_vm6, %v3384_v5  ;;  %v3550_v36 = vpop.permute.xlu2 %3549 }
0x143d   :  { %5965 = vmatpush.xpose.msk.msrb.mxu2 %vm450_vm6, %v3216_v3  ;;  %5977 = vmatpush.xpose.msk.msra.mxu1 %vm450_vm6, %v3382_v18 }
0x1440   :  { %v3212_v17 = vpop.permute.xlu0 %3211  ;;  %v3214_v63 = vpop.permute.xlu1 %3213 }
0x1441   :  { %5966 = vmatpush.xpose.msk.msrb.mxu2 %vm450_vm6, %v3214_v63  ;;  %5978 = vmatpush.xpose.msk.msra.mxu1 %vm450_vm6, %v3380_v52  ;;  %v3712_v25 = vpop.permute.xlu2 %3711  ;;  %v3041_v52 = vld [vmem:[%s9225_s23 + $0x10] sm:$0xff] }
0x1445   :  { %5967 = vmatpush.xpose.msk.msrb.mxu2 %vm450_vm6, %v3212_v17 }
0x1448   :  { %v3372_v37 = vpop.permute.xlu0 %3371  ;;  %5968 = vmatmul.msk.f32.vlgmr.msrb.gmra.mxu2 %vm450_vm6, %v3196_v53  ;;  %v3378_v57 = vpop.permute.xlu1 %3377 }
0x1449   :  { %5988 = vmatpush.xpose.msk.msra.mxu2 %vm450_vm6, %v3550_v36  ;;  %5979 = vmatpush.xpose.msk.msra.mxu1 %vm450_vm6, %v3378_v57  ;;  %v3536_v42 = vpop.permute.xlu2 %3535 }
0x144c   :  { %5980 = vmatmul.msk.f32.vlgmr.msra.gmra.mxu1 %vm450_vm6, %v3370_v22 }
0x1450   :  { %v3544_v30 = vpop.permute.xlu0 %3543  ;;  %5969 = vmatmul.msk.f32.gmra.mxu2 %vm450_vm6, %v3199_v12  ;;  %v3374_v28 = vpop.permute.xlu1 %3373 }
0x1451   :  { %v3704_v20 = vpop.permute.xlu2 %3703 }
0x1454   :  { %5981 = vmatmul.msk.f32.gmra.mxu1 %vm450_vm6, %v3372_v37  ;;  %v3042_v37 = vld [vmem:[%s9225_s23 + $0x18] sm:$0xff] }
0x1458   :  { %v3716_v47 = vpop.permute.xlu0 %3715  ;;  %5970 = vmatmul.msk.f32.gmra.mxu2 %vm450_vm6, %v8188_v0  ;;  %v3548_v14 = vpop.permute.xlu1 %3547 }
0x1459   :  { %5989 = vmatpush.xpose.msk.msra.mxu2 %vm450_vm6, %v3548_v14  ;;  %6000 = vmatpush.xpose.msk.msrb.mxu1 %vm450_vm6, %v3716_v47  ;;  %v3542_v33 = vpop.permute.xlu2 %3541 }
0x145c   :  { %5982 = vmatmul.msk.f32.gmra.mxu1 %vm450_vm6, %v3374_v28 }
0x145d   :  { %6001 = vmatpush.xpose.msk.msrb.mxu1 %vm450_vm6, %v3714_v61 }
0x1460   :  { %v3376_v49 = vpop.permute.xlu0 %3375  ;;  %5971 = vmatmul.msk.f32.gmra.mxu2 %vm450_vm6, %v8194_v10  ;;  %v3546_v8 = vpop.permute.xlu1 %3545 }
0x1461   :  { %5990 = vmatpush.xpose.msk.msra.mxu2 %vm450_vm6, %v3546_v8  ;;  %6002 = vmatpush.xpose.msk.msrb.mxu1 %vm450_vm6, %v3712_v25  ;;  %v6258_v32 = vpop.permute.xlu2 %6257 }
0x1462   :  { %v6259_v6 = vunpack.i.l.bf16 %v6258_v32  ;;  %v6260_v24 = vunpack.i.h.bf16 %v6258_v32 }
0x1464   :  { %5983 = vmatmul.msk.f32.gmra.mxu1 %vm450_vm6, %v3376_v49 }
0x1465   :  { %5991 = vmatpush.xpose.msk.msra.mxu2 %vm450_vm6, %v3544_v30 }
0x1468   :  { %v3702_v62 = vpop.permute.xlu0 %3701  ;;  %5992 = vmatmul.msk.f32.vlgmr.msra.gmra.mxu2 %vm450_vm6, %v3536_v42  ;;  %v3710_v29 = vpop.permute.xlu1 %3709 }
0x1469   :  { %6003 = vmatpush.xpose.msk.msrb.mxu1 %vm450_vm6, %v3710_v29  ;;  %v6263_v16 = vpop.permute.xlu2 %6262 }
0x146a   :  { %v6264_v59 = vunpack.i.l.bf16 %v6263_v16  ;;  %v6265_v43 = vunpack.i.h.bf16 %v6263_v16 }
0x146c   :  { %6004 = vmatmul.msk.f32.vlgmr.msrb.gmra.mxu1 %vm450_vm6, %v3702_v62 }
0x1470   :  { %v3540_v2 = vpop.permute.xlu0 %3539  ;;  %v3538_v21 = vpop.permute.xlu1 %3537 }
0x1471   :  { %5993 = vmatmul.msk.f32.gmra.mxu2 %vm450_vm6, %v3538_v21 }
0x1474   :  { %6005 = vmatmul.msk.f32.gmra.mxu1 %vm450_vm6, %v3704_v20 }
0x1478   :  { %v3708_v45 = vpop.permute.xlu0 %3707  ;;  %v3706_v50 = vpop.permute.xlu1 %3705 }
0x1479   :  { %5994 = vmatmul.msk.f32.gmra.mxu2 %vm450_vm6, %v3540_v2 }
0x147c   :  { %6006 = vmatmul.msk.f32.gmra.mxu1 %vm450_vm6, %v3706_v50 }
0x1480   :  { %v6273_v26 = vpop.permute.xlu0 %6272  ;;  %v6268_v11 = vpop.permute.xlu1 %6267 }
0x1481   :  { %v6274_v56 = vunpack.i.l.bf16 %v6273_v26  ;;  %v6269_v13 = vunpack.i.l.bf16 %v6268_v11  ;;  %5995 = vmatmul.msk.f32.gmra.mxu2 %vm450_vm6, %v3542_v33  ;;  %v6275_v60 = vunpack.i.h.bf16 %v6273_v26  ;;  %v6270_v15 = vunpack.i.h.bf16 %v6268_v11 }
0x1483   :  { %3352 = vmatpush.msra.mxu0 %v6274_v56  ;;  %3518 = vmatpush.msrb.mxu3 %v6269_v13 }
0x1484   :  { %6007 = vmatmul.msk.f32.gmra.mxu1 %vm450_vm6, %v3708_v45 }
0x1485   :  { %3353 = vmatpush.msra.mxu0 %v6275_v60  ;;  %3519 = vmatpush.msrb.mxu3 %v6270_v15 }
0x1487   :  { %3354 = vmatpush.msra.mxu0 %v6264_v59  ;;  %3520 = vmatpush.msrb.mxu3 %v6259_v6 }
0x1489   :  { %3355 = vmatpush.msra.mxu0 %v6265_v43  ;;  %3521 = vmatpush.msrb.mxu3 %v6260_v24 }
0x14c9   :  { %v3418_v44 = vpop.f32.mrf.mxu1 }
0x14ca   :  { %v3430_v7 = vmul.f32 0.35355338, %v3418_v44 }
0x14cb   :  { %v3252_v9 = vpop.f32.mrf.mxu2 }
0x14cc   :  { %v8283_v48 = vadd.f32 %v3430_v7, %v3039_v54  ;;  %v3264_v40 = vmul.f32 0.35355338, %v3252_v9 }
0x14ce   :  { %v8285_v1 = vadd.f32 %v3264_v40, %v3039_v54  ;;  %v3438_v35 = vsel %vm214_vm0, %v8283_v48, -inf }
0x14cf   :  { %3439 = vmax.xlane.f32.xlu1 %v3438_v35 }
0x14d0   :  { %v3272_v55 = vsel %vm214_vm0, %v8285_v1, -inf }
0x14d1   :  { %3273 = vmax.xlane.f32.xlu2 %v3272_v55  ;;  %v3421_v39 = vpop.f32.mrf.mxu1 }
0x14d2   :  { %v3431_v4 = vmul.f32 0.35355338, %v3421_v39 }
0x14d3   :  { %v3255_v0 = vpop.f32.mrf.mxu2 }
0x14d4   :  { %v8292_v41 = vadd.f32 %v3431_v4, %v3040_v34  ;;  %v3265_v10 = vmul.f32 0.35355338, %v3255_v0 }
0x14d6   :  { %v8294_v12 = vadd.f32 %v3265_v10, %v3040_v34  ;;  %v3441_v53 = vsel %vm214_vm0, %v8292_v41, -inf }
0x14d7   :  { %3442 = vmax.xlane.f32.xlu0 %v3441_v53 }
0x14d8   :  { %v3275_v3 = vsel %vm214_vm0, %v8294_v12, -inf }
0x14d9   :  { %3276 = vmax.xlane.f32.xlu1 %v3275_v3  ;;  %v3424_v18 = vpop.f32.mrf.mxu1 }
0x14da   :  { %v3432_v22 = vmul.f32 0.35355338, %v3424_v18 }
0x14db   :  { %v3258_v19 = vpop.f32.mrf.mxu2 }
0x14dc   :  { %v8301_v5 = vadd.f32 %v3432_v22, %v3041_v52  ;;  %v3266_v61 = vmul.f32 0.35355338, %v3258_v19 }
0x14de   :  { %v8303_v17 = vadd.f32 %v3266_v61, %v3041_v52  ;;  %v3444_v63 = vsel %vm214_vm0, %v8301_v5, -inf }
0x14df   :  { %3445 = vmax.xlane.f32.xlu2 %v3444_v63 }
0x14e0   :  { %v3278_v36 = vsel %vm214_vm0, %v8303_v17, -inf }
0x14e1   :  { %3279 = vmax.xlane.f32.xlu0 %v3278_v36  ;;  %v3427_v57 = vpop.f32.mrf.mxu1 }
0x14e2   :  { %v3433_v25 = vmul.f32 0.35355338, %v3427_v57 }
0x14e3   :  { %v3261_v30 = vpop.f32.mrf.mxu2 }
0x14e4   :  { %v8310_v28 = vadd.f32 %v3433_v25, %v3042_v37  ;;  %v3267_v47 = vmul.f32 0.35355338, %v3261_v30 }
0x14e6   :  { %v8312_v14 = vadd.f32 %v3267_v47, %v3042_v37  ;;  %v3447_v42 = vsel %vm214_vm0, %v8310_v28, -inf }
0x14e7   :  { %3448 = vmax.xlane.f32.xlu1 %v3447_v42 }
0x14e8   :  { %v3281_v49 = vsel %vm214_vm0, %v8312_v14, -inf }
0x14e9   :  { %3282 = vmax.xlane.f32.xlu2 %v3281_v49  ;;  %v3750_v8 = vpop.f32.mrf.mxu1 }
0x14ea   :  { %v3762_v20 = vmul.f32 0.35355338, %v3750_v8 }
0x14eb   :  { %v3584_v62 = vpop.f32.mrf.mxu2 }
0x14ec   :  { %v8318_v29 = vadd.f32 %v3762_v20, %v3039_v54  ;;  %v3596_v33 = vmul.f32 0.35355338, %v3584_v62 }
0x14ee   :  { %v8320_v2 = vadd.f32 %v3596_v33, %v3039_v54  ;;  %v3770_v21 = vsel %vm214_vm0, %v8318_v29, -inf }
0x14ef   :  { %3771 = vmax.xlane.f32.xlu0 %v3770_v21 }
0x14f0   :  { %v3604_v32 = vsel %vm214_vm0, %v8320_v2, -inf }
0x14f1   :  { %3605 = vmax.xlane.f32.xlu1 %v3604_v32  ;;  %v3753_v45 = vpop.f32.mrf.mxu1 }
0x14f2   :  { %v3763_v50 = vmul.f32 0.35355338, %v3753_v45 }
0x14f4   :  { %v8326_v26 = vadd.f32 %v3763_v50, %v3040_v34  ;;  %v3587_v11 = vpop.f32.mrf.mxu2 }
0x14f5   :  { %v3597_v56 = vmul.f32 0.35355338, %v3587_v11 }
0x14f6   :  { %v3773_v13 = vsel %vm214_vm0, %v8326_v26, -inf }
0x14f7   :  { %v8330_v16 = vadd.f32 %v3597_v56, %v3040_v34  ;;  %3774 = vmax.xlane.f32.xlu2 %v3773_v13 }
0x14f9   :  { %v3756_v60 = vpop.f32.mrf.mxu1  ;;  %v3607_v15 = vsel %vm214_vm0, %v8330_v16, -inf }
0x14fa   :  { %v3764_v6 = vmul.f32 0.35355338, %v3756_v60  ;;  %3608 = vmax.xlane.f32.xlu0 %v3607_v15 }
0x14fc   :  { %v8334_v59 = vadd.f32 %v3764_v6, %v3041_v52  ;;  %v3590_v24 = vpop.f32.mrf.mxu2 }
0x14fd   :  { %v3598_v43 = vmul.f32 0.35355338, %v3590_v24 }
0x14fe   :  { %v3776_v54 = vsel %vm214_vm0, %v8334_v59, -inf }
0x14ff   :  { %v8338_v44 = vadd.f32 %v3598_v43, %v3041_v52  ;;  %3777 = vmax.xlane.f32.xlu1 %v3776_v54 }
0x1501   :  { %v3759_v7 = vpop.f32.mrf.mxu1  ;;  %v3610_v9 = vsel %vm214_vm0, %v8338_v44, -inf }
0x1502   :  { %v3765_v40 = vmul.f32 0.35355338, %v3759_v7  ;;  %3611 = vmax.xlane.f32.xlu0 %v3610_v9 }
0x1504   :  { %v8342_v35 = vadd.f32 %v3765_v40, %v3042_v37  ;;  %v3593_v55 = vpop.f32.mrf.mxu2 }
0x1505   :  { %v3599_v34 = vmul.f32 0.35355338, %v3593_v55 }
0x1506   :  { %v3779_v39 = vsel %vm214_vm0, %v8342_v35, -inf }
0x1507   :  { %v8346_v4 = vadd.f32 %v3599_v34, %v3042_v37  ;;  %3780 = vmax.xlane.f32.xlu2 %v3779_v39 }
0x1509   :  { %v3613_v0 = vsel %vm214_vm0, %v8346_v4, -inf }
0x150a   :  { %3614 = vmax.xlane.f32.xlu0 %v3613_v0 }
0x1542   :  { %v3440_v10 = vpop.xlane.xlu1 %3439 }
0x1543   :  { %v3450_v53 = vsub.f32 %v8283_v48, %v3440_v10 }
0x1544   :  { %v3274_v3 = vpop.xlane.xlu2 %3273 }
0x1545   :  { %v3454_v52 = vmul.f32 1.442695, %v3450_v53  ;;  %v3284_v18 = vsub.f32 %v8285_v1, %v3274_v3 }
0x1547   :  { %6566 = vpow2.f32 %v3454_v52  ;;  %v3288_v22 = vmul.f32 1.442695, %v3284_v18 }
0x1549   :  { %6568 = vpow2.f32 %v3288_v22 }
0x154a   :  { %v3443_v19 = vpop.xlane.xlu0 %3442 }
0x154b   :  { %v3451_v61 = vsub.f32 %v8292_v41, %v3443_v19 }
0x154c   :  { %v3277_v63 = vpop.xlane.xlu1 %3276 }
0x154d   :  { %v8353_v36 = vpop.eup %6566  ;;  %v3456_v37 = vmul.f32 1.442695, %v3451_v61  ;;  %v3285_v57 = vsub.f32 %v8294_v12, %v3277_v63 }
0x154e   :  { %v3462_v25 = vsel %vm214_vm0, %v8353_v36, 0.0 }
0x154f   :  { %v8358_v48 = vpop.eup %6568  ;;  %6570 = vpow2.f32 %v3456_v37  ;;  %v3290_v30 = vmul.f32 1.442695, %v3285_v57  ;;  %3463 = vadd.xlane.f32.xlu2 %v3462_v25 }
0x1550   :  { %v3296_v1 = vsel %vm214_vm0, %v8358_v48, 0.0 }
0x1551   :  { %6572 = vpow2.f32 %v3290_v30  ;;  %3297 = vadd.xlane.f32.xlu0 %v3296_v1 }
0x1552   :  { %v3446_v41 = vpop.xlane.xlu2 %3445 }
0x1553   :  { %v3452_v47 = vsub.f32 %v8301_v5, %v3446_v41 }
0x1554   :  { %v3280_v42 = vpop.xlane.xlu0 %3279 }
0x1555   :  { %v8363_v49 = vpop.eup %6570  ;;  %v3458_v12 = vmul.f32 1.442695, %v3452_v47  ;;  %v3286_v8 = vsub.f32 %v8303_v17, %v3280_v42 }
0x1556   :  { %v3465_v20 = vsel %vm214_vm0, %v8363_v49, 0.0 }
0x1557   :  { %v8368_v62 = vpop.eup %6572  ;;  %6574 = vpow2.f32 %v3458_v12  ;;  %3466 = vadd.xlane.f32.xlu1 %v3465_v20  ;;  %v3292_v21 = vmul.f32 1.442695, %v3286_v8 }
0x1558   :  { %v3299_v33 = vsel %vm214_vm0, %v8368_v62, 0.0 }
0x1559   :  { %3300 = vadd.xlane.f32.xlu2 %v3299_v33  ;;  %6576 = vpow2.f32 %v3292_v21 }
0x155a   :  { %v3449_v32 = vpop.xlane.xlu1 %3448 }
0x155b   :  { %v3453_v7 = vsub.f32 %v8310_v28, %v3449_v32 }
0x155c   :  { %v3283_v5 = vpop.xlane.xlu2 %3282 }
0x155d   :  { %v8372_v45 = vpop.eup %6574  ;;  %v3287_v50 = vsub.f32 %v8312_v14, %v3283_v5  ;;  %v3460_v9 = vmul.f32 1.442695, %v3453_v7 }
0x155e   :  { %v3468_v17 = vsel %vm214_vm0, %v8372_v45, 0.0 }
0x155f   :  { %3469 = vadd.xlane.f32.xlu1 %v3468_v17  ;;  %v3294_v11 = vmul.f32 1.442695, %v3287_v50  ;;  %v8377_v56 = vpop.eup %6576 }
0x1560   :  { %v3302_v15 = vsel %vm214_vm0, %v8377_v56, 0.0 }
0x1561   :  { %6578 = vpow2.f32 %v3294_v11 }
0x1562   :  { %v3772_v54 = vpop.xlane.xlu0 %3771 }
0x1563   :  { %v3782_v55 = vsub.f32 %v8318_v29, %v3772_v54 }
0x1564   :  { %v3606_v13 = vpop.xlane.xlu1 %3605 }
0x1565   :  { %v3616_v60 = vsub.f32 %v8320_v2, %v3606_v13  ;;  %6282 = vrot.lane.b32.xlu0 %v8230_v51, %s9226_s26  ;;  %v3786_v0 = vmul.f32 1.442695, %v3782_v55 }
0x1567   :  { %3303 = vadd.xlane.f32.xlu1 %v3302_v15  ;;  %v3620_v6 = vmul.f32 1.442695, %v3616_v60  ;;  %v8384_v14 = vpop.eup %6578 }
0x1568   :  { %v3305_v24 = vsel %vm214_vm0, %v8384_v14, 0.0 }
0x1569   :  { %6580 = vpow2.f32 %v3620_v6 }
0x156a   :  { %6582 = vpow2.f32 %v3460_v9  ;;  %v3775_v34 = vpop.xlane.xlu2 %3774 }
0x156b   :  { %v3783_v39 = vsub.f32 %v8326_v26, %v3775_v34  ;;  %6584 = vpow2.f32 %v3786_v0 }
0x156d   :  { %v3609_v40 = vpop.xlane.xlu0 %3608  ;;  %v3788_v53 = vmul.f32 1.442695, %v3783_v39 }
0x156e   :  { %v3617_v12 = vsub.f32 %v8330_v16, %v3609_v40 }
0x156f   :  { %3306 = vadd.xlane.f32.xlu1 %v3305_v24  ;;  %v8390_v43 = vpop.eup %6580  ;;  %6586 = vpow2.f32 %v3788_v53 }
0x1570   :  { %v3628_v2 = vsel %vm214_vm0, %v8390_v43, 0.0  ;;  %v8397_v10 = vpop.eup %6582  ;;  %v3622_v20 = vmul.f32 1.442695, %v3617_v12 }
0x1571   :  { %6277 = vrot.lane.b32.xlu2 %v8240_v58, %s9226_s26  ;;  %v3471_v52 = vsel %vm214_vm0, %v8397_v10, 0.0  ;;  %v8404_v29 = vpop.eup %6584 }
0x1572   :  { %v3794_v19 = vsel %vm214_vm0, %v8404_v29, 0.0  ;;  %v3778_v57 = vpop.xlane.xlu1 %3777 }
0x1573   :  { %v3784_v30 = vsub.f32 %v8334_v59, %v3778_v57 }
0x1575   :  { %v3612_v3 = vpop.xlane.xlu0 %3611  ;;  %v8406_v22 = vpop.eup %6586  ;;  %v3790_v1 = vmul.f32 1.442695, %v3784_v30 }
0x1576   :  { %v3618_v28 = vsub.f32 %v8338_v44, %v3612_v3  ;;  %v3797_v63 = vsel %vm214_vm0, %v8406_v22, 0.0 }
0x1577   :  { %3629 = vadd.xlane.f32.xlu1 %v3628_v2 }
0x1578   :  { %v3624_v18 = vmul.f32 1.442695, %v3618_v28 }
0x157a   :  { %v3781_v26 = vpop.xlane.xlu2 %3780  ;;  %6588 = vpow2.f32 %v3624_v18 }
0x157b   :  { %v3785_v61 = vsub.f32 %v8342_v35, %v3781_v26 }
0x157d   :  { %v3792_v44 = vmul.f32 1.442695, %v3785_v61  ;;  %v3615_v42 = vpop.xlane.xlu0 %3614 }
0x157f   :  { %6590 = vpow2.f32 %v3792_v44 }
0x1580   :  { %v8413_v37 = vpop.eup %6588  ;;  %6592 = vpow2.f32 %v3790_v1 }
0x1585   :  { %v8417_v25 = vpop.eup %6590 }
0x1586   :  { %v3803_v35 = vsel %vm214_vm0, %v8417_v25, 0.0  ;;  %v8424_v41 = vpop.eup %6592 }
0x1587   :  { %v3800_v47 = vsel %vm214_vm0, %v8424_v41, 0.0 }
0x158f   :  { %3472 = vadd.xlane.f32.xlu0 %v3471_v52 }
0x1590   :  { %6287 = vrot.lane.b32.xlu1 %v8240_v58, %s9219_s25  ;;  %v3634_v58 = vsel %vm214_vm0, %v8413_v37, 0.0 }
0x1597   :  { %3795 = vadd.xlane.f32.xlu0 %v3794_v19 }
0x159a   :  { %3798 = vadd.xlane.f32.xlu2 %v3797_v63 }
0x15a2   :  { %3635 = vadd.xlane.f32.xlu2 %v3634_v58 }
0x15aa   :  { %3804 = vadd.xlane.f32.xlu2 %v3803_v35 }
0x15ab   :  { %6292 = vrot.lane.b32.xlu0 %v8230_v51, %s9219_s25  ;;  %v3619_v51 = vsub.f32 %v8346_v4, %v3615_v42 }
0x15ad   :  { %v3626_v16 = vmul.f32 1.442695, %v3619_v51 }
0x15ba   :  { %3801 = vadd.xlane.f32.xlu1 %v3800_v47 }
0x15c2   :  { %v3464_v8 = vpop.xlane.xlu2 %3463 }
0x15c3   :  { %6594 = vrcp.f32 %v3464_v8 }
0x15c4   :  { %v3298_v59 = vpop.xlane.xlu0 %3297 }
0x15c5   :  { %6596 = vrcp.f32 %v3298_v59 }
0x15c6   :  { %6598 = vpow2.f32 %v3622_v20 }
0x15c9   :  { %v6595_v33 = vpop.eup %6594 }
0x15ca   :  { %v3478_v21 = vmul.f32 %v6595_v33, %v8353_v36  ;;  %v3467_v32 = vpop.xlane.xlu1 %3466 }
0x15cb   :  { %v6597_v5 = vpop.eup %6596  ;;  %6600 = vrcp.f32 %v3467_v32 }
0x15cc   :  { %v3312_v50 = vmul.f32 %v6597_v5, %v8358_v48  ;;  %v3301_v17 = vpop.xlane.xlu2 %3300  ;;  %5984 = vmatmul.msk.f32.vlgmr.msrb.gmra.mxu3 %vm214_vm0, %v3478_v21  ;;  %v8434_v11 = vpop.eup %6598 }
0x15cd   :  { %6602 = vrcp.f32 %v3301_v17  ;;  %v3631_v48 = vsel %vm214_vm0, %v8434_v11, 0.0 }
0x15ce   :  { %5972 = vmatmul.msk.f32.vlgmr.msra.gmra.mxu0 %vm214_vm0, %v3312_v50  ;;  %6604 = vpow2.f32 %v3626_v16 }
0x15d1   :  { %v6601_v13 = vpop.eup %6600 }
0x15d2   :  { %v3470_v60 = vpop.xlane.xlu1 %3469  ;;  %v3479_v4 = vmul.f32 %v6601_v13, %v8363_v49 }
0x15d3   :  { %v6603_v36 = vpop.eup %6602  ;;  %6606 = vrcp.f32 %v3470_v60 }
0x15d4   :  { %v6278_v15 = vpop.permute.xlu2 %6277  ;;  %5985 = vmatmul.msk.f32.gmra.mxu3 %vm214_vm0, %v3479_v4  ;;  %v3313_v6 = vmul.f32 %v6603_v36, %v8368_v62  ;;  %v8442_v7 = vpop.eup %6604 }
0x15d5   :  { %v6279_v24 = vunpack.i.l.bf16 %v6278_v15  ;;  %3632 = vadd.xlane.f32.xlu0 %v3631_v48  ;;  %v6280_v2 = vunpack.i.h.bf16 %v6278_v15  ;;  %v3637_v62 = vsel %vm214_vm0, %v8442_v7, 0.0 }
0x15d6   :  { %5973 = vmatmul.msk.f32.gmra.mxu0 %vm214_vm0, %v3313_v6 }
0x15d7   :  { %v6283_v54 = vpop.permute.xlu0 %6282  ;;  %3850 = vmatpush.msra.mxu3 %v6279_v24 }
0x15d8   :  { %v6284_v49 = vunpack.i.l.bf16 %v6283_v54  ;;  %v6285_v34 = vunpack.i.h.bf16 %v6283_v54 }
0x15d9   :  { %v6607_v9 = vpop.eup %6606  ;;  %3851 = vmatpush.msra.mxu3 %v6280_v2 }
0x15da   :  { %v3304_v40 = vpop.xlane.xlu1 %3303  ;;  %v3480_v55 = vmul.f32 %v6607_v9, %v8372_v45  ;;  %v5957_v9 = vld [vmem:[%s6884_s30 + $0x50] sm:$0xff] }
0x15db   :  { %6608 = vrcp.f32 %v3304_v40  ;;  %3852 = vmatpush.msra.mxu3 %v6284_v49  ;;  %v5958_v49 = vld [vmem:[%s6884_s30 + $0x58] sm:$0xff]  ;;  %v5956_v40 = vld [vmem:[%s6884_s30 + $0x48] sm:$0xff] }
0x15dc   :  { %5986 = vmatmul.msk.f32.gmra.mxu3 %vm214_vm0, %v3480_v55  ;;  %3954 = vmatpush.msrb.mxu2 %v5958_v49 }
0x15dd   :  { %3638 = vadd.xlane.f32.xlu0 %v3637_v62  ;;  %3853 = vmatpush.msra.mxu3 %v6285_v34  ;;  %v5955_v34 = vld [vmem:[%s6884_s30 + $0x40] sm:$0xff] }
0x15de   :  { %3955 = vmatpush.msrb.mxu2 %v5957_v9 }
0x15e0   :  { %3956 = vmatpush.msrb.mxu2 %v5956_v40 }
0x15e1   :  { %v6609_v39 = vpop.eup %6608 }
0x15e2   :  { %v3307_v0 = vpop.xlane.xlu1 %3306  ;;  %v3314_v53 = vmul.f32 %v6609_v39, %v8377_v56  ;;  %3957 = vmatpush.msrb.mxu2 %v5955_v34  ;;  %v4083_v34 = vld [vmem:[%s9227_s28 + $0x10] sm:$0xff] }
0x15e3   :  { %6610 = vrcp.f32 %v3307_v0 }
0x15e4   :  { %5974 = vmatmul.msk.f32.gmra.mxu0 %vm214_vm0, %v3314_v53 }
0x15e9   :  { %v6611_v3 = vpop.eup %6610 }
0x15ea   :  { %v3315_v45 = vmul.f32 %v6611_v3, %v8384_v14  ;;  %v3630_v52 = vpop.xlane.xlu1 %3629 }
0x15ec   :  { %5975 = vmatmul.msk.f32.gmra.mxu0 %vm214_vm0, %v3315_v45 }
0x1602   :  { %v3473_v28 = vpop.xlane.xlu0 %3472  ;;  %v6288_v18 = vpop.permute.xlu1 %6287 }
0x1603   :  { %6612 = vrcp.f32 %v3473_v28  ;;  %v6289_v26 = vunpack.i.l.bf16 %v6288_v18  ;;  %v6290_v19 = vunpack.i.h.bf16 %v6288_v18 }
0x1605   :  { %3684 = vmatpush.msrb.mxu0 %v6289_v26 }
0x1607   :  { %3685 = vmatpush.msrb.mxu0 %v6290_v19 }
0x1609   :  { %v6613_v61 = vpop.eup %6612 }
0x160a   :  { %v3796_v63 = vpop.xlane.xlu0 %3795  ;;  %v3481_v56 = vmul.f32 %v6613_v61, %v8397_v10 }
0x160b   :  { %6614 = vrcp.f32 %v3796_v63 }
0x160c   :  { %5987 = vmatmul.msk.f32.gmra.mxu3 %vm214_vm0, %v3481_v56 }
0x160d   :  { %v3799_v44 = vpop.xlane.xlu2 %3798 }
0x160e   :  { %6616 = vrcp.f32 %v3799_v44 }
0x160f   :  { %6618 = vrcp.f32 %v3630_v52 }
0x1611   :  { %v6615_v58 = vpop.eup %6614 }
0x1612   :  { %v3810_v14 = vmul.f32 %v6615_v58, %v8404_v29 }
0x1614   :  { %6008 = vmatmul.msk.f32.vlgmr.msra.gmra.mxu3 %vm214_vm0, %v3810_v14  ;;  %v6617_v57 = vpop.eup %6616 }
0x1615   :  { %v3811_v30 = vmul.f32 %v6617_v57, %v8406_v22  ;;  %v6619_v1 = vpop.eup %6618  ;;  %v3636_v12 = vpop.xlane.xlu2 %3635 }
0x1616   :  { %v3644_v42 = vmul.f32 %v6619_v1, %v8390_v43 }
0x161c   :  { %6009 = vmatmul.msk.f32.gmra.mxu3 %vm214_vm0, %v3811_v30 }
0x161d   :  { %v6293_v35 = vpop.permute.xlu0 %6292  ;;  %v3805_v8 = vpop.xlane.xlu2 %3804 }
0x161e   :  { %v6294_v47 = vunpack.i.l.bf16 %v6293_v35  ;;  %v6295_v10 = vunpack.i.h.bf16 %v6293_v35 }
0x1620   :  { %3686 = vmatpush.msrb.mxu0 %v6294_v47 }
0x1622   :  { %3687 = vmatpush.msrb.mxu0 %v6295_v10 }
0x1623   :  { %5996 = vmatmul.msk.f32.vlgmr.msrb.gmra.mxu0 %vm214_vm0, %v3644_v42 }
0x162d   :  { %v3802_v29 = vpop.xlane.xlu1 %3801 }
0x162e   :  { %6620 = vrcp.f32 %v3802_v29 }
0x162f   :  { %6622 = vrcp.f32 %v3805_v8 }
0x1634   :  { %v6621_v59 = vpop.eup %6620 }
0x1635   :  { %v3812_v22 = vmul.f32 %v6621_v59, %v8424_v41  ;;  %v6623_v20 = vpop.eup %6622 }
0x1636   :  { %v3813_v33 = vmul.f32 %v6623_v20, %v8417_v25 }
0x1637   :  { %6010 = vmatmul.msk.f32.gmra.mxu3 %vm214_vm0, %v3812_v22 }
0x163f   :  { %6011 = vmatmul.msk.f32.gmra.mxu3 %vm214_vm0, %v3813_v33 }
0x1648   :  { %v3633_v51 = vpop.xlane.xlu0 %3632 }
0x1649   :  { %6624 = vrcp.f32 %v3633_v51 }
0x164a   :  { %6626 = vrcp.f32 %v3636_v12  ;;  %v6361_v12 = vld [vmem:[%s6889_s6 + $0x2] ss:$0 sm:$0xff] }
0x164b   :  { %v3357_v16 = vpop.f32.mrf.mxu0 }
0x164f   :  { %v6625_v43 = vpop.eup %6624  ;;  %v3523_v21 = vpop.f32.mrf.mxu3 }
0x1650   :  { %3871 = vrot.lane.b32.xlu1 %v3523_v21, %s9220_s22  ;;  %v3645_v32 = vmul.f32 %v6625_v43, %v8434_v11  ;;  %v3639_v5 = vpop.xlane.xlu0 %3638  ;;  %v6627_v41 = vpop.eup %6626 }
0x1651   :  { %6628 = vrcp.f32 %v3639_v5  ;;  %v3646_v50 = vmul.f32 %v6627_v41, %v8413_v37 }
0x1652   :  { %5997 = vmatmul.msk.f32.gmra.mxu0 %vm214_vm0, %v3645_v32 }
0x1653   :  { %v3360_v60 = vpop.f32.mrf.mxu0 }
0x1657   :  { %v6629_v25 = vpop.eup %6628  ;;  %v3526_v13 = vpop.f32.mrf.mxu3 }
0x1658   :  { %v3647_v17 = vmul.f32 %v6629_v25, %v8442_v7 }
0x165a   :  { %5998 = vmatmul.msk.f32.gmra.mxu0 %vm214_vm0, %v3646_v50 }
0x165f   :  { %v3529_v4 = vpop.f32.mrf.mxu3 }
0x1661   :  { %v3363_v36 = vpop.f32.mrf.mxu0 }
0x1662   :  { %5999 = vmatmul.msk.f32.gmra.mxu0 %vm214_vm0, %v3647_v17 }
0x1669   :  { %v3366_v48 = vpop.f32.mrf.mxu0 }
0x168f   :  { %v3532_v11 = vpop.f32.mrf.mxu3 }
0x1697   :  { %v3855_v15 = vpop.f32.mrf.mxu3 }
0x1698   :  { %3903 = vrot.lane.b32.xlu0 %v3855_v15, %s9222_s18 }
0x169f   :  { %v3858_v6 = vpop.f32.mrf.mxu3 }
0x16a0   :  { %v3689_v37 = vpop.f32.mrf.mxu0  ;;  %3873 = vrot.lane.b32.xlu0 %v3526_v13, %s9220_s22  ;;  %3905 = vrot.lane.b32.xlu1 %v3858_v6, %s9222_s18 }
0x16a1   :  { %3887 = vrot.lane.b32.xlu2 %v3689_v37, %s9221_s15 }
0x16a8   :  { %3875 = vrot.lane.b32.xlu0 %v3529_v4, %s9220_s22 }
0x16b0   :  { %3877 = vrot.lane.b32.xlu0 %v3532_v11, %s9220_s22 }
0x16ba   :  { %v3861_v24 = vpop.f32.mrf.mxu3 }
0x16bb   :  { %3907 = vrot.lane.b32.xlu1 %v3861_v24, %s9222_s18 }
0x16c2   :  { %v3864_v2 = vpop.f32.mrf.mxu3  ;;  %v3872_v62 = vpop.permute.xlu1 %3871 }
0x16c3   :  { %3909 = vrot.lane.b32.xlu1 %v3864_v2, %s9222_s18  ;;  %v3915_v0 = vsel %vm450_vm6, %v3357_v16, %v3872_v62  ;;  %v4082_v62 = vld [vmem:[%s9227_s28 + $0x8] sm:$0xff] }
0x16cf   :  { %v3692_v54 = vpop.f32.mrf.mxu0 }
0x16d0   :  { %3889 = vrot.lane.b32.xlu2 %v3692_v54, %s9221_s15 }
0x16d7   :  { %v3695_v7 = vpop.f32.mrf.mxu0 }
0x16d8   :  { %3891 = vrot.lane.b32.xlu2 %v3695_v7, %s9221_s15 }
0x16df   :  { %v3698_v55 = vpop.f32.mrf.mxu0 }
0x16e0   :  { %3893 = vrot.lane.b32.xlu2 %v3698_v55, %s9221_s15  ;;  %v4084_v55 = vld [vmem:[%s9227_s28 + $0x18] sm:$0xff] }
0x16e1   :  { %4130 = vmatpush.msra.mxu0 %v4084_v55  ;;  %v4101_v55 = vld [vmem:[%s9228_s1 + $0x78] sm:$0xff] }
0x16e2   :  { %4326 = vmatpush.msra.mxu1 %v4101_v55 }
0x16e3   :  { %4131 = vmatpush.msra.mxu0 %v4083_v34  ;;  %v4100_v34 = vld [vmem:[%s9228_s1 + $0x70] sm:$0xff] }
0x16e4   :  { %4327 = vmatpush.msra.mxu1 %v4100_v34 }
0x16e5   :  { %4132 = vmatpush.msra.mxu0 %v4082_v62  ;;  %v4099_v62 = vld [vmem:[%s9228_s1 + $0x68] sm:$0xff] }
0x16e6   :  { %4328 = vmatpush.msra.mxu1 %v4099_v62 }
0x16fb   :  { %v3888_v39 = vpop.permute.xlu2 %3887 }
0x16fc   :  { %v3919_v53 = vsel %vm1151_vm7, %v3915_v0, %v3888_v39  ;;  %v4081_v39 = vld [vmem:[%s9227_s28] sm:$0xff] }
0x16fd   :  { %4133 = vmatpush.msra.mxu0 %v4081_v39  ;;  %v8568_v39 = vld [vmem:[%s9229_s10] ss:$0 sm:$0xff] }
0x170a   :  { %v3904_v3 = vpop.permute.xlu0 %3903 }
0x170b   :  { %v3923_v45 = vsel %vm1156_vm8, %v3919_v53, %v3904_v3 }
0x170c   :  { %6012 = vmatmul.msk.f32.vlgmr.msrb.gmra.mxu2 %vm214_vm0, %v3923_v45 }
0x1712   :  { %v3874_v52 = vpop.permute.xlu0 %3873  ;;  %v3906_v28 = vpop.permute.xlu1 %3905 }
0x1713   :  { %v3916_v18 = vsel %vm450_vm6, %v3360_v60, %v3874_v52 }
0x171a   :  { %v3876_v63 = vpop.permute.xlu0 %3875 }
0x171b   :  { %v3917_v44 = vsel %vm450_vm6, %v3363_v36, %v3876_v63 }
0x1722   :  { %v3878_v30 = vpop.permute.xlu0 %3877 }
0x1723   :  { %v3918_v35 = vsel %vm450_vm6, %v3366_v48, %v3878_v30 }
0x172a   :  { %v3890_v26 = vpop.permute.xlu2 %3889 }
0x172b   :  { %v3920_v19 = vsel %vm1151_vm7, %v3916_v18, %v3890_v26 }
0x172c   :  { %v3924_v61 = vsel %vm1156_vm8, %v3920_v19, %v3906_v28 }
0x172d   :  { %6013 = vmatmul.msk.f32.gmra.mxu2 %vm214_vm0, %v3924_v61  ;;  %v3908_v56 = vpop.permute.xlu1 %3907  ;;  %v6362_v61 = vld [vmem:[%s9211_s2 + $0x2] ss:$0 sm:$0xff] }
0x1732   :  { %v3892_v58 = vpop.permute.xlu2 %3891 }
0x1733   :  { %v3921_v14 = vsel %vm1151_vm7, %v3917_v44, %v3892_v58 }
0x1734   :  { %v3925_v57 = vsel %vm1156_vm8, %v3921_v14, %v3908_v56  ;;  %v6363_v56 = vld [vmem:[%s9212_s7 + $0x2] ss:$0 sm:$0xff] }
0x1735   :  { %6014 = vmatmul.msk.f32.gmra.mxu2 %vm214_vm0, %v3925_v57  ;;  %v3910_v47 = vpop.permute.xlu1 %3909 }
0x173a   :  { %v3894_v1 = vpop.permute.xlu2 %3893 }
0x173b   :  { %v3922_v10 = vsel %vm1151_vm7, %v3918_v35, %v3894_v1 }
0x173c   :  { %v3926_v42 = vsel %vm1156_vm8, %v3922_v10, %v3910_v47 }
0x173d   :  { %6015 = vmatmul.msk.f32.gmra.mxu2 %vm214_vm0, %v3926_v42 }
0x178f   :  { %v3959_v29 = vpop.f32.mrf.mxu2 }
0x1790   :  { %v3960_v8 = vadd.f32 %v6361_v12, %v3959_v29 }
0x1792   :  { %v8504_v59 = vadd.f32 %v3960_v8, %v8131_v27 }
0x1794   :  { %v3979_v22 = vsel %vm214_vm0, %v8504_v59, 0.0 }
0x1795   :  { %3980 = vadd.xlane.f32.xlu0 %v3979_v22 }
0x17b0   :  { %v3962_v20 = vpop.f32.mrf.mxu2 }
0x17b1   :  { %v3963_v33 = vadd.f32 %v6361_v12, %v3962_v20 }
0x17b3   :  { %v8509_v51 = vadd.f32 %v3963_v33, %v8100_v31 }
0x17b5   :  { %v3982_v43 = vsel %vm214_vm0, %v8509_v51, 0.0 }
0x17b6   :  { %3983 = vadd.xlane.f32.xlu2 %v3982_v43 }
0x17b8   :  { %v3965_v21 = vpop.f32.mrf.mxu2 }
0x17b9   :  { %v3966_v32 = vadd.f32 %v6361_v12, %v3965_v21 }
0x17bb   :  { %v8514_v5 = vadd.f32 %v3966_v32, %v8143_v46 }
0x17bd   :  { %v3985_v27 = vsel %vm214_vm0, %v8514_v5, 0.0 }
0x17be   :  { %3986 = vadd.xlane.f32.xlu1 %v3985_v27 }
0x17c0   :  { %v3968_v41 = vpop.f32.mrf.mxu2 }
0x17c1   :  { %v3969_v50 = vadd.f32 %v6361_v12, %v3968_v41 }
0x17c3   :  { %v8519_v25 = vadd.f32 %v3969_v50, %v8137_v23 }
0x17c5   :  { %v3988_v31 = vsel %vm214_vm0, %v8519_v25, 0.0 }
0x17c6   :  { %3989 = vadd.xlane.f32.xlu2 %v3988_v31 }
0x1808   :  { %v3981_v17 = vpop.xlane.xlu0 %3980 }
0x1809   :  { %v3991_v16 = vmul.f32 %v3981_v17, %v7016_v38 }
0x180b   :  { %v3995_v13 = vsub.f32 %v8504_v59, %v3991_v16 }
0x180d   :  { %v3999_v46 = vmul.f32 %v3995_v13, %v3995_v13 }
0x180f   :  { %v4003_v60 = vsel %vm214_vm0, %v3999_v46, 0.0 }
0x1810   :  { %4004 = vadd.xlane.f32.xlu0 %v4003_v60 }
0x1829   :  { %v3984_v4 = vpop.xlane.xlu2 %3983 }
0x182a   :  { %v3992_v36 = vmul.f32 %v3984_v4, %v7016_v38 }
0x182c   :  { %v8528_v11 = vsub.f32 %v8509_v51, %v3992_v36 }
0x182e   :  { %v4000_v23 = vmul.f32 %v8528_v11, %v8528_v11 }
0x1830   :  { %v4006_v15 = vsel %vm214_vm0, %v4000_v23, 0.0 }
0x1831   :  { %4007 = vadd.xlane.f32.xlu1 %v4006_v15  ;;  %v3987_v48 = vpop.xlane.xlu1 %3986 }
0x1832   :  { %v3993_v6 = vmul.f32 %v3987_v48, %v7016_v38 }
0x1834   :  { %v8535_v37 = vsub.f32 %v8514_v5, %v3993_v6 }
0x1836   :  { %v4001_v24 = vmul.f32 %v8535_v37, %v8535_v37 }
0x1838   :  { %v4009_v2 = vsel %vm214_vm0, %v4001_v24, 0.0 }
0x1839   :  { %v3990_v54 = vpop.xlane.xlu2 %3989  ;;  %4010 = vadd.xlane.f32.xlu2 %v4009_v2 }
0x183a   :  { %v3994_v7 = vmul.f32 %v3990_v54, %v7016_v38 }
0x183c   :  { %v8542_v49 = vsub.f32 %v8519_v25, %v3994_v7 }
0x183e   :  { %v4002_v9 = vmul.f32 %v8542_v49, %v8542_v49 }
0x1840   :  { %v4012_v40 = vsel %vm214_vm0, %v4002_v9, 0.0 }
0x1841   :  { %4013 = vadd.xlane.f32.xlu0 %v4012_v40 }
0x1883   :  { %v4005_v0 = vpop.xlane.xlu0 %4004 }
0x1884   :  { %v4015_v53 = vmul.f32 %v4005_v0, %v7016_v38  ;;  %v4098_v0 = vld [vmem:[%s9228_s1 + $0x60] sm:$0xff] }
0x1885   :  { %4329 = vmatpush.msra.mxu1 %v4098_v0 }
0x1886   :  { %v4019_v3 = vadd.f32 1e-06, %v4015_v53 }
0x1888   :  { %6630 = vrsqrt.f32 %v4019_v3  ;;  %vm4029_vm3 = vweird.f32 %v4019_v3 }
0x188e   :  { %v6631_v45 = vpop.eup %6630 }
0x188f   :  { %v4024_v52 = vmul.f32 %v6631_v45, %v4019_v3  ;;  %vm4030_vm2 = vweird.f32 %v6631_v45 }
0x1890   :  { %vm4031_vm4 = vmor %vm4029_vm3, %vm4030_vm2 }
0x1891   :  { %v4025_v28 = vmul.f32 %v6631_v45, %v4024_v52 }
0x1893   :  { %v4026_v18 = vmul.f32 0.5, %v4025_v28  ;;  %v4095_v28 = vld [vmem:[%s9228_s1 + $0x48] sm:$0xff] }
0x1895   :  { %v4027_v26 = vsub.f32 1.5, %v4026_v18 }
0x1897   :  { %v4028_v19 = vmul.f32 %v6631_v45, %v4027_v26  ;;  %v4094_v26 = vld [vmem:[%s9228_s1 + $0x40] sm:$0xff] }
0x1899   :  { %v4032_v63 = vsel %vm4031_vm4, %v6631_v45, %v4028_v19  ;;  %v4096_v45 = vld [vmem:[%s9228_s1 + $0x50] sm:$0xff] }
0x189a   :  { %v4063_v44 = vmul.f32 %v4032_v63, %v3995_v13 }
0x189c   :  { %v4070_v58 = vmul.f32 %v6362_v61, %v4063_v44  ;;  %v4092_v44 = vld [vmem:[%s9228_s1 + $0x30] sm:$0xff] }
0x189e   :  { %v4077_v14 = vadd.f32 %v6363_v56, %v4070_v58 }
0x18a0   :  { %6018 = vmatmul.msk.f32.vlgmr.msra.gmra.mxu0 %vm214_vm0, %v4077_v14 }
0x18a4   :  { %v4008_v57 = vpop.xlane.xlu1 %4007 }
0x18a5   :  { %v4016_v30 = vmul.f32 %v4008_v57, %v7016_v38  ;;  %v4091_v57 = vld [vmem:[%s9228_s1 + $0x28] sm:$0xff] }
0x18a7   :  { %v4020_v35 = vadd.f32 1e-06, %v4016_v30 }
0x18a9   :  { %6632 = vrsqrt.f32 %v4020_v35  ;;  %vm4039_vm9 = vweird.f32 %v4020_v35 }
0x18ac   :  { %v4011_v1 = vpop.xlane.xlu2 %4010 }
0x18ad   :  { %v4017_v47 = vmul.f32 %v4011_v1, %v7016_v38  ;;  %v4090_v1 = vld [vmem:[%s9228_s1 + $0x20] sm:$0xff] }
0x18af   :  { %v6633_v10 = vpop.eup %6632  ;;  %v4021_v42 = vadd.f32 1e-06, %v4017_v47 }
0x18b0   :  { %v4034_v12 = vmul.f32 %v6633_v10, %v4020_v35  ;;  %vm4040_vm5 = vweird.f32 %v6633_v10 }
0x18b1   :  { %6634 = vrsqrt.f32 %v4021_v42  ;;  %vm4041_vm10 = vmor %vm4039_vm9, %vm4040_vm5  ;;  %vm4049_vm12 = vweird.f32 %v4021_v42 }
0x18b2   :  { %v4035_v29 = vmul.f32 %v6633_v10, %v4034_v12 }
0x18b4   :  { %v4036_v8 = vmul.f32 0.5, %v4035_v29  ;;  %v4014_v22 = vpop.xlane.xlu0 %4013 }
0x18b5   :  { %v4018_v20 = vmul.f32 %v4014_v22, %v7016_v38 }
0x18b6   :  { %v4037_v33 = vsub.f32 1.5, %v4036_v8 }
0x18b7   :  { %v6635_v43 = vpop.eup %6634  ;;  %v4022_v21 = vadd.f32 1e-06, %v4018_v20  ;;  %v4088_v20 = vld [vmem:[%s9228_s1 + $0x10] sm:$0xff] }
0x18b8   :  { %v4038_v32 = vmul.f32 %v6633_v10, %v4037_v33  ;;  %v4044_v27 = vmul.f32 %v6635_v43, %v4021_v42  ;;  %vm4050_vm11 = vweird.f32 %v6635_v43  ;;  %v4089_v42 = vld [vmem:[%s9228_s1 + $0x18] sm:$0xff] }
0x18b9   :  { %6636 = vrsqrt.f32 %v4022_v21  ;;  %vm4051_vm13 = vmor %vm4049_vm12, %vm4050_vm11  ;;  %vm4059_vm15 = vweird.f32 %v4022_v21 }
0x18ba   :  { %v4042_v41 = vsel %vm4041_vm10, %v6633_v10, %v4038_v32  ;;  %v4045_v50 = vmul.f32 %v6635_v43, %v4044_v27  ;;  %v4086_v27 = vld [vmem:[%s9228_s1] sm:$0xff] }
0x18bb   :  { %v4064_v31 = vmul.f32 %v4042_v41, %v8528_v11 }
0x18bc   :  { %v4046_v17 = vmul.f32 0.5, %v4045_v50 }
0x18bd   :  { %v4071_v16 = vmul.f32 %v6362_v61, %v4064_v31 }
0x18be   :  { %v4047_v13 = vsub.f32 1.5, %v4046_v17 }
0x18bf   :  { %v6637_v46 = vpop.eup %6636  ;;  %v4078_v60 = vadd.f32 %v6363_v56, %v4071_v16 }
0x18c0   :  { %v4048_v4 = vmul.f32 %v6635_v43, %v4047_v13  ;;  %v4054_v36 = vmul.f32 %v6637_v46, %v4022_v21  ;;  %vm4060_vm14 = vweird.f32 %v6637_v46  ;;  %v4087_v21 = vld [vmem:[%s9228_s1 + $0x8] sm:$0xff] }
0x18c1   :  { %6019 = vmatmul.msk.f32.gmra.mxu0 %vm214_vm0, %v4078_v60  ;;  %vm4061_vm1 = vmor %vm4059_vm15, %vm4060_vm14 }
0x18c2   :  { %v4052_v23 = vsel %vm4051_vm13, %v6635_v43, %v4048_v4  ;;  %v4055_v15 = vmul.f32 %v6637_v46, %v4054_v36 }
0x18c3   :  { %v4065_v48 = vmul.f32 %v4052_v23, %v8535_v37 }
0x18c4   :  { %v4056_v6 = vmul.f32 0.5, %v4055_v15 }
0x18c5   :  { %v4072_v11 = vmul.f32 %v6362_v61, %v4065_v48 }
0x18c6   :  { %v4057_v24 = vsub.f32 1.5, %v4056_v6 }
0x18c7   :  { %v4079_v2 = vadd.f32 %v6363_v56, %v4072_v11 }
0x18c8   :  { %v4058_v54 = vmul.f32 %v6637_v46, %v4057_v24 }
0x18c9   :  { %6020 = vmatmul.msk.f32.gmra.mxu0 %vm214_vm0, %v4079_v2 }
0x18ca   :  { %v4062_v7 = vsel %vm4061_vm1, %v6637_v46, %v4058_v54 }
0x18cb   :  { %v4066_v9 = vmul.f32 %v4062_v7, %v8542_v49  ;;  %v4097_v49 = vld [vmem:[%s9228_s1 + $0x58] sm:$0xff] }
0x18cc   :  { %4330 = vmatpush.msra.mxu1 %v4097_v49 }
0x18cd   :  { %v4073_v40 = vmul.f32 %v6362_v61, %v4066_v9  ;;  %v4093_v61 = vld [vmem:[%s9228_s1 + $0x38] sm:$0xff] }
0x18ce   :  { %4331 = vmatpush.msra.mxu1 %v4096_v45 }
0x18cf   :  { %v4080_v37 = vadd.f32 %v6363_v56, %v4073_v40 }
0x18d0   :  { %4332 = vmatpush.msra.mxu1 %v4095_v28 }
0x18d1   :  { %6021 = vmatmul.msk.f32.gmra.mxu0 %vm214_vm0, %v4080_v37 }
0x18d2   :  { %4333 = vmatpush.msra.mxu1 %v4094_v26 }
0x18d4   :  { %4334 = vmatpush.msra.mxu1 %v4093_v61 }
0x18d6   :  { %4335 = vmatpush.msra.mxu1 %v4092_v44 }
0x18d8   :  { %4336 = vmatpush.msra.mxu1 %v4091_v57 }
0x18da   :  { %4337 = vmatpush.msra.mxu1 %v4090_v1 }
0x18dc   :  { %4338 = vmatpush.msra.mxu1 %v4089_v42 }
0x18de   :  { %4339 = vmatpush.msra.mxu1 %v4088_v20 }
0x18e0   :  { %4340 = vmatpush.msra.mxu1 %v4087_v21 }
0x18e2   :  { %4341 = vmatpush.msra.mxu1 %v4086_v27 }
0x191d   :  { %v4135_v53 = vpop.f32.mrf.mxu0 }
0x191e   :  { %v8573_v3 = vadd.f32 %v8568_v39, %v4135_v53 }
0x1920   :  { %v8577_v52 = vmul.f32 0.70710677, %v8573_v3  ;;  %v4147_v44 = vmul.f32 0.5, %v8573_v3 }
0x1922   :  { %v4155_v18 = vmul.f32 %v8577_v52, %v8577_v52 }
0x1924   :  { %v4156_v19 = vmin.f32 %v4155_v18, 16.0 }
0x1926   :  { %v4157_v63 = vmul.f32 2.1237322e-06, %v4156_v19  ;;  %v4168_v56 = vmul.f32 3.8918573e-05, %v4156_v19 }
0x1928   :  { %v4158_v58 = vadd.f32 0.00028619796, %v4157_v63  ;;  %v4169_v14 = vadd.f32 0.001143296, %v4168_v56 }
0x192a   :  { %v4159_v30 = vmul.f32 %v4158_v58, %v4156_v19  ;;  %v4170_v35 = vmul.f32 %v4169_v14, %v4156_v19 }
0x192c   :  { %v4160_v47 = vadd.f32 0.0036580483, %v4159_v30  ;;  %v4171_v10 = vadd.f32 0.014752088, %v4170_v35 }
0x192e   :  { %v4172_v12 = vmul.f32 %v4171_v10, %v4156_v19  ;;  %v4161_v29 = vmul.f32 %v4160_v47, %v4156_v19 }
0x1930   :  { %v4173_v8 = vadd.f32 0.112945676, %v4172_v12  ;;  %v4162_v33 = vadd.f32 0.05243302, %v4161_v29 }
0x1932   :  { %v4174_v22 = vmul.f32 %v4173_v8, %v4156_v19  ;;  %v4163_v41 = vmul.f32 %v4162_v33, %v4156_v19 }
0x1934   :  { %v4175_v43 = vadd.f32 0.4994258, %v4174_v22  ;;  %v4164_v31 = vadd.f32 0.18741608, %v4163_v41 }
0x1936   :  { %v4176_v32 = vmul.f32 %v4175_v43, %v4156_v19  ;;  %v4165_v46 = vmul.f32 %v4164_v31, %v4156_v19 }
0x1938   :  { %v4177_v50 = vadd.f32 1.0, %v4176_v32  ;;  %v4166_v15 = vadd.f32 1.1283791, %v4165_v46 }
0x193a   :  { %6638 = vrcp.f32 %v4177_v50  ;;  %v4189_v48 = vand.u32 2147483648, %v4177_v50  ;;  %v4187_v11 = vand.u32 2147483647, %v4177_v50  ;;  %vm4183_vm3 = vweird.f32 %v4177_v50 }
0x193b   :  { %v4167_v37 = vmul.f32 %v4166_v15, %v8577_v52 }
0x193c   :  { %v4190_v55 = vor.u32 1.1754944e-38, %v4189_v48  ;;  %vm4188_vm5 = vcmp.eq.f32.partialorder %v4187_v11, 8.507059e+37 }
0x193e   :  { %v4138_v17 = vpop.f32.mrf.mxu0 }
0x193f   :  { %v8592_v16 = vadd.f32 %v8568_v39, %v4138_v17 }
0x1940   :  { %v6639_v13 = vpop.eup %6638 }
0x1941   :  { %v4179_v60 = vmul.f32 %v6639_v13, %v4177_v50  ;;  %v8595_v4 = vmul.f32 0.70710677, %v8592_v16  ;;  %vm4184_vm2 = vweird.f32 %v6639_v13 }
0x1942   :  { %vm4185_vm4 = vmor %vm4183_vm3, %vm4184_vm2 }
0x1943   :  { %v4180_v36 = vsub.f32 1.0, %v4179_v60  ;;  %v4195_v23 = vmul.f32 %v8595_v4, %v8595_v4 }
0x1945   :  { %v4181_v6 = vmul.f32 %v6639_v13, %v4180_v36  ;;  %v8599_v24 = vmin.f32 %v4195_v23, 16.0 }
0x1946   :  { %v4141_v2 = vpop.f32.mrf.mxu0 }
0x1947   :  { %v4182_v54 = vadd.f32 %v6639_v13, %v4181_v6  ;;  %v4197_v7 = vmul.f32 2.1237322e-06, %v8599_v24  ;;  %v4208_v9 = vmul.f32 3.8918573e-05, %v8599_v24  ;;  %v8604_v40 = vadd.f32 %v8568_v39, %v4141_v2 }
0x1949   :  { %v4186_v34 = vsel %vm4185_vm4, %v6639_v13, %v4182_v54  ;;  %v4198_v62 = vadd.f32 0.00028619796, %v4197_v7  ;;  %v4209_v0 = vadd.f32 0.001143296, %v4208_v9  ;;  %v8608_v49 = vmul.f32 0.70710677, %v8604_v40 }
0x194a   :  { %v4191_v53 = vsel %vm4188_vm5, %v4190_v55, %v4186_v34 }
0x194b   :  { %v4192_v45 = vmul.f32 %v4191_v53, %v4167_v37  ;;  %v4199_v28 = vmul.f32 %v4198_v62, %v8599_v24  ;;  %v4210_v18 = vmul.f32 %v4209_v0, %v8599_v24  ;;  %v4235_v26 = vmul.f32 %v8608_v49, %v8608_v49 }
0x194d   :  { %v6022_v19 = vclamps-f32 %v4192_v45, 1.0  ;;  %v4200_v52 = vadd.f32 0.0036580483, %v4199_v28  ;;  %v4211_v61 = vadd.f32 0.014752088, %v4210_v18  ;;  %v8614_v63 = vmin.f32 %v4235_v26, 16.0 }
0x194e   :  { %v4144_v56 = vpop.f32.mrf.mxu0 }
0x194f   :  { %v4315_v58 = vadd.f32 1.0, %v6022_v19  ;;  %v4212_v14 = vmul.f32 %v4211_v61, %v8599_v24  ;;  %v8619_v57 = vadd.f32 %v8568_v39, %v4144_v56  ;;  %v4237_v30 = vmul.f32 2.1237322e-06, %v8614_v63 }
0x1950   :  { %v4248_v35 = vmul.f32 3.8918573e-05, %v8614_v63  ;;  %v4201_v47 = vmul.f32 %v4200_v52, %v8599_v24 }
0x1951   :  { %v4319_v1 = vmul.f32 %v4315_v58, %v4147_v44  ;;  %v4213_v10 = vadd.f32 0.112945676, %v4212_v14  ;;  %v4238_v42 = vadd.f32 0.00028619796, %v4237_v30  ;;  %v8625_v29 = vmul.f32 0.70710677, %v8619_v57 }
0x1952   :  { %v4249_v12 = vadd.f32 0.001143296, %v4248_v35  ;;  %v4202_v20 = vadd.f32 0.05243302, %v4201_v47 }
0x1953   :  { %v4214_v3 = vmul.f32 %v4213_v10, %v8599_v24  ;;  %4342 = vmatmul.f32.vlgmr.msra.gmra.mxu1 %v4319_v1  ;;  %v4239_v8 = vmul.f32 %v4238_v42, %v8614_v63  ;;  %v4275_v22 = vmul.f32 %v8625_v29, %v8625_v29 }
0x1954   :  { %v4250_v39 = vmul.f32 %v4249_v12, %v8614_v63  ;;  %v4203_v31 = vmul.f32 %v4202_v20, %v8599_v24 }
0x1955   :  { %v4215_v33 = vadd.f32 0.4994258, %v4214_v3  ;;  %v8632_v21 = vmin.f32 %v4275_v22, 16.0  ;;  %v4240_v27 = vadd.f32 0.0036580483, %v4239_v8 }
0x1956   :  { %v4251_v43 = vadd.f32 0.014752088, %v4250_v39  ;;  %v4204_v15 = vadd.f32 0.18741608, %v4203_v31 }
0x1957   :  { %v4216_v32 = vmul.f32 %v4215_v33, %v8599_v24  ;;  %v4277_v50 = vmul.f32 2.1237322e-06, %v8632_v21  ;;  %v4288_v13 = vmul.f32 3.8918573e-05, %v8632_v21  ;;  %v4241_v36 = vmul.f32 %v4240_v27, %v8614_v63 }
0x1958   :  { %v4252_v41 = vmul.f32 %v4251_v43, %v8614_v63  ;;  %v4205_v37 = vmul.f32 %v4204_v15, %v8599_v24 }
0x1959   :  { %v4217_v17 = vadd.f32 1.0, %v4216_v32  ;;  %v4278_v60 = vadd.f32 0.00028619796, %v4277_v50  ;;  %v4289_v48 = vadd.f32 0.001143296, %v4288_v13  ;;  %v4148_v50 = vmul.f32 0.5, %v8592_v16 }
0x195a   :  { %v4253_v46 = vadd.f32 0.112945676, %v4252_v41  ;;  %v4242_v2 = vadd.f32 0.05243302, %v4241_v36  ;;  %v4206_v18 = vadd.f32 1.1283791, %v4205_v37 }
0x195b   :  { %6640 = vrcp.f32 %v4217_v17  ;;  %v4279_v11 = vmul.f32 %v4278_v60, %v8632_v21  ;;  %v4290_v54 = vmul.f32 %v4289_v48, %v8632_v21  ;;  %v4229_v26 = vand.u32 2147483648, %v4217_v17 }
0x195c   :  { %v4254_v23 = vmul.f32 %v4253_v46, %v8614_v63  ;;  %v4243_v53 = vmul.f32 %v4242_v2, %v8614_v63  ;;  %v4227_v61 = vand.u32 2147483647, %v4217_v17  ;;  %vm4223_vm10 = vweird.f32 %v4217_v17 }
0x195d   :  { %v4291_v55 = vadd.f32 0.014752088, %v4290_v54  ;;  %v4280_v0 = vadd.f32 0.0036580483, %v4279_v11  ;;  %v4230_v14 = vor.u32 1.1754944e-38, %v4229_v26  ;;  %v4207_v1 = vmul.f32 %v4206_v18, %v8595_v4 }
0x195e   :  { %v4255_v6 = vadd.f32 0.4994258, %v4254_v23  ;;  %v4244_v44 = vadd.f32 0.18741608, %v4243_v53  ;;  %vm4228_vm12 = vcmp.eq.f32.partialorder %v4227_v61, 8.507059e+37  ;;  %v4149_v16 = vmul.f32 0.5, %v8604_v40 }
0x195f   :  { %v4292_v45 = vmul.f32 %v4291_v55, %v8632_v21  ;;  %v4281_v56 = vmul.f32 %v4280_v0, %v8632_v21  ;;  %v4150_v18 = vmul.f32 0.5, %v8619_v57 }
0x1960   :  { %v4256_v7 = vmul.f32 %v4255_v6, %v8614_v63  ;;  %v4245_v12 = vmul.f32 %v4244_v44, %v8614_v63 }
0x1961   :  { %v6641_v9 = vpop.eup %6640  ;;  %v4293_v19 = vadd.f32 0.112945676, %v4292_v45  ;;  %v4282_v10 = vadd.f32 0.05243302, %v4281_v56 }
0x1962   :  { %v4219_v34 = vmul.f32 %v6641_v9, %v4217_v17  ;;  %v4257_v62 = vadd.f32 1.0, %v4256_v7  ;;  %vm4224_vm9 = vweird.f32 %v6641_v9  ;;  %v4246_v27 = vadd.f32 1.1283791, %v4245_v12 }
0x1963   :  { %v4294_v24 = vmul.f32 %v4293_v19, %v8632_v21  ;;  %vm4225_vm11 = vmor %vm4223_vm10, %vm4224_vm9  ;;  %v4283_v33 = vmul.f32 %v4282_v10, %v8632_v21 }
0x1964   :  { %v4220_v28 = vsub.f32 1.0, %v4219_v34  ;;  %6642 = vrcp.f32 %v4257_v62  ;;  %v4269_v20 = vand.u32 2147483648, %v4257_v62  ;;  %v4267_v4 = vand.u32 2147483647, %v4257_v62 }
0x1965   :  { %v4295_v30 = vadd.f32 0.4994258, %v4294_v24  ;;  %vm4263_vm14 = vweird.f32 %v4257_v62  ;;  %v4284_v13 = vadd.f32 0.18741608, %v4283_v33  ;;  %v4247_v46 = vmul.f32 %v4246_v27, %v8608_v49 }
0x1966   :  { %v4221_v52 = vmul.f32 %v6641_v9, %v4220_v28  ;;  %v4270_v17 = vor.u32 1.1754944e-38, %v4269_v20  ;;  %vm4268_vm1 = vcmp.eq.f32.partialorder %v4267_v4, 8.507059e+37 }
0x1967   :  { %v4296_v39 = vmul.f32 %v4295_v30, %v8632_v21  ;;  %v4285_v6 = vmul.f32 %v4284_v13, %v8632_v21 }
0x1968   :  { %v4222_v58 = vadd.f32 %v6641_v9, %v4221_v52  ;;  %v6365_v52 = vld [vmem:[%s6959_s20] ss:$0 sm:$0xff] }
0x1969   :  { %v4297_v43 = vadd.f32 1.0, %v4296_v39 }
0x196a   :  { %v6643_v35 = vpop.eup %6642  ;;  %v4226_v47 = vsel %vm4225_vm11, %v6641_v9, %v4222_v58  ;;  %v4286_v9 = vadd.f32 1.1283791, %v4285_v6 }
0x196b   :  { %v4231_v42 = vsel %vm4228_vm12, %v4230_v14, %v4226_v47  ;;  %v4259_v3 = vmul.f32 %v6643_v35, %v4257_v62  ;;  %vm4264_vm13 = vweird.f32 %v6643_v35  ;;  %6644 = vrcp.f32 %v4297_v43 }
0x196c   :  { %v4232_v8 = vmul.f32 %v4231_v42, %v4207_v1  ;;  %vm4265_vm15 = vmor %vm4263_vm14, %vm4264_vm13  ;;  %v4309_v37 = vand.u32 2147483648, %v4297_v43  ;;  %v4307_v49 = vand.u32 2147483647, %v4297_v43  ;;  %vm4303_vm3 = vweird.f32 %v4297_v43 }
0x196d   :  { %v4260_v22 = vsub.f32 1.0, %v4259_v3  ;;  %v4287_v21 = vmul.f32 %v4286_v9, %v8625_v29 }
0x196e   :  { %v6023_v32 = vclamps-f32 %v4232_v8, 1.0  ;;  %v4310_v0 = vor.u32 1.1754944e-38, %v4309_v37  ;;  %vm4308_vm5 = vcmp.eq.f32.partialorder %v4307_v49, 8.507059e+37 }
0x196f   :  { %v4261_v41 = vmul.f32 %v6643_v35, %v4260_v22 }
0x1970   :  { %v4316_v63 = vadd.f32 1.0, %v6023_v32 }
0x1971   :  { %v4262_v31 = vadd.f32 %v6643_v35, %v4261_v41  ;;  %v6645_v48 = vpop.eup %6644 }
0x1972   :  { %v4320_v36 = vmul.f32 %v4316_v63, %v4148_v50  ;;  %v4299_v11 = vmul.f32 %v6645_v48, %v4297_v43  ;;  %vm4304_vm2 = vweird.f32 %v6645_v48 }
0x1973   :  { %v4266_v60 = vsel %vm4265_vm15, %v6643_v35, %v4262_v31  ;;  %vm4305_vm4 = vmor %vm4303_vm3, %vm4304_vm2 }
0x1974   :  { %v4271_v23 = vsel %vm4268_vm1, %v4270_v17, %v4266_v60  ;;  %4345 = vmatmul.f32.gmra.mxu1 %v4320_v36  ;;  %v4300_v54 = vsub.f32 1.0, %v4299_v11  ;;  %v6031_v60 = vld [vmem:[%s6874_s19 + $0x78] sm:$0xff]  ;;  %v6030_v36 = vld [vmem:[%s6874_s19 + $0x70] sm:$0xff] }
0x1975   :  { %v4272_v15 = vmul.f32 %v4271_v23, %v4247_v46  ;;  %4506 = vmatpush.msrb.mxu3 %v6031_v60  ;;  %v6029_v23 = vld [vmem:[%s6874_s19 + $0x68] sm:$0xff] }
0x1976   :  { %v4301_v55 = vmul.f32 %v6645_v48, %v4300_v54 }
0x1977   :  { %v6024_v2 = vclamps-f32 %v4272_v15, 1.0  ;;  %4507 = vmatpush.msrb.mxu3 %v6030_v36  ;;  %v6028_v15 = vld [vmem:[%s6874_s19 + $0x60] sm:$0xff]  ;;  %s5721_s19 = sshll.u32 %s6974_s29, 4  ;;  %s5722_s19 = int_to_ptr.hbm [resolvable:$true] %s5721_s19 }
0x1978   :  { %v4302_v62 = vadd.f32 %v6645_v48, %v4301_v55  ;;  %v6366_v55 = vld [vmem:[%s6864_s8 + $0x3] ss:$0 sm:$0xff]  ;;  %s6815_s8 = smov [#allocation2]  }
0x1979   :  { %v4317_v7 = vadd.f32 1.0, %v6024_v2  ;;  %4508 = vmatpush.msrb.mxu3 %v6029_v23  ;;  %v6368_v23 = vld [vmem:[%s6879_s24 + $0x3] ss:$0 sm:$0xff]  ;;  %s6756_s24 = sshra.s32 %s5722_s19, 4  ;;  %s6757_s24 = int_to_ptr.hbm [resolvable:$true] %s6756_s24 }
0x197a   :  { %v4306_v53 = vsel %vm4305_vm4, %v6645_v48, %v4302_v62  ;;  %p6761_p1 = scmp.lt.s32.totalorder %s6757_s24, %s6974_s29 }
0x197b   :  { %v4321_v34 = vmul.f32 %v4317_v7, %v4149_v16  ;;  %v4311_v45 = vsel %vm4308_vm5, %v4310_v0, %v4306_v53  ;;  %4509 = vmatpush.msrb.mxu3 %v6028_v15 }
0x197c   :  { %v4312_v40 = vmul.f32 %v4311_v45, %v4287_v21 }
0x197d   :  { %4348 = vmatmul.f32.gmra.mxu1 %v4321_v34  ;;  %v6367_v34 = vld [vmem:[%s6869_s14 + $0x3] ss:$0 sm:$0xff]  ;;  %s5719_s14 = sshll.u32 %s6815_s8, 4  ;;  %s5720_s14 = int_to_ptr.vmem [resolvable:$true] %s5719_s14 }
0x197e   :  { %v6025_v28 = vclamps-f32 %v4312_v40, 1.0 }
0x1980   :  { %v4318_v26 = vadd.f32 1.0, %v6025_v28 }
0x1982   :  { %v4322_v19 = vmul.f32 %v4318_v26, %v4150_v18 }
0x1985   :  { %4351 = vmatmul.f32.gmra.mxu1 %v4322_v19 }
0x19d0   :  { %v4343_v61 = vpop.f32.mrf.mxu1 }
0x19d1   :  { %v4344_v56 = vadd.f32 %v6365_v52, %v4343_v61 }
0x19d3   :  { %v8661_v44 = vadd.f32 %v4344_v56, %v8504_v59 }
0x19d5   :  { %v4377_v24 = vsel %vm214_vm0, %v8661_v44, 0.0 }
0x19d6   :  { %4378 = vadd.xlane.f32.xlu1 %v4377_v24 }
0x19f1   :  { %v4346_v29 = vpop.f32.mrf.mxu1 }
0x19f2   :  { %v4347_v58 = vadd.f32 %v6365_v52, %v4346_v29 }
0x19f4   :  { %v8666_v14 = vadd.f32 %v4347_v58, %v8509_v51 }
0x19f6   :  { %v4380_v57 = vsel %vm214_vm0, %v8666_v14, 0.0 }
0x19f7   :  { %4381 = vadd.xlane.f32.xlu2 %v4380_v57 }
0x19fa   :  { %v4349_v30 = vpop.f32.mrf.mxu1 }
0x19fb   :  { %v4350_v35 = vadd.f32 %v6365_v52, %v4349_v30 }
0x19fd   :  { %v8671_v1 = vadd.f32 %v4350_v35, %v8514_v5 }
0x19ff   :  { %v4383_v59 = vsel %vm214_vm0, %v8671_v1, 0.0 }
0x1a00   :  { %4384 = vadd.xlane.f32.xlu0 %v4383_v59 }
0x1a02   :  { %v4352_v47 = vpop.f32.mrf.mxu1 }
0x1a03   :  { %v4353_v10 = vadd.f32 %v6365_v52, %v4352_v47 }
0x1a05   :  { %v8676_v42 = vadd.f32 %v4353_v10, %v8519_v25 }
0x1a07   :  { %v4386_v51 = vsel %vm214_vm0, %v8676_v42, 0.0 }
0x1a08   :  { %4387 = vadd.xlane.f32.xlu1 %v4386_v51 }
0x1a49   :  { %v4379_v12 = vpop.xlane.xlu1 %4378 }
0x1a4a   :  { %v4389_v3 = vmul.f32 %v4379_v12, %v7016_v38 }
0x1a4c   :  { %v4393_v8 = vsub.f32 %v8661_v44, %v4389_v3 }
0x1a4e   :  { %v4397_v5 = vmul.f32 %v4393_v8, %v4393_v8 }
0x1a50   :  { %v4401_v39 = vsel %vm214_vm0, %v4397_v5, 0.0 }
0x1a51   :  { %4402 = vadd.xlane.f32.xlu2 %v4401_v39 }
0x1a6a   :  { %v4382_v22 = vpop.xlane.xlu2 %4381 }
0x1a6b   :  { %v4390_v20 = vmul.f32 %v4382_v22, %v7016_v38 }
0x1a6d   :  { %v8685_v33 = vsub.f32 %v8666_v14, %v4390_v20 }
0x1a6f   :  { %v4398_v25 = vmul.f32 %v8685_v33, %v8685_v33 }
0x1a71   :  { %v4404_v43 = vsel %vm214_vm0, %v4398_v25, 0.0 }
0x1a72   :  { %4405 = vadd.xlane.f32.xlu0 %v4404_v43 }
0x1a73   :  { %v4385_v32 = vpop.xlane.xlu0 %4384 }
0x1a74   :  { %v4391_v27 = vmul.f32 %v4385_v32, %v7016_v38 }
0x1a76   :  { %v8692_v41 = vsub.f32 %v8671_v1, %v4391_v27 }
0x1a78   :  { %v4399_v4 = vmul.f32 %v8692_v41, %v8692_v41 }
0x1a7a   :  { %v4407_v50 = vsel %vm214_vm0, %v4399_v4, 0.0 }
0x1a7b   :  { %4408 = vadd.xlane.f32.xlu1 %v4407_v50  ;;  %v4388_v31 = vpop.xlane.xlu1 %4387 }
0x1a7c   :  { %v4392_v63 = vmul.f32 %v4388_v31, %v7016_v38 }
0x1a7e   :  { %v8699_v17 = vsub.f32 %v8676_v42, %v4392_v63 }
0x1a80   :  { %v4400_v13 = vmul.f32 %v8699_v17, %v8699_v17 }
0x1a82   :  { %v4410_v46 = vsel %vm214_vm0, %v4400_v13, 0.0 }
0x1a83   :  { %4411 = vadd.xlane.f32.xlu2 %v4410_v46 }
0x1ac4   :  { %v4403_v48 = vpop.xlane.xlu2 %4402 }
0x1ac5   :  { %v4413_v6 = vmul.f32 %v4403_v48, %v7016_v38 }
0x1ac7   :  { %v4417_v11 = vadd.f32 1e-06, %v4413_v6 }
0x1ac9   :  { %6646 = vrsqrt.f32 %v4417_v11  ;;  %vm4427_vm10 = vweird.f32 %v4417_v11 }
0x1acf   :  { %v6647_v2 = vpop.eup %6646 }
0x1ad0   :  { %v4422_v16 = vmul.f32 %v6647_v2, %v4417_v11  ;;  %vm4428_vm9 = vweird.f32 %v6647_v2 }
0x1ad1   :  { %vm4429_vm11 = vmor %vm4427_vm10, %vm4428_vm9 }
0x1ad2   :  { %v4423_v54 = vmul.f32 %v6647_v2, %v4422_v16 }
0x1ad4   :  { %v4424_v7 = vmul.f32 0.5, %v4423_v54 }
0x1ad6   :  { %v4425_v9 = vsub.f32 1.5, %v4424_v7 }
0x1ad8   :  { %v4426_v37 = vmul.f32 %v6647_v2, %v4425_v9 }
0x1ada   :  { %v4430_v49 = vsel %vm4429_vm11, %v6647_v2, %v4426_v37 }
0x1adb   :  { %v4461_v62 = vmul.f32 %v4430_v49, %v4393_v8 }
0x1add   :  { %v4468_v0 = vmul.f32 %v6366_v55, %v4461_v62 }
0x1adf   :  { %v4475_v21 = vadd.f32 %v6367_v34, %v4468_v0 }
0x1ae1   :  { %6038 = vmatmul.msk.f32.vlgmr.msrb.gmra.mxu3 %vm214_vm0, %v4475_v21 }
0x1ae5   :  { %v4406_v53 = vpop.xlane.xlu0 %4405 }
0x1ae6   :  { %v4414_v45 = vmul.f32 %v4406_v53, %v7016_v38 }
0x1ae8   :  { %v4418_v40 = vadd.f32 1e-06, %v4414_v45 }
0x1aea   :  { %6648 = vrsqrt.f32 %v4418_v40  ;;  %vm4437_vm13 = vweird.f32 %v4418_v40 }
0x1aee   :  { %v4409_v28 = vpop.xlane.xlu1 %4408 }
0x1aef   :  { %v4415_v18 = vmul.f32 %v4409_v28, %v7016_v38 }
0x1af0   :  { %v6649_v26 = vpop.eup %6648 }
0x1af1   :  { %v4419_v19 = vadd.f32 1e-06, %v4415_v18  ;;  %v4432_v52 = vmul.f32 %v6649_v26, %v4418_v40  ;;  %vm4438_vm12 = vweird.f32 %v6649_v26 }
0x1af2   :  { %vm4439_vm14 = vmor %vm4437_vm13, %vm4438_vm12 }
0x1af3   :  { %6650 = vrsqrt.f32 %v4419_v19  ;;  %v4433_v61 = vmul.f32 %v6649_v26, %v4432_v52  ;;  %vm4447_vm1 = vweird.f32 %v4419_v19 }
0x1af5   :  { %v4434_v56 = vmul.f32 0.5, %v4433_v61 }
0x1af6   :  { %v4412_v30 = vpop.xlane.xlu2 %4411 }
0x1af7   :  { %v4435_v24 = vsub.f32 1.5, %v4434_v56  ;;  %v4416_v35 = vmul.f32 %v4412_v30, %v7016_v38 }
0x1af9   :  { %v6651_v29 = vpop.eup %6650  ;;  %v4436_v58 = vmul.f32 %v6649_v26, %v4435_v24  ;;  %v4420_v51 = vadd.f32 1e-06, %v4416_v35 }
0x1afa   :  { %v4442_v57 = vmul.f32 %v6651_v29, %v4419_v19  ;;  %vm4448_vm15 = vweird.f32 %v6651_v29 }
0x1afb   :  { %v4440_v59 = vsel %vm4439_vm14, %v6649_v26, %v4436_v58  ;;  %6652 = vrsqrt.f32 %v4420_v51  ;;  %vm4449_vm2 = vmor %vm4447_vm1, %vm4448_vm15  ;;  %vm4457_vm4 = vweird.f32 %v4420_v51 }
0x1afc   :  { %v4443_v47 = vmul.f32 %v6651_v29, %v4442_v57  ;;  %v4462_v10 = vmul.f32 %v4440_v59, %v8685_v33 }
0x1afe   :  { %v4444_v12 = vmul.f32 0.5, %v4443_v47  ;;  %v4469_v3 = vmul.f32 %v6366_v55, %v4462_v10 }
0x1b00   :  { %v4445_v8 = vsub.f32 1.5, %v4444_v12  ;;  %v4476_v5 = vadd.f32 %v6367_v34, %v4469_v3 }
0x1b01   :  { %v6653_v20 = vpop.eup %6652 }
0x1b02   :  { %v4446_v39 = vmul.f32 %v6651_v29, %v4445_v8  ;;  %6039 = vmatmul.msk.f32.gmra.mxu3 %vm214_vm0, %v4476_v5  ;;  %v4452_v43 = vmul.f32 %v6653_v20, %v4420_v51  ;;  %vm4458_vm3 = vweird.f32 %v6653_v20 }
0x1b03   :  { %vm4459_vm5 = vmor %vm4457_vm4, %vm4458_vm3 }
0x1b04   :  { %v4450_v22 = vsel %vm4449_vm2, %v6651_v29, %v4446_v39  ;;  %v4453_v27 = vmul.f32 %v6653_v20, %v4452_v43 }
0x1b05   :  { %v4463_v25 = vmul.f32 %v4450_v22, %v8692_v41 }
0x1b06   :  { %v4454_v4 = vmul.f32 0.5, %v4453_v27 }
0x1b07   :  { %v4470_v32 = vmul.f32 %v6366_v55, %v4463_v25 }
0x1b08   :  { %v4455_v50 = vsub.f32 1.5, %v4454_v4 }
0x1b09   :  { %v4477_v33 = vadd.f32 %v6367_v34, %v4470_v32 }
0x1b0a   :  { %v4456_v31 = vmul.f32 %v6653_v20, %v4455_v50 }
0x1b0b   :  { %6040 = vmatmul.msk.f32.gmra.mxu3 %vm214_vm0, %v4477_v33 }
0x1b0c   :  { %v4460_v63 = vsel %vm4459_vm5, %v6653_v20, %v4456_v31  ;;  %v6740_v31 = vld [vmem:[%s9225_s23] sm:$0xff] }
0x1b0d   :  { %v4464_v13 = vmul.f32 %v4460_v63, %v8699_v17 }
0x1b0f   :  { %v4471_v46 = vmul.f32 %v6366_v55, %v4464_v13 }
0x1b11   :  { %v4478_v60 = vadd.f32 %v6367_v34, %v4471_v46 }
0x1b13   :  { %6041 = vmatmul.msk.f32.gmra.mxu3 %vm214_vm0, %v4478_v60 }
0x1b64   :  { %v4511_v41 = vpop.f32.mrf.mxu3 }
0x1b65   :  { %v4512_v6 = vadd.f32 %v6368_v23, %v4511_v41 }
0x1b85   :  { %v4514_v36 = vpop.f32.mrf.mxu3 }
0x1b86   :  { %v4515_v2 = vadd.f32 %v6368_v23, %v4514_v36 }
0x1b88   :  { %v8760_v16 = vpack.i.bf16 %v4512_v6, %v4515_v2 }
0x1b8e   :  { %v4517_v15 = vpop.f32.mrf.mxu3 }
0x1b8f   :  { %v8722_v48 = vadd.f32 %v6368_v23, %v4517_v15 }
0x1b91   :  { %4697 = vrot.lane.b32.xlu0 %v8722_v48, %s6801_s0  ;;  %4531 = vrot.lane.b32.xlu2 %v8722_v48, %s6802_s5 }
0x1b96   :  { %v4520_v17 = vpop.f32.mrf.mxu3 }
0x1b97   :  { %v8729_v11 = vadd.f32 %v6368_v23, %v4520_v17 }
0x1b99   :  { %4527 = vrot.lane.b32.xlu2 %v4512_v6, %s6802_s5  ;;  %4699 = vrot.lane.b32.xlu1 %v8729_v11, %s6801_s0  ;;  %v8770_v54 = vpack.i.bf16 %v8722_v48, %v8729_v11 }
0x1b9a   :  { %4533 = vrot.lane.b32.xlu0 %v8729_v11, %s6802_s5 }
0x1ba1   :  { %4687 = vrot.lane.b32.xlu2 %v4515_v2, %s6803_s9  ;;  %4529 = vrot.lane.b32.xlu1 %v4515_v2, %s6802_s5 }
0x1ba2   :  { %4695 = vrot.lane.b32.xlu0 %v4515_v2, %s6801_s0 }
0x1ba9   :  { %4859 = vrot.lane.b32.xlu2 %v4512_v6, %s6804_s13  ;;  %4693 = vrot.lane.b32.xlu1 %v4512_v6, %s6801_s0 }
0x1baa   :  { %4685 = vrot.lane.b32.xlu0 %v4512_v6, %s6803_s9 }
0x1bb1   :  { %5031 = vrot.lane.b32.xlu2 %v8729_v11, %s6805_s17  ;;  %4689 = vrot.lane.b32.xlu1 %v8722_v48, %s6803_s9 }
0x1bb2   :  { %5029 = vrot.lane.b32.xlu0 %v8722_v48, %s6805_s17 }
0x1bb9   :  { %4691 = vrot.lane.b32.xlu2 %v8729_v11, %s6803_s9  ;;  %4863 = vrot.lane.b32.xlu1 %v8722_v48, %s6804_s13 }
0x1bba   :  { %4865 = vrot.lane.b32.xlu0 %v8729_v11, %s6804_s13 }
0x1bc1   :  { %5017 = vrot.lane.b32.xlu2 %v4512_v6, %s6807_s3  ;;  %4861 = vrot.lane.b32.xlu1 %v4515_v2, %s6804_s13 }
0x1bc2   :  { %5027 = vrot.lane.b32.xlu0 %v4515_v2, %s6805_s17 }
0x1bc9   :  { %4855 = vrot.lane.b32.xlu2 %v8722_v48, %s6806_s21  ;;  %5025 = vrot.lane.b32.xlu1 %v4512_v6, %s6805_s17 }
0x1bca   :  { %4851 = vrot.lane.b32.xlu0 %v4512_v6, %s6806_s21 }
0x1bd1   :  { %6297 = vrot.lane.b32.xlu2 %v8760_v16, %s9223_s27  ;;  %4853 = vrot.lane.b32.xlu1 %v4515_v2, %s6806_s21 }
0x1bd2   :  { %5019 = vrot.lane.b32.xlu0 %v4515_v2, %s6807_s3 }
0x1bd9   :  { %6302 = vrot.lane.b32.xlu2 %v8760_v16, %s9224_s16  ;;  %5021 = vrot.lane.b32.xlu1 %v8722_v48, %s6807_s3 }
0x1bda   :  { %6312 = vrot.lane.b32.xlu0 %v8770_v54, %s9224_s16 }
0x1be1   :  { %4857 = vrot.lane.b32.xlu2 %v8729_v11, %s6806_s21  ;;  %5023 = vrot.lane.b32.xlu1 %v8729_v11, %s6807_s3 }
0x1be9   :  { %6307 = vrot.lane.b32.xlu1 %v8770_v54, %s9223_s27 }
0x1beb   :  { %v4532_v7 = vpop.permute.xlu2 %4531 }
0x1bf3   :  { %v4528_v9 = vpop.permute.xlu2 %4527 }
0x1bfb   :  { %v4688_v55 = vpop.permute.xlu2 %4687 }
0x1c03   :  { %v4698_v37 = vpop.permute.xlu0 %4697  ;;  %v4860_v62 = vpop.permute.xlu2 %4859 }
0x1c0b   :  { %v4700_v49 = vpop.permute.xlu1 %4699  ;;  %v5032_v53 = vpop.permute.xlu2 %5031 }
0x1c0c   :  { %v4534_v34 = vpop.permute.xlu0 %4533  ;;  %6054 = vmatpush.xpose.msk.msrb.mxu1 %vm450_vm6, %v4700_v49  ;;  %v6742_v49 = vld [vmem:[%s9225_s23 + $0x10] sm:$0xff] }
0x1c0d   :  { %6042 = vmatpush.xpose.msk.msra.mxu2 %vm450_vm6, %v4534_v34 }
0x1c10   :  { %6055 = vmatpush.xpose.msk.msrb.mxu1 %vm450_vm6, %v4698_v37 }
0x1c11   :  { %6043 = vmatpush.xpose.msk.msra.mxu2 %vm450_vm6, %v4532_v7 }
0x1c13   :  { %v4530_v0 = vpop.permute.xlu1 %4529  ;;  %v4692_v28 = vpop.permute.xlu2 %4691 }
0x1c14   :  { %v4696_v21 = vpop.permute.xlu0 %4695 }
0x1c15   :  { %6044 = vmatpush.xpose.msk.msra.mxu2 %vm450_vm6, %v4530_v0  ;;  %6056 = vmatpush.xpose.msk.msrb.mxu1 %vm450_vm6, %v4696_v21 }
0x1c19   :  { %6045 = vmatpush.xpose.msk.msra.mxu2 %vm450_vm6, %v4528_v9 }
0x1c1b   :  { %v4694_v45 = vpop.permute.xlu1 %4693  ;;  %v5018_v19 = vpop.permute.xlu2 %5017 }
0x1c1c   :  { %v4686_v40 = vpop.permute.xlu0 %4685  ;;  %6046 = vmatmul.msk.f32.vlgmr.msra.gmra.mxu2 %vm450_vm6, %v4512_v6  ;;  %6057 = vmatpush.xpose.msk.msrb.mxu1 %vm450_vm6, %v4694_v45 }
0x1c1f   :  { %6058 = vmatmul.msk.f32.vlgmr.msrb.gmra.mxu1 %vm450_vm6, %v4686_v40 }
0x1c20   :  { %6078 = vmatpush.xpose.msk.msra.mxu1 %vm450_vm6, %v5032_v53 }
0x1c23   :  { %v4690_v18 = vpop.permute.xlu1 %4689  ;;  %v4856_v29 = vpop.permute.xlu2 %4855 }
0x1c24   :  { %v5030_v26 = vpop.permute.xlu0 %5029  ;;  %6047 = vmatmul.msk.f32.gmra.mxu2 %vm450_vm6, %v4515_v2 }
0x1c25   :  { %6079 = vmatpush.xpose.msk.msra.mxu1 %vm450_vm6, %v5030_v26 }
0x1c27   :  { %6059 = vmatmul.msk.f32.gmra.mxu1 %vm450_vm6, %v4688_v55 }
0x1c2b   :  { %v4864_v52 = vpop.permute.xlu1 %4863  ;;  %v6298_v30 = vpop.permute.xlu2 %6297 }
0x1c2c   :  { %v4866_v61 = vpop.permute.xlu0 %4865  ;;  %6048 = vmatmul.msk.f32.gmra.mxu2 %vm450_vm6, %v8722_v48  ;;  %v6299_v32 = vunpack.i.l.bf16 %v6298_v30  ;;  %v6300_v27 = vunpack.i.h.bf16 %v6298_v30  ;;  %v6741_v48 = vld [vmem:[%s9225_s23 + $0x8] sm:$0xff] }
0x1c2d   :  { %6066 = vmatpush.xpose.msk.msrb.mxu2 %vm450_vm6, %v4866_v61 }
0x1c2f   :  { %6060 = vmatmul.msk.f32.gmra.mxu1 %vm450_vm6, %v4690_v18  ;;  %v8844_v18 = vld [vmem:[%s9225_s23 + $0x18] sm:$0xff] }
0x1c31   :  { %6067 = vmatpush.xpose.msk.msrb.mxu2 %vm450_vm6, %v4864_v52 }
0x1c33   :  { %v4862_v56 = vpop.permute.xlu1 %4861  ;;  %v6303_v47 = vpop.permute.xlu2 %6302 }
0x1c34   :  { %v5028_v24 = vpop.permute.xlu0 %5027  ;;  %6049 = vmatmul.msk.f32.gmra.mxu2 %vm450_vm6, %v8729_v11  ;;  %v6304_v8 = vunpack.i.l.bf16 %v6303_v47  ;;  %v6305_v5 = vunpack.i.h.bf16 %v6303_v47 }
0x1c35   :  { %6068 = vmatpush.xpose.msk.msrb.mxu2 %vm450_vm6, %v4862_v56  ;;  %6080 = vmatpush.xpose.msk.msra.mxu1 %vm450_vm6, %v5028_v24 }
0x1c37   :  { %6061 = vmatmul.msk.f32.gmra.mxu1 %vm450_vm6, %v4692_v28 }
0x1c39   :  { %6069 = vmatpush.xpose.msk.msrb.mxu2 %vm450_vm6, %v4860_v62 }
0x1c3b   :  { %v5026_v58 = vpop.permute.xlu1 %5025  ;;  %v4858_v39 = vpop.permute.xlu2 %4857 }
0x1c3c   :  { %v4852_v57 = vpop.permute.xlu0 %4851  ;;  %6081 = vmatpush.xpose.msk.msra.mxu1 %vm450_vm6, %v5026_v58 }
0x1c3d   :  { %6070 = vmatmul.msk.f32.vlgmr.msrb.gmra.mxu2 %vm450_vm6, %v4852_v57 }
0x1c3f   :  { %6082 = vmatmul.msk.f32.vlgmr.msra.gmra.mxu1 %vm450_vm6, %v5018_v19 }
0x1c43   :  { %v4854_v35 = vpop.permute.xlu1 %4853 }
0x1c44   :  { %v5020_v59 = vpop.permute.xlu0 %5019 }
0x1c45   :  { %6071 = vmatmul.msk.f32.gmra.mxu2 %vm450_vm6, %v4854_v35 }
0x1c47   :  { %6083 = vmatmul.msk.f32.gmra.mxu1 %vm450_vm6, %v5020_v59 }
0x1c4b   :  { %v5022_v10 = vpop.permute.xlu1 %5021 }
0x1c4c   :  { %v6313_v51 = vpop.permute.xlu0 %6312 }
0x1c4d   :  { %v6314_v12 = vunpack.i.l.bf16 %v6313_v51  ;;  %6072 = vmatmul.msk.f32.gmra.mxu2 %vm450_vm6, %v4856_v29  ;;  %v6315_v3 = vunpack.i.h.bf16 %v6313_v51 }
0x1c4f   :  { %4668 = vmatpush.msrb.mxu0 %v6314_v12  ;;  %6084 = vmatmul.msk.f32.gmra.mxu1 %vm450_vm6, %v5022_v10 }
0x1c51   :  { %4669 = vmatpush.msrb.mxu0 %v6315_v3 }
0x1c53   :  { %4670 = vmatpush.msrb.mxu0 %v6304_v8  ;;  %v5024_v22 = vpop.permute.xlu1 %5023 }
0x1c55   :  { %4671 = vmatpush.msrb.mxu0 %v6305_v5  ;;  %6073 = vmatmul.msk.f32.gmra.mxu2 %vm450_vm6, %v4858_v39 }
0x1c57   :  { %6085 = vmatmul.msk.f32.gmra.mxu1 %vm450_vm6, %v5024_v22 }
0x1c5b   :  { %v6308_v20 = vpop.permute.xlu1 %6307 }
0x1c5c   :  { %v6309_v25 = vunpack.i.l.bf16 %v6308_v20  ;;  %v6310_v43 = vunpack.i.h.bf16 %v6308_v20 }
0x1c5e   :  { %4834 = vmatpush.msra.mxu3 %v6309_v25 }
0x1c60   :  { %4835 = vmatpush.msra.mxu3 %v6310_v43 }
0x1c62   :  { %4836 = vmatpush.msra.mxu3 %v6299_v32 }
0x1c64   :  { %4837 = vmatpush.msra.mxu3 %v6300_v27 }
0x1c9c   :  { %v4734_v33 = vpop.f32.mrf.mxu1 }
0x1c9d   :  { %v4746_v4 = vmul.f32 0.35355338, %v4734_v33 }
0x1c9f   :  { %v4568_v50 = vpop.f32.mrf.mxu2  ;;  %v8817_v63 = vadd.f32 %v6740_v31, %v4746_v4 }
0x1ca0   :  { %v4580_v13 = vmul.f32 0.35355338, %v4568_v50 }
0x1ca1   :  { %v4754_v60 = vsel %vm214_vm0, %v8817_v63, -inf }
0x1ca2   :  { %v8819_v46 = vadd.f32 %v6740_v31, %v4580_v13  ;;  %4755 = vmax.xlane.f32.xlu0 %v4754_v60 }
0x1ca4   :  { %v4588_v41 = vsel %vm214_vm0, %v8819_v46, -inf  ;;  %v4737_v36 = vpop.f32.mrf.mxu1 }
0x1ca5   :  { %4589 = vmax.xlane.f32.xlu2 %v4588_v41  ;;  %v4747_v23 = vmul.f32 0.35355338, %v4737_v36 }
0x1ca7   :  { %v4571_v15 = vpop.f32.mrf.mxu2  ;;  %v8826_v6 = vadd.f32 %v6741_v48, %v4747_v23 }
0x1ca8   :  { %v4581_v17 = vmul.f32 0.35355338, %v4571_v15 }
0x1ca9   :  { %v4757_v2 = vsel %vm214_vm0, %v8826_v6, -inf }
0x1caa   :  { %v8828_v11 = vadd.f32 %v6741_v48, %v4581_v17  ;;  %4758 = vmax.xlane.f32.xlu1 %v4757_v2 }
0x1cac   :  { %v4591_v7 = vsel %vm214_vm0, %v8828_v11, -inf  ;;  %v4740_v9 = vpop.f32.mrf.mxu1 }
0x1cad   :  { %4592 = vmax.xlane.f32.xlu0 %v4591_v7  ;;  %v4748_v37 = vmul.f32 0.35355338, %v4740_v9 }
0x1caf   :  { %v4574_v55 = vpop.f32.mrf.mxu2  ;;  %v8835_v34 = vadd.f32 %v6742_v49, %v4748_v37 }
0x1cb0   :  { %v4582_v62 = vmul.f32 0.35355338, %v4574_v55 }
0x1cb1   :  { %v4760_v53 = vsel %vm214_vm0, %v8835_v34, -inf }
0x1cb2   :  { %v8837_v0 = vadd.f32 %v6742_v49, %v4582_v62 }
0x1cb4   :  { %v4594_v21 = vsel %vm214_vm0, %v8837_v0, -inf  ;;  %v4743_v45 = vpop.f32.mrf.mxu1 }
0x1cb5   :  { %4595 = vmax.xlane.f32.xlu2 %v4594_v21  ;;  %4761 = vmax.xlane.f32.xlu0 %v4760_v53  ;;  %v4749_v40 = vmul.f32 0.35355338, %v4743_v45 }
0x1cb7   :  { %v4577_v28 = vpop.f32.mrf.mxu2  ;;  %v8847_v26 = vadd.f32 %v8844_v18, %v4749_v40 }
0x1cb8   :  { %v4583_v19 = vmul.f32 0.35355338, %v4577_v28 }
0x1cb9   :  { %v4763_v61 = vsel %vm214_vm0, %v8847_v26, -inf }
0x1cba   :  { %v8850_v52 = vadd.f32 %v8844_v18, %v4583_v19  ;;  %4764 = vmax.xlane.f32.xlu1 %v4763_v61 }
0x1cbc   :  { %v4597_v56 = vsel %vm214_vm0, %v8850_v52, -inf  ;;  %v5066_v24 = vpop.f32.mrf.mxu1 }
0x1cbd   :  { %4598 = vmax.xlane.f32.xlu0 %v4597_v56  ;;  %v5078_v29 = vmul.f32 0.35355338, %v5066_v24 }
0x1cbf   :  { %v8856_v58 = vadd.f32 %v6740_v31, %v5078_v29 }
0x1cc0   :  { %v4900_v57 = vpop.f32.mrf.mxu2 }
0x1cc1   :  { %v4912_v30 = vmul.f32 0.35355338, %v4900_v57  ;;  %v5086_v35 = vsel %vm214_vm0, %v8856_v58, -inf }
0x1cc2   :  { %5087 = vmax.xlane.f32.xlu2 %v5086_v35 }
0x1cc3   :  { %v8860_v59 = vadd.f32 %v6740_v31, %v4912_v30 }
0x1cc4   :  { %v5069_v47 = vpop.f32.mrf.mxu1 }
0x1cc5   :  { %v4920_v10 = vsel %vm214_vm0, %v8860_v59, -inf  ;;  %v5079_v51 = vmul.f32 0.35355338, %v5069_v47 }
0x1cc6   :  { %4921 = vmax.xlane.f32.xlu1 %v4920_v10 }
0x1cc7   :  { %v8864_v12 = vadd.f32 %v6741_v48, %v5079_v51 }
0x1cc8   :  { %v4903_v3 = vpop.f32.mrf.mxu2 }
0x1cc9   :  { %v4913_v8 = vmul.f32 0.35355338, %v4903_v3  ;;  %v5089_v5 = vsel %vm214_vm0, %v8864_v12, -inf }
0x1cca   :  { %5090 = vmax.xlane.f32.xlu0 %v5089_v5 }
0x1ccb   :  { %v8868_v39 = vadd.f32 %v6741_v48, %v4913_v8 }
0x1ccc   :  { %v5072_v22 = vpop.f32.mrf.mxu1 }
0x1ccd   :  { %v4923_v20 = vsel %vm214_vm0, %v8868_v39, -inf  ;;  %v5080_v25 = vmul.f32 0.35355338, %v5072_v22 }
0x1cce   :  { %4924 = vmax.xlane.f32.xlu2 %v4923_v20 }
0x1ccf   :  { %v8872_v43 = vadd.f32 %v6742_v49, %v5080_v25 }
0x1cd0   :  { %v4906_v32 = vpop.f32.mrf.mxu2 }
0x1cd1   :  { %v4914_v27 = vmul.f32 0.35355338, %v4906_v32  ;;  %v5092_v33 = vsel %vm214_vm0, %v8872_v43, -inf }
0x1cd2   :  { %5093 = vmax.xlane.f32.xlu1 %v5092_v33 }
0x1cd3   :  { %v8876_v4 = vadd.f32 %v6742_v49, %v4914_v27 }
0x1cd5   :  { %v4926_v50 = vsel %vm214_vm0, %v8876_v4, -inf }
0x1cd6   :  { %4927 = vmax.xlane.f32.xlu2 %v4926_v50 }
0x1d15   :  { %v4756_v31 = vpop.xlane.xlu0 %4755 }
0x1d16   :  { %v4766_v13 = vsub.f32 %v8817_v63, %v4756_v31 }
0x1d18   :  { %v4590_v60 = vpop.xlane.xlu2 %4589  ;;  %v4770_v41 = vmul.f32 1.442695, %v4766_v13 }
0x1d19   :  { %v4600_v36 = vsub.f32 %v8819_v46, %v4590_v60 }
0x1d1a   :  { %6654 = vpow2.f32 %v4770_v41 }
0x1d1b   :  { %v4604_v23 = vmul.f32 1.442695, %v4600_v36 }
0x1d1d   :  { %v4759_v15 = vpop.xlane.xlu1 %4758  ;;  %6656 = vpow2.f32 %v4604_v23 }
0x1d1e   :  { %v4767_v48 = vsub.f32 %v8826_v6, %v4759_v15  ;;  %v5075_v15 = vpop.f32.mrf.mxu1 }
0x1d20   :  { %v4593_v17 = vpop.xlane.xlu0 %4592  ;;  %v8883_v2 = vpop.eup %6654  ;;  %v4772_v7 = vmul.f32 1.442695, %v4767_v48  ;;  %v5081_v48 = vmul.f32 0.35355338, %v5075_v15 }
0x1d21   :  { %v4601_v9 = vsub.f32 %v8828_v11, %v4593_v17  ;;  %v4778_v37 = vsel %vm214_vm0, %v8883_v2, 0.0 }
0x1d22   :  { %6658 = vpow2.f32 %v4772_v7  ;;  %4779 = vadd.xlane.f32.xlu0 %v4778_v37  ;;  %v8948_v7 = vadd.f32 %v8844_v18, %v5081_v48  ;;  %v4909_v37 = vpop.f32.mrf.mxu2 }
0x1d23   :  { %v4606_v63 = vmul.f32 1.442695, %v4601_v9  ;;  %v8888_v55 = vpop.eup %6656 }
0x1d24   :  { %v4612_v53 = vsel %vm214_vm0, %v8888_v55, 0.0 }
0x1d25   :  { %6660 = vpow2.f32 %v4606_v63  ;;  %v4915_v63 = vmul.f32 0.35355338, %v4909_v37 }
0x1d28   :  { %v4762_v46 = vpop.xlane.xlu0 %4761  ;;  %v4596_v49 = vpop.xlane.xlu2 %4595 }
0x1d29   :  { %v8890_v62 = vpop.eup %6658  ;;  %v4768_v6 = vsub.f32 %v8835_v34, %v4762_v46  ;;  %v4602_v21 = vsub.f32 %v8837_v0, %v4596_v49  ;;  %v5095_v49 = vsel %vm214_vm0, %v8948_v7, -inf }
0x1d2a   :  { %v4781_v11 = vsel %vm214_vm0, %v8890_v62, 0.0  ;;  %4613 = vadd.xlane.f32.xlu0 %v4612_v53 }
0x1d2b   :  { %v4774_v45 = vmul.f32 1.442695, %v4768_v6  ;;  %v4608_v40 = vmul.f32 1.442695, %v4602_v21  ;;  %4782 = vadd.xlane.f32.xlu1 %v4781_v11  ;;  %v8898_v19 = vpop.eup %6660  ;;  %v8957_v6 = vadd.f32 %v8844_v18, %v4915_v63 }
0x1d2c   :  { %v4615_v0 = vsel %vm214_vm0, %v8898_v19, 0.0 }
0x1d2d   :  { %6662 = vpow2.f32 %v4774_v45  ;;  %v4765_v28 = vpop.xlane.xlu1 %4764  ;;  %v4929_v21 = vsel %vm214_vm0, %v8957_v6, -inf }
0x1d2e   :  { %6664 = vpow2.f32 %v4608_v40  ;;  %v4769_v61 = vsub.f32 %v8847_v26, %v4765_v28 }
0x1d30   :  { %v4776_v34 = vmul.f32 1.442695, %v4769_v61  ;;  %v4599_v47 = vpop.xlane.xlu0 %4598 }
0x1d31   :  { %v4603_v8 = vsub.f32 %v8850_v52, %v4599_v47 }
0x1d32   :  { %6666 = vpow2.f32 %v4776_v34  ;;  %4616 = vadd.xlane.f32.xlu0 %v4615_v0 }
0x1d33   :  { %v8903_v56 = vpop.eup %6662  ;;  %v4610_v20 = vmul.f32 1.442695, %v4603_v8 }
0x1d34   :  { %v8905_v24 = vpop.eup %6664  ;;  %v4784_v29 = vsel %vm214_vm0, %v8903_v56, 0.0 }
0x1d35   :  { %4785 = vadd.xlane.f32.xlu2 %v4784_v29  ;;  %v4618_v57 = vsel %vm214_vm0, %v8905_v24, 0.0  ;;  %v5088_v35 = vpop.xlane.xlu2 %5087 }
0x1d36   :  { %4619 = vadd.xlane.f32.xlu1 %v4618_v57  ;;  %v5098_v51 = vsub.f32 %v8856_v58, %v5088_v35 }
0x1d38   :  { %v8911_v30 = vpop.eup %6666  ;;  %v5102_v22 = vmul.f32 1.442695, %v5098_v51 }
0x1d39   :  { %v4787_v26 = vsel %vm214_vm0, %v8911_v30, 0.0  ;;  %v4922_v25 = vpop.xlane.xlu1 %4921 }
0x1d3a   :  { %4788 = vadd.xlane.f32.xlu0 %v4787_v26  ;;  %6668 = vpow2.f32 %v5102_v22  ;;  %v4932_v33 = vsub.f32 %v8860_v59, %v4922_v25 }
0x1d3b   :  { %6670 = vpow2.f32 %v4610_v20 }
0x1d3c   :  { %v4936_v58 = vmul.f32 1.442695, %v4932_v33 }
0x1d3d   :  { %v5091_v3 = vpop.xlane.xlu0 %5090 }
0x1d3e   :  { %v5099_v5 = vsub.f32 %v8864_v12, %v5091_v3 }
0x1d40   :  { %v5104_v32 = vmul.f32 1.442695, %v5099_v5  ;;  %v8926_v50 = vpop.eup %6668 }
0x1d41   :  { %v4925_v10 = vpop.xlane.xlu2 %4924  ;;  %v8928_v13 = vpop.eup %6670  ;;  %v5110_v12 = vsel %vm214_vm0, %v8926_v50, 0.0 }
0x1d42   :  { %6672 = vpow2.f32 %v5104_v32  ;;  %v4933_v60 = vsub.f32 %v8868_v39, %v4925_v10  ;;  %v4621_v59 = vsel %vm214_vm0, %v8928_v13, 0.0 }
0x1d43   :  { %6674 = vpow2.f32 %v4936_v58 }
0x1d44   :  { %v4938_v41 = vmul.f32 1.442695, %v4933_v60 }
0x1d45   :  { %v5094_v11 = vpop.xlane.xlu1 %5093 }
0x1d46   :  { %v5100_v34 = vsub.f32 %v8872_v43, %v5094_v11 }
0x1d48   :  { %v8930_v52 = vpop.eup %6672 }
0x1d49   :  { %v4928_v27 = vpop.xlane.xlu2 %4927  ;;  %v8939_v36 = vpop.eup %6674 }
0x1d4a   :  { %v4944_v39 = vsel %vm214_vm0, %v8939_v36, 0.0 }
0x1d4d   :  { %6322 = vrot.lane.b32.xlu2 %v8760_v16, %s9226_s26 }
0x1d4e   :  { %6317 = vrot.lane.b32.xlu0 %v8770_v54, %s9226_s26 }
0x1d4f   :  { %6327 = vrot.lane.b32.xlu1 %v8770_v54, %s9219_s25  ;;  %v4934_v54 = vsub.f32 %v8876_v4, %v4928_v27  ;;  %v5113_v4 = vsel %vm214_vm0, %v8930_v52, 0.0 }
0x1d51   :  { %v4940_v31 = vmul.f32 1.442695, %v4934_v54 }
0x1d53   :  { %6676 = vpow2.f32 %v4940_v31 }
0x1d54   :  { %6678 = vpow2.f32 %v4938_v41 }
0x1d59   :  { %v8941_v23 = vpop.eup %6676 }
0x1d5a   :  { %v4950_v17 = vsel %vm214_vm0, %v8941_v23, 0.0  ;;  %v8950_v9 = vpop.eup %6678 }
0x1d5b   :  { %v4947_v46 = vsel %vm214_vm0, %v8950_v9, 0.0 }
0x1d76   :  { %5111 = vadd.xlane.f32.xlu2 %v5110_v12 }
0x1d78   :  { %5114 = vadd.xlane.f32.xlu0 %v5113_v4 }
0x1d79   :  { %4622 = vadd.xlane.f32.xlu1 %v4621_v59 }
0x1d80   :  { %4951 = vadd.xlane.f32.xlu0 %v4950_v17 }
0x1d81   :  { %4945 = vadd.xlane.f32.xlu1 %v4944_v39 }
0x1d88   :  { %5096 = vmax.xlane.f32.xlu0 %v5095_v49 }
0x1d89   :  { %4948 = vadd.xlane.f32.xlu1 %v4947_v46 }
0x1d8e   :  { %6332 = vrot.lane.b32.xlu2 %v8760_v16, %s9219_s25 }
0x1d90   :  { %4930 = vmax.xlane.f32.xlu0 %v4929_v21 }
0x1d95   :  { %v4780_v53 = vpop.xlane.xlu0 %4779 }
0x1d96   :  { %6680 = vrcp.f32 %v4780_v53 }
0x1d9c   :  { %v6681_v45 = vpop.eup %6680 }
0x1d9d   :  { %v4794_v40 = vmul.f32 %v6681_v45, %v8883_v2  ;;  %v4614_v61 = vpop.xlane.xlu0 %4613  ;;  %v5106_v2 = vmul.f32 1.442695, %v5100_v34 }
0x1d9e   :  { %v4783_v28 = vpop.xlane.xlu1 %4782 }
0x1d9f   :  { %6682 = vrcp.f32 %v4783_v28  ;;  %6062 = vmatmul.msk.f32.vlgmr.msra.gmra.mxu3 %vm214_vm0, %v4794_v40 }
0x1da0   :  { %6684 = vrcp.f32 %v4614_v61 }
0x1da5   :  { %v6683_v18 = vpop.eup %6682  ;;  %v4617_v0 = vpop.xlane.xlu0 %4616 }
0x1da6   :  { %v6685_v16 = vpop.eup %6684  ;;  %v4795_v29 = vmul.f32 %v6683_v18, %v8890_v62  ;;  %6686 = vrcp.f32 %v4617_v0 }
0x1da7   :  { %v4628_v57 = vmul.f32 %v6685_v16, %v8888_v55 }
0x1da8   :  { %v4786_v26 = vpop.xlane.xlu2 %4785  ;;  %6063 = vmatmul.msk.f32.gmra.mxu3 %vm214_vm0, %v4795_v29 }
0x1da9   :  { %6688 = vrcp.f32 %v4786_v26  ;;  %6050 = vmatmul.msk.f32.vlgmr.msrb.gmra.mxu0 %vm214_vm0, %v4628_v57  ;;  %v4620_v35 = vpop.xlane.xlu1 %4619 }
0x1daa   :  { %6690 = vpow2.f32 %v5106_v2 }
0x1dab   :  { %6692 = vrcp.f32 %v4620_v35 }
0x1dac   :  { %v6687_v47 = vpop.eup %6686 }
0x1dad   :  { %v4789_v10 = vpop.xlane.xlu0 %4788  ;;  %v4629_v43 = vmul.f32 %v6687_v47, %v8898_v19 }
0x1dae   :  { %6694 = vrcp.f32 %v4789_v10 }
0x1daf   :  { %v6689_v51 = vpop.eup %6688 }
0x1db0   :  { %v4796_v62 = vmul.f32 %v6689_v51, %v8903_v56  ;;  %v8974_v55 = vpop.eup %6690  ;;  %v6323_v27 = vpop.permute.xlu2 %6322 }
0x1db1   :  { %6051 = vmatmul.msk.f32.gmra.mxu0 %vm214_vm0, %v4629_v43  ;;  %v6693_v3 = vpop.eup %6692  ;;  %v5116_v5 = vsel %vm214_vm0, %v8974_v55, 0.0  ;;  %v6324_v58 = vunpack.i.l.bf16 %v6323_v27  ;;  %v6325_v31 = vunpack.i.h.bf16 %v6323_v27  ;;  %v6036_v27 = vld [vmem:[%s6884_s30 + $0x78] sm:$0xff] }
0x1db2   :  { %6064 = vmatmul.msk.f32.gmra.mxu3 %vm214_vm0, %v4796_v62  ;;  %v4630_v22 = vmul.f32 %v6693_v3, %v8905_v24  ;;  %5270 = vmatpush.msra.mxu2 %v6036_v27  ;;  %v6099_v27 = vld [vmem:[%s9227_s28 + $0x38] sm:$0xff] }
0x1db4   :  { %v6695_v8 = vpop.eup %6694 }
0x1db5   :  { %v4797_v19 = vmul.f32 %v6695_v8, %v8911_v30 }
0x1db7   :  { %5117 = vadd.xlane.f32.xlu2 %v5116_v5 }
0x1db9   :  { %6052 = vmatmul.msk.f32.gmra.mxu0 %vm214_vm0, %v4630_v22 }
0x1dba   :  { %6065 = vmatmul.msk.f32.gmra.mxu3 %vm214_vm0, %v4797_v19 }
0x1dc0   :  { %v6318_v20 = vpop.permute.xlu0 %6317 }
0x1dc1   :  { %v6328_v56 = vpop.permute.xlu1 %6327  ;;  %v6319_v32 = vunpack.i.l.bf16 %v6318_v20  ;;  %v6320_v54 = vunpack.i.h.bf16 %v6318_v20 }
0x1dc2   :  { %v6329_v25 = vunpack.i.l.bf16 %v6328_v56  ;;  %v6330_v33 = vunpack.i.h.bf16 %v6328_v56 }
0x1dc3   :  { %5166 = vmatpush.msrb.mxu3 %v6319_v32 }
0x1dc4   :  { %5000 = vmatpush.msra.mxu0 %v6329_v25 }
0x1dc5   :  { %5167 = vmatpush.msrb.mxu3 %v6320_v54  ;;  %v6034_v54 = vld [vmem:[%s6884_s30 + $0x68] sm:$0xff] }
0x1dc6   :  { %5001 = vmatpush.msra.mxu0 %v6330_v33  ;;  %v6035_v33 = vld [vmem:[%s6884_s30 + $0x70] sm:$0xff] }
0x1dc7   :  { %5168 = vmatpush.msrb.mxu3 %v6324_v58  ;;  %5271 = vmatpush.msra.mxu2 %v6035_v33  ;;  %v6033_v58 = vld [vmem:[%s6884_s30 + $0x60] sm:$0xff]  ;;  %v6098_v33 = vld [vmem:[%s9227_s28 + $0x30] sm:$0xff]  ;;  %s6758_s30 = scalar_lea.hbm %s6757_s24, 2 }
0x1dc8   :  { %p6759_p0 = scmp.ne.s32.totalorder %s6757_s24, %s6758_s30 }
0x1dc9   :  { %5169 = vmatpush.msrb.mxu3 %v6325_v31  ;;  %5272 = vmatpush.msra.mxu2 %v6034_v54  ;;  %v6096_v54 = vld [vmem:[%s9227_s28 + $0x20] sm:$0xff] }
0x1dcb   :  { %5273 = vmatpush.msra.mxu2 %v6033_v58 }
0x1de9   :  { %v5112_v24 = vpop.xlane.xlu2 %5111 }
0x1dea   :  { %6696 = vrcp.f32 %v5112_v24 }
0x1deb   :  { %v5115_v12 = vpop.xlane.xlu0 %5114 }
0x1dec   :  { %v4623_v30 = vpop.xlane.xlu1 %4622 }
0x1ded   :  { %6698 = vrcp.f32 %v4623_v30 }
0x1dee   :  { %6700 = vrcp.f32 %v5115_v12 }
0x1df0   :  { %v6697_v60 = vpop.eup %6696 }
0x1df1   :  { %v5126_v59 = vmul.f32 %v6697_v60, %v8926_v50  ;;  %v6333_v4 = vpop.permute.xlu2 %6332 }
0x1df2   :  { %v6334_v41 = vunpack.i.l.bf16 %v6333_v4  ;;  %v6335_v37 = vunpack.i.h.bf16 %v6333_v4 }
0x1df3   :  { %v6699_v15 = vpop.eup %6698  ;;  %6086 = vmatmul.msk.f32.vlgmr.msrb.gmra.mxu3 %vm214_vm0, %v5126_v59  ;;  %v4952_v39 = vpop.xlane.xlu0 %4951 }
0x1df4   :  { %v4946_v48 = vpop.xlane.xlu1 %4945  ;;  %5002 = vmatpush.msra.mxu0 %v6334_v41  ;;  %v4631_v17 = vmul.f32 %v6699_v15, %v8928_v13  ;;  %v6701_v63 = vpop.eup %6700 }
0x1df5   :  { %6702 = vrcp.f32 %v4946_v48  ;;  %v5127_v46 = vmul.f32 %v6701_v63, %v8930_v52 }
0x1df6   :  { %6053 = vmatmul.msk.f32.gmra.mxu0 %vm214_vm0, %v4631_v17 }
0x1df7   :  { %5003 = vmatpush.msra.mxu0 %v6335_v37 }
0x1df9   :  { %5450 = vmatpush.msrb.mxu0 %v6099_v27  ;;  %v6112_v27 = vld [vmem:[%s9228_s1 + $0xd8] sm:$0xff] }
0x1dfb   :  { %v6703_v49 = vpop.eup %6702  ;;  %6087 = vmatmul.msk.f32.gmra.mxu3 %vm214_vm0, %v5127_v46  ;;  %v5097_v11 = vpop.xlane.xlu0 %5096  ;;  %5451 = vmatpush.msrb.mxu0 %v6098_v33 }
0x1dfc   :  { %v4960_v50 = vmul.f32 %v6703_v49, %v8939_v36  ;;  %v4949_v21 = vpop.xlane.xlu1 %4948  ;;  %v5101_v53 = vsub.f32 %v8948_v7, %v5097_v11 }
0x1dfd   :  { %6704 = vrcp.f32 %v4949_v21 }
0x1dfe   :  { %6074 = vmatmul.msk.f32.vlgmr.msra.gmra.mxu0 %vm214_vm0, %v4960_v50  ;;  %v5108_v13 = vmul.f32 1.442695, %v5101_v53 }
0x1e00   :  { %6706 = vpow2.f32 %v5108_v13  ;;  %v6369_v13 = vld [vmem:[%s6889_s6 + $0x3] ss:$0 sm:$0xff]  ;;  %s6760_s6 = scalar_lea.hbm %s6974_s29, 2 }
0x1e01   :  { %6708 = vrcp.f32 %v4952_v39  ;;  %p6762_p2 = scmp.lt.s32.totalorder %s6760_s6, %s6758_s30 }
0x1e03   :  { %v6705_v45 = vpop.eup %6704  ;;  %v4931_v40 = vpop.xlane.xlu0 %4930  ;;  %p6763_p3 = por %p6762_p2, %p6761_p1 }
0x1e04   :  { %v4961_v28 = vmul.f32 %v6705_v45, %v8950_v9  ;;  %v4935_v52 = vsub.f32 %v8957_v6, %v4931_v40 }
0x1e05   :  { %p6764_p4 = pnand %p6763_p3, %p6759_p0 }
0x1e06   :  { %6075 = vmatmul.msk.f32.gmra.mxu0 %vm214_vm0, %v4961_v28  ;;  %v6707_v61 = vpop.eup %6706  ;;  %v4942_v36 = vmul.f32 1.442695, %v4935_v52 }
0x1e07   :  { %v5119_v18 = vsel %vm214_vm0, %v6707_v61, 0.0  ;;  %v6709_v34 = vpop.eup %6708 }
0x1e08   :  { %6710 = vpow2.f32 %v4942_v36  ;;  %5120 = vadd.xlane.f32.xlu1 %v5119_v18  ;;  %v4962_v7 = vmul.f32 %v6709_v34, %v8941_v23 }
0x1e0e   :  { %6076 = vmatmul.msk.f32.gmra.mxu0 %vm214_vm0, %v4962_v7  ;;  %v6711_v16 = vpop.eup %6710 }
0x1e0f   :  { %v4953_v0 = vsel %vm214_vm0, %v6711_v16, 0.0 }
0x1e10   :  { %4954 = vadd.xlane.f32.xlu2 %v4953_v0 }
0x1e22   :  { %v4839_v9 = vpop.f32.mrf.mxu3 }
0x1e23   :  { %5187 = vrot.lane.b32.xlu0 %v4839_v9, %s9220_s22 }
0x1e26   :  { %v4673_v35 = vpop.f32.mrf.mxu0 }
0x1e2a   :  { %v5118_v6 = vpop.xlane.xlu2 %5117 }
0x1e2b   :  { %6712 = vrcp.f32 %v5118_v6  ;;  %v4842_v29 = vpop.f32.mrf.mxu3 }
0x1e2c   :  { %5189 = vrot.lane.b32.xlu0 %v4842_v29, %s9220_s22 }
0x1e2e   :  { %v4676_v47 = vpop.f32.mrf.mxu0 }
0x1e31   :  { %v6713_v57 = vpop.eup %6712 }
0x1e32   :  { %v5128_v26 = vmul.f32 %v6713_v57, %v8974_v55 }
0x1e34   :  { %6088 = vmatmul.msk.f32.gmra.mxu3 %vm214_vm0, %v5128_v26 }
0x1e35   :  { %v4845_v23 = vpop.f32.mrf.mxu3 }
0x1e36   :  { %5191 = vrot.lane.b32.xlu0 %v4845_v23, %s9220_s22  ;;  %v4679_v10 = vpop.f32.mrf.mxu0 }
0x1e3d   :  { %v4848_v2 = vpop.f32.mrf.mxu3 }
0x1e3e   :  { %5193 = vrot.lane.b32.xlu0 %v4848_v2, %s9220_s22 }
0x1e73   :  { %v9004_v43 = vpop.f32.mrf.mxu0 }
0x1e76   :  { %v5171_v51 = vpop.f32.mrf.mxu3 }
0x1e77   :  { %5219 = vrot.lane.b32.xlu2 %v5171_v51, %s9222_s18 }
0x1e7b   :  { %v5005_v62 = vpop.f32.mrf.mxu0  ;;  %v5121_v55 = vpop.xlane.xlu1 %5120 }
0x1e7c   :  { %5203 = vrot.lane.b32.xlu1 %v5005_v62, %s9221_s15  ;;  %6714 = vrcp.f32 %v5121_v55 }
0x1e7e   :  { %v5174_v8 = vpop.f32.mrf.mxu3 }
0x1e82   :  { %v6715_v3 = vpop.eup %6714 }
0x1e83   :  { %v5008_v5 = vpop.f32.mrf.mxu0  ;;  %v4955_v22 = vpop.xlane.xlu2 %4954  ;;  %v5129_v19 = vmul.f32 %v6715_v3, %v6707_v61 }
0x1e84   :  { %5205 = vrot.lane.b32.xlu2 %v5008_v5, %s9221_s15  ;;  %5221 = vrot.lane.b32.xlu1 %v5174_v8, %s9222_s18  ;;  %6716 = vrcp.f32 %v4955_v22 }
0x1e85   :  { %6089 = vmatmul.msk.f32.gmra.mxu3 %vm214_vm0, %v5129_v19 }
0x1e8a   :  { %v6717_v56 = vpop.eup %6716 }
0x1e8b   :  { %v5011_v20 = vpop.f32.mrf.mxu0  ;;  %v4963_v25 = vmul.f32 %v6717_v56, %v6711_v16 }
0x1e8c   :  { %5207 = vrot.lane.b32.xlu2 %v5011_v20, %s9221_s15 }
0x1e8d   :  { %6077 = vmatmul.msk.f32.gmra.mxu0 %vm214_vm0, %v4963_v25 }
0x1e95   :  { %v5188_v31 = vpop.permute.xlu0 %5187 }
0x1e96   :  { %v5231_v30 = vsel %vm450_vm6, %v4673_v35, %v5188_v31 }
0x1e9e   :  { %v5190_v4 = vpop.permute.xlu0 %5189 }
0x1e9f   :  { %v5232_v15 = vsel %vm450_vm6, %v4676_v47, %v5190_v4 }
0x1ea8   :  { %v5192_v46 = vpop.permute.xlu0 %5191 }
0x1ea9   :  { %v5233_v50 = vsel %vm450_vm6, %v4679_v10, %v5192_v46 }
0x1eb0   :  { %v5194_v52 = vpop.permute.xlu0 %5193 }
0x1eb1   :  { %v5234_v18 = vsel %vm450_vm6, %v9004_v43, %v5194_v52 }
0x1eb7   :  { %v5177_v32 = vpop.f32.mrf.mxu3 }
0x1eb8   :  { %5223 = vrot.lane.b32.xlu1 %v5177_v32, %s9222_s18 }
0x1ed1   :  { %v5220_v24 = vpop.permute.xlu2 %5219 }
0x1ede   :  { %v5206_v41 = vpop.permute.xlu2 %5205 }
0x1edf   :  { %v5236_v48 = vsel %vm1151_vm7, %v5232_v15, %v5206_v41 }
0x1ee6   :  { %v5208_v49 = vpop.permute.xlu2 %5207 }
0x1ee7   :  { %v5237_v21 = vsel %vm1151_vm7, %v5233_v50, %v5208_v49  ;;  %v9076_v49 = vld [vmem:[%s9211_s2 + $0x3] ss:$0 sm:$0xff] }
0x1eee   :  { %v5204_v12 = vpop.permute.xlu1 %5203 }
0x1eef   :  { %v5235_v60 = vsel %vm1151_vm7, %v5231_v30, %v5204_v12 }
0x1ef0   :  { %v5239_v59 = vsel %vm1156_vm8, %v5235_v60, %v5220_v24 }
0x1ef1   :  { %6090 = vmatmul.msk.f32.vlgmr.msra.gmra.mxu2 %vm214_vm0, %v5239_v59 }
0x1ef6   :  { %v5222_v39 = vpop.permute.xlu1 %5221 }
0x1ef7   :  { %v5240_v17 = vsel %vm1156_vm8, %v5236_v48, %v5222_v39 }
0x1ef9   :  { %6091 = vmatmul.msk.f32.gmra.mxu2 %vm214_vm0, %v5240_v17 }
0x1f08   :  { %v5180_v37 = vpop.f32.mrf.mxu3 }
0x1f09   :  { %5225 = vrot.lane.b32.xlu1 %v5180_v37, %s9222_s18 }
0x1f0a   :  { %v5014_v63 = vpop.f32.mrf.mxu0 }
0x1f0b   :  { %5209 = vrot.lane.b32.xlu2 %v5014_v63, %s9221_s15 }
0x1f2a   :  { %v5224_v11 = vpop.permute.xlu1 %5223 }
0x1f2b   :  { %v5241_v53 = vsel %vm1156_vm8, %v5237_v21, %v5224_v11 }
0x1f2c   :  { %6092 = vmatmul.msk.f32.gmra.mxu2 %vm214_vm0, %v5241_v53  ;;  %v9081_v53 = vld [vmem:[%s9212_s7 + $0x3] ss:$0 sm:$0xff] }
0x1f65   :  { %v5210_v61 = vpop.permute.xlu2 %5209 }
0x1f66   :  { %v5238_v34 = vsel %vm1151_vm7, %v5234_v18, %v5210_v61 }
0x1f74   :  { %v5275_v45 = vpop.f32.mrf.mxu2 }
0x1f75   :  { %v5276_v40 = vadd.f32 %v6369_v13, %v5275_v45 }
0x1f77   :  { %v9034_v28 = vadd.f32 %v5276_v40, %v8661_v44 }
0x1f79   :  { %v5295_v36 = vsel %vm214_vm0, %v9034_v28, 0.0 }
0x1f7a   :  { %5296 = vadd.xlane.f32.xlu0 %v5295_v36 }
0x1f7b   :  { %v5226_v16 = vpop.permute.xlu1 %5225 }
0x1f7c   :  { %v5278_v7 = vpop.f32.mrf.mxu2  ;;  %v5242_v9 = vsel %vm1156_vm8, %v5238_v34, %v5226_v16 }
0x1f7d   :  { %v5279_v0 = vadd.f32 %v6369_v13, %v5278_v7  ;;  %6093 = vmatmul.msk.f32.gmra.mxu2 %vm214_vm0, %v5242_v9 }
0x1f7f   :  { %v5288_v44 = vadd.f32 %v5279_v0, %v8666_v14 }
0x1f81   :  { %v5298_v6 = vsel %vm214_vm0, %v5288_v44, 0.0 }
0x1f82   :  { %5299 = vadd.xlane.f32.xlu2 %v5298_v6 }
0x1faf   :  { %v5281_v29 = vpop.f32.mrf.mxu2 }
0x1fb0   :  { %v5282_v57 = vadd.f32 %v6369_v13, %v5281_v29 }
0x1fb2   :  { %v9046_v26 = vadd.f32 %v5282_v57, %v8671_v1 }
0x1fb4   :  { %v5301_v23 = vsel %vm214_vm0, %v9046_v26, 0.0 }
0x1fb5   :  { %5302 = vadd.xlane.f32.xlu1 %v5301_v23 }
0x1fed   :  { %v5297_v2 = vpop.xlane.xlu0 %5296 }
0x1fee   :  { %v5307_v35 = vmul.f32 %v5297_v2, %v7016_v38 }
0x1ff0   :  { %v5311_v47 = vsub.f32 %v9034_v28, %v5307_v35 }
0x1ff2   :  { %v5315_v10 = vmul.f32 %v5311_v47, %v5311_v47 }
0x1ff4   :  { %v5319_v14 = vsel %vm214_vm0, %v5315_v10, 0.0 }
0x1ff5   :  { %5320 = vadd.xlane.f32.xlu0 %v5319_v14  ;;  %v5300_v43 = vpop.xlane.xlu2 %5299 }
0x1ff6   :  { %v5308_v51 = vmul.f32 %v5300_v43, %v7016_v38 }
0x1ff8   :  { %v9054_v62 = vsub.f32 %v5288_v44, %v5308_v51 }
0x1ffa   :  { %v5316_v1 = vmul.f32 %v9054_v62, %v9054_v62 }
0x1ffc   :  { %v5322_v55 = vsel %vm214_vm0, %v5316_v1, 0.0 }
0x1ffd   :  { %5323 = vadd.xlane.f32.xlu2 %v5322_v55 }
0x2000   :  { %v5284_v3 = vpop.f32.mrf.mxu2 }
0x2001   :  { %v5285_v8 = vadd.f32 %v6369_v13, %v5284_v3 }
0x2003   :  { %v5290_v5 = vadd.f32 %v5285_v8, %v8676_v42  ;;  %v6097_v42 = vld [vmem:[%s9227_s28 + $0x28] sm:$0xff]  ;;  %v6116_v8 = vld [vmem:[%s9228_s1 + $0xf8] sm:$0xff] }
0x2004   :  { %5452 = vmatpush.msrb.mxu0 %v6097_v42  ;;  %5646 = vmatpush.msrb.mxu1 %v6116_v8 }
0x2005   :  { %v5304_v22 = vsel %vm214_vm0, %v5290_v5, 0.0 }
0x2006   :  { %5305 = vadd.xlane.f32.xlu0 %v5304_v22  ;;  %5453 = vmatpush.msrb.mxu0 %v6096_v54  ;;  %v6114_v22 = vld [vmem:[%s9228_s1 + $0xe8] sm:$0xff]  ;;  %v6111_v54 = vld [vmem:[%s9228_s1 + $0xd0] sm:$0xff] }
0x2028   :  { %v5303_v19 = vpop.xlane.xlu1 %5302 }
0x2029   :  { %v5309_v56 = vmul.f32 %v5303_v19, %v7016_v38  ;;  %v9103_v19 = vld [vmem:[%s9229_s10 + $0x1] ss:$0 sm:$0xff] }
0x202b   :  { %v9063_v20 = vsub.f32 %v9046_v26, %v5309_v56 }
0x202d   :  { %v5317_v25 = vmul.f32 %v9063_v20, %v9063_v20 }
0x202f   :  { %v5325_v32 = vsel %vm214_vm0, %v5317_v25, 0.0 }
0x2030   :  { %5326 = vadd.xlane.f32.xlu1 %v5325_v32 }
0x2068   :  { %v5321_v58 = vpop.xlane.xlu0 %5320 }
0x2069   :  { %v5331_v31 = vmul.f32 %v5321_v58, %v7016_v38 }
0x206b   :  { %v5335_v24 = vadd.f32 1e-06, %v5331_v31 }
0x206d   :  { %6718 = vrsqrt.f32 %v5335_v24  ;;  %vm5345_vm7 = vweird.f32 %v5335_v24 }
0x2070   :  { %v5324_v30 = vpop.xlane.xlu2 %5323 }
0x2071   :  { %v5332_v12 = vmul.f32 %v5324_v30, %v7016_v38 }
0x2073   :  { %v6719_v60 = vpop.eup %6718  ;;  %v5336_v59 = vadd.f32 1e-06, %v5332_v12 }
0x2074   :  { %v5340_v4 = vmul.f32 %v6719_v60, %v5335_v24  ;;  %vm5346_vm6 = vweird.f32 %v6719_v60  ;;  %v6110_v24 = vld [vmem:[%s9228_s1 + $0xc8] sm:$0xff] }
0x2075   :  { %6720 = vrsqrt.f32 %v5336_v59  ;;  %vm5347_vm8 = vmor %vm5345_vm7, %vm5346_vm6  ;;  %vm5355_vm10 = vweird.f32 %v5336_v59 }
0x2076   :  { %v5341_v41 = vmul.f32 %v6719_v60, %v5340_v4 }
0x2078   :  { %v5342_v15 = vmul.f32 0.5, %v5341_v41 }
0x2079   :  { %v5306_v39 = vpop.xlane.xlu0 %5305 }
0x207a   :  { %v5343_v48 = vsub.f32 1.5, %v5342_v15  ;;  %v5310_v37 = vmul.f32 %v5306_v39, %v7016_v38  ;;  %v6108_v15 = vld [vmem:[%s9228_s1 + $0xb8] sm:$0xff] }
0x207b   :  { %v6721_v17 = vpop.eup %6720 }
0x207c   :  { %v5344_v63 = vmul.f32 %v6719_v60, %v5343_v48  ;;  %v5350_v46 = vmul.f32 %v6721_v17, %v5336_v59  ;;  %v9078_v50 = vsub.f32 %v5290_v5, %v5310_v37  ;;  %vm5356_vm9 = vweird.f32 %v6721_v17  ;;  %v6115_v5 = vld [vmem:[%s9228_s1 + $0xf0] sm:$0xff] }
0x207d   :  { %vm5357_vm11 = vmor %vm5355_vm10, %vm5356_vm9  ;;  %5647 = vmatpush.msrb.mxu1 %v6115_v5 }
0x207e   :  { %v5348_v21 = vsel %vm5347_vm8, %v6719_v60, %v5344_v63  ;;  %v5351_v11 = vmul.f32 %v6721_v17, %v5350_v46  ;;  %v5318_v45 = vmul.f32 %v9078_v50, %v9078_v50  ;;  %v6109_v60 = vld [vmem:[%s9228_s1 + $0xc0] sm:$0xff]  ;;  %v6107_v46 = vld [vmem:[%s9228_s1 + $0xb0] sm:$0xff] }
0x207f   :  { %v5379_v13 = vmul.f32 %v5348_v21, %v5311_v47  ;;  %5648 = vmatpush.msrb.mxu1 %v6114_v22 }
0x2080   :  { %v5352_v40 = vmul.f32 0.5, %v5351_v11  ;;  %v5328_v61 = vsel %vm214_vm0, %v5318_v45, 0.0 }
0x2081   :  { %v5386_v52 = vmul.f32 %v9076_v49, %v5379_v13  ;;  %5329 = vadd.xlane.f32.xlu2 %v5328_v61 }
0x2082   :  { %v5353_v36 = vsub.f32 1.5, %v5352_v40  ;;  %v6106_v40 = vld [vmem:[%s9228_s1 + $0xa8] sm:$0xff] }
0x2083   :  { %v5393_v18 = vadd.f32 %v9081_v53, %v5386_v52 }
0x2084   :  { %v5354_v34 = vmul.f32 %v6721_v17, %v5353_v36 }
0x2085   :  { %6118 = vmatmul.msk.f32.vlgmr.msrb.gmra.mxu0 %vm214_vm0, %v5393_v18  ;;  %v6105_v18 = vld [vmem:[%s9228_s1 + $0xa0] sm:$0xff] }
0x2086   :  { %v5358_v7 = vsel %vm5357_vm11, %v6721_v17, %v5354_v34 }
0x2087   :  { %v5380_v16 = vmul.f32 %v5358_v7, %v9054_v62 }
0x2089   :  { %v5387_v0 = vmul.f32 %v9076_v49, %v5380_v16 }
0x208b   :  { %v5394_v9 = vadd.f32 %v9081_v53, %v5387_v0 }
0x208d   :  { %6119 = vmatmul.msk.f32.gmra.mxu0 %vm214_vm0, %v5394_v9 }
0x20a3   :  { %v5327_v44 = vpop.xlane.xlu1 %5326 }
0x20a4   :  { %v5333_v6 = vmul.f32 %v5327_v44, %v7016_v38 }
0x20a6   :  { %v5337_v29 = vadd.f32 1e-06, %v5333_v6  ;;  %v6103_v6 = vld [vmem:[%s9228_s1 + $0x90] sm:$0xff] }
0x20a8   :  { %6722 = vrsqrt.f32 %v5337_v29  ;;  %vm5365_vm13 = vweird.f32 %v5337_v29 }
0x20ae   :  { %v6723_v57 = vpop.eup %6722 }
0x20af   :  { %v5360_v23 = vmul.f32 %v6723_v57, %v5337_v29  ;;  %vm5366_vm12 = vweird.f32 %v6723_v57 }
0x20b0   :  { %vm5367_vm14 = vmor %vm5365_vm13, %vm5366_vm12 }
0x20b1   :  { %v5361_v2 = vmul.f32 %v6723_v57, %v5360_v23 }
0x20b3   :  { %v5362_v35 = vmul.f32 0.5, %v5361_v2  ;;  %v6102_v2 = vld [vmem:[%s9228_s1 + $0x88] sm:$0xff] }
0x20b5   :  { %v5363_v47 = vsub.f32 1.5, %v5362_v35 }
0x20b7   :  { %v5364_v10 = vmul.f32 %v6723_v57, %v5363_v47 }
0x20b9   :  { %v5368_v14 = vsel %vm5367_vm14, %v6723_v57, %v5364_v10 }
0x20ba   :  { %v5381_v43 = vmul.f32 %v5368_v14, %v9063_v20  ;;  %v6113_v20 = vld [vmem:[%s9228_s1 + $0xe0] sm:$0xff] }
0x20bb   :  { %5649 = vmatpush.msrb.mxu1 %v6113_v20  ;;  %v6101_v14 = vld [vmem:[%s9228_s1 + $0x80] sm:$0xff] }
0x20bc   :  { %v5388_v51 = vmul.f32 %v9076_v49, %v5381_v43 }
0x20bd   :  { %5650 = vmatpush.msrb.mxu1 %v6112_v27 }
0x20be   :  { %v5395_v62 = vadd.f32 %v9081_v53, %v5388_v51 }
0x20bf   :  { %5651 = vmatpush.msrb.mxu1 %v6111_v54 }
0x20c0   :  { %6120 = vmatmul.msk.f32.gmra.mxu0 %vm214_vm0, %v5395_v62 }
0x20c1   :  { %5652 = vmatpush.msrb.mxu1 %v6110_v24 }
0x20c3   :  { %5653 = vmatpush.msrb.mxu1 %v6109_v60 }
0x20c5   :  { %5654 = vmatpush.msrb.mxu1 %v6108_v15 }
0x20c7   :  { %5655 = vmatpush.msrb.mxu1 %v6107_v46 }
0x20c9   :  { %5656 = vmatpush.msrb.mxu1 %v6106_v40 }
0x20cb   :  { %5657 = vmatpush.msrb.mxu1 %v6105_v18 }
0x20f4   :  { %v5330_v1 = vpop.xlane.xlu2 %5329 }
0x20f5   :  { %v5334_v55 = vmul.f32 %v5330_v1, %v7016_v38 }
0x20f7   :  { %v5338_v3 = vadd.f32 1e-06, %v5334_v55 }
0x20f9   :  { %6724 = vrsqrt.f32 %v5338_v3  ;;  %vm5375_vm1 = vweird.f32 %v5338_v3 }
0x20ff   :  { %v6725_v56 = vpop.eup %6724 }
0x2100   :  { %v5370_v25 = vmul.f32 %v6725_v56, %v5338_v3  ;;  %vm5376_vm15 = vweird.f32 %v6725_v56 }
0x2101   :  { %vm5377_vm2 = vmor %vm5375_vm1, %vm5376_vm15 }
0x2102   :  { %v5455_v32 = vpop.f32.mrf.mxu0  ;;  %v5371_v33 = vmul.f32 %v6725_v56, %v5370_v25 }
0x2103   :  { %v9108_v42 = vadd.f32 %v9103_v19, %v5455_v32 }
0x2104   :  { %v5372_v58 = vmul.f32 0.5, %v5371_v33 }
0x2105   :  { %v9112_v31 = vmul.f32 0.70710677, %v9108_v42 }
0x2106   :  { %v5373_v30 = vsub.f32 1.5, %v5372_v58 }
0x2107   :  { %v5475_v12 = vmul.f32 %v9112_v31, %v9112_v31 }
0x2108   :  { %v5374_v59 = vmul.f32 %v6725_v56, %v5373_v30 }
0x2109   :  { %v9118_v4 = vmin.f32 %v5475_v12, 16.0 }
0x210a   :  { %v5458_v41 = vpop.f32.mrf.mxu0  ;;  %v5378_v48 = vsel %vm5377_vm2, %v6725_v56, %v5374_v59 }
0x210b   :  { %v5477_v39 = vmul.f32 2.1237322e-06, %v9118_v4  ;;  %v5488_v17 = vmul.f32 3.8918573e-05, %v9118_v4  ;;  %v9124_v37 = vadd.f32 %v9103_v19, %v5458_v41  ;;  %v5382_v63 = vmul.f32 %v5378_v48, %v9078_v50 }
0x210d   :  { %v5478_v21 = vadd.f32 0.00028619796, %v5477_v39  ;;  %v5489_v11 = vadd.f32 0.001143296, %v5488_v17  ;;  %v9129_v13 = vmul.f32 0.70710677, %v9124_v37  ;;  %v5389_v45 = vmul.f32 %v9076_v49, %v5382_v63 }
0x210e   :  { %v6104_v49 = vld [vmem:[%s9228_s1 + $0x98] sm:$0xff] }
0x210f   :  { %v5479_v52 = vmul.f32 %v5478_v21, %v9118_v4  ;;  %v5490_v61 = vmul.f32 %v5489_v11, %v9118_v4  ;;  %v5515_v50 = vmul.f32 %v9129_v13, %v9129_v13  ;;  %v5396_v36 = vadd.f32 %v9081_v53, %v5389_v45  ;;  %5658 = vmatpush.msrb.mxu1 %v6104_v49 }
0x2110   :  { %v5467_v49 = vmul.f32 0.5, %v9108_v42 }
0x2111   :  { %v5491_v34 = vadd.f32 0.014752088, %v5490_v61  ;;  %v5480_v7 = vadd.f32 0.0036580483, %v5479_v52  ;;  %v5516_v16 = vmin.f32 %v5515_v50, 16.0  ;;  %6121 = vmatmul.msk.f32.gmra.mxu0 %vm214_vm0, %v5396_v36  ;;  %5659 = vmatpush.msrb.mxu1 %v6103_v6 }
0x2113   :  { %v5492_v0 = vmul.f32 %v5491_v34, %v9118_v4  ;;  %v5517_v9 = vmul.f32 2.1237322e-06, %v5516_v16  ;;  %v5528_v44 = vmul.f32 3.8918573e-05, %v5516_v16  ;;  %v5481_v53 = vmul.f32 %v5480_v7, %v9118_v4  ;;  %5660 = vmatpush.msrb.mxu1 %v6102_v2 }
0x2115   :  { %v5493_v29 = vadd.f32 0.112945676, %v5492_v0  ;;  %v5518_v57 = vadd.f32 0.00028619796, %v5517_v9  ;;  %v5529_v23 = vadd.f32 0.001143296, %v5528_v44  ;;  %5661 = vmatpush.msrb.mxu1 %v6101_v14 }
0x2116   :  { %v5482_v51 = vadd.f32 0.05243302, %v5481_v53 }
0x2117   :  { %v5494_v35 = vmul.f32 %v5493_v29, %v9118_v4  ;;  %v5519_v47 = vmul.f32 %v5518_v57, %v5516_v16  ;;  %v5530_v10 = vmul.f32 %v5529_v23, %v5516_v16  ;;  %v5468_v23 = vmul.f32 0.5, %v9124_v37 }
0x2118   :  { %v5483_v5 = vmul.f32 %v5482_v51, %v9118_v4 }
0x2119   :  { %v5495_v43 = vadd.f32 0.4994258, %v5494_v35  ;;  %v5531_v62 = vadd.f32 0.014752088, %v5530_v10  ;;  %v5520_v55 = vadd.f32 0.0036580483, %v5519_v47 }
0x211a   :  { %v5484_v25 = vadd.f32 0.18741608, %v5483_v5 }
0x211b   :  { %v5496_v1 = vmul.f32 %v5495_v43, %v9118_v4  ;;  %v5532_v3 = vmul.f32 %v5531_v62, %v5516_v16  ;;  %v5521_v56 = vmul.f32 %v5520_v55, %v5516_v16 }
0x211c   :  { %v5485_v58 = vmul.f32 %v5484_v25, %v9118_v4 }
0x211d   :  { %v5497_v8 = vadd.f32 1.0, %v5496_v1  ;;  %v5533_v22 = vadd.f32 0.112945676, %v5532_v3  ;;  %v5522_v27 = vadd.f32 0.05243302, %v5521_v56 }
0x211e   :  { %v5486_v41 = vadd.f32 1.1283791, %v5485_v58 }
0x211f   :  { %6726 = vrcp.f32 %v5497_v8  ;;  %v5534_v20 = vmul.f32 %v5533_v22, %v5516_v16  ;;  %v5523_v12 = vmul.f32 %v5522_v27, %v5516_v16  ;;  %v5509_v59 = vand.u32 2147483648, %v5497_v8 }
0x2120   :  { %v5507_v48 = vand.u32 2147483647, %v5497_v8  ;;  %vm5503_vm3 = vweird.f32 %v5497_v8  ;;  %v5487_v21 = vmul.f32 %v5486_v41, %v9112_v31 }
0x2121   :  { %v5535_v32 = vadd.f32 0.4994258, %v5534_v20  ;;  %v5524_v39 = vadd.f32 0.18741608, %v5523_v12  ;;  %v5510_v63 = vor.u32 1.1754944e-38, %v5509_v59 }
0x2122   :  { %vm5508_vm5 = vcmp.eq.f32.partialorder %v5507_v48, 8.507059e+37 }
0x2123   :  { %v5536_v33 = vmul.f32 %v5535_v32, %v5516_v16  ;;  %v5525_v45 = vmul.f32 %v5524_v39, %v5516_v16 }
0x2125   :  { %v6727_v54 = vpop.eup %6726  ;;  %v5537_v30 = vadd.f32 1.0, %v5536_v33  ;;  %v5526_v18 = vadd.f32 1.1283791, %v5525_v45 }
0x2126   :  { %v5499_v24 = vmul.f32 %v6727_v54, %v5497_v8  ;;  %vm5504_vm0 = vweird.f32 %v6727_v54 }
0x2127   :  { %6728 = vrcp.f32 %v5537_v30  ;;  %vm5505_vm4 = vmor %vm5503_vm3, %vm5504_vm0  ;;  %v5549_v36 = vand.u32 2147483648, %v5537_v30  ;;  %v5547_v7 = vand.u32 2147483647, %v5537_v30  ;;  %vm5543_vm7 = vweird.f32 %v5537_v30 }
0x2128   :  { %v5500_v60 = vsub.f32 1.0, %v5499_v24  ;;  %v5527_v6 = vmul.f32 %v5526_v18, %v9129_v13  ;;  %vm5678_vm0 = vcmask 1040384   ;;  %vm5682_vm3 = vcmask 254976  }
0x2129   :  { %v5550_v31 = vor.u32 1.1754944e-38, %v5549_v36  ;;  %vm5548_vm9 = vcmp.eq.f32.partialorder %v5547_v7, 8.507059e+37 }
0x212a   :  { %v5501_v15 = vmul.f32 %v6727_v54, %v5500_v60 }
0x212c   :  { %v5502_v17 = vadd.f32 %v6727_v54, %v5501_v15 }
0x212d   :  { %v6729_v46 = vpop.eup %6728 }
0x212e   :  { %v5506_v11 = vsel %vm5505_vm4, %v6727_v54, %v5502_v17  ;;  %v5539_v40 = vmul.f32 %v6729_v46, %v5537_v30  ;;  %vm5544_vm6 = vweird.f32 %v6729_v46 }
0x212f   :  { %v5511_v4 = vsel %vm5508_vm5, %v5510_v63, %v5506_v11  ;;  %vm5545_vm8 = vmor %vm5543_vm7, %vm5544_vm6 }
0x2130   :  { %v5512_v52 = vmul.f32 %v5511_v4, %v5487_v21  ;;  %v5540_v61 = vsub.f32 1.0, %v5539_v40 }
0x2132   :  { %v6122_v50 = vclamps-f32 %v5512_v52, 1.0  ;;  %v5541_v34 = vmul.f32 %v6729_v46, %v5540_v61 }
0x2134   :  { %v5635_v0 = vadd.f32 1.0, %v6122_v50  ;;  %v5542_v9 = vadd.f32 %v6729_v46, %v5541_v34 }
0x2136   :  { %v5639_v44 = vmul.f32 %v5635_v0, %v5467_v49  ;;  %v5546_v16 = vsel %vm5545_vm8, %v6729_v46, %v5542_v9 }
0x2137   :  { %v5551_v29 = vsel %vm5548_vm9, %v5550_v31, %v5546_v16 }
0x2138   :  { %5662 = vmatmul.f32.vlgmr.msrb.gmra.mxu1 %v5639_v44  ;;  %v5552_v53 = vmul.f32 %v5551_v29, %v5527_v6 }
0x213a   :  { %v6123_v57 = vclamps-f32 %v5552_v53, 1.0 }
0x213c   :  { %v5636_v35 = vadd.f32 1.0, %v6123_v57 }
0x213d   :  { %v5461_v2 = vpop.f32.mrf.mxu0 }
0x213e   :  { %v5462_v42 = vadd.f32 %v9103_v19, %v5461_v2  ;;  %v5640_v47 = vmul.f32 %v5636_v35, %v5468_v23 }
0x2140   :  { %v5473_v10 = vmul.f32 0.70710677, %v5462_v42  ;;  %5665 = vmatmul.f32.gmra.mxu1 %v5640_v47  ;;  %v5469_v45 = vmul.f32 0.5, %v5462_v42 }
0x2142   :  { %v5555_v14 = vmul.f32 %v5473_v10, %v5473_v10 }
0x2144   :  { %v5556_v43 = vmin.f32 %v5555_v14, 16.0 }
0x2146   :  { %v5557_v51 = vmul.f32 2.1237322e-06, %v5556_v43  ;;  %v5568_v62 = vmul.f32 3.8918573e-05, %v5556_v43 }
0x2148   :  { %v5558_v13 = vadd.f32 0.00028619796, %v5557_v51  ;;  %v5569_v1 = vadd.f32 0.001143296, %v5568_v62 }
0x214a   :  { %v5559_v55 = vmul.f32 %v5558_v13, %v5556_v43  ;;  %v5570_v3 = vmul.f32 %v5569_v1, %v5556_v43 }
0x214c   :  { %v5571_v8 = vadd.f32 0.014752088, %v5570_v3  ;;  %v5560_v5 = vadd.f32 0.0036580483, %v5559_v55 }
0x214e   :  { %v5572_v22 = vmul.f32 %v5571_v8, %v5556_v43  ;;  %v5561_v37 = vmul.f32 %v5560_v5, %v5556_v43 }
0x2150   :  { %v5573_v56 = vadd.f32 0.112945676, %v5572_v22  ;;  %v5562_v32 = vadd.f32 0.05243302, %v5561_v37 }
0x2152   :  { %v5574_v20 = vmul.f32 %v5573_v56, %v5556_v43  ;;  %v5563_v54 = vmul.f32 %v5562_v32, %v5556_v43 }
0x2154   :  { %v5575_v25 = vadd.f32 0.4994258, %v5574_v20  ;;  %v5564_v58 = vadd.f32 0.18741608, %v5563_v54 }
0x2156   :  { %v5576_v27 = vmul.f32 %v5575_v25, %v5556_v43  ;;  %v5565_v30 = vmul.f32 %v5564_v58, %v5556_v43 }
0x2158   :  { %v5577_v33 = vadd.f32 1.0, %v5576_v27  ;;  %v5566_v41 = vadd.f32 1.1283791, %v5565_v30 }
0x215a   :  { %6730 = vrcp.f32 %v5577_v33  ;;  %v5589_v59 = vand.u32 2147483648, %v5577_v33  ;;  %v5587_v48 = vand.u32 2147483647, %v5577_v33  ;;  %vm5583_vm11 = vweird.f32 %v5577_v33 }
0x215b   :  { %v5567_v63 = vmul.f32 %v5566_v41, %v5473_v10 }
0x215c   :  { %v5590_v17 = vor.u32 1.1754944e-38, %v5589_v59  ;;  %vm5588_vm13 = vcmp.eq.f32.partialorder %v5587_v48, 8.507059e+37 }
0x2160   :  { %v6731_v24 = vpop.eup %6730 }
0x2161   :  { %v5579_v12 = vmul.f32 %v6731_v24, %v5577_v33  ;;  %vm5584_vm10 = vweird.f32 %v6731_v24 }
0x2162   :  { %vm5585_vm12 = vmor %vm5583_vm11, %vm5584_vm10 }
0x2163   :  { %v5580_v60 = vsub.f32 1.0, %v5579_v12 }
0x2165   :  { %v5581_v15 = vmul.f32 %v6731_v24, %v5580_v60 }
0x2167   :  { %v5582_v39 = vadd.f32 %v6731_v24, %v5581_v15 }
0x2169   :  { %v5586_v46 = vsel %vm5585_vm12, %v6731_v24, %v5582_v39  ;;  %v6373_v24 = vld [vmem:[%s6959_s20 + $0x1] ss:$0 sm:$0xff] }
0x216a   :  { %v5591_v21 = vsel %vm5588_vm13, %v5590_v17, %v5586_v46 }
0x216b   :  { %v5592_v11 = vmul.f32 %v5591_v21, %v5567_v63 }
0x216d   :  { %v6124_v4 = vclamps-f32 %v5592_v11, 1.0 }
0x216f   :  { %v5637_v40 = vadd.f32 1.0, %v6124_v4 }
0x2171   :  { %v5641_v52 = vmul.f32 %v5637_v40, %v5469_v45 }
0x2173   :  { %5667 = vmatmul.f32.gmra.mxu1 %v5641_v52 }
0x218e   :  { %v5464_v61 = vpop.f32.mrf.mxu0 }
0x218f   :  { %v5465_v50 = vadd.f32 %v9103_v19, %v5464_v61 }
0x2191   :  { %v5474_v36 = vmul.f32 0.70710677, %v5465_v50  ;;  %v5470_v33 = vmul.f32 0.5, %v5465_v50 }
0x2193   :  { %v5595_v18 = vmul.f32 %v5474_v36, %v5474_v36 }
0x2195   :  { %v5596_v34 = vmin.f32 %v5595_v18, 16.0 }
0x2197   :  { %v5597_v7 = vmul.f32 2.1237322e-06, %v5596_v34  ;;  %v5608_v49 = vmul.f32 3.8918573e-05, %v5596_v34 }
0x2199   :  { %v5598_v0 = vadd.f32 0.00028619796, %v5597_v7  ;;  %v5609_v9 = vadd.f32 0.001143296, %v5608_v49 }
0x219b   :  { %v5599_v44 = vmul.f32 %v5598_v0, %v5596_v34  ;;  %v5610_v31 = vmul.f32 %v5609_v9, %v5596_v34  ;;  %v6375_v0 = vld [vmem:[%s6969_s4] ss:$0 sm:$0xff] }
0x219d   :  { %v5611_v6 = vadd.f32 0.014752088, %v5610_v31  ;;  %v5600_v16 = vadd.f32 0.0036580483, %v5599_v44 }
0x219f   :  { %v5612_v29 = vmul.f32 %v5611_v6, %v5596_v34  ;;  %v5601_v57 = vmul.f32 %v5600_v16, %v5596_v34 }
0x21a1   :  { %v5613_v53 = vadd.f32 0.112945676, %v5612_v29  ;;  %v5602_v35 = vadd.f32 0.05243302, %v5601_v57 }
0x21a3   :  { %v5614_v23 = vmul.f32 %v5613_v53, %v5596_v34  ;;  %v5603_v19 = vmul.f32 %v5602_v35, %v5596_v34 }
0x21a5   :  { %v5615_v2 = vadd.f32 0.4994258, %v5614_v23  ;;  %v5604_v10 = vadd.f32 0.18741608, %v5603_v19 }
0x21a7   :  { %v5616_v42 = vmul.f32 %v5615_v2, %v5596_v34  ;;  %v5605_v43 = vmul.f32 %v5604_v10, %v5596_v34  ;;  %v6374_v34 = vld [vmem:[%s6964_s12] ss:$0 sm:$0xff] }
0x21a9   :  { %v5617_v47 = vadd.f32 1.0, %v5616_v42  ;;  %v5606_v55 = vadd.f32 1.1283791, %v5605_v43 }
0x21ab   :  { %6732 = vrcp.f32 %v5617_v47  ;;  %v5629_v1 = vand.u32 2147483648, %v5617_v47  ;;  %v5627_v8 = vand.u32 2147483647, %v5617_v47  ;;  %vm5623_vm15 = vweird.f32 %v5617_v47 }
0x21ac   :  { %v5607_v56 = vmul.f32 %v5606_v55, %v5474_v36 }
0x21ad   :  { %v5630_v22 = vor.u32 1.1754944e-38, %v5629_v1  ;;  %vm5628_vm2 = vcmp.eq.f32.partialorder %v5627_v8, 8.507059e+37 }
0x21b1   :  { %v6733_v14 = vpop.eup %6732 }
0x21b2   :  { %v5619_v51 = vmul.f32 %v6733_v14, %v5617_v47  ;;  %vm5624_vm14 = vweird.f32 %v6733_v14 }
0x21b3   :  { %vm5625_vm1 = vmor %vm5623_vm15, %vm5624_vm14 }
0x21b4   :  { %v5620_v62 = vsub.f32 1.0, %v5619_v51 }
0x21b5   :  { %v5663_v13 = vpop.f32.mrf.mxu1 }
0x21b6   :  { %v5621_v3 = vmul.f32 %v6733_v14, %v5620_v62  ;;  %v5664_v12 = vadd.f32 %v6373_v24, %v5663_v13 }
0x21b8   :  { %v5622_v5 = vadd.f32 %v6733_v14, %v5621_v3  ;;  %v5673_v41 = vadd.f32 %v5664_v12, %v9034_v28 }
0x21ba   :  { %v5626_v37 = vsel %vm5625_vm1, %v6733_v14, %v5622_v5 }
0x21bb   :  { %v5631_v20 = vsel %vm5628_vm2, %v5630_v22, %v5626_v37 }
0x21bc   :  { %v5632_v25 = vmul.f32 %v5631_v20, %v5607_v56 }
0x21bd   :  { %v5666_v32 = vpop.f32.mrf.mxu1 }
0x21be   :  { %v6125_v27 = vclamps-f32 %v5632_v25, 1.0 }
0x21c0   :  { %v5638_v54 = vadd.f32 1.0, %v6125_v27 }
0x21c2   :  { %v5642_v58 = vmul.f32 %v5638_v54, %v5470_v33 }
0x21c4   :  { %5670 = vmatmul.f32.gmra.mxu1 %v5642_v58 }
0x21f0   :  { %v5668_v30 = vpop.f32.mrf.mxu1 }
0x21f1   :  { %v5669_v60 = vadd.f32 %v6373_v24, %v5668_v30 }
0x21f3   :  { %v5674_v59 = vadd.f32 %v5669_v60, %v9046_v26 }
0x21f5   :  { %v5676_v15 = vrot.slane %v5674_v59, 7 }
0x21f7   :  { %v5679_v48 = vsel %vm5678_vm0, %v5673_v41, %v5676_v15 }
0x21f8   :  { %v5683_v39 = vsel %vm5682_vm3, %v5679_v48, 0.0 }
0x21f9   :  { %5684 = vadd.xlane.f32.xlu1 %v5683_v39 }
0x2241   :  { %v5671_v17 = vpop.f32.mrf.mxu1 }
0x226c   :  { %v5685_v63 = vpop.xlane.xlu1 %5684 }
0x226d   :  { %v5686_v46 = vmul.f32 %v5685_v63, %v7016_v38 }
0x226f   :  { %v5687_v21 = vsub.f32 %v5679_v48, %v5686_v46 }
0x2271   :  { %v5688_v11 = vmul.f32 %v5687_v21, %v5687_v21 }
0x2273   :  { %v5689_v4 = vsel %vm5682_vm3, %v5688_v11, 0.0 }
0x2274   :  { %5690 = vadd.xlane.f32.xlu0 %v5689_v4 }
0x22e7   :  { %v5691_v26 = vpop.xlane.xlu0 %5690 }
0x22e8   :  { %v5692_v28 = vmul.f32 %v5691_v26, %v7016_v38 }
0x22ea   :  { %v5693_v45 = vadd.f32 1e-06, %v5692_v28 }
0x22ec   :  { %6734 = vrsqrt.f32 %v5693_v45  ;;  %vm5700_vm5 = vweird.f32 %v5693_v45 }
0x22f2   :  { %v6735_v40 = vpop.eup %6734 }
0x22f3   :  { %v5695_v52 = vmul.f32 %v6735_v40, %v5693_v45  ;;  %vm5701_vm4 = vweird.f32 %v6735_v40 }
0x22f4   :  { %vm5702_vm6 = vmor %vm5700_vm5, %vm5701_vm4 }
0x22f5   :  { %v5696_v61 = vmul.f32 %v6735_v40, %v5695_v52 }
0x22f7   :  { %v5697_v50 = vmul.f32 0.5, %v5696_v61 }
0x22f9   :  { %v5698_v36 = vsub.f32 1.5, %v5697_v50 }
0x22fb   :  { %v5699_v18 = vmul.f32 %v6735_v40, %v5698_v36 }
0x22fd   :  { %v5703_v7 = vsel %vm5702_vm6, %v6735_v40, %v5699_v18 }
0x22fe   :  { %v5704_v49 = vmul.f32 %v5703_v7, %v5687_v21 }
0x2300   :  { %v5708_v38 = vmul.f32 %v6374_v34, %v5704_v49 }
0x2302   :  { %v5712_v9 = vadd.f32 %v6375_v0, %v5708_v38 }
0x2304   :  { %5713 = vst.msk [vmem:[#allocation2] sm:$0x3] %vm5682_vm3, %v5712_v9 }
0x2305   :  { %6767 = shalt.err (!%p6764_p4)
}
0x2306   :  { %5724 = dma.vmem_to_hbm [thread:$0]  %s5720_s14, 32, %s5722_s19, [#allocation3]  }
0x2307   :  { %6768 = dma.done.wait [#allocation3], 32  }
0x2308   :  { %6769 = vsyncadd [#allocation3], 4294967264 }
0x2309   :  { %5729 = vsyncpa [#allocation3], 1 }

</bundles_post_ra>
